<compile_context>
chip_gen: v5e
topology: v5e:2x2
jax: 0.10.0
libtpu: 0.0.40
codegen_flags: <defaults>
</compile_context>

<pallas_src>
import functools

import jax
import jax.numpy as jnp
from jax.experimental import pallas as pl
from jax.experimental.pallas import tpu as pltpu

EPS = 1e-5
MATMUL_DTYPE = jnp.float32   # set to jnp.bfloat16 on v5e/v6e/v7x (loosen tol)


# ---------------------------------------------------------------------------
# In-kernel 3x3 "SAME" conv for one image: nine shifted MXU matmuls.
# ---------------------------------------------------------------------------
def _conv9(x_ref, w_ref, H, W):
    """x_ref: Ref (1, H+2, W+2, Cin) zero-padded image block.
    w_ref: Ref (9, Cin, Cout), (dy, dx)-major.  Returns f32 (H*W, Cout)."""
    cin = x_ref.shape[-1]
    cout = w_ref.shape[-1]
    acc = jnp.zeros((H * W, cout), jnp.float32)
    for dy in range(3):
        for dx in range(3):
            # Static shifted window of the padded image -> (H*W, Cin).
            a = x_ref[0, dy:dy + H, dx:dx + W, :].reshape(H * W, cin)
            acc = acc + jnp.dot(a, w_ref[dy * 3 + dx],
                                preferred_element_type=jnp.float32)
    return acc


# ---------------------------------------------------------------------------
# Kernel A: conv (recomputed later) + per-image centered BN partials.
# ---------------------------------------------------------------------------
def _conv_stats_kernel(x_ref, w_ref, stats_ref, *, H, W):
    y = _conv9(x_ref, w_ref, H, W)                       # (H*W, Cout) f32
    m = jnp.mean(y, axis=0, keepdims=True)               # per-image mean
    c2 = jnp.sum((y - m) ** 2, axis=0, keepdims=True)    # centered sum-sq
    stats_ref[0] = jnp.concatenate([m, c2], axis=0)      # (2, Cout)


def _conv_stats(xp, w9):
    N, Hp, Wp, cin = xp.shape
    H, W = Hp - 2, Wp - 2
    cout = w9.shape[-1]
    itemsize = jnp.dtype(xp.dtype).itemsize
    cost = pl.CostEstimate(
        flops=2 * N * H * W * 9 * cin * cout,
        transcendentals=0,
        bytes_accessed=(xp.size + N * w9.size) * itemsize + N * 2 * cout * 4,
    )
    return pl.pallas_call(
        functools.partial(_conv_stats_kernel, H=H, W=W),
        grid=(N,),
        in_specs=[
            pl.BlockSpec((1, Hp, Wp, cin), lambda n: (n, 0, 0, 0)),
            pl.BlockSpec((9, cin, cout), lambda n: (0, 0, 0)),   # resident
        ],
        out_specs=pl.BlockSpec((1, 2, cout), lambda n: (n, 0, 0)),
        out_shape=jax.ShapeDtypeStruct((N, 2, cout), jnp.float32),
        compiler_params=pltpu.CompilerParams(
            dimension_semantics=("parallel",),
            vmem_limit_bytes=32 * 1024 * 1024,
        ),
        cost_estimate=cost,
    )(xp, w9)


# ---------------------------------------------------------------------------
# Kernel B: recompute conv, apply BN affine + ReLU, write final activation.
# ---------------------------------------------------------------------------
def _conv_bn_relu_kernel(x_ref, w_ref, scale_ref, shift_ref, o_ref, *, H, W):
    y = _conv9(x_ref, w_ref, H, W)                       # (H*W, Cout) f32
    o_ref[...] = jnp.maximum(y * scale_ref[...] + shift_ref[...], 0.0).astype(
        o_ref.dtype)


def _conv_bn_relu(xp, w9, scale, shift):
    N, Hp, Wp, cin = xp.shape
    H, W = Hp - 2, Wp - 2
    cout = w9.shape[-1]
    itemsize = jnp.dtype(xp.dtype).itemsize
    cost = pl.CostEstimate(
        flops=2 * N * H * W * 9 * cin * cout + 3 * N * H * W * cout,
        transcendentals=0,
        bytes_accessed=(xp.size + N * w9.size) * itemsize
        + (N * H * W + 2) * cout * 4,
    )
    return pl.pallas_call(
        functools.partial(_conv_bn_relu_kernel, H=H, W=W),
        grid=(N,),
        in_specs=[
            pl.BlockSpec((1, Hp, Wp, cin), lambda n: (n, 0, 0, 0)),
            pl.BlockSpec((9, cin, cout), lambda n: (0, 0, 0)),
            pl.BlockSpec((1, cout), lambda n: (0, 0)),
            pl.BlockSpec((1, cout), lambda n: (0, 0)),
        ],
        out_specs=pl.BlockSpec((H * W, cout), lambda n: (n, 0)),
        out_shape=jax.ShapeDtypeStruct((N * H * W, cout), jnp.float32),
        compiler_params=pltpu.CompilerParams(
            dimension_semantics=("parallel",),
            vmem_limit_bytes=32 * 1024 * 1024,
        ),
        cost_estimate=cost,
    )(xp, w9, scale, shift)


# ---------------------------------------------------------------------------
# One Conv -> BN(train) -> ReLU layer.
# ---------------------------------------------------------------------------
def _conv_bn_relu_layer(x_nhwc, w_oihw, gamma, beta):
    N, H, W, cin = x_nhwc.shape
    cout = w_oihw.shape[0]
    M = N * H * W

    # Spatial zero padding (~1.3x input bytes) is the only XLA-side copy.
    xp = jnp.pad(x_nhwc, ((0, 0), (1, 1), (1, 1), (0, 0))).astype(MATMUL_DTYPE)
    # PyTorch OIHW -> (dy*3+dx, Cin, Cout), matching the in-kernel loop order.
    w9 = jnp.transpose(w_oihw, (2, 3, 1, 0)).reshape(9, cin, cout).astype(
        MATMUL_DTYPE)

    # Pass 1: per-image centered BN partials (no conv output hits HBM).
    stats = _conv_stats(xp, w9)                    # (N, 2, Cout) f32
    m_t, c2_t = stats[:, 0, :], stats[:, 1, :]
    mean = jnp.mean(m_t, axis=0)
    # Chan parallel-variance merge of the centered per-image partials
    # (biased variance, as in PyTorch training-mode BatchNorm).
    var = (jnp.sum(c2_t, axis=0)
           + (H * W) * jnp.sum((m_t - mean) ** 2, axis=0)) / M
    scale = gamma * jax.lax.rsqrt(var + EPS)
    shift = beta - mean * scale

    # Pass 2: recompute conv, fuse BN+ReLU, write unpadded (M, Cout) output.
    out2d = _conv_bn_relu(xp, w9, scale.reshape(1, cout),
                          shift.reshape(1, cout))
    return out2d.reshape(N, H, W, cout)            # free (contiguous) reshape

    # TODO(synk): for images where (H+2)*(W+2)*Cin*itemsize exceeds the
    # per-step VMEM budget (32 MiB here, 64 MiB/TC total on v7x), switch the
    # grid to (N, H//TH) row-tiles with a haloed manual DMA
    # (memory_space=pl.ANY + pltpu.make_async_copy) instead of whole images.


def conv_block_forward(x_nchw, params):
    """ConvBlock forward. Input/output are NCHW like the PyTorch module."""
    x = jnp.transpose(x_nchw, (0, 2, 3, 1))
    # Conv bias is intentionally not added: with training-mode BatchNorm the
    # per-channel bias is cancelled exactly by the batch-mean subtraction.
    y = _conv_bn_relu_layer(x, params["w1"], params["g1"], params["beta1"])
    y = _conv_bn_relu_layer(y, params["w2"], params["g2"], params["beta2"])
    return jnp.transpose(y, (0, 3, 1, 2))
    # TODO(synk): BatchNorm running_mean/running_var buffer updates are not
    # replicated (they do not affect the training-mode forward output).


# ---------------------------------------------------------------------------
# Pure-JAX reference (sanity check)
# ---------------------------------------------------------------------------
def _reference_forward(x_nchw, params):
    def conv(x, w, b):
        y = jax.lax.conv_general_dilated(
            x, w, window_strides=(1, 1), padding="SAME",
            dimension_numbers=("NCHW", "OIHW", "NCHW"))
        return y + b[None, :, None, None]

    def bn_relu(y, g, beta):
        mean = jnp.mean(y, axis=(0, 2, 3), keepdims=True)
        var = jnp.mean((y - mean) ** 2, axis=(0, 2, 3), keepdims=True)
        yhat = (y - mean) * jax.lax.rsqrt(var + EPS)
        return jnp.maximum(
            yhat * g[None, :, None, None] + beta[None, :, None, None], 0.0)

    y = bn_relu(conv(x_nchw, params["w1"], params["b1"]),
                params["g1"], params["beta1"])
    y = bn_relu(conv(y, params["w2"], params["b2"]),
                params["g2"], params["beta2"])
    return y


# ---------------------------------------------------------------------------
def init_params(key, in_ch, out_ch):
    ks = jax.random.split(key, 8)
    return {
        "w1": 0.1 * jax.random.normal(ks[0], (out_ch, in_ch, 3, 3), jnp.float32),
        "b1": 0.1 * jax.random.normal(ks[1], (out_ch,), jnp.float32),
        "g1": 1.0 + 0.1 * jax.random.normal(ks[2], (out_ch,), jnp.float32),
        "beta1": 0.1 * jax.random.normal(ks[3], (out_ch,), jnp.float32),
        "w2": 0.1 * jax.random.normal(ks[4], (out_ch, out_ch, 3, 3), jnp.float32),
        "b2": 0.1 * jax.random.normal(ks[5], (out_ch,), jnp.float32),
        "g2": 1.0 + 0.1 * jax.random.normal(ks[6], (out_ch,), jnp.float32),
        "beta2": 0.1 * jax.random.normal(ks[7], (out_ch,), jnp.float32),
    }


if __name__ == "__main__":
    key = jax.random.PRNGKey(0)
    k_x, k_p = jax.random.split(key)

    N, in_ch, out_ch, H, W = 2, 4, 8, 16, 16
    x = jax.random.normal(k_x, (N, in_ch, H, W), jnp.float32)
    params = init_params(k_p, in_ch, out_ch)

    out = jax.block_until_ready(jax.jit(conv_block_forward)(x, params))
    assert out.shape == (N, out_ch, H, W), out.shape

    ref = jax.block_until_ready(_reference_forward(x, params))
    err = float(jnp.max(jnp.abs(out - ref)))
    assert jnp.allclose(out, ref, rtol=1e-3, atol=1e-3), err

    print("KERNEL_OK")
</pallas_src>

<mosaic_0001>
module attributes {stable_mosaic.version = 11 : i64} {
  func.func @_conv_stats_kernel(%arg0: i32, %arg1: memref<1x18x18x4xf32, #tpu.memory_space<vmem>>, %arg2: memref<9x4x8xf32, #tpu.memory_space<vmem>>, %arg3: memref<1x2x8xf32, #tpu.memory_space<vmem>>) attributes {dimension_semantics = [#tpu.dimension_semantics<parallel>], iteration_bounds = array<i64: 2>, scalar_prefetch = 0 : i64, scratch_operands = 0 : i64, tpu.core_type = #tpu.core_type<tc>, window_params = [{transform_indices = @transform_0, window_bounds = array<i64: 1, 18, 18, 4>}, {pipeline_mode = #tpu.pipeline_mode<synchronous>, transform_indices = @transform_1, window_bounds = array<i64: 9, 4, 8>}, {transform_indices = @transform_2, window_bounds = array<i64: 1, 2, 8>}]} {
    %cst = arith.constant 0.000000e+00 : f32
    %0 = vector.broadcast %cst : f32 to vector<256x8xf32>
    %c0 = arith.constant 0 : index
    %c0_0 = arith.constant 0 : index
    %c0_1 = arith.constant 0 : index
    %c0_2 = arith.constant 0 : index
    %1 = vector.load %arg1[%c0, %c0_0, %c0_1, %c0_2] : memref<1x18x18x4xf32, #tpu.memory_space<vmem>>, vector<1x16x16x4xf32>
    %2 = vector.shape_cast %1 : vector<1x16x16x4xf32> to vector<16x16x4xf32>
    %3 = vector.shape_cast %2 : vector<16x16x4xf32> to vector<256x4xf32>
    %c0_3 = arith.constant 0 : index
    %c0_4 = arith.constant 0 : index
    %c0_5 = arith.constant 0 : index
    %4 = vector.load %arg2[%c0_3, %c0_4, %c0_5] : memref<9x4x8xf32, #tpu.memory_space<vmem>>, vector<1x4x8xf32>
    %5 = vector.shape_cast %4 : vector<1x4x8xf32> to vector<4x8xf32>
    %cst_6 = arith.constant dense<0.000000e+00> : vector<256x8xf32>
    %6 = tpu.matmul %3, %5, %cst_6 {dimension_numbers = #tpu.dot_dimension_numbers<[1], [0], [0], [1], [0, 0, 1, 1], [], []>} : vector<256x4xf32>, vector<4x8xf32>, vector<256x8xf32> -> vector<256x8xf32>
    %7 = arith.addf %0, %6 : vector<256x8xf32>
    %c0_7 = arith.constant 0 : index
    %c0_8 = arith.constant 0 : index
    %c1 = arith.constant 1 : index
    %c0_9 = arith.constant 0 : index
    %8 = vector.load %arg1[%c0_7, %c0_8, %c1, %c0_9] : memref<1x18x18x4xf32, #tpu.memory_space<vmem>>, vector<1x16x16x4xf32>
    %9 = vector.shape_cast %8 : vector<1x16x16x4xf32> to vector<16x16x4xf32>
    %10 = vector.shape_cast %9 : vector<16x16x4xf32> to vector<256x4xf32>
    %c1_10 = arith.constant 1 : index
    %c0_11 = arith.constant 0 : index
    %c0_12 = arith.constant 0 : index
    %11 = vector.load %arg2[%c1_10, %c0_11, %c0_12] : memref<9x4x8xf32, #tpu.memory_space<vmem>>, vector<1x4x8xf32>
    %12 = vector.shape_cast %11 : vector<1x4x8xf32> to vector<4x8xf32>
    %cst_13 = arith.constant dense<0.000000e+00> : vector<256x8xf32>
    %13 = tpu.matmul %10, %12, %cst_13 {dimension_numbers = #tpu.dot_dimension_numbers<[1], [0], [0], [1], [0, 0, 1, 1], [], []>} : vector<256x4xf32>, vector<4x8xf32>, vector<256x8xf32> -> vector<256x8xf32>
    %14 = arith.addf %7, %13 : vector<256x8xf32>
    %c0_14 = arith.constant 0 : index
    %c0_15 = arith.constant 0 : index
    %c2 = arith.constant 2 : index
    %c0_16 = arith.constant 0 : index
    %15 = vector.load %arg1[%c0_14, %c0_15, %c2, %c0_16] : memref<1x18x18x4xf32, #tpu.memory_space<vmem>>, vector<1x16x16x4xf32>
    %16 = vector.shape_cast %15 : vector<1x16x16x4xf32> to vector<16x16x4xf32>
    %17 = vector.shape_cast %16 : vector<16x16x4xf32> to vector<256x4xf32>
    %c2_17 = arith.constant 2 : index
    %c0_18 = arith.constant 0 : index
    %c0_19 = arith.constant 0 : index
    %18 = vector.load %arg2[%c2_17, %c0_18, %c0_19] : memref<9x4x8xf32, #tpu.memory_space<vmem>>, vector<1x4x8xf32>
    %19 = vector.shape_cast %18 : vector<1x4x8xf32> to vector<4x8xf32>
    %cst_20 = arith.constant dense<0.000000e+00> : vector<256x8xf32>
    %20 = tpu.matmul %17, %19, %cst_20 {dimension_numbers = #tpu.dot_dimension_numbers<[1], [0], [0], [1], [0, 0, 1, 1], [], []>} : vector<256x4xf32>, vector<4x8xf32>, vector<256x8xf32> -> vector<256x8xf32>
    %21 = arith.addf %14, %20 : vector<256x8xf32>
    %c0_21 = arith.constant 0 : index
    %c1_22 = arith.constant 1 : index
    %c0_23 = arith.constant 0 : index
    %c0_24 = arith.constant 0 : index
    %22 = vector.load %arg1[%c0_21, %c1_22, %c0_23, %c0_24] : memref<1x18x18x4xf32, #tpu.memory_space<vmem>>, vector<1x16x16x4xf32>
    %23 = vector.shape_cast %22 : vector<1x16x16x4xf32> to vector<16x16x4xf32>
    %24 = vector.shape_cast %23 : vector<16x16x4xf32> to vector<256x4xf32>
    %c3 = arith.constant 3 : index
    %c0_25 = arith.constant 0 : index
    %c0_26 = arith.constant 0 : index
    %25 = vector.load %arg2[%c3, %c0_25, %c0_26] : memref<9x4x8xf32, #tpu.memory_space<vmem>>, vector<1x4x8xf32>
    %26 = vector.shape_cast %25 : vector<1x4x8xf32> to vector<4x8xf32>
    %cst_27 = arith.constant dense<0.000000e+00> : vector<256x8xf32>
    %27 = tpu.matmul %24, %26, %cst_27 {dimension_numbers = #tpu.dot_dimension_numbers<[1], [0], [0], [1], [0, 0, 1, 1], [], []>} : vector<256x4xf32>, vector<4x8xf32>, vector<256x8xf32> -> vector<256x8xf32>
    %28 = arith.addf %21, %27 : vector<256x8xf32>
    %c0_28 = arith.constant 0 : index
    %c1_29 = arith.constant 1 : index
    %c1_30 = arith.constant 1 : index
    %c0_31 = arith.constant 0 : index
    %29 = vector.load %arg1[%c0_28, %c1_29, %c1_30, %c0_31] : memref<1x18x18x4xf32, #tpu.memory_space<vmem>>, vector<1x16x16x4xf32>
    %30 = vector.shape_cast %29 : vector<1x16x16x4xf32> to vector<16x16x4xf32>
    %31 = vector.shape_cast %30 : vector<16x16x4xf32> to vector<256x4xf32>
    %c4 = arith.constant 4 : index
    %c0_32 = arith.constant 0 : index
    %c0_33 = arith.constant 0 : index
    %32 = vector.load %arg2[%c4, %c0_32, %c0_33] : memref<9x4x8xf32, #tpu.memory_space<vmem>>, vector<1x4x8xf32>
    %33 = vector.shape_cast %32 : vector<1x4x8xf32> to vector<4x8xf32>
    %cst_34 = arith.constant dense<0.000000e+00> : vector<256x8xf32>
    %34 = tpu.matmul %31, %33, %cst_34 {dimension_numbers = #tpu.dot_dimension_numbers<[1], [0], [0], [1], [0, 0, 1, 1], [], []>} : vector<256x4xf32>, vector<4x8xf32>, vector<256x8xf32> -> vector<256x8xf32>
    %35 = arith.addf %28, %34 : vector<256x8xf32>
    %c0_35 = arith.constant 0 : index
    %c1_36 = arith.constant 1 : index
    %c2_37 = arith.constant 2 : index
    %c0_38 = arith.constant 0 : index
    %36 = vector.load %arg1[%c0_35, %c1_36, %c2_37, %c0_38] : memref<1x18x18x4xf32, #tpu.memory_space<vmem>>, vector<1x16x16x4xf32>
    %37 = vector.shape_cast %36 : vector<1x16x16x4xf32> to vector<16x16x4xf32>
    %38 = vector.shape_cast %37 : vector<16x16x4xf32> to vector<256x4xf32>
    %c5 = arith.constant 5 : index
    %c0_39 = arith.constant 0 : index
    %c0_40 = arith.constant 0 : index
    %39 = vector.load %arg2[%c5, %c0_39, %c0_40] : memref<9x4x8xf32, #tpu.memory_space<vmem>>, vector<1x4x8xf32>
    %40 = vector.shape_cast %39 : vector<1x4x8xf32> to vector<4x8xf32>
    %cst_41 = arith.constant dense<0.000000e+00> : vector<256x8xf32>
    %41 = tpu.matmul %38, %40, %cst_41 {dimension_numbers = #tpu.dot_dimension_numbers<[1], [0], [0], [1], [0, 0, 1, 1], [], []>} : vector<256x4xf32>, vector<4x8xf32>, vector<256x8xf32> -> vector<256x8xf32>
    %42 = arith.addf %35, %41 : vector<256x8xf32>
    %c0_42 = arith.constant 0 : index
    %c2_43 = arith.constant 2 : index
    %c0_44 = arith.constant 0 : index
    %c0_45 = arith.constant 0 : index
    %43 = vector.load %arg1[%c0_42, %c2_43, %c0_44, %c0_45] : memref<1x18x18x4xf32, #tpu.memory_space<vmem>>, vector<1x16x16x4xf32>
    %44 = vector.shape_cast %43 : vector<1x16x16x4xf32> to vector<16x16x4xf32>
    %45 = vector.shape_cast %44 : vector<16x16x4xf32> to vector<256x4xf32>
    %c6 = arith.constant 6 : index
    %c0_46 = arith.constant 0 : index
    %c0_47 = arith.constant 0 : index
    %46 = vector.load %arg2[%c6, %c0_46, %c0_47] : memref<9x4x8xf32, #tpu.memory_space<vmem>>, vector<1x4x8xf32>
    %47 = vector.shape_cast %46 : vector<1x4x8xf32> to vector<4x8xf32>
    %cst_48 = arith.constant dense<0.000000e+00> : vector<256x8xf32>
    %48 = tpu.matmul %45, %47, %cst_48 {dimension_numbers = #tpu.dot_dimension_numbers<[1], [0], [0], [1], [0, 0, 1, 1], [], []>} : vector<256x4xf32>, vector<4x8xf32>, vector<256x8xf32> -> vector<256x8xf32>
    %49 = arith.addf %42, %48 : vector<256x8xf32>
    %c0_49 = arith.constant 0 : index
    %c2_50 = arith.constant 2 : index
    %c1_51 = arith.constant 1 : index
    %c0_52 = arith.constant 0 : index
    %50 = vector.load %arg1[%c0_49, %c2_50, %c1_51, %c0_52] : memref<1x18x18x4xf32, #tpu.memory_space<vmem>>, vector<1x16x16x4xf32>
    %51 = vector.shape_cast %50 : vector<1x16x16x4xf32> to vector<16x16x4xf32>
    %52 = vector.shape_cast %51 : vector<16x16x4xf32> to vector<256x4xf32>
    %c7 = arith.constant 7 : index
    %c0_53 = arith.constant 0 : index
    %c0_54 = arith.constant 0 : index
    %53 = vector.load %arg2[%c7, %c0_53, %c0_54] : memref<9x4x8xf32, #tpu.memory_space<vmem>>, vector<1x4x8xf32>
    %54 = vector.shape_cast %53 : vector<1x4x8xf32> to vector<4x8xf32>
    %cst_55 = arith.constant dense<0.000000e+00> : vector<256x8xf32>
    %55 = tpu.matmul %52, %54, %cst_55 {dimension_numbers = #tpu.dot_dimension_numbers<[1], [0], [0], [1], [0, 0, 1, 1], [], []>} : vector<256x4xf32>, vector<4x8xf32>, vector<256x8xf32> -> vector<256x8xf32>
    %56 = arith.addf %49, %55 : vector<256x8xf32>
    %c0_56 = arith.constant 0 : index
    %c2_57 = arith.constant 2 : index
    %c2_58 = arith.constant 2 : index
    %c0_59 = arith.constant 0 : index
    %57 = vector.load %arg1[%c0_56, %c2_57, %c2_58, %c0_59] : memref<1x18x18x4xf32, #tpu.memory_space<vmem>>, vector<1x16x16x4xf32>
    %58 = vector.shape_cast %57 : vector<1x16x16x4xf32> to vector<16x16x4xf32>
    %59 = vector.shape_cast %58 : vector<16x16x4xf32> to vector<256x4xf32>
    %c8 = arith.constant 8 : index
    %c0_60 = arith.constant 0 : index
    %c0_61 = arith.constant 0 : index
    %60 = vector.load %arg2[%c8, %c0_60, %c0_61] : memref<9x4x8xf32, #tpu.memory_space<vmem>>, vector<1x4x8xf32>
    %61 = vector.shape_cast %60 : vector<1x4x8xf32> to vector<4x8xf32>
    %cst_62 = arith.constant dense<0.000000e+00> : vector<256x8xf32>
    %62 = tpu.matmul %59, %61, %cst_62 {dimension_numbers = #tpu.dot_dimension_numbers<[1], [0], [0], [1], [0, 0, 1, 1], [], []>} : vector<256x4xf32>, vector<4x8xf32>, vector<256x8xf32> -> vector<256x8xf32>
    %63 = arith.addf %56, %62 : vector<256x8xf32>
    %cst_63 = arith.constant dense<0.000000e+00> : vector<8xf32>
    %64 = vector.multi_reduction <add>, %63, %cst_63 [0] : vector<256x8xf32> to vector<8xf32>
    %65 = vector.shape_cast %64 : vector<8xf32> to vector<1x8xf32>
    %cst_64 = arith.constant 2.560000e+02 : f32
    %66 = vector.broadcast %cst_64 : f32 to vector<1x8xf32>
    %67 = arith.divf %65, %66 : vector<1x8xf32>
    %68 = vector.broadcast %67 : vector<1x8xf32> to vector<256x8xf32>
    %69 = arith.subf %63, %68 : vector<256x8xf32>
    %70 = arith.mulf %69, %69 : vector<256x8xf32>
    %cst_65 = arith.constant dense<0.000000e+00> : vector<8xf32>
    %71 = vector.multi_reduction <add>, %70, %cst_65 [0] : vector<256x8xf32> to vector<8xf32>
    %72 = vector.shape_cast %71 : vector<8xf32> to vector<1x8xf32>
    %73 = tpu.concatenate %67, %72 in 0 : vector<1x8xf32>, vector<1x8xf32> -> vector<2x8xf32>
    %c0_66 = arith.constant 0 : index
    %c0_67 = arith.constant 0 : index
    %c0_68 = arith.constant 0 : index
    %74 = vector.load %arg3[%c0_66, %c0_67, %c0_68] : memref<1x2x8xf32, #tpu.memory_space<vmem>>, vector<1x2x8xf32>
    %75 = vector.shape_cast %74 : vector<1x2x8xf32> to vector<2x8xf32>
    %76 = vector.shape_cast %73 : vector<2x8xf32> to vector<1x2x8xf32>
    tpu.vector_store %arg3[%c0_66, %c0_67, %c0_68], %76 {strides = array<i32>} : memref<1x2x8xf32, #tpu.memory_space<vmem>>, vector<1x2x8xf32>,
    return
  }
  func.func @transform_0(%arg0: i32) -> (i32, i32, i32, i32) {
    %c0_i32 = arith.constant 0 : i32
    %c0_i32_0 = arith.constant 0 : i32
    %c0_i32_1 = arith.constant 0 : i32
    %c0_i32_2 = arith.constant 0 : i32
    return %arg0, %c0_i32, %c0_i32_0, %c0_i32_1 : i32, i32, i32, i32
  }
  func.func @transform_1(%arg0: i32) -> (i32, i32, i32) {
    %c0_i32 = arith.constant 0 : i32
    %c0_i32_0 = arith.constant 0 : i32
    %c0_i32_1 = arith.constant 0 : i32
    %c0_i32_2 = arith.constant 0 : i32
    return %c0_i32, %c0_i32_0, %c0_i32_1 : i32, i32, i32
  }
  func.func @transform_2(%arg0: i32) -> (i32, i32, i32) {
    %c0_i32 = arith.constant 0 : i32
    %c0_i32_0 = arith.constant 0 : i32
    %c0_i32_1 = arith.constant 0 : i32
    return %arg0, %c0_i32, %c0_i32_0 : i32, i32, i32
  }
}

module attributes {stable_mosaic.version = 11 : i64} {
  func.func @_conv_bn_relu_kernel(%arg0: i32, %arg1: memref<1x18x18x4xf32, #tpu.memory_space<vmem>>, %arg2: memref<9x4x8xf32, #tpu.memory_space<vmem>>, %arg3: memref<1x8xf32, #tpu.memory_space<vmem>>, %arg4: memref<1x8xf32, #tpu.memory_space<vmem>>, %arg5: memref<256x8xf32, #tpu.memory_space<vmem>>) attributes {dimension_semantics = [#tpu.dimension_semantics<parallel>], iteration_bounds = array<i64: 2>, scalar_prefetch = 0 : i64, scratch_operands = 0 : i64, tpu.core_type = #tpu.core_type<tc>, window_params = [{transform_indices = @transform_0, window_bounds = array<i64: 1, 18, 18, 4>}, {pipeline_mode = #tpu.pipeline_mode<synchronous>, transform_indices = @transform_1, window_bounds = array<i64: 9, 4, 8>}, {pipeline_mode = #tpu.pipeline_mode<synchronous>, transform_indices = @transform_2, window_bounds = array<i64: 1, 8>}, {pipeline_mode = #tpu.pipeline_mode<synchronous>, transform_indices = @transform_3, window_bounds = array<i64: 1, 8>}, {transform_indices = @transform_4, window_bounds = array<i64: 256, 8>}]} {
    %cst = arith.constant 0.000000e+00 : f32
    %0 = vector.broadcast %cst : f32 to vector<256x8xf32>
    %c0 = arith.constant 0 : index
    %c0_0 = arith.constant 0 : index
    %c0_1 = arith.constant 0 : index
    %c0_2 = arith.constant 0 : index
    %1 = vector.load %arg1[%c0, %c0_0, %c0_1, %c0_2] : memref<1x18x18x4xf32, #tpu.memory_space<vmem>>, vector<1x16x16x4xf32>
    %2 = vector.shape_cast %1 : vector<1x16x16x4xf32> to vector<16x16x4xf32>
    %3 = vector.shape_cast %2 : vector<16x16x4xf32> to vector<256x4xf32>
    %c0_3 = arith.constant 0 : index
    %c0_4 = arith.constant 0 : index
    %c0_5 = arith.constant 0 : index
    %4 = vector.load %arg2[%c0_3, %c0_4, %c0_5] : memref<9x4x8xf32, #tpu.memory_space<vmem>>, vector<1x4x8xf32>
    %5 = vector.shape_cast %4 : vector<1x4x8xf32> to vector<4x8xf32>
    %cst_6 = arith.constant dense<0.000000e+00> : vector<256x8xf32>
    %6 = tpu.matmul %3, %5, %cst_6 {dimension_numbers = #tpu.dot_dimension_numbers<[1], [0], [0], [1], [0, 0, 1, 1], [], []>} : vector<256x4xf32>, vector<4x8xf32>, vector<256x8xf32> -> vector<256x8xf32>
    %7 = arith.addf %0, %6 : vector<256x8xf32>
    %c0_7 = arith.constant 0 : index
    %c0_8 = arith.constant 0 : index
    %c1 = arith.constant 1 : index
    %c0_9 = arith.constant 0 : index
    %8 = vector.load %arg1[%c0_7, %c0_8, %c1, %c0_9] : memref<1x18x18x4xf32, #tpu.memory_space<vmem>>, vector<1x16x16x4xf32>
    %9 = vector.shape_cast %8 : vector<1x16x16x4xf32> to vector<16x16x4xf32>
    %10 = vector.shape_cast %9 : vector<16x16x4xf32> to vector<256x4xf32>
    %c1_10 = arith.constant 1 : index
    %c0_11 = arith.constant 0 : index
    %c0_12 = arith.constant 0 : index
    %11 = vector.load %arg2[%c1_10, %c0_11, %c0_12] : memref<9x4x8xf32, #tpu.memory_space<vmem>>, vector<1x4x8xf32>
    %12 = vector.shape_cast %11 : vector<1x4x8xf32> to vector<4x8xf32>
    %cst_13 = arith.constant dense<0.000000e+00> : vector<256x8xf32>
    %13 = tpu.matmul %10, %12, %cst_13 {dimension_numbers = #tpu.dot_dimension_numbers<[1], [0], [0], [1], [0, 0, 1, 1], [], []>} : vector<256x4xf32>, vector<4x8xf32>, vector<256x8xf32> -> vector<256x8xf32>
    %14 = arith.addf %7, %13 : vector<256x8xf32>
    %c0_14 = arith.constant 0 : index
    %c0_15 = arith.constant 0 : index
    %c2 = arith.constant 2 : index
    %c0_16 = arith.constant 0 : index
    %15 = vector.load %arg1[%c0_14, %c0_15, %c2, %c0_16] : memref<1x18x18x4xf32, #tpu.memory_space<vmem>>, vector<1x16x16x4xf32>
    %16 = vector.shape_cast %15 : vector<1x16x16x4xf32> to vector<16x16x4xf32>
    %17 = vector.shape_cast %16 : vector<16x16x4xf32> to vector<256x4xf32>
    %c2_17 = arith.constant 2 : index
    %c0_18 = arith.constant 0 : index
    %c0_19 = arith.constant 0 : index
    %18 = vector.load %arg2[%c2_17, %c0_18, %c0_19] : memref<9x4x8xf32, #tpu.memory_space<vmem>>, vector<1x4x8xf32>
    %19 = vector.shape_cast %18 : vector<1x4x8xf32> to vector<4x8xf32>
    %cst_20 = arith.constant dense<0.000000e+00> : vector<256x8xf32>
    %20 = tpu.matmul %17, %19, %cst_20 {dimension_numbers = #tpu.dot_dimension_numbers<[1], [0], [0], [1], [0, 0, 1, 1], [], []>} : vector<256x4xf32>, vector<4x8xf32>, vector<256x8xf32> -> vector<256x8xf32>
    %21 = arith.addf %14, %20 : vector<256x8xf32>
    %c0_21 = arith.constant 0 : index
    %c1_22 = arith.constant 1 : index
    %c0_23 = arith.constant 0 : index
    %c0_24 = arith.constant 0 : index
    %22 = vector.load %arg1[%c0_21, %c1_22, %c0_23, %c0_24] : memref<1x18x18x4xf32, #tpu.memory_space<vmem>>, vector<1x16x16x4xf32>
    %23 = vector.shape_cast %22 : vector<1x16x16x4xf32> to vector<16x16x4xf32>
    %24 = vector.shape_cast %23 : vector<16x16x4xf32> to vector<256x4xf32>
    %c3 = arith.constant 3 : index
    %c0_25 = arith.constant 0 : index
    %c0_26 = arith.constant 0 : index
    %25 = vector.load %arg2[%c3, %c0_25, %c0_26] : memref<9x4x8xf32, #tpu.memory_space<vmem>>, vector<1x4x8xf32>
    %26 = vector.shape_cast %25 : vector<1x4x8xf32> to vector<4x8xf32>
    %cst_27 = arith.constant dense<0.000000e+00> : vector<256x8xf32>
    %27 = tpu.matmul %24, %26, %cst_27 {dimension_numbers = #tpu.dot_dimension_numbers<[1], [0], [0], [1], [0, 0, 1, 1], [], []>} : vector<256x4xf32>, vector<4x8xf32>, vector<256x8xf32> -> vector<256x8xf32>
    %28 = arith.addf %21, %27 : vector<256x8xf32>
    %c0_28 = arith.constant 0 : index
    %c1_29 = arith.constant 1 : index
    %c1_30 = arith.constant 1 : index
    %c0_31 = arith.constant 0 : index
    %29 = vector.load %arg1[%c0_28, %c1_29, %c1_30, %c0_31] : memref<1x18x18x4xf32, #tpu.memory_space<vmem>>, vector<1x16x16x4xf32>
    %30 = vector.shape_cast %29 : vector<1x16x16x4xf32> to vector<16x16x4xf32>
    %31 = vector.shape_cast %30 : vector<16x16x4xf32> to vector<256x4xf32>
    %c4 = arith.constant 4 : index
    %c0_32 = arith.constant 0 : index
    %c0_33 = arith.constant 0 : index
    %32 = vector.load %arg2[%c4, %c0_32, %c0_33] : memref<9x4x8xf32, #tpu.memory_space<vmem>>, vector<1x4x8xf32>
    %33 = vector.shape_cast %32 : vector<1x4x8xf32> to vector<4x8xf32>
    %cst_34 = arith.constant dense<0.000000e+00> : vector<256x8xf32>
    %34 = tpu.matmul %31, %33, %cst_34 {dimension_numbers = #tpu.dot_dimension_numbers<[1], [0], [0], [1], [0, 0, 1, 1], [], []>} : vector<256x4xf32>, vector<4x8xf32>, vector<256x8xf32> -> vector<256x8xf32>
    %35 = arith.addf %28, %34 : vector<256x8xf32>
    %c0_35 = arith.constant 0 : index
    %c1_36 = arith.constant 1 : index
    %c2_37 = arith.constant 2 : index
    %c0_38 = arith.constant 0 : index
    %36 = vector.load %arg1[%c0_35, %c1_36, %c2_37, %c0_38] : memref<1x18x18x4xf32, #tpu.memory_space<vmem>>, vector<1x16x16x4xf32>
    %37 = vector.shape_cast %36 : vector<1x16x16x4xf32> to vector<16x16x4xf32>
    %38 = vector.shape_cast %37 : vector<16x16x4xf32> to vector<256x4xf32>
    %c5 = arith.constant 5 : index
    %c0_39 = arith.constant 0 : index
    %c0_40 = arith.constant 0 : index
    %39 = vector.load %arg2[%c5, %c0_39, %c0_40] : memref<9x4x8xf32, #tpu.memory_space<vmem>>, vector<1x4x8xf32>
    %40 = vector.shape_cast %39 : vector<1x4x8xf32> to vector<4x8xf32>
    %cst_41 = arith.constant dense<0.000000e+00> : vector<256x8xf32>
    %41 = tpu.matmul %38, %40, %cst_41 {dimension_numbers = #tpu.dot_dimension_numbers<[1], [0], [0], [1], [0, 0, 1, 1], [], []>} : vector<256x4xf32>, vector<4x8xf32>, vector<256x8xf32> -> vector<256x8xf32>
    %42 = arith.addf %35, %41 : vector<256x8xf32>
    %c0_42 = arith.constant 0 : index
    %c2_43 = arith.constant 2 : index
    %c0_44 = arith.constant 0 : index
    %c0_45 = arith.constant 0 : index
    %43 = vector.load %arg1[%c0_42, %c2_43, %c0_44, %c0_45] : memref<1x18x18x4xf32, #tpu.memory_space<vmem>>, vector<1x16x16x4xf32>
    %44 = vector.shape_cast %43 : vector<1x16x16x4xf32> to vector<16x16x4xf32>
    %45 = vector.shape_cast %44 : vector<16x16x4xf32> to vector<256x4xf32>
    %c6 = arith.constant 6 : index
    %c0_46 = arith.constant 0 : index
    %c0_47 = arith.constant 0 : index
    %46 = vector.load %arg2[%c6, %c0_46, %c0_47] : memref<9x4x8xf32, #tpu.memory_space<vmem>>, vector<1x4x8xf32>
    %47 = vector.shape_cast %46 : vector<1x4x8xf32> to vector<4x8xf32>
    %cst_48 = arith.constant dense<0.000000e+00> : vector<256x8xf32>
    %48 = tpu.matmul %45, %47, %cst_48 {dimension_numbers = #tpu.dot_dimension_numbers<[1], [0], [0], [1], [0, 0, 1, 1], [], []>} : vector<256x4xf32>, vector<4x8xf32>, vector<256x8xf32> -> vector<256x8xf32>
    %49 = arith.addf %42, %48 : vector<256x8xf32>
    %c0_49 = arith.constant 0 : index
    %c2_50 = arith.constant 2 : index
    %c1_51 = arith.constant 1 : index
    %c0_52 = arith.constant 0 : index
    %50 = vector.load %arg1[%c0_49, %c2_50, %c1_51, %c0_52] : memref<1x18x18x4xf32, #tpu.memory_space<vmem>>, vector<1x16x16x4xf32>
    %51 = vector.shape_cast %50 : vector<1x16x16x4xf32> to vector<16x16x4xf32>
    %52 = vector.shape_cast %51 : vector<16x16x4xf32> to vector<256x4xf32>
    %c7 = arith.constant 7 : index
    %c0_53 = arith.constant 0 : index
    %c0_54 = arith.constant 0 : index
    %53 = vector.load %arg2[%c7, %c0_53, %c0_54] : memref<9x4x8xf32, #tpu.memory_space<vmem>>, vector<1x4x8xf32>
    %54 = vector.shape_cast %53 : vector<1x4x8xf32> to vector<4x8xf32>
    %cst_55 = arith.constant dense<0.000000e+00> : vector<256x8xf32>
    %55 = tpu.matmul %52, %54, %cst_55 {dimension_numbers = #tpu.dot_dimension_numbers<[1], [0], [0], [1], [0, 0, 1, 1], [], []>} : vector<256x4xf32>, vector<4x8xf32>, vector<256x8xf32> -> vector<256x8xf32>
    %56 = arith.addf %49, %55 : vector<256x8xf32>
    %c0_56 = arith.constant 0 : index
    %c2_57 = arith.constant 2 : index
    %c2_58 = arith.constant 2 : index
    %c0_59 = arith.constant 0 : index
    %57 = vector.load %arg1[%c0_56, %c2_57, %c2_58, %c0_59] : memref<1x18x18x4xf32, #tpu.memory_space<vmem>>, vector<1x16x16x4xf32>
    %58 = vector.shape_cast %57 : vector<1x16x16x4xf32> to vector<16x16x4xf32>
    %59 = vector.shape_cast %58 : vector<16x16x4xf32> to vector<256x4xf32>
    %c8 = arith.constant 8 : index
    %c0_60 = arith.constant 0 : index
    %c0_61 = arith.constant 0 : index
    %60 = vector.load %arg2[%c8, %c0_60, %c0_61] : memref<9x4x8xf32, #tpu.memory_space<vmem>>, vector<1x4x8xf32>
    %61 = vector.shape_cast %60 : vector<1x4x8xf32> to vector<4x8xf32>
    %cst_62 = arith.constant dense<0.000000e+00> : vector<256x8xf32>
    %62 = tpu.matmul %59, %61, %cst_62 {dimension_numbers = #tpu.dot_dimension_numbers<[1], [0], [0], [1], [0, 0, 1, 1], [], []>} : vector<256x4xf32>, vector<4x8xf32>, vector<256x8xf32> -> vector<256x8xf32>
    %63 = arith.addf %56, %62 : vector<256x8xf32>
    %c0_63 = arith.constant 0 : index
    %c0_64 = arith.constant 0 : index
    %64 = vector.load %arg3[%c0_63, %c0_64] : memref<1x8xf32, #tpu.memory_space<vmem>>, vector<1x8xf32>
    %65 = vector.broadcast %64 : vector<1x8xf32> to vector<256x8xf32>
    %66 = arith.mulf %63, %65 : vector<256x8xf32>
    %c0_65 = arith.constant 0 : index
    %c0_66 = arith.constant 0 : index
    %67 = vector.load %arg4[%c0_65, %c0_66] : memref<1x8xf32, #tpu.memory_space<vmem>>, vector<1x8xf32>
    %68 = vector.broadcast %67 : vector<1x8xf32> to vector<256x8xf32>
    %69 = arith.addf %66, %68 : vector<256x8xf32>
    %cst_67 = arith.constant 0.000000e+00 : f32
    %70 = vector.broadcast %cst_67 : f32 to vector<256x8xf32>
    %71 = arith.maximumf %69, %70 : vector<256x8xf32>
    %c0_68 = arith.constant 0 : index
    %c0_69 = arith.constant 0 : index
    %72 = vector.load %arg5[%c0_68, %c0_69] : memref<256x8xf32, #tpu.memory_space<vmem>>, vector<256x8xf32>
    tpu.vector_store %arg5[%c0_68, %c0_69], %71 {strides = array<i32>} : memref<256x8xf32, #tpu.memory_space<vmem>>, vector<256x8xf32>,
    return
  }
  func.func @transform_0(%arg0: i32) -> (i32, i32, i32, i32) {
    %c0_i32 = arith.constant 0 : i32
    %c0_i32_0 = arith.constant 0 : i32
    %c0_i32_1 = arith.constant 0 : i32
    %c0_i32_2 = arith.constant 0 : i32
    return %arg0, %c0_i32, %c0_i32_0, %c0_i32_1 : i32, i32, i32, i32
  }
  func.func @transform_1(%arg0: i32) -> (i32, i32, i32) {
    %c0_i32 = arith.constant 0 : i32
    %c0_i32_0 = arith.constant 0 : i32
    %c0_i32_1 = arith.constant 0 : i32
    %c0_i32_2 = arith.constant 0 : i32
    return %c0_i32, %c0_i32_0, %c0_i32_1 : i32, i32, i32
  }
  func.func @transform_2(%arg0: i32) -> (i32, i32) {
    %c0_i32 = arith.constant 0 : i32
    %c0_i32_0 = arith.constant 0 : i32
    %c0_i32_1 = arith.constant 0 : i32
    return %c0_i32, %c0_i32_0 : i32, i32
  }
  func.func @transform_3(%arg0: i32) -> (i32, i32) {
    %c0_i32 = arith.constant 0 : i32
    %c0_i32_0 = arith.constant 0 : i32
    %c0_i32_1 = arith.constant 0 : i32
    return %c0_i32, %c0_i32_0 : i32, i32
  }
  func.func @transform_4(%arg0: i32) -> (i32, i32) {
    %c0_i32 = arith.constant 0 : i32
    %c0_i32_0 = arith.constant 0 : i32
    return %arg0, %c0_i32 : i32, i32
  }
}

module attributes {stable_mosaic.version = 11 : i64} {
  func.func @_conv_stats_kernel(%arg0: i32, %arg1: memref<1x18x18x8xf32, #tpu.memory_space<vmem>>, %arg2: memref<9x8x8xf32, #tpu.memory_space<vmem>>, %arg3: memref<1x2x8xf32, #tpu.memory_space<vmem>>) attributes {dimension_semantics = [#tpu.dimension_semantics<parallel>], iteration_bounds = array<i64: 2>, scalar_prefetch = 0 : i64, scratch_operands = 0 : i64, tpu.core_type = #tpu.core_type<tc>, window_params = [{transform_indices = @transform_0, window_bounds = array<i64: 1, 18, 18, 8>}, {pipeline_mode = #tpu.pipeline_mode<synchronous>, transform_indices = @transform_1, window_bounds = array<i64: 9, 8, 8>}, {transform_indices = @transform_2, window_bounds = array<i64: 1, 2, 8>}]} {
    %cst = arith.constant 0.000000e+00 : f32
    %0 = vector.broadcast %cst : f32 to vector<256x8xf32>
    %c0 = arith.constant 0 : index
    %c0_0 = arith.constant 0 : index
    %c0_1 = arith.constant 0 : index
    %c0_2 = arith.constant 0 : index
    %1 = vector.load %arg1[%c0, %c0_0, %c0_1, %c0_2] : memref<1x18x18x8xf32, #tpu.memory_space<vmem>>, vector<1x16x16x8xf32>
    %2 = vector.shape_cast %1 : vector<1x16x16x8xf32> to vector<16x16x8xf32>
    %3 = vector.shape_cast %2 : vector<16x16x8xf32> to vector<256x8xf32>
    %c0_3 = arith.constant 0 : index
    %c0_4 = arith.constant 0 : index
    %c0_5 = arith.constant 0 : index
    %4 = vector.load %arg2[%c0_3, %c0_4, %c0_5] : memref<9x8x8xf32, #tpu.memory_space<vmem>>, vector<1x8x8xf32>
    %5 = vector.shape_cast %4 : vector<1x8x8xf32> to vector<8x8xf32>
    %cst_6 = arith.constant dense<0.000000e+00> : vector<256x8xf32>
    %6 = tpu.matmul %3, %5, %cst_6 {dimension_numbers = #tpu.dot_dimension_numbers<[1], [0], [0], [1], [0, 0, 1, 1], [], []>} : vector<256x8xf32>, vector<8x8xf32>, vector<256x8xf32> -> vector<256x8xf32>
    %7 = arith.addf %0, %6 : vector<256x8xf32>
    %c0_7 = arith.constant 0 : index
    %c0_8 = arith.constant 0 : index
    %c1 = arith.constant 1 : index
    %c0_9 = arith.constant 0 : index
    %8 = vector.load %arg1[%c0_7, %c0_8, %c1, %c0_9] : memref<1x18x18x8xf32, #tpu.memory_space<vmem>>, vector<1x16x16x8xf32>
    %9 = vector.shape_cast %8 : vector<1x16x16x8xf32> to vector<16x16x8xf32>
    %10 = vector.shape_cast %9 : vector<16x16x8xf32> to vector<256x8xf32>
    %c1_10 = arith.constant 1 : index
    %c0_11 = arith.constant 0 : index
    %c0_12 = arith.constant 0 : index
    %11 = vector.load %arg2[%c1_10, %c0_11, %c0_12] : memref<9x8x8xf32, #tpu.memory_space<vmem>>, vector<1x8x8xf32>
    %12 = vector.shape_cast %11 : vector<1x8x8xf32> to vector<8x8xf32>
    %cst_13 = arith.constant dense<0.000000e+00> : vector<256x8xf32>
    %13 = tpu.matmul %10, %12, %cst_13 {dimension_numbers = #tpu.dot_dimension_numbers<[1], [0], [0], [1], [0, 0, 1, 1], [], []>} : vector<256x8xf32>, vector<8x8xf32>, vector<256x8xf32> -> vector<256x8xf32>
    %14 = arith.addf %7, %13 : vector<256x8xf32>
    %c0_14 = arith.constant 0 : index
    %c0_15 = arith.constant 0 : index
    %c2 = arith.constant 2 : index
    %c0_16 = arith.constant 0 : index
    %15 = vector.load %arg1[%c0_14, %c0_15, %c2, %c0_16] : memref<1x18x18x8xf32, #tpu.memory_space<vmem>>, vector<1x16x16x8xf32>
    %16 = vector.shape_cast %15 : vector<1x16x16x8xf32> to vector<16x16x8xf32>
    %17 = vector.shape_cast %16 : vector<16x16x8xf32> to vector<256x8xf32>
    %c2_17 = arith.constant 2 : index
    %c0_18 = arith.constant 0 : index
    %c0_19 = arith.constant 0 : index
    %18 = vector.load %arg2[%c2_17, %c0_18, %c0_19] : memref<9x8x8xf32, #tpu.memory_space<vmem>>, vector<1x8x8xf32>
    %19 = vector.shape_cast %18 : vector<1x8x8xf32> to vector<8x8xf32>
    %cst_20 = arith.constant dense<0.000000e+00> : vector<256x8xf32>
    %20 = tpu.matmul %17, %19, %cst_20 {dimension_numbers = #tpu.dot_dimension_numbers<[1], [0], [0], [1], [0, 0, 1, 1], [], []>} : vector<256x8xf32>, vector<8x8xf32>, vector<256x8xf32> -> vector<256x8xf32>
    %21 = arith.addf %14, %20 : vector<256x8xf32>
    %c0_21 = arith.constant 0 : index
    %c1_22 = arith.constant 1 : index
    %c0_23 = arith.constant 0 : index
    %c0_24 = arith.constant 0 : index
    %22 = vector.load %arg1[%c0_21, %c1_22, %c0_23, %c0_24] : memref<1x18x18x8xf32, #tpu.memory_space<vmem>>, vector<1x16x16x8xf32>
    %23 = vector.shape_cast %22 : vector<1x16x16x8xf32> to vector<16x16x8xf32>
    %24 = vector.shape_cast %23 : vector<16x16x8xf32> to vector<256x8xf32>
    %c3 = arith.constant 3 : index
    %c0_25 = arith.constant 0 : index
    %c0_26 = arith.constant 0 : index
    %25 = vector.load %arg2[%c3, %c0_25, %c0_26] : memref<9x8x8xf32, #tpu.memory_space<vmem>>, vector<1x8x8xf32>
    %26 = vector.shape_cast %25 : vector<1x8x8xf32> to vector<8x8xf32>
    %cst_27 = arith.constant dense<0.000000e+00> : vector<256x8xf32>
    %27 = tpu.matmul %24, %26, %cst_27 {dimension_numbers = #tpu.dot_dimension_numbers<[1], [0], [0], [1], [0, 0, 1, 1], [], []>} : vector<256x8xf32>, vector<8x8xf32>, vector<256x8xf32> -> vector<256x8xf32>
    %28 = arith.addf %21, %27 : vector<256x8xf32>
    %c0_28 = arith.constant 0 : index
    %c1_29 = arith.constant 1 : index
    %c1_30 = arith.constant 1 : index
    %c0_31 = arith.constant 0 : index
    %29 = vector.load %arg1[%c0_28, %c1_29, %c1_30, %c0_31] : memref<1x18x18x8xf32, #tpu.memory_space<vmem>>, vector<1x16x16x8xf32>
    %30 = vector.shape_cast %29 : vector<1x16x16x8xf32> to vector<16x16x8xf32>
    %31 = vector.shape_cast %30 : vector<16x16x8xf32> to vector<256x8xf32>
    %c4 = arith.constant 4 : index
    %c0_32 = arith.constant 0 : index
    %c0_33 = arith.constant 0 : index
    %32 = vector.load %arg2[%c4, %c0_32, %c0_33] : memref<9x8x8xf32, #tpu.memory_space<vmem>>, vector<1x8x8xf32>
    %33 = vector.shape_cast %32 : vector<1x8x8xf32> to vector<8x8xf32>
    %cst_34 = arith.constant dense<0.000000e+00> : vector<256x8xf32>
    %34 = tpu.matmul %31, %33, %cst_34 {dimension_numbers = #tpu.dot_dimension_numbers<[1], [0], [0], [1], [0, 0, 1, 1], [], []>} : vector<256x8xf32>, vector<8x8xf32>, vector<256x8xf32> -> vector<256x8xf32>
    %35 = arith.addf %28, %34 : vector<256x8xf32>
    %c0_35 = arith.constant 0 : index
    %c1_36 = arith.constant 1 : index
    %c2_37 = arith.constant 2 : index
    %c0_38 = arith.constant 0 : index
    %36 = vector.load %arg1[%c0_35, %c1_36, %c2_37, %c0_38] : memref<1x18x18x8xf32, #tpu.memory_space<vmem>>, vector<1x16x16x8xf32>
    %37 = vector.shape_cast %36 : vector<1x16x16x8xf32> to vector<16x16x8xf32>
    %38 = vector.shape_cast %37 : vector<16x16x8xf32> to vector<256x8xf32>
    %c5 = arith.constant 5 : index
    %c0_39 = arith.constant 0 : index
    %c0_40 = arith.constant 0 : index
    %39 = vector.load %arg2[%c5, %c0_39, %c0_40] : memref<9x8x8xf32, #tpu.memory_space<vmem>>, vector<1x8x8xf32>
    %40 = vector.shape_cast %39 : vector<1x8x8xf32> to vector<8x8xf32>
    %cst_41 = arith.constant dense<0.000000e+00> : vector<256x8xf32>
    %41 = tpu.matmul %38, %40, %cst_41 {dimension_numbers = #tpu.dot_dimension_numbers<[1], [0], [0], [1], [0, 0, 1, 1], [], []>} : vector<256x8xf32>, vector<8x8xf32>, vector<256x8xf32> -> vector<256x8xf32>
    %42 = arith.addf %35, %41 : vector<256x8xf32>
    %c0_42 = arith.constant 0 : index
    %c2_43 = arith.constant 2 : index
    %c0_44 = arith.constant 0 : index
    %c0_45 = arith.constant 0 : index
    %43 = vector.load %arg1[%c0_42, %c2_43, %c0_44, %c0_45] : memref<1x18x18x8xf32, #tpu.memory_space<vmem>>, vector<1x16x16x8xf32>
    %44 = vector.shape_cast %43 : vector<1x16x16x8xf32> to vector<16x16x8xf32>
    %45 = vector.shape_cast %44 : vector<16x16x8xf32> to vector<256x8xf32>
    %c6 = arith.constant 6 : index
    %c0_46 = arith.constant 0 : index
    %c0_47 = arith.constant 0 : index
    %46 = vector.load %arg2[%c6, %c0_46, %c0_47] : memref<9x8x8xf32, #tpu.memory_space<vmem>>, vector<1x8x8xf32>
    %47 = vector.shape_cast %46 : vector<1x8x8xf32> to vector<8x8xf32>
    %cst_48 = arith.constant dense<0.000000e+00> : vector<256x8xf32>
    %48 = tpu.matmul %45, %47, %cst_48 {dimension_numbers = #tpu.dot_dimension_numbers<[1], [0], [0], [1], [0, 0, 1, 1], [], []>} : vector<256x8xf32>, vector<8x8xf32>, vector<256x8xf32> -> vector<256x8xf32>
    %49 = arith.addf %42, %48 : vector<256x8xf32>
    %c0_49 = arith.constant 0 : index
    %c2_50 = arith.constant 2 : index
    %c1_51 = arith.constant 1 : index
    %c0_52 = arith.constant 0 : index
    %50 = vector.load %arg1[%c0_49, %c2_50, %c1_51, %c0_52] : memref<1x18x18x8xf32, #tpu.memory_space<vmem>>, vector<1x16x16x8xf32>
    %51 = vector.shape_cast %50 : vector<1x16x16x8xf32> to vector<16x16x8xf32>
    %52 = vector.shape_cast %51 : vector<16x16x8xf32> to vector<256x8xf32>
    %c7 = arith.constant 7 : index
    %c0_53 = arith.constant 0 : index
    %c0_54 = arith.constant 0 : index
    %53 = vector.load %arg2[%c7, %c0_53, %c0_54] : memref<9x8x8xf32, #tpu.memory_space<vmem>>, vector<1x8x8xf32>
    %54 = vector.shape_cast %53 : vector<1x8x8xf32> to vector<8x8xf32>
    %cst_55 = arith.constant dense<0.000000e+00> : vector<256x8xf32>
    %55 = tpu.matmul %52, %54, %cst_55 {dimension_numbers = #tpu.dot_dimension_numbers<[1], [0], [0], [1], [0, 0, 1, 1], [], []>} : vector<256x8xf32>, vector<8x8xf32>, vector<256x8xf32> -> vector<256x8xf32>
    %56 = arith.addf %49, %55 : vector<256x8xf32>
    %c0_56 = arith.constant 0 : index
    %c2_57 = arith.constant 2 : index
    %c2_58 = arith.constant 2 : index
    %c0_59 = arith.constant 0 : index
    %57 = vector.load %arg1[%c0_56, %c2_57, %c2_58, %c0_59] : memref<1x18x18x8xf32, #tpu.memory_space<vmem>>, vector<1x16x16x8xf32>
    %58 = vector.shape_cast %57 : vector<1x16x16x8xf32> to vector<16x16x8xf32>
    %59 = vector.shape_cast %58 : vector<16x16x8xf32> to vector<256x8xf32>
    %c8 = arith.constant 8 : index
    %c0_60 = arith.constant 0 : index
    %c0_61 = arith.constant 0 : index
    %60 = vector.load %arg2[%c8, %c0_60, %c0_61] : memref<9x8x8xf32, #tpu.memory_space<vmem>>, vector<1x8x8xf32>
    %61 = vector.shape_cast %60 : vector<1x8x8xf32> to vector<8x8xf32>
    %cst_62 = arith.constant dense<0.000000e+00> : vector<256x8xf32>
    %62 = tpu.matmul %59, %61, %cst_62 {dimension_numbers = #tpu.dot_dimension_numbers<[1], [0], [0], [1], [0, 0, 1, 1], [], []>} : vector<256x8xf32>, vector<8x8xf32>, vector<256x8xf32> -> vector<256x8xf32>
    %63 = arith.addf %56, %62 : vector<256x8xf32>
    %cst_63 = arith.constant dense<0.000000e+00> : vector<8xf32>
    %64 = vector.multi_reduction <add>, %63, %cst_63 [0] : vector<256x8xf32> to vector<8xf32>
    %65 = vector.shape_cast %64 : vector<8xf32> to vector<1x8xf32>
    %cst_64 = arith.constant 2.560000e+02 : f32
    %66 = vector.broadcast %cst_64 : f32 to vector<1x8xf32>
    %67 = arith.divf %65, %66 : vector<1x8xf32>
    %68 = vector.broadcast %67 : vector<1x8xf32> to vector<256x8xf32>
    %69 = arith.subf %63, %68 : vector<256x8xf32>
    %70 = arith.mulf %69, %69 : vector<256x8xf32>
    %cst_65 = arith.constant dense<0.000000e+00> : vector<8xf32>
    %71 = vector.multi_reduction <add>, %70, %cst_65 [0] : vector<256x8xf32> to vector<8xf32>
    %72 = vector.shape_cast %71 : vector<8xf32> to vector<1x8xf32>
    %73 = tpu.concatenate %67, %72 in 0 : vector<1x8xf32>, vector<1x8xf32> -> vector<2x8xf32>
    %c0_66 = arith.constant 0 : index
    %c0_67 = arith.constant 0 : index
    %c0_68 = arith.constant 0 : index
    %74 = vector.load %arg3[%c0_66, %c0_67, %c0_68] : memref<1x2x8xf32, #tpu.memory_space<vmem>>, vector<1x2x8xf32>
    %75 = vector.shape_cast %74 : vector<1x2x8xf32> to vector<2x8xf32>
    %76 = vector.shape_cast %73 : vector<2x8xf32> to vector<1x2x8xf32>
    tpu.vector_store %arg3[%c0_66, %c0_67, %c0_68], %76 {strides = array<i32>} : memref<1x2x8xf32, #tpu.memory_space<vmem>>, vector<1x2x8xf32>,
    return
  }
  func.func @transform_0(%arg0: i32) -> (i32, i32, i32, i32) {
    %c0_i32 = arith.constant 0 : i32
    %c0_i32_0 = arith.constant 0 : i32
    %c0_i32_1 = arith.constant 0 : i32
    %c0_i32_2 = arith.constant 0 : i32
    return %arg0, %c0_i32, %c0_i32_0, %c0_i32_1 : i32, i32, i32, i32
  }
  func.func @transform_1(%arg0: i32) -> (i32, i32, i32) {
    %c0_i32 = arith.constant 0 : i32
    %c0_i32_0 = arith.constant 0 : i32
    %c0_i32_1 = arith.constant 0 : i32
    %c0_i32_2 = arith.constant 0 : i32
    return %c0_i32, %c0_i32_0, %c0_i32_1 : i32, i32, i32
  }
  func.func @transform_2(%arg0: i32) -> (i32, i32, i32) {
    %c0_i32 = arith.constant 0 : i32
    %c0_i32_0 = arith.constant 0 : i32
    %c0_i32_1 = arith.constant 0 : i32
    return %arg0, %c0_i32, %c0_i32_0 : i32, i32, i32
  }
}

module attributes {stable_mosaic.version = 11 : i64} {
  func.func @_conv_bn_relu_kernel(%arg0: i32, %arg1: memref<1x18x18x8xf32, #tpu.memory_space<vmem>>, %arg2: memref<9x8x8xf32, #tpu.memory_space<vmem>>, %arg3: memref<1x8xf32, #tpu.memory_space<vmem>>, %arg4: memref<1x8xf32, #tpu.memory_space<vmem>>, %arg5: memref<256x8xf32, #tpu.memory_space<vmem>>) attributes {dimension_semantics = [#tpu.dimension_semantics<parallel>], iteration_bounds = array<i64: 2>, scalar_prefetch = 0 : i64, scratch_operands = 0 : i64, tpu.core_type = #tpu.core_type<tc>, window_params = [{transform_indices = @transform_0, window_bounds = array<i64: 1, 18, 18, 8>}, {pipeline_mode = #tpu.pipeline_mode<synchronous>, transform_indices = @transform_1, window_bounds = array<i64: 9, 8, 8>}, {pipeline_mode = #tpu.pipeline_mode<synchronous>, transform_indices = @transform_2, window_bounds = array<i64: 1, 8>}, {pipeline_mode = #tpu.pipeline_mode<synchronous>, transform_indices = @transform_3, window_bounds = array<i64: 1, 8>}, {transform_indices = @transform_4, window_bounds = array<i64: 256, 8>}]} {
    %cst = arith.constant 0.000000e+00 : f32
    %0 = vector.broadcast %cst : f32 to vector<256x8xf32>
    %c0 = arith.constant 0 : index
    %c0_0 = arith.constant 0 : index
    %c0_1 = arith.constant 0 : index
    %c0_2 = arith.constant 0 : index
    %1 = vector.load %arg1[%c0, %c0_0, %c0_1, %c0_2] : memref<1x18x18x8xf32, #tpu.memory_space<vmem>>, vector<1x16x16x8xf32>
    %2 = vector.shape_cast %1 : vector<1x16x16x8xf32> to vector<16x16x8xf32>
    %3 = vector.shape_cast %2 : vector<16x16x8xf32> to vector<256x8xf32>
    %c0_3 = arith.constant 0 : index
    %c0_4 = arith.constant 0 : index
    %c0_5 = arith.constant 0 : index
    %4 = vector.load %arg2[%c0_3, %c0_4, %c0_5] : memref<9x8x8xf32, #tpu.memory_space<vmem>>, vector<1x8x8xf32>
    %5 = vector.shape_cast %4 : vector<1x8x8xf32> to vector<8x8xf32>
    %cst_6 = arith.constant dense<0.000000e+00> : vector<256x8xf32>
    %6 = tpu.matmul %3, %5, %cst_6 {dimension_numbers = #tpu.dot_dimension_numbers<[1], [0], [0], [1], [0, 0, 1, 1], [], []>} : vector<256x8xf32>, vector<8x8xf32>, vector<256x8xf32> -> vector<256x8xf32>
    %7 = arith.addf %0, %6 : vector<256x8xf32>
    %c0_7 = arith.constant 0 : index
    %c0_8 = arith.constant 0 : index
    %c1 = arith.constant 1 : index
    %c0_9 = arith.constant 0 : index
    %8 = vector.load %arg1[%c0_7, %c0_8, %c1, %c0_9] : memref<1x18x18x8xf32, #tpu.memory_space<vmem>>, vector<1x16x16x8xf32>
    %9 = vector.shape_cast %8 : vector<1x16x16x8xf32> to vector<16x16x8xf32>
    %10 = vector.shape_cast %9 : vector<16x16x8xf32> to vector<256x8xf32>
    %c1_10 = arith.constant 1 : index
    %c0_11 = arith.constant 0 : index
    %c0_12 = arith.constant 0 : index
    %11 = vector.load %arg2[%c1_10, %c0_11, %c0_12] : memref<9x8x8xf32, #tpu.memory_space<vmem>>, vector<1x8x8xf32>
    %12 = vector.shape_cast %11 : vector<1x8x8xf32> to vector<8x8xf32>
    %cst_13 = arith.constant dense<0.000000e+00> : vector<256x8xf32>
    %13 = tpu.matmul %10, %12, %cst_13 {dimension_numbers = #tpu.dot_dimension_numbers<[1], [0], [0], [1], [0, 0, 1, 1], [], []>} : vector<256x8xf32>, vector<8x8xf32>, vector<256x8xf32> -> vector<256x8xf32>
    %14 = arith.addf %7, %13 : vector<256x8xf32>
    %c0_14 = arith.constant 0 : index
    %c0_15 = arith.constant 0 : index
    %c2 = arith.constant 2 : index
    %c0_16 = arith.constant 0 : index
    %15 = vector.load %arg1[%c0_14, %c0_15, %c2, %c0_16] : memref<1x18x18x8xf32, #tpu.memory_space<vmem>>, vector<1x16x16x8xf32>
    %16 = vector.shape_cast %15 : vector<1x16x16x8xf32> to vector<16x16x8xf32>
    %17 = vector.shape_cast %16 : vector<16x16x8xf32> to vector<256x8xf32>
    %c2_17 = arith.constant 2 : index
    %c0_18 = arith.constant 0 : index
    %c0_19 = arith.constant 0 : index
    %18 = vector.load %arg2[%c2_17, %c0_18, %c0_19] : memref<9x8x8xf32, #tpu.memory_space<vmem>>, vector<1x8x8xf32>
    %19 = vector.shape_cast %18 : vector<1x8x8xf32> to vector<8x8xf32>
    %cst_20 = arith.constant dense<0.000000e+00> : vector<256x8xf32>
    %20 = tpu.matmul %17, %19, %cst_20 {dimension_numbers = #tpu.dot_dimension_numbers<[1], [0], [0], [1], [0, 0, 1, 1], [], []>} : vector<256x8xf32>, vector<8x8xf32>, vector<256x8xf32> -> vector<256x8xf32>
    %21 = arith.addf %14, %20 : vector<256x8xf32>
    %c0_21 = arith.constant 0 : index
    %c1_22 = arith.constant 1 : index
    %c0_23 = arith.constant 0 : index
    %c0_24 = arith.constant 0 : index
    %22 = vector.load %arg1[%c0_21, %c1_22, %c0_23, %c0_24] : memref<1x18x18x8xf32, #tpu.memory_space<vmem>>, vector<1x16x16x8xf32>
    %23 = vector.shape_cast %22 : vector<1x16x16x8xf32> to vector<16x16x8xf32>
    %24 = vector.shape_cast %23 : vector<16x16x8xf32> to vector<256x8xf32>
    %c3 = arith.constant 3 : index
    %c0_25 = arith.constant 0 : index
    %c0_26 = arith.constant 0 : index
    %25 = vector.load %arg2[%c3, %c0_25, %c0_26] : memref<9x8x8xf32, #tpu.memory_space<vmem>>, vector<1x8x8xf32>
    %26 = vector.shape_cast %25 : vector<1x8x8xf32> to vector<8x8xf32>
    %cst_27 = arith.constant dense<0.000000e+00> : vector<256x8xf32>
    %27 = tpu.matmul %24, %26, %cst_27 {dimension_numbers = #tpu.dot_dimension_numbers<[1], [0], [0], [1], [0, 0, 1, 1], [], []>} : vector<256x8xf32>, vector<8x8xf32>, vector<256x8xf32> -> vector<256x8xf32>
    %28 = arith.addf %21, %27 : vector<256x8xf32>
    %c0_28 = arith.constant 0 : index
    %c1_29 = arith.constant 1 : index
    %c1_30 = arith.constant 1 : index
    %c0_31 = arith.constant 0 : index
    %29 = vector.load %arg1[%c0_28, %c1_29, %c1_30, %c0_31] : memref<1x18x18x8xf32, #tpu.memory_space<vmem>>, vector<1x16x16x8xf32>
    %30 = vector.shape_cast %29 : vector<1x16x16x8xf32> to vector<16x16x8xf32>
    %31 = vector.shape_cast %30 : vector<16x16x8xf32> to vector<256x8xf32>
    %c4 = arith.constant 4 : index
    %c0_32 = arith.constant 0 : index
    %c0_33 = arith.constant 0 : index
    %32 = vector.load %arg2[%c4, %c0_32, %c0_33] : memref<9x8x8xf32, #tpu.memory_space<vmem>>, vector<1x8x8xf32>
    %33 = vector.shape_cast %32 : vector<1x8x8xf32> to vector<8x8xf32>
    %cst_34 = arith.constant dense<0.000000e+00> : vector<256x8xf32>
    %34 = tpu.matmul %31, %33, %cst_34 {dimension_numbers = #tpu.dot_dimension_numbers<[1], [0], [0], [1], [0, 0, 1, 1], [], []>} : vector<256x8xf32>, vector<8x8xf32>, vector<256x8xf32> -> vector<256x8xf32>
    %35 = arith.addf %28, %34 : vector<256x8xf32>
    %c0_35 = arith.constant 0 : index
    %c1_36 = arith.constant 1 : index
    %c2_37 = arith.constant 2 : index
    %c0_38 = arith.constant 0 : index
    %36 = vector.load %arg1[%c0_35, %c1_36, %c2_37, %c0_38] : memref<1x18x18x8xf32, #tpu.memory_space<vmem>>, vector<1x16x16x8xf32>
    %37 = vector.shape_cast %36 : vector<1x16x16x8xf32> to vector<16x16x8xf32>
    %38 = vector.shape_cast %37 : vector<16x16x8xf32> to vector<256x8xf32>
    %c5 = arith.constant 5 : index
    %c0_39 = arith.constant 0 : index
    %c0_40 = arith.constant 0 : index
    %39 = vector.load %arg2[%c5, %c0_39, %c0_40] : memref<9x8x8xf32, #tpu.memory_space<vmem>>, vector<1x8x8xf32>
    %40 = vector.shape_cast %39 : vector<1x8x8xf32> to vector<8x8xf32>
    %cst_41 = arith.constant dense<0.000000e+00> : vector<256x8xf32>
    %41 = tpu.matmul %38, %40, %cst_41 {dimension_numbers = #tpu.dot_dimension_numbers<[1], [0], [0], [1], [0, 0, 1, 1], [], []>} : vector<256x8xf32>, vector<8x8xf32>, vector<256x8xf32> -> vector<256x8xf32>
    %42 = arith.addf %35, %41 : vector<256x8xf32>
    %c0_42 = arith.constant 0 : index
    %c2_43 = arith.constant 2 : index
    %c0_44 = arith.constant 0 : index
    %c0_45 = arith.constant 0 : index
    %43 = vector.load %arg1[%c0_42, %c2_43, %c0_44, %c0_45] : memref<1x18x18x8xf32, #tpu.memory_space<vmem>>, vector<1x16x16x8xf32>
    %44 = vector.shape_cast %43 : vector<1x16x16x8xf32> to vector<16x16x8xf32>
    %45 = vector.shape_cast %44 : vector<16x16x8xf32> to vector<256x8xf32>
    %c6 = arith.constant 6 : index
    %c0_46 = arith.constant 0 : index
    %c0_47 = arith.constant 0 : index
    %46 = vector.load %arg2[%c6, %c0_46, %c0_47] : memref<9x8x8xf32, #tpu.memory_space<vmem>>, vector<1x8x8xf32>
    %47 = vector.shape_cast %46 : vector<1x8x8xf32> to vector<8x8xf32>
    %cst_48 = arith.constant dense<0.000000e+00> : vector<256x8xf32>
    %48 = tpu.matmul %45, %47, %cst_48 {dimension_numbers = #tpu.dot_dimension_numbers<[1], [0], [0], [1], [0, 0, 1, 1], [], []>} : vector<256x8xf32>, vector<8x8xf32>, vector<256x8xf32> -> vector<256x8xf32>
    %49 = arith.addf %42, %48 : vector<256x8xf32>
    %c0_49 = arith.constant 0 : index
    %c2_50 = arith.constant 2 : index
    %c1_51 = arith.constant 1 : index
    %c0_52 = arith.constant 0 : index
    %50 = vector.load %arg1[%c0_49, %c2_50, %c1_51, %c0_52] : memref<1x18x18x8xf32, #tpu.memory_space<vmem>>, vector<1x16x16x8xf32>
    %51 = vector.shape_cast %50 : vector<1x16x16x8xf32> to vector<16x16x8xf32>
    %52 = vector.shape_cast %51 : vector<16x16x8xf32> to vector<256x8xf32>
    %c7 = arith.constant 7 : index
    %c0_53 = arith.constant 0 : index
    %c0_54 = arith.constant 0 : index
    %53 = vector.load %arg2[%c7, %c0_53, %c0_54] : memref<9x8x8xf32, #tpu.memory_space<vmem>>, vector<1x8x8xf32>
    %54 = vector.shape_cast %53 : vector<1x8x8xf32> to vector<8x8xf32>
    %cst_55 = arith.constant dense<0.000000e+00> : vector<256x8xf32>
    %55 = tpu.matmul %52, %54, %cst_55 {dimension_numbers = #tpu.dot_dimension_numbers<[1], [0], [0], [1], [0, 0, 1, 1], [], []>} : vector<256x8xf32>, vector<8x8xf32>, vector<256x8xf32> -> vector<256x8xf32>
    %56 = arith.addf %49, %55 : vector<256x8xf32>
    %c0_56 = arith.constant 0 : index
    %c2_57 = arith.constant 2 : index
    %c2_58 = arith.constant 2 : index
    %c0_59 = arith.constant 0 : index
    %57 = vector.load %arg1[%c0_56, %c2_57, %c2_58, %c0_59] : memref<1x18x18x8xf32, #tpu.memory_space<vmem>>, vector<1x16x16x8xf32>
    %58 = vector.shape_cast %57 : vector<1x16x16x8xf32> to vector<16x16x8xf32>
    %59 = vector.shape_cast %58 : vector<16x16x8xf32> to vector<256x8xf32>
    %c8 = arith.constant 8 : index
    %c0_60 = arith.constant 0 : index
    %c0_61 = arith.constant 0 : index
    %60 = vector.load %arg2[%c8, %c0_60, %c0_61] : memref<9x8x8xf32, #tpu.memory_space<vmem>>, vector<1x8x8xf32>
    %61 = vector.shape_cast %60 : vector<1x8x8xf32> to vector<8x8xf32>
    %cst_62 = arith.constant dense<0.000000e+00> : vector<256x8xf32>
    %62 = tpu.matmul %59, %61, %cst_62 {dimension_numbers = #tpu.dot_dimension_numbers<[1], [0], [0], [1], [0, 0, 1, 1], [], []>} : vector<256x8xf32>, vector<8x8xf32>, vector<256x8xf32> -> vector<256x8xf32>
    %63 = arith.addf %56, %62 : vector<256x8xf32>
    %c0_63 = arith.constant 0 : index
    %c0_64 = arith.constant 0 : index
    %64 = vector.load %arg3[%c0_63, %c0_64] : memref<1x8xf32, #tpu.memory_space<vmem>>, vector<1x8xf32>
    %65 = vector.broadcast %64 : vector<1x8xf32> to vector<256x8xf32>
    %66 = arith.mulf %63, %65 : vector<256x8xf32>
    %c0_65 = arith.constant 0 : index
    %c0_66 = arith.constant 0 : index
    %67 = vector.load %arg4[%c0_65, %c0_66] : memref<1x8xf32, #tpu.memory_space<vmem>>, vector<1x8xf32>
    %68 = vector.broadcast %67 : vector<1x8xf32> to vector<256x8xf32>
    %69 = arith.addf %66, %68 : vector<256x8xf32>
    %cst_67 = arith.constant 0.000000e+00 : f32
    %70 = vector.broadcast %cst_67 : f32 to vector<256x8xf32>
    %71 = arith.maximumf %69, %70 : vector<256x8xf32>
    %c0_68 = arith.constant 0 : index
    %c0_69 = arith.constant 0 : index
    %72 = vector.load %arg5[%c0_68, %c0_69] : memref<256x8xf32, #tpu.memory_space<vmem>>, vector<256x8xf32>
    tpu.vector_store %arg5[%c0_68, %c0_69], %71 {strides = array<i32>} : memref<256x8xf32, #tpu.memory_space<vmem>>, vector<256x8xf32>,
    return
  }
  func.func @transform_0(%arg0: i32) -> (i32, i32, i32, i32) {
    %c0_i32 = arith.constant 0 : i32
    %c0_i32_0 = arith.constant 0 : i32
    %c0_i32_1 = arith.constant 0 : i32
    %c0_i32_2 = arith.constant 0 : i32
    return %arg0, %c0_i32, %c0_i32_0, %c0_i32_1 : i32, i32, i32, i32
  }
  func.func @transform_1(%arg0: i32) -> (i32, i32, i32) {
    %c0_i32 = arith.constant 0 : i32
    %c0_i32_0 = arith.constant 0 : i32
    %c0_i32_1 = arith.constant 0 : i32
    %c0_i32_2 = arith.constant 0 : i32
    return %c0_i32, %c0_i32_0, %c0_i32_1 : i32, i32, i32
  }
  func.func @transform_2(%arg0: i32) -> (i32, i32) {
    %c0_i32 = arith.constant 0 : i32
    %c0_i32_0 = arith.constant 0 : i32
    %c0_i32_1 = arith.constant 0 : i32
    return %c0_i32, %c0_i32_0 : i32, i32
  }
  func.func @transform_3(%arg0: i32) -> (i32, i32) {
    %c0_i32 = arith.constant 0 : i32
    %c0_i32_0 = arith.constant 0 : i32
    %c0_i32_1 = arith.constant 0 : i32
    return %c0_i32, %c0_i32_0 : i32, i32
  }
  func.func @transform_4(%arg0: i32) -> (i32, i32) {
    %c0_i32 = arith.constant 0 : i32
    %c0_i32_0 = arith.constant 0 : i32
    return %arg0, %c0_i32 : i32, i32
  }
}

</mosaic_0001>

<bundles_post_ra>
// kernel: conv_block_forward.5
= control target key start
LH: loop header
LB: loop body
LE: loop exit
PB: predicated region body
PF: predicated region fallthrough
CT: control target
= control target key end

     0   :  { %s3387_s15 = smov 0   ;;  %s4574_s0 = inlined_call_operand.vmem [shape: f32[2,18,18,4], index: 0, kind: input, shape index: {}]   ;;  %s4575_s1 = inlined_call_operand.vmem [shape: f32[9,4,8], index: 1, kind: input, shape index: {}]   ;;  %s4576_s2 = inlined_call_operand.vmem [shape: f32[1,8], index: 2, kind: input, shape index: {}]   ;;  %s4577_s3 = inlined_call_operand.vmem [shape: f32[1,8], index: 3, kind: input, shape index: {}]   ;;  %s4578_s4 = inlined_call_operand.vmem [shape: f32[512,8], index: 4, kind: output, shape index: {}]  }
   0x1 LB: > { %s3393_s16 = sadd.s32 4294967295, %s3360_s15   ;;  %p2837_p0 = scmp.ge.s32.totalorder %s3360_s15, 1  ;;  %s3360_s15 = sphi %s3387_s15, %s14_s15  }
   0x2   : > { %p162_p1 = scmp.lt.s32.totalorder %s3360_s15, 3 }
   0x4   : > { %p163_p2 = pnand %p2837_p0, %p162_p1 }
   0x6   : > { %166 = sbr.rel (%p163_p2) target bundleno = 733 (0x2dd), region = 36 }
   0xb   : > { %v2841_v0 = vld [vmem:[%s4575_s1 + $0x4] sm:$0xf]  ;;  %vm363_vm0 = vcmask 1043456   ;;  %p188_p3 = scmp.lt.s32.totalorder %s3393_s16, 1  ;;  %v2908_v1 = vld [vmem:[%s4575_s1 + $0x8] sm:$0xf] }
   0xc   : > { %3340 = vmatpush.msk.msra.mxu1 %vm363_vm0, %v2841_v0  ;;  %3341 = vmatpush.msk.msra.mxu2 %vm363_vm0, %v2841_v0  ;;  %v2974_v2 = vld [vmem:[%s4575_s1 + $0xc] sm:$0xf]  ;;  %v231_v3 = vld [vmem:[%s4575_s1] sm:$0xf]  ;;  %v3040_v4 = vld [vmem:[%s4575_s1 + $0x10] sm:$0xf] }
   0xd   : > { %s189_s25 = scalar_select %p188_p3, %s3393_s16, 1  ;;  %3342 = vmatpush.msk.msra.mxu3 %vm363_vm0, %v2841_v0  ;;  %2842 = vmatpush.msk.msra.mxu0 %vm363_vm0, %v2841_v0  ;;  %vm266_vm1 = vcmask 31744   ;;  %v3172_v25 = vld [vmem:[%s4575_s1 + $0x18] sm:$0xf]  ;;  %v3238_v26 = vld [vmem:[%s4575_s1 + $0x1c] sm:$0xf] }
   0xe   : > { %2909 = vmatpush.msk.msrb.mxu2 %vm363_vm0, %v2908_v1  ;;  %2875 = vmatpush.msk.msrb.mxu1 %vm363_vm0, %v231_v3  ;;  %v3106_v27 = vld [vmem:[%s4575_s1 + $0x14] sm:$0xf]  ;;  %v3304_v32 = vld [vmem:[%s4575_s1 + $0x20] sm:$0xf]  ;;  %s2839_s14 = sshll.u32 %s3393_s16, 5  ;;  %vm2744_vm2 = vcmask 64512  }
   0xf   : > { %2975 = vmatpush.msk.msrb.mxu3 %vm363_vm0, %v2974_v2  ;;  %s3343_s28 = smul.u32 432, %s189_s25  ;;  %3041 = vmatpush.msk.msrb.mxu0 %vm363_vm0, %v3040_v4  ;;  %p194_p4 = scmp.lt.s32.totalorder %s2839_s14, 63 }
  0x11   : > { %s3425_s5 = scalar_lea.vmem %s4574_s0, %s3343_s28  ;;  %s4682_s14 = smov (!%p194_p4, %s2839_s14), 63 }
  0x12   : > { %v3428_v5 = vld [vmem:[%s3425_s5 + $0x61] sm:$0xff]  ;;  %v3445_v9 = vld [vmem:[%s3425_s5 + $0x69] sm:$0xff]  ;;  %v3462_v13 = vld [vmem:[%s3425_s5 + $0x79] sm:$0xff]  ;;  %s2840_s20 = sshll.u32 %s4682_s14, 3 }
  0x13   : > { %v3431_v6 = vld [vmem:[%s3425_s5 + $0xc1] sm:$0xff]  ;;  %2851 = vmatmul.msk.f32.vlgmr.msra.gmra.mxu1 %vm266_vm1, %v3428_v5  ;;  %v3448_v10 = vld [vmem:[%s3425_s5 + $0xc9] sm:$0xff]  ;;  %v3465_v14 = vld [vmem:[%s3425_s5 + $0xd9] sm:$0xff]  ;;  %s4307_s23 = scalar_lea.vmem %s4578_s4, %s2840_s20 }
  0x14   : > { %v3434_v7 = vld [vmem:[%s3425_s5 + $0x121] sm:$0xff]  ;;  %2859 = vmatmul.msk.f32.vlgmr.msra.gmra.mxu2 %vm266_vm1, %v3431_v6  ;;  %v3451_v11 = vld [vmem:[%s3425_s5 + $0x129] sm:$0xff]  ;;  %v3468_v15 = vld [vmem:[%s3425_s5 + $0x139] sm:$0xff]  ;;  %3107 = vmatpush.msk.msra.mxu1 %vm363_vm0, %v3106_v27 }
  0x15   : > { %v232_v8 = vld [vmem:[%s3425_s5 + $0x1] sm:$0xff]  ;;  %2867 = vmatmul.msk.f32.vlgmr.msra.gmra.mxu3 %vm266_vm1, %v3434_v7  ;;  %v233_v12 = vld [vmem:[%s3425_s5 + $0x9] sm:$0xff]  ;;  %v234_v16 = vld [vmem:[%s3425_s5 + $0x19] sm:$0xff]  ;;  %3173 = vmatpush.msk.msra.mxu2 %vm363_vm0, %v3172_v25 }
  0x16   : > { %2843 = vmatmul.msk.f32.vlgmr.msra.gmra.mxu0 %vm266_vm1, %v232_v8  ;;  %v3479_v17 = vld [vmem:[%s3425_s5 + $0x81] sm:$0xff]  ;;  %v3496_v21 = vld [vmem:[%s3425_s5 + $0x91] sm:$0xff]  ;;  %3239 = vmatpush.msk.msra.mxu3 %vm363_vm0, %v3238_v26  ;;  %v3528_v28 = vld [vmem:[%s3425_s5 + $0x99] sm:$0xff] }
  0x17   : > { %v3482_v18 = vld [vmem:[%s3425_s5 + $0xe1] sm:$0xff]  ;;  %v3499_v22 = vld [vmem:[%s3425_s5 + $0xf1] sm:$0xff]  ;;  %v3531_v29 = vld [vmem:[%s3425_s5 + $0xf9] sm:$0xff]  ;;  %3305 = vmatpush.msk.msra.mxu0 %vm363_vm0, %v3304_v32 }
  0x18   : > { %v3485_v19 = vld [vmem:[%s3425_s5 + $0x141] sm:$0xff]  ;;  %v3502_v23 = vld [vmem:[%s3425_s5 + $0x151] sm:$0xff]  ;;  %v3534_v30 = vld [vmem:[%s3425_s5 + $0x159] sm:$0xff] }
  0x19   : > { %v235_v20 = vld [vmem:[%s3425_s5 + $0x21] sm:$0xff]  ;;  %v3505_v24 = vld [vmem:[%s3425_s5 + $0x31] sm:$0xff]  ;;  %v3537_v31 = vld [vmem:[%s3425_s5 + $0x39] sm:$0xff] }
  0x1a   : > { %v3552_v33 = vld [vmem:[%s3425_s5 + $0xa9] sm:$0xff]  ;;  %v3572_v37 = vld [vmem:[%s3425_s5 + $0xb1] sm:$0xff]  ;;  %v199_v41 = vld [vmem:[%s3425_s5] sm:$0xff] }
  0x1b   : > { %2852 = vmatmul.msk.f32.gmra.mxu1 %vm266_vm1, %v3445_v9  ;;  %v3555_v34 = vld [vmem:[%s3425_s5 + $0x109] sm:$0xff]  ;;  %v3575_v38 = vld [vmem:[%s3425_s5 + $0x111] sm:$0xff]  ;;  %v2943_v46 = vld [vmem:[%s3425_s5 + $0x20] sm:$0xff] }
  0x1c   : > { %2860 = vmatmul.msk.f32.gmra.mxu2 %vm266_vm1, %v3448_v10  ;;  %v3558_v35 = vld [vmem:[%s3425_s5 + $0x169] sm:$0xff]  ;;  %v3578_v39 = vld [vmem:[%s3425_s5 + $0x171] sm:$0xff]  ;;  %v3606_v47 = vld [vmem:[%s3425_s5 + $0x1a] sm:$0xff] }
  0x1d   : > { %2868 = vmatmul.msk.f32.gmra.mxu3 %vm266_vm1, %v3451_v11  ;;  %v3561_v36 = vld [vmem:[%s3425_s5 + $0x49] sm:$0xff]  ;;  %v3581_v40 = vld [vmem:[%s3425_s5 + $0x51] sm:$0xff]  ;;  %v3646_v53 = vld [vmem:[%s3425_s5 + $0x3a] sm:$0xff] }
  0x1e   : > { %2844 = vmatmul.msk.f32.gmra.mxu0 %vm266_vm1, %v233_v12  ;;  %v692_v42 = vld [vmem:[%s3425_s5 + $0x2] sm:$0xff]  ;;  %v2942_v43 = vld [vmem:[%s3425_s5 + $0x18] sm:$0xff]  ;;  %v693_v45 = vld [vmem:[%s3425_s5 + $0xa] sm:$0xff] }
  0x1f   : > { %v200_v44 = vld [vmem:[%s3425_s5 + $0x8] sm:$0xff]  ;;  %v3609_v48 = vld [vmem:[%s3425_s5 + $0x30] sm:$0xff]  ;;  %v3622_v50 = vld [vmem:[%s3425_s5 + $0x38] sm:$0xff] }
  0x20   : > { %v3619_v49 = vld [vmem:[%s3425_s5 + $0x22] sm:$0xff]  ;;  %v3632_v51 = vld [vmem:[%s3425_s5 + $0x32] sm:$0xff]  ;;  %v3660_v55 = vld [vmem:[%s3425_s5 + $0x4a] sm:$0xff] }
  0x21   : > { %v3635_v52 = vld [vmem:[%s3425_s5 + $0x48] sm:$0xff]  ;;  %v3649_v54 = vld [vmem:[%s3425_s5 + $0x50] sm:$0xff]  ;;  %v3663_v56 = vld [vmem:[%s3425_s5 + $0x60] sm:$0xff] }
  0x22   : > { %v3674_v57 = vld [vmem:[%s3425_s5 + $0x52] sm:$0xff]  ;;  %v3677_v58 = vld [vmem:[%s3425_s5 + $0x68] sm:$0xff]  ;;  %v3715_v3 = vld [vmem:[%s3425_s5 + $0x80] sm:$0xff] }
  0x23   : > { %2853 = vmatmul.msk.f32.gmra.mxu1 %vm266_vm1, %v3462_v13  ;;  %4603 = vst [vmem:[#allocation2_spill] sm:$0xff] %v3677_v58  ;;  %v3690_v60 = vld [vmem:[%s3425_s5 + $0x62] sm:$0xff]  ;;  %v3693_v61 = vld [vmem:[%s3425_s5 + $0x78] sm:$0xff]  ;;  %v3712_v2 = vld [vmem:[%s3425_s5 + $0x6a] sm:$0xff] }
  0x24   : > { %2861 = vmatmul.msk.f32.gmra.mxu2 %vm266_vm1, %v3465_v14  ;;  %4604 = vst [vmem:[#allocation3_spill] sm:$0xff] %v3693_v61  ;;  %v3734_v12 = vld [vmem:[%s3425_s5 + $0x7a] sm:$0xff]  ;;  %v3756_v26 = vld [vmem:[%s3425_s5 + $0x82] sm:$0xff] }
  0x25   : > { %2869 = vmatmul.msk.f32.gmra.mxu3 %vm266_vm1, %v3468_v15  ;;  %4606 = vst [vmem:[#allocation5_spill] sm:$0xff] %v3712_v2  ;;  %v3759_v27 = vld [vmem:[%s3425_s5 + $0x98] sm:$0xff] }
  0x26   : > { %2845 = vmatmul.msk.f32.gmra.mxu0 %vm266_vm1, %v234_v16  ;;  %4607 = vst [vmem:[#allocation6_spill] sm:$0xff] %v3715_v3 }
  0x27   : > { %4609 = vst [vmem:[#allocation8_spill] sm:$0xff] %v3734_v12 }
  0x28   : > { %4612 = vst [vmem:[#allocation11_spill] sm:$0xff] %v3756_v26 }
  0x29   : > { %4613 = vst [vmem:[#allocation12_spill] sm:$0xff] %v3759_v27 }
  0x2b   : > { %2854 = vmatmul.msk.f32.gmra.mxu1 %vm266_vm1, %v3479_v17 }
  0x2c   : > { %2862 = vmatmul.msk.f32.gmra.mxu2 %vm266_vm1, %v3482_v18 }
  0x2d   : > { %2870 = vmatmul.msk.f32.gmra.mxu3 %vm266_vm1, %v3485_v19 }
  0x2e   : > { %2846 = vmatmul.msk.f32.gmra.mxu0 %vm266_vm1, %v235_v20 }
  0x33   : > { %2855 = vmatmul.msk.f32.gmra.mxu1 %vm266_vm1, %v3496_v21 }
  0x34   : > { %2863 = vmatmul.msk.f32.gmra.mxu2 %vm266_vm1, %v3499_v22 }
  0x35   : > { %2871 = vmatmul.msk.f32.gmra.mxu3 %vm266_vm1, %v3502_v23 }
  0x36   : > { %2847 = vmatmul.msk.f32.gmra.mxu0 %vm266_vm1, %v3505_v24 }
  0x3b   : > { %2856 = vmatmul.msk.f32.gmra.mxu1 %vm266_vm1, %v3528_v28 }
  0x3c   : > { %2864 = vmatmul.msk.f32.gmra.mxu2 %vm266_vm1, %v3531_v29 }
  0x3d   : > { %2872 = vmatmul.msk.f32.gmra.mxu3 %vm266_vm1, %v3534_v30 }
  0x3e   : > { %2848 = vmatmul.msk.f32.gmra.mxu0 %vm266_vm1, %v3537_v31 }
  0x43   : > { %2857 = vmatmul.msk.f32.gmra.mxu1 %vm266_vm1, %v3552_v33 }
  0x44   : > { %2865 = vmatmul.msk.f32.gmra.mxu2 %vm266_vm1, %v3555_v34 }
  0x45   : > { %2873 = vmatmul.msk.f32.gmra.mxu3 %vm266_vm1, %v3558_v35 }
  0x46   : > { %2849 = vmatmul.msk.f32.gmra.mxu0 %vm266_vm1, %v3561_v36 }
  0x4b   : > { %2858 = vmatmul.msk.f32.gmra.mxu1 %vm266_vm1, %v3572_v37 }
  0x4c   : > { %2866 = vmatmul.msk.f32.gmra.mxu2 %vm266_vm1, %v3575_v38 }
  0x4d   : > { %2874 = vmatmul.msk.f32.gmra.mxu3 %vm266_vm1, %v3578_v39 }
  0x4e   : > { %2850 = vmatmul.msk.f32.gmra.mxu0 %vm266_vm1, %v3581_v40 }
  0x53   : > { %2876 = vmatmul.msk.f32.vlgmr.msrb.gmra.mxu1 %vm266_vm1, %v199_v41 }
  0x54   : > { %2910 = vmatmul.msk.f32.vlgmr.msrb.gmra.mxu2 %vm266_vm1, %v692_v42 }
  0x55   : > { %2976 = vmatmul.msk.f32.vlgmr.msrb.gmra.mxu3 %vm266_vm1, %v2942_v43 }
  0x56   : > { %3042 = vmatmul.msk.f32.vlgmr.msrb.gmra.mxu0 %vm266_vm1, %v234_v16 }
  0x5b   : > { %2877 = vmatmul.msk.f32.gmra.mxu1 %vm266_vm1, %v200_v44  ;;  %v3781_v44 = vld [vmem:[%s3425_s5 + $0xa8] sm:$0xff] }
  0x5c   : > { %2911 = vmatmul.msk.f32.gmra.mxu2 %vm266_vm1, %v693_v45  ;;  %4616 = vst [vmem:[#allocation15_spill] sm:$0xff] %v3781_v44 }
  0x5d   : > { %2977 = vmatmul.msk.f32.gmra.mxu3 %vm266_vm1, %v2943_v46 }
  0x5e   : > { %3043 = vmatmul.msk.f32.gmra.mxu0 %vm266_vm1, %v235_v20 }
  0x63   : > { %2878 = vmatmul.msk.f32.gmra.mxu1 %vm266_vm1, %v2942_v43  ;;  %v3778_v43 = vld [vmem:[%s3425_s5 + $0x92] sm:$0xff] }
  0x64   : > { %2912 = vmatmul.msk.f32.gmra.mxu2 %vm266_vm1, %v3606_v47  ;;  %4615 = vst [vmem:[#allocation14_spill] sm:$0xff] %v3778_v43 }
  0x65   : > { %2978 = vmatmul.msk.f32.gmra.mxu3 %vm266_vm1, %v3609_v48 }
  0x66   : > { %3044 = vmatmul.msk.f32.gmra.mxu0 %vm266_vm1, %v3505_v24 }
  0x6b   : > { %2879 = vmatmul.msk.f32.gmra.mxu1 %vm266_vm1, %v2943_v46 }
  0x6c   : > { %2913 = vmatmul.msk.f32.gmra.mxu2 %vm266_vm1, %v3619_v49 }
  0x6d   : > { %2979 = vmatmul.msk.f32.gmra.mxu3 %vm266_vm1, %v3622_v50 }
  0x6e   : > { %3045 = vmatmul.msk.f32.gmra.mxu0 %vm266_vm1, %v3537_v31 }
  0x73   : > { %2880 = vmatmul.msk.f32.gmra.mxu1 %vm266_vm1, %v3609_v48 }
  0x74   : > { %2914 = vmatmul.msk.f32.gmra.mxu2 %vm266_vm1, %v3632_v51 }
  0x75   : > { %2980 = vmatmul.msk.f32.gmra.mxu3 %vm266_vm1, %v3635_v52 }
  0x76   : > { %3046 = vmatmul.msk.f32.gmra.mxu0 %vm266_vm1, %v3561_v36 }
  0x7b   : > { %2881 = vmatmul.msk.f32.gmra.mxu1 %vm266_vm1, %v3622_v50 }
  0x7c   : > { %2915 = vmatmul.msk.f32.gmra.mxu2 %vm266_vm1, %v3646_v53 }
  0x7d   : > { %2981 = vmatmul.msk.f32.gmra.mxu3 %vm266_vm1, %v3649_v54 }
  0x7e   : > { %3047 = vmatmul.msk.f32.gmra.mxu0 %vm266_vm1, %v3581_v40 }
  0x83   : > { %2882 = vmatmul.msk.f32.gmra.mxu1 %vm266_vm1, %v3635_v52 }
  0x84   : > { %2916 = vmatmul.msk.f32.gmra.mxu2 %vm266_vm1, %v3660_v55 }
  0x85   : > { %2982 = vmatmul.msk.f32.gmra.mxu3 %vm266_vm1, %v3663_v56 }
  0x86   : > { %3048 = vmatmul.msk.f32.gmra.mxu0 %vm266_vm1, %v3428_v5 }
  0x8b   : > { %2883 = vmatmul.msk.f32.gmra.mxu1 %vm266_vm1, %v3649_v54 }
  0x8c   : > { %2917 = vmatmul.msk.f32.gmra.mxu2 %vm266_vm1, %v3674_v57 }
  0x8d   : > { %2983 = vmatmul.msk.f32.gmra.mxu3 %vm266_vm1, %v3677_v58 }
  0x8e   : > { %3049 = vmatmul.msk.f32.gmra.mxu0 %vm266_vm1, %v3445_v9 }
  0x90   : > { %v3687_v59 = vpop.f32.mrf.mxu1 }
  0x93   : > { %v3695_v62 = vpop.f32.mrf.mxu0  ;;  %2884 = vmatmul.msk.f32.gmra.mxu1 %vm266_vm1, %v3663_v56 }
  0x94   : > { %2918 = vmatmul.msk.f32.gmra.mxu2 %vm266_vm1, %v3690_v60 }
  0x95   : > { %2984 = vmatmul.msk.f32.gmra.mxu3 %vm266_vm1, %v3693_v61 }
  0x96   : > { %3050 = vmatmul.msk.f32.gmra.mxu0 %vm266_vm1, %v3462_v13  ;;  %v3737_v13 = vld [vmem:[%s3425_s5 + $0x90] sm:$0xff] }
  0x97   : > { %v3705_v63 = vpop.f32.mrf.mxu2  ;;  %4610 = vst [vmem:[#allocation9_spill] sm:$0xff] %v3737_v13 }
  0x98   : > { %v3707_v0 = vpop.f32.mrf.mxu3  ;;  %v3709_v1 = vpop.f32.mrf.mxu1 }
  0x99   : > { %4605 = vst [vmem:[#allocation4_spill] sm:$0xff] %v3707_v0 }
  0x9b   : > { %v3717_v4 = vpop.f32.mrf.mxu0  ;;  %2885 = vmatmul.msk.f32.gmra.mxu1 %vm266_vm1, %v3677_v58  ;;  %v3882_v58 = vld [vmem:[%s3425_s5 + $0xe0] sm:$0xff] }
  0x9c   : > { %2919 = vmatmul.msk.f32.gmra.mxu2 %vm266_vm1, %v3712_v2  ;;  %v3879_v2 = vld [vmem:[%s3425_s5 + $0xca] sm:$0xff] }
  0x9d   : > { %2985 = vmatmul.msk.f32.gmra.mxu3 %vm266_vm1, %v3715_v3 }
  0x9e   : > { %3051 = vmatmul.msk.f32.gmra.mxu0 %vm266_vm1, %v3479_v17 }
  0x9f   : > { %v3727_v5 = vpop.f32.mrf.mxu2 }
  0xa0   : > { %v3729_v8 = vpop.f32.mrf.mxu3  ;;  %v3731_v9 = vpop.f32.mrf.mxu1 }
  0xa1   : > { %4608 = vst [vmem:[#allocation7_spill] sm:$0xff] %v3729_v8  ;;  %v3803_v8 = vld [vmem:[%s3425_s5 + $0xb0] sm:$0xff] }
  0xa2   : > { %4620 = vst [vmem:[#allocation19_spill] sm:$0xff] %v3803_v8 }
  0xa3   : > { %v3739_v16 = vpop.f32.mrf.mxu0  ;;  %2886 = vmatmul.msk.f32.gmra.mxu1 %vm266_vm1, %v3693_v61  ;;  %v3867_v61 = vld [vmem:[%s3425_s5 + $0xd8] sm:$0xff] }
  0xa4   : > { %2920 = vmatmul.msk.f32.gmra.mxu2 %vm266_vm1, %v3734_v12 }
  0xa5   : > { %2986 = vmatmul.msk.f32.gmra.mxu3 %vm266_vm1, %v3737_v13 }
  0xa6   : > { %3052 = vmatmul.msk.f32.gmra.mxu0 %vm266_vm1, %v3496_v21 }
  0xa7   : > { %v3749_v17 = vpop.f32.mrf.mxu2 }
  0xa8   : > { %v3751_v20 = vpop.f32.mrf.mxu3  ;;  %v3753_v25 = vpop.f32.mrf.mxu1 }
  0xa9   : > { %4611 = vst [vmem:[#allocation10_spill] sm:$0xff] %v3751_v20  ;;  %v3800_v20 = vld [vmem:[%s3425_s5 + $0x9a] sm:$0xff] }
  0xaa   : > { %4619 = vst [vmem:[#allocation18_spill] sm:$0xff] %v3800_v20 }
  0xab   : > { %v3761_v32 = vpop.f32.mrf.mxu0  ;;  %2887 = vmatmul.msk.f32.gmra.mxu1 %vm266_vm1, %v3715_v3  ;;  %v3844_v3 = vld [vmem:[%s3425_s5 + $0xb2] sm:$0xff] }
  0xac   : > { %2921 = vmatmul.msk.f32.gmra.mxu2 %vm266_vm1, %v3756_v26  ;;  %4627 = vst [vmem:[#allocation26_spill] sm:$0xff] %v3844_v3 }
  0xad   : > { %2987 = vmatmul.msk.f32.gmra.mxu3 %vm266_vm1, %v3759_v27 }
  0xae   : > { %3053 = vmatmul.msk.f32.gmra.mxu0 %vm266_vm1, %v3528_v28 }
  0xaf   : > { %v3771_v21 = vpop.f32.mrf.mxu2 }
  0xb0   : > { %v3773_v41 = vpop.f32.mrf.mxu3  ;;  %v3775_v42 = vpop.f32.mrf.mxu1 }
  0xb1   : > { %4614 = vst [vmem:[#allocation13_spill] sm:$0xff] %v3773_v41 }
  0xb3   : > { %v3783_v45 = vpop.f32.mrf.mxu0  ;;  %2888 = vmatmul.msk.f32.gmra.mxu1 %vm266_vm1, %v3737_v13  ;;  %v3822_v13 = vld [vmem:[%s3425_s5 + $0xaa] sm:$0xff] }
  0xb4   : > { %2922 = vmatmul.msk.f32.gmra.mxu2 %vm266_vm1, %v3778_v43  ;;  %4623 = vst [vmem:[#allocation22_spill] sm:$0xff] %v3822_v13 }
  0xb5   : > { %2988 = vmatmul.msk.f32.gmra.mxu3 %vm266_vm1, %v3781_v44 }
  0xb6   : > { %3054 = vmatmul.msk.f32.gmra.mxu0 %vm266_vm1, %v3552_v33 }
  0xb7   : > { %v3793_v28 = vpop.f32.mrf.mxu2 }
  0xb8   : > { %4617 = vst [vmem:[#allocation16_spill] sm:$0xff] %v3793_v28  ;;  %v3795_v46 = vpop.f32.mrf.mxu3  ;;  %v3797_v41 = vpop.f32.mrf.mxu1 }
  0xb9   : > { %4618 = vst [vmem:[#allocation17_spill] sm:$0xff] %v3795_v46 }
  0xbb   : > { %v3805_v0 = vpop.f32.mrf.mxu0  ;;  %2889 = vmatmul.msk.f32.gmra.mxu1 %vm266_vm1, %v3759_v27  ;;  %v3825_v27 = vld [vmem:[%s3425_s5 + $0xc0] sm:$0xff] }
  0xbc   : > { %2923 = vmatmul.msk.f32.gmra.mxu2 %vm266_vm1, %v3800_v20  ;;  %4624 = vst [vmem:[#allocation23_spill] sm:$0xff] %v3825_v27 }
  0xbd   : > { %2989 = vmatmul.msk.f32.gmra.mxu3 %vm266_vm1, %v3803_v8 }
  0xbe   : > { %3055 = vmatmul.msk.f32.gmra.mxu0 %vm266_vm1, %v3572_v37 }
  0xbf   : > { %v3815_v33 = vpop.f32.mrf.mxu2 }
  0xc0   : > { %4621 = vst [vmem:[#allocation20_spill] sm:$0xff] %v3815_v33  ;;  %v3817_v46 = vpop.f32.mrf.mxu3  ;;  %v3819_v43 = vpop.f32.mrf.mxu1 }
  0xc1   : > { %4622 = vst [vmem:[#allocation21_spill] sm:$0xff] %v3817_v46 }
  0xc3   : > { %v3827_v26 = vpop.f32.mrf.mxu0  ;;  %2890 = vmatmul.msk.f32.gmra.mxu1 %vm266_vm1, %v3781_v44  ;;  %v3847_v44 = vld [vmem:[%s3425_s5 + $0xc8] sm:$0xff] }
  0xc4   : > { %2924 = vmatmul.msk.f32.gmra.mxu2 %vm266_vm1, %v3822_v13 }
  0xc5   : > { %2990 = vmatmul.msk.f32.gmra.mxu3 %vm266_vm1, %v3825_v27 }
  0xc6   : > { %3056 = vmatmul.msk.f32.gmra.mxu0 %vm266_vm1, %v3431_v6 }
  0xc7   : > { %v3837_v37 = vpop.f32.mrf.mxu2 }
  0xc8   : > { %4625 = vst [vmem:[#allocation24_spill] sm:$0xff] %v3837_v37  ;;  %v3839_v46 = vpop.f32.mrf.mxu3  ;;  %v3841_v20 = vpop.f32.mrf.mxu1  ;;  %v3864_v37 = vld [vmem:[%s3425_s5 + $0xc2] sm:$0xff] }
  0xc9   : > { %4626 = vst [vmem:[#allocation25_spill] sm:$0xff] %v3839_v46 }
  0xca   : > { %4630 = vst [vmem:[#allocation29_spill] sm:$0xff] %v3864_v37 }
  0xcb   : > { %v3849_v12 = vpop.f32.mrf.mxu0  ;;  %2891 = vmatmul.msk.f32.gmra.mxu1 %vm266_vm1, %v3803_v8 }
  0xcc   : > { %2925 = vmatmul.msk.f32.gmra.mxu2 %vm266_vm1, %v3844_v3 }
  0xcd   : > { %2991 = vmatmul.msk.f32.gmra.mxu3 %vm266_vm1, %v3847_v44 }
  0xce   : > { %3057 = vmatmul.msk.f32.gmra.mxu0 %vm266_vm1, %v3448_v10 }
  0xcf   : > { %v3859_v6 = vpop.f32.mrf.mxu2 }
  0xd0   : > { %4628 = vst [vmem:[#allocation27_spill] sm:$0xff] %v3859_v6  ;;  %v3861_v46 = vpop.f32.mrf.mxu3  ;;  %v596_v13 = vpop.f32.mrf.mxu1 }
  0xd1   : > { %4629 = vst [vmem:[#allocation28_spill] sm:$0xff] %v3861_v46  ;;  %v597_v10 = vadd.f32 %v596_v13, %v3695_v62 }
  0xd3   : > { %v1399_v8 = vpop.f32.mrf.mxu0  ;;  %2892 = vmatmul.msk.f32.gmra.mxu1 %vm266_vm1, %v3825_v27 }
  0xd4   : > { %2926 = vmatmul.msk.f32.gmra.mxu2 %vm266_vm1, %v3864_v37 }
  0xd5   : > { %2992 = vmatmul.msk.f32.gmra.mxu3 %vm266_vm1, %v3867_v61 }
  0xd6   : > { %3058 = vmatmul.msk.f32.gmra.mxu0 %vm266_vm1, %v3465_v14 }
  0xd7   : > { %v842_v46 = vpop.f32.mrf.mxu2 }
  0xd8   : > { %v938_v3 = vadd.f32 %v842_v46, %v597_v10  ;;  %v1121_v6 = vpop.f32.mrf.mxu3  ;;  %v599_v33 = vpop.f32.mrf.mxu1 }
  0xd9   : > { %v600_v14 = vadd.f32 %v599_v33, %v3717_v4 }
  0xda   : > { %v1217_v27 = vadd.f32 %v1121_v6, %v938_v3  ;;  %v3899_v6 = vld [vmem:[%s3425_s5 + $0xf0] sm:$0xff] }
  0xdb   : > { %v1402_v37 = vpop.f32.mrf.mxu0  ;;  %2893 = vmatmul.msk.f32.gmra.mxu1 %vm266_vm1, %v3847_v44 }
  0xdc   : > { %v3884_v28 = vadd.f32 %v1399_v8, %v1217_v27  ;;  %2927 = vmatmul.msk.f32.gmra.mxu2 %vm266_vm1, %v3879_v2  ;;  %v3896_v27 = vld [vmem:[%s3425_s5 + $0xda] sm:$0xff] }
  0xdd   : > { %2993 = vmatmul.msk.f32.gmra.mxu3 %vm266_vm1, %v3882_v58 }
  0xde   : > { %4631 = vst [vmem:[#allocation30_spill] sm:$0xff] %v3884_v28  ;;  %3059 = vmatmul.msk.f32.gmra.mxu0 %vm266_vm1, %v3482_v18 }
  0xdf   : > { %v845_v62 = vpop.f32.mrf.mxu2 }
  0xe0   : > { %v939_v3 = vadd.f32 %v845_v62, %v600_v14  ;;  %v1124_v13 = vpop.f32.mrf.mxu3  ;;  %v602_v8 = vpop.f32.mrf.mxu1  ;;  %v3913_v62 = vld [vmem:[%s3425_s5 + $0xe2] sm:$0xff] }
  0xe1   : > { %v603_v18 = vadd.f32 %v602_v8, %v3739_v16 }
  0xe2   : > { %v1218_v46 = vadd.f32 %v1124_v13, %v939_v3  ;;  %v3916_v13 = vld [vmem:[%s3425_s5 + $0xf8] sm:$0xff] }
  0xe3   : > { %v1405_v10 = vpop.f32.mrf.mxu0  ;;  %2894 = vmatmul.msk.f32.gmra.mxu1 %vm266_vm1, %v3867_v61 }
  0xe4   : > { %v3901_v28 = vadd.f32 %v1402_v37, %v1218_v46  ;;  %2928 = vmatmul.msk.f32.gmra.mxu2 %vm266_vm1, %v3896_v27 }
  0xe5   : > { %2994 = vmatmul.msk.f32.gmra.mxu3 %vm266_vm1, %v3899_v6 }
  0xe6   : > { %4632 = vst [vmem:[#allocation31_spill] sm:$0xff] %v3901_v28  ;;  %3060 = vmatmul.msk.f32.gmra.mxu0 %vm266_vm1, %v3499_v22 }
  0xe7   : > { %v848_v4 = vpop.f32.mrf.mxu2 }
  0xe8   : > { %v940_v33 = vadd.f32 %v848_v4, %v603_v18  ;;  %v1127_v14 = vpop.f32.mrf.mxu3  ;;  %v605_v37 = vpop.f32.mrf.mxu1  ;;  %v3930_v4 = vld [vmem:[%s3425_s5 + $0xf2] sm:$0xff] }
  0xe9   : > { %v606_v22 = vadd.f32 %v605_v37, %v3761_v32 }
  0xea   : > { %v1219_v3 = vadd.f32 %v1127_v14, %v940_v33  ;;  %v3933_v14 = vld [vmem:[%s3425_s5 + $0x108] sm:$0xff] }
  0xeb   : > { %v1408_v46 = vpop.f32.mrf.mxu0  ;;  %2895 = vmatmul.msk.f32.gmra.mxu1 %vm266_vm1, %v3882_v58 }
  0xec   : > { %v3918_v28 = vadd.f32 %v1405_v10, %v1219_v3  ;;  %2929 = vmatmul.msk.f32.gmra.mxu2 %vm266_vm1, %v3913_v62 }
  0xed   : > { %2995 = vmatmul.msk.f32.gmra.mxu3 %vm266_vm1, %v3916_v13 }
  0xee   : > { %4633 = vst [vmem:[#allocation32_spill] sm:$0xff] %v3918_v28  ;;  %3061 = vmatmul.msk.f32.gmra.mxu0 %vm266_vm1, %v3531_v29 }
  0xef   : > { %v851_v16 = vpop.f32.mrf.mxu2 }
  0xf0   : > { %v941_v8 = vadd.f32 %v851_v16, %v606_v22  ;;  %v1130_v18 = vpop.f32.mrf.mxu3  ;;  %v608_v10 = vpop.f32.mrf.mxu1  ;;  %v3947_v16 = vld [vmem:[%s3425_s5 + $0xfa] sm:$0xff] }
  0xf1   : > { %v609_v29 = vadd.f32 %v608_v10, %v3783_v45 }
  0xf2   : > { %v1220_v33 = vadd.f32 %v1130_v18, %v941_v8  ;;  %v3950_v18 = vld [vmem:[%s3425_s5 + $0x110] sm:$0xff] }
  0xf3   : > { %v1411_v3 = vpop.f32.mrf.mxu0  ;;  %2896 = vmatmul.msk.f32.gmra.mxu1 %vm266_vm1, %v3899_v6 }
  0xf4   : > { %v3935_v28 = vadd.f32 %v1408_v46, %v1220_v33  ;;  %2930 = vmatmul.msk.f32.gmra.mxu2 %vm266_vm1, %v3930_v4 }
  0xf5   : > { %2996 = vmatmul.msk.f32.gmra.mxu3 %vm266_vm1, %v3933_v14 }
  0xf6   : > { %4634 = vst [vmem:[#allocation33_spill] sm:$0xff] %v3935_v28  ;;  %3062 = vmatmul.msk.f32.gmra.mxu0 %vm266_vm1, %v3555_v34 }
  0xf7   : > { %v854_v32 = vpop.f32.mrf.mxu2 }
  0xf8   : > { %v942_v37 = vadd.f32 %v854_v32, %v609_v29  ;;  %v1133_v22 = vpop.f32.mrf.mxu3  ;;  %v611_v46 = vpop.f32.mrf.mxu1  ;;  %v3964_v32 = vld [vmem:[%s3425_s5 + $0x10a] sm:$0xff] }
  0xf9   : > { %v612_v34 = vadd.f32 %v611_v46, %v3805_v0 }
  0xfa   : > { %v1221_v8 = vadd.f32 %v1133_v22, %v942_v37  ;;  %v3967_v22 = vld [vmem:[%s3425_s5 + $0x120] sm:$0xff] }
  0xfb   : > { %v1414_v33 = vpop.f32.mrf.mxu0  ;;  %2897 = vmatmul.msk.f32.gmra.mxu1 %vm266_vm1, %v3916_v13 }
  0xfc   : > { %v3952_v28 = vadd.f32 %v1411_v3, %v1221_v8  ;;  %2931 = vmatmul.msk.f32.gmra.mxu2 %vm266_vm1, %v3947_v16 }
  0xfd   : > { %2997 = vmatmul.msk.f32.gmra.mxu3 %vm266_vm1, %v3950_v18 }
  0xfe   : > { %4635 = vst [vmem:[#allocation34_spill] sm:$0xff] %v3952_v28  ;;  %3063 = vmatmul.msk.f32.gmra.mxu0 %vm266_vm1, %v3575_v38 }
  0xff   : > { %v857_v45 = vpop.f32.mrf.mxu2 }
 0x100   : > { %v943_v10 = vadd.f32 %v857_v45, %v612_v34  ;;  %v1136_v29 = vpop.f32.mrf.mxu3  ;;  %v614_v3 = vpop.f32.mrf.mxu1  ;;  %v3981_v45 = vld [vmem:[%s3425_s5 + $0x112] sm:$0xff] }
 0x101   : > { %v615_v38 = vadd.f32 %v614_v3, %v3827_v26 }
 0x102   : > { %v1222_v37 = vadd.f32 %v1136_v29, %v943_v10  ;;  %v3984_v29 = vld [vmem:[%s3425_s5 + $0x128] sm:$0xff] }
 0x103   : > { %v1417_v8 = vpop.f32.mrf.mxu0  ;;  %2898 = vmatmul.msk.f32.gmra.mxu1 %vm266_vm1, %v3933_v14 }
 0x104   : > { %v3969_v28 = vadd.f32 %v1414_v33, %v1222_v37  ;;  %2932 = vmatmul.msk.f32.gmra.mxu2 %vm266_vm1, %v3964_v32 }
 0x105   : > { %2998 = vmatmul.msk.f32.gmra.mxu3 %vm266_vm1, %v3967_v22 }
 0x106   : > { %4636 = vst [vmem:[#allocation35_spill] sm:$0xff] %v3969_v28  ;;  %3064 = vmatmul.msk.f32.gmra.mxu0 %vm266_vm1, %v3434_v7 }
 0x107   : > { %v860_v0 = vpop.f32.mrf.mxu2 }
 0x108   : > { %v944_v46 = vadd.f32 %v860_v0, %v615_v38  ;;  %v1139_v34 = vpop.f32.mrf.mxu3  ;;  %v617_v33 = vpop.f32.mrf.mxu1  ;;  %v3998_v0 = vld [vmem:[%s3425_s5 + $0x122] sm:$0xff] }
 0x109   : > { %v618_v7 = vadd.f32 %v617_v33, %v3849_v12 }
 0x10a   : > { %v1223_v10 = vadd.f32 %v1139_v34, %v944_v46  ;;  %v4001_v34 = vld [vmem:[%s3425_s5 + $0x138] sm:$0xff] }
 0x10b   : > { %v1420_v37 = vpop.f32.mrf.mxu0  ;;  %2899 = vmatmul.msk.f32.gmra.mxu1 %vm266_vm1, %v3950_v18 }
 0x10c   : > { %v3986_v28 = vadd.f32 %v1417_v8, %v1223_v10  ;;  %2933 = vmatmul.msk.f32.gmra.mxu2 %vm266_vm1, %v3981_v45 }
 0x10d   : > { %2999 = vmatmul.msk.f32.gmra.mxu3 %vm266_vm1, %v3984_v29 }
 0x10e   : > { %4637 = vst [vmem:[#allocation36_spill] sm:$0xff] %v3986_v28  ;;  %3065 = vmatmul.msk.f32.gmra.mxu0 %vm266_vm1, %v3451_v11 }
 0x10f   : > { %v863_v26 = vpop.f32.mrf.mxu2 }
 0x110   : > { %v945_v3 = vadd.f32 %v863_v26, %v618_v7  ;;  %v1142_v38 = vpop.f32.mrf.mxu3  ;;  %v620_v8 = vpop.f32.mrf.mxu1  ;;  %v4015_v26 = vld [vmem:[%s3425_s5 + $0x12a] sm:$0xff] }
 0x111   : > { %v621_v11 = vadd.f32 %v620_v8, %v3687_v59 }
 0x112   : > { %v1224_v46 = vadd.f32 %v1142_v38, %v945_v3  ;;  %v2967_v38 = vld [vmem:[%s3425_s5 + $0x140] sm:$0xff] }
 0x113   : > { %v1423_v10 = vpop.f32.mrf.mxu0  ;;  %2900 = vmatmul.msk.f32.gmra.mxu1 %vm266_vm1, %v3967_v22 }
 0x114   : > { %v4003_v28 = vadd.f32 %v1420_v37, %v1224_v46  ;;  %2934 = vmatmul.msk.f32.gmra.mxu2 %vm266_vm1, %v3998_v0 }
 0x115   : > { %3000 = vmatmul.msk.f32.gmra.mxu3 %vm266_vm1, %v4001_v34 }
 0x116   : > { %4638 = vst [vmem:[#allocation37_spill] sm:$0xff] %v4003_v28  ;;  %3066 = vmatmul.msk.f32.gmra.mxu0 %vm266_vm1, %v3468_v15 }
 0x117   : > { %v866_v12 = vpop.f32.mrf.mxu2 }
 0x118   : > { %v946_v33 = vadd.f32 %v866_v12, %v621_v11  ;;  %v1145_v7 = vpop.f32.mrf.mxu3  ;;  %v623_v37 = vpop.f32.mrf.mxu1 }
 0x119   : > { %v624_v15 = vadd.f32 %v623_v37, %v3709_v1 }
 0x11a   : > { %v1225_v3 = vadd.f32 %v1145_v7, %v946_v33  ;;  %v2968_v7 = vld [vmem:[%s3425_s5 + $0x150] sm:$0xff] }
 0x11b   : > { %v1426_v46 = vpop.f32.mrf.mxu0  ;;  %2901 = vmatmul.msk.f32.gmra.mxu1 %vm266_vm1, %v3984_v29 }
 0x11c   : > { %v4018_v28 = vadd.f32 %v1423_v10, %v1225_v3  ;;  %2935 = vmatmul.msk.f32.gmra.mxu2 %vm266_vm1, %v4015_v26  ;;  %v4029_v10 = vld [vmem:[%s3425_s5 + $0x13a] sm:$0xff] }
 0x11d   : > { %3001 = vmatmul.msk.f32.gmra.mxu3 %vm266_vm1, %v2967_v38 }
 0x11e   : > { %4639 = vst [vmem:[#allocation38_spill] sm:$0xff] %v4018_v28  ;;  %3067 = vmatmul.msk.f32.gmra.mxu0 %vm266_vm1, %v3485_v19 }
 0x11f   : > { %v869_v59 = vpop.f32.mrf.mxu2 }
 0x120   : > { %v947_v8 = vadd.f32 %v869_v59, %v624_v15  ;;  %v1148_v11 = vpop.f32.mrf.mxu3  ;;  %v626_v12 = vpop.f32.mrf.mxu1 }
 0x121   : > { %v627_v19 = vadd.f32 %v626_v12, %v3731_v9 }
 0x122   : > { %v1226_v33 = vadd.f32 %v1148_v11, %v947_v8  ;;  %v2969_v11 = vld [vmem:[%s3425_s5 + $0x158] sm:$0xff] }
 0x123   : > { %v1429_v3 = vpop.f32.mrf.mxu0  ;;  %2902 = vmatmul.msk.f32.gmra.mxu1 %vm266_vm1, %v4001_v34 }
 0x124   : > { %v4032_v28 = vadd.f32 %v1426_v46, %v1226_v33  ;;  %2936 = vmatmul.msk.f32.gmra.mxu2 %vm266_vm1, %v4029_v10  ;;  %v4043_v46 = vld [vmem:[%s3425_s5 + $0x142] sm:$0xff] }
 0x125   : > { %3002 = vmatmul.msk.f32.gmra.mxu3 %vm266_vm1, %v2968_v7 }
 0x126   : > { %4640 = vst [vmem:[#allocation39_spill] sm:$0xff] %v4032_v28  ;;  %3068 = vmatmul.msk.f32.gmra.mxu0 %vm266_vm1, %v3502_v23 }
 0x127   : > { %v872_v1 = vpop.f32.mrf.mxu2 }
 0x128   : > { %v948_v37 = vadd.f32 %v872_v1, %v627_v19  ;;  %v1151_v15 = vpop.f32.mrf.mxu3  ;;  %v629_v59 = vpop.f32.mrf.mxu1 }
 0x129   : > { %v630_v23 = vadd.f32 %v629_v59, %v3753_v25 }
 0x12a   : > { %v1227_v8 = vadd.f32 %v1151_v15, %v948_v37  ;;  %v720_v37 = vld [vmem:[%s3425_s5 + $0x152] sm:$0xff]  ;;  %v2970_v15 = vld [vmem:[%s3425_s5 + $0x168] sm:$0xff] }
 0x12b   : > { %v1432_v33 = vpop.f32.mrf.mxu0  ;;  %2903 = vmatmul.msk.f32.gmra.mxu1 %vm266_vm1, %v2967_v38 }
 0x12c   : > { %v4046_v28 = vadd.f32 %v1429_v3, %v1227_v8  ;;  %2937 = vmatmul.msk.f32.gmra.mxu2 %vm266_vm1, %v4043_v46 }
 0x12d   : > { %3003 = vmatmul.msk.f32.gmra.mxu3 %vm266_vm1, %v2969_v11 }
 0x12e   : > { %3069 = vmatmul.msk.f32.gmra.mxu0 %vm266_vm1, %v3534_v30 }
 0x12f   : > { %v875_v9 = vpop.f32.mrf.mxu2 }
 0x130   : > { %v949_v12 = vadd.f32 %v875_v9, %v630_v23  ;;  %v1154_v19 = vpop.f32.mrf.mxu3  ;;  %v632_v1 = vpop.f32.mrf.mxu1 }
 0x131   : > { %v633_v30 = vadd.f32 %v632_v1, %v3775_v42 }
 0x132   : > { %v1228_v3 = vadd.f32 %v1154_v19, %v949_v12  ;;  %v721_v12 = vld [vmem:[%s3425_s5 + $0x15a] sm:$0xff]  ;;  %v2971_v19 = vld [vmem:[%s3425_s5 + $0x170] sm:$0xff] }
 0x133   : > { %v1435_v38 = vpop.f32.mrf.mxu0  ;;  %2904 = vmatmul.msk.f32.gmra.mxu1 %vm266_vm1, %v2968_v7 }
 0x134   : > { %v4057_v8 = vadd.f32 %v1432_v33, %v1228_v3  ;;  %2938 = vmatmul.msk.f32.gmra.mxu2 %vm266_vm1, %v720_v37 }
 0x135   : > { %3004 = vmatmul.msk.f32.gmra.mxu3 %vm266_vm1, %v2970_v15 }
 0x136   : > { %3070 = vmatmul.msk.f32.gmra.mxu0 %vm266_vm1, %v3558_v35 }
 0x137   : > { %v878_v25 = vpop.f32.mrf.mxu2 }
 0x138   : > { %v950_v59 = vadd.f32 %v878_v25, %v633_v30  ;;  %v1157_v23 = vpop.f32.mrf.mxu3  ;;  %v635_v9 = vpop.f32.mrf.mxu1  ;;  %v722_v25 = vld [vmem:[%s3425_s5 + $0x16a] sm:$0xff] }
 0x139   : > { %v636_v35 = vadd.f32 %v635_v9, %v3797_v41 }
 0x13a   : > { %v1229_v33 = vadd.f32 %v1157_v23, %v950_v59 }
 0x13b   : > { %v1438_v7 = vpop.f32.mrf.mxu0  ;;  %2905 = vmatmul.msk.f32.gmra.mxu1 %vm266_vm1, %v2969_v11  ;;  %v3038_v11 = vld [vmem:[%s3425_s5 + $0x181] sm:$0xff] }
 0x13c   : > { %v4067_v3 = vadd.f32 %v1435_v38, %v1229_v33  ;;  %2939 = vmatmul.msk.f32.gmra.mxu2 %vm266_vm1, %v721_v12  ;;  %v2972_v38 = vld [vmem:[%s3425_s5 + $0x180] sm:$0xff] }
 0x13d   : > { %3005 = vmatmul.msk.f32.gmra.mxu3 %vm266_vm1, %v2971_v19 }
 0x13e   : > { %4641 = vst [vmem:[#allocation40_spill] sm:$0xff] %v4067_v3  ;;  %3071 = vmatmul.msk.f32.gmra.mxu0 %vm266_vm1, %v3578_v39 }
 0x13f   : > { %v881_v42 = vpop.f32.mrf.mxu2 }
 0x140   : > { %v951_v1 = vadd.f32 %v881_v42, %v636_v35  ;;  %v1160_v37 = vpop.f32.mrf.mxu3  ;;  %v638_v30 = vpop.f32.mrf.mxu1  ;;  %v723_v42 = vld [vmem:[%s3425_s5 + $0x172] sm:$0xff] }
 0x141   : > { %v639_v39 = vadd.f32 %v638_v30, %v3819_v43 }
 0x142   : > { %v1230_v59 = vadd.f32 %v1160_v37, %v951_v1  ;;  %v2973_v37 = vld [vmem:[%s3425_s5 + $0x188] sm:$0xff] }
 0x143   : > { %v1441_v23 = vpop.f32.mrf.mxu0  ;;  %2906 = vmatmul.msk.f32.gmra.mxu1 %vm266_vm1, %v2970_v15 }
 0x144   : > { %v4078_v12 = vadd.f32 %v1438_v7, %v1230_v59  ;;  %2940 = vmatmul.msk.f32.gmra.mxu2 %vm266_vm1, %v722_v25  ;;  %v3039_v7 = vld [vmem:[%s3425_s5 + $0x189] sm:$0xff] }
 0x145   : > { %3006 = vmatmul.msk.f32.gmra.mxu3 %vm266_vm1, %v2972_v38 }
 0x146   : > { %3072 = vmatmul.msk.f32.gmra.mxu0 %vm266_vm1, %v3038_v11 }
 0x147   : > { %v884_v41 = vpop.f32.mrf.mxu2 }
 0x148   : > { %v952_v9 = vadd.f32 %v884_v41, %v639_v39  ;;  %v1163_v33 = vpop.f32.mrf.mxu3  ;;  %v641_v35 = vpop.f32.mrf.mxu1 }
 0x149   : > { %v642_v43 = vadd.f32 %v641_v35, %v3841_v20 }
 0x14a   : > { %v1231_v1 = vadd.f32 %v1163_v33, %v952_v9 }
 0x14b   : > { %v1444_v3 = vpop.f32.mrf.mxu0  ;;  %2907 = vmatmul.msk.f32.gmra.mxu1 %vm266_vm1, %v2971_v19 }
 0x14c   : > { %v4088_v59 = vadd.f32 %v1441_v23, %v1231_v1  ;;  %2941 = vmatmul.msk.f32.gmra.mxu2 %vm266_vm1, %v723_v42 }
 0x14d   : > { %3007 = vmatmul.msk.f32.gmra.mxu3 %vm266_vm1, %v2973_v37 }
 0x14e   : > { %3073 = vmatmul.msk.f32.gmra.mxu0 %vm266_vm1, %v3039_v7 }
 0x14f   : > { %v887_v15 = vpop.f32.mrf.mxu2 }
 0x150   : > { %v953_v30 = vadd.f32 %v887_v15, %v642_v43  ;;  %v1166_v25 = vpop.f32.mrf.mxu3  ;;  %v644_v38 = vpop.f32.mrf.mxu1 }
 0x151   : > { %v645_v20 = vadd.f32 %v644_v38, %v3705_v63 }
 0x152   : > { %v1232_v11 = vadd.f32 %v1166_v25, %v953_v30 }
 0x153   : > { %v1447_v39 = vpop.f32.mrf.mxu0  ;;  %3108 = vmatmul.msk.f32.vlgmr.msra.gmra.mxu1 %vm266_vm1, %v3606_v47 }
 0x154   : > { %v4095_v41 = vadd.f32 %v1444_v3, %v1232_v11  ;;  %3174 = vmatmul.msk.f32.vlgmr.msra.gmra.mxu2 %vm266_vm1, %v3609_v48 }
 0x155   : > { %3240 = vmatmul.msk.f32.vlgmr.msra.gmra.mxu3 %vm266_vm1, %v3505_v24 }
 0x156   : > { %3306 = vmatmul.msk.f32.vlgmr.msra.gmra.mxu0 %vm266_vm1, %v3632_v51 }
 0x157   : > { %v890_v19 = vpop.f32.mrf.mxu2 }
 0x158   : > { %v954_v23 = vadd.f32 %v890_v19, %v645_v20  ;;  %v1169_v9 = vpop.f32.mrf.mxu3  ;;  %v647_v33 = vpop.f32.mrf.mxu1  ;;  %v3210_v20 = vld [vmem:[%s3425_s5 + $0x61] sm:$0xff] }
 0x159   : > { %v648_v24 = vadd.f32 %v647_v33, %v3727_v5 }
 0x15a   : > { %v1233_v3 = vadd.f32 %v1169_v9, %v954_v23 }
 0x15b   : > { %v1450_v35 = vpop.f32.mrf.mxu0  ;;  %3109 = vmatmul.msk.f32.gmra.mxu1 %vm266_vm1, %v3619_v49 }
 0x15c   : > { %v4106_v42 = vadd.f32 %v1447_v39, %v1233_v3  ;;  %3175 = vmatmul.msk.f32.gmra.mxu2 %vm266_vm1, %v3622_v50 }
 0x15d   : > { %3241 = vmatmul.msk.f32.gmra.mxu3 %vm266_vm1, %v3537_v31 }
 0x15e   : > { %3307 = vmatmul.msk.f32.gmra.mxu0 %vm266_vm1, %v3646_v53 }
 0x15f   : > { %v893_v47 = vpop.f32.mrf.mxu2 }
 0x160   : > { %v955_v48 = vadd.f32 %v893_v47, %v648_v24  ;;  %v1172_v63 = vpop.f32.mrf.mxu3  ;;  %v650_v1 = vpop.f32.mrf.mxu1 }
 0x161   : > { %v651_v31 = vadd.f32 %v650_v1, %v3749_v17 }
 0x162   : > { %v1234_v37 = vadd.f32 %v1172_v63, %v955_v48  ;;  %v4645_v48 = vld [vmem:[#allocation20_spill] sm:$0xff] }
 0x163   : > { %v1453_v7 = vpop.f32.mrf.mxu0  ;;  %3110 = vmatmul.msk.f32.gmra.mxu1 %vm266_vm1, %v3632_v51 }
 0x164   : > { %v4117_v43 = vadd.f32 %v1450_v35, %v1234_v37  ;;  %3176 = vmatmul.msk.f32.gmra.mxu2 %vm266_vm1, %v3635_v52  ;;  %v3211_v35 = vld [vmem:[%s3425_s5 + $0x69] sm:$0xff] }
 0x165   : > { %3242 = vmatmul.msk.f32.gmra.mxu3 %vm266_vm1, %v3561_v36 }
 0x166   : > { %3308 = vmatmul.msk.f32.gmra.mxu0 %vm266_vm1, %v3660_v55 }
 0x167   : > { %v896_v49 = vpop.f32.mrf.mxu2 }
 0x168   : > { %v956_v50 = vadd.f32 %v896_v49, %v651_v31  ;;  %v1175_v5 = vpop.f32.mrf.mxu3  ;;  %v653_v15 = vpop.f32.mrf.mxu1 }
 0x169   : > { %v654_v36 = vadd.f32 %v653_v15, %v3771_v21 }
 0x16a   : > { %v1235_v30 = vadd.f32 %v1175_v5, %v956_v50  ;;  %v3212_v50 = vld [vmem:[%s3425_s5 + $0x79] sm:$0xff] }
 0x16b   : > { %v1456_v25 = vpop.f32.mrf.mxu0  ;;  %3111 = vmatmul.msk.f32.gmra.mxu1 %vm266_vm1, %v3646_v53 }
 0x16c   : > { %v4128_v38 = vadd.f32 %v1453_v7, %v1235_v30  ;;  %3177 = vmatmul.msk.f32.gmra.mxu2 %vm266_vm1, %v3649_v54  ;;  %v4647_v30 = vld [vmem:[#allocation8_spill] sm:$0xff] }
 0x16d   : > { %3243 = vmatmul.msk.f32.gmra.mxu3 %vm266_vm1, %v3581_v40  ;;  %v4642_v40 = vld [vmem:[#allocation16_spill] sm:$0xff] }
 0x16e   : > { %3309 = vmatmul.msk.f32.gmra.mxu0 %vm266_vm1, %v3674_v57 }
 0x16f   : > { %v899_v51 = vpop.f32.mrf.mxu2 }
 0x170   : > { %v957_v52 = vadd.f32 %v899_v51, %v654_v36  ;;  %v1178_v17 = vpop.f32.mrf.mxu3  ;;  %v656_v11 = vpop.f32.mrf.mxu1 }
 0x171   : > { %v657_v54 = vadd.f32 %v656_v11, %v4642_v40 }
 0x172   : > { %v1236_v39 = vadd.f32 %v1178_v17, %v957_v52 }
 0x173   : > { %v1459_v19 = vpop.f32.mrf.mxu0  ;;  %3112 = vmatmul.msk.f32.gmra.mxu1 %vm266_vm1, %v3660_v55  ;;  %v4643_v55 = vld [vmem:[#allocation2_spill] sm:$0xff] }
 0x174   : > { %v4140_v53 = vadd.f32 %v1456_v25, %v1236_v39  ;;  %3178 = vmatmul.msk.f32.gmra.mxu2 %vm266_vm1, %v3663_v56  ;;  %v4644_v56 = vld [vmem:[#allocation5_spill] sm:$0xff]  ;;  %v4648_v25 = vld [vmem:[#allocation24_spill] sm:$0xff] }
 0x175   : > { %3244 = vmatmul.msk.f32.gmra.mxu3 %vm266_vm1, %v3210_v20  ;;  %v3213_v20 = vld [vmem:[%s3425_s5 + $0x81] sm:$0xff] }
 0x176   : > { %3310 = vmatmul.msk.f32.gmra.mxu0 %vm266_vm1, %v3690_v60 }
 0x177   : > { %v902_v21 = vpop.f32.mrf.mxu2 }
 0x178   : > { %v958_v23 = vadd.f32 %v902_v21, %v657_v54  ;;  %v1181_v9 = vpop.f32.mrf.mxu3  ;;  %v659_v33 = vpop.f32.mrf.mxu1  ;;  %v4650_v54 = vld [vmem:[#allocation11_spill] sm:$0xff] }
 0x179   : > { %v660_v63 = vadd.f32 %v659_v33, %v4645_v48  ;;  %v4651_v21 = vld [vmem:[#allocation27_spill] sm:$0xff] }
 0x17a   : > { %v1237_v3 = vadd.f32 %v1181_v9, %v958_v23 }
 0x17b   : > { %v1462_v24 = vpop.f32.mrf.mxu0  ;;  %3113 = vmatmul.msk.f32.gmra.mxu1 %vm266_vm1, %v3674_v57  ;;  %v4646_v57 = vld [vmem:[#allocation3_spill] sm:$0xff] }
 0x17c   : > { %v4151_v47 = vadd.f32 %v1459_v19, %v1237_v3  ;;  %3179 = vmatmul.msk.f32.gmra.mxu2 %vm266_vm1, %v4643_v55  ;;  %v3214_v55 = vld [vmem:[%s3425_s5 + $0x91] sm:$0xff] }
 0x17d   : > { %3245 = vmatmul.msk.f32.gmra.mxu3 %vm266_vm1, %v3211_v35 }
 0x17e   : > { %3311 = vmatmul.msk.f32.gmra.mxu0 %vm266_vm1, %v4644_v56 }
 0x17f   : > { %v905_v1 = vpop.f32.mrf.mxu2 }
 0x180   : > { %v959_v37 = vadd.f32 %v905_v1, %v660_v63  ;;  %v1184_v7 = vpop.f32.mrf.mxu3  ;;  %v662_v31 = vpop.f32.mrf.mxu1  ;;  %v4653_v1 = vld [vmem:[#allocation14_spill] sm:$0xff] }
 0x181   : > { %v663_v36 = vadd.f32 %v662_v31, %v4648_v25  ;;  %v3215_v25 = vld [vmem:[%s3425_s5 + $0x99] sm:$0xff] }
 0x182   : > { %v1238_v49 = vadd.f32 %v1184_v7, %v959_v37  ;;  %v4654_v37 = vld [vmem:[#allocation4_spill] sm:$0xff] }
 0x183   : > { %v1465_v5 = vpop.f32.mrf.mxu0  ;;  %3114 = vmatmul.msk.f32.gmra.mxu1 %vm266_vm1, %v3690_v60  ;;  %v4649_v60 = vld [vmem:[#allocation6_spill] sm:$0xff] }
 0x184   : > { %v4162_v15 = vadd.f32 %v1462_v24, %v1238_v49  ;;  %3180 = vmatmul.msk.f32.gmra.mxu2 %vm266_vm1, %v4646_v57 }
 0x185   : > { %3246 = vmatmul.msk.f32.gmra.mxu3 %vm266_vm1, %v3212_v50 }
 0x186   : > { %3312 = vmatmul.msk.f32.gmra.mxu0 %vm266_vm1, %v4647_v30 }
 0x187   : > { %v908_v51 = vpop.f32.mrf.mxu2 }
 0x188   : > { %v960_v52 = vadd.f32 %v908_v51, %v663_v36  ;;  %v1187_v17 = vpop.f32.mrf.mxu3  ;;  %v665_v11 = vpop.f32.mrf.mxu1 }
 0x189   : > { %v666_v23 = vadd.f32 %v665_v11, %v4651_v21 }
 0x18a   : > { %v1239_v39 = vadd.f32 %v1187_v17, %v960_v52  ;;  %v4656_v52 = vld [vmem:[#allocation18_spill] sm:$0xff]  ;;  %v4657_v17 = vld [vmem:[#allocation7_spill] sm:$0xff] }
 0x18b   : > { %v1468_v19 = vpop.f32.mrf.mxu0  ;;  %3115 = vmatmul.msk.f32.gmra.mxu1 %vm266_vm1, %v4644_v56  ;;  %v4652_v56 = vld [vmem:[#allocation9_spill] sm:$0xff] }
 0x18c   : > { %v4173_v40 = vadd.f32 %v1465_v5, %v1239_v39  ;;  %3181 = vmatmul.msk.f32.gmra.mxu2 %vm266_vm1, %v4649_v60 }
 0x18d   : > { %3247 = vmatmul.msk.f32.gmra.mxu3 %vm266_vm1, %v3213_v20 }
 0x18e   : > { %3313 = vmatmul.msk.f32.gmra.mxu0 %vm266_vm1, %v4650_v54 }
 0x18f   : > { %v911_v9 = vpop.f32.mrf.mxu2 }
 0x190   : > { %v961_v33 = vadd.f32 %v911_v9, %v666_v23  ;;  %v1190_v3 = vpop.f32.mrf.mxu3  ;;  %v668_v35 = vpop.f32.mrf.mxu1  ;;  %v3216_v23 = vld [vmem:[%s3425_s5 + $0xa9] sm:$0xff] }
 0x191   : > { %v669_v7 = vadd.f32 %v668_v35, %v4654_v37  ;;  %v4660_v35 = vld [vmem:[#allocation10_spill] sm:$0xff] }
 0x192   : > { %v1240_v24 = vadd.f32 %v1190_v3, %v961_v33  ;;  %v4659_v3 = vld [vmem:[#allocation22_spill] sm:$0xff] }
 0x193   : > { %v1471_v48 = vpop.f32.mrf.mxu0  ;;  %3116 = vmatmul.msk.f32.gmra.mxu1 %vm266_vm1, %v4647_v30  ;;  %v4655_v30 = vld [vmem:[#allocation12_spill] sm:$0xff] }
 0x194   : > { %v4184_v63 = vadd.f32 %v1468_v19, %v1240_v24  ;;  %3182 = vmatmul.msk.f32.gmra.mxu2 %vm266_vm1, %v4652_v56 }
 0x195   : > { %3248 = vmatmul.msk.f32.gmra.mxu3 %vm266_vm1, %v3214_v55 }
 0x196   : > { %3314 = vmatmul.msk.f32.gmra.mxu0 %vm266_vm1, %v4653_v1 }
 0x197   : > { %v914_v31 = vpop.f32.mrf.mxu2 }
 0x198   : > { %v962_v49 = vadd.f32 %v914_v31, %v669_v7  ;;  %v1193_v50 = vpop.f32.mrf.mxu3  ;;  %v671_v5 = vpop.f32.mrf.mxu1  ;;  %v3217_v31 = vld [vmem:[%s3425_s5 + $0xb1] sm:$0xff] }
 0x199   : > { %v672_v11 = vadd.f32 %v671_v5, %v4657_v17  ;;  %v4662_v5 = vld [vmem:[#allocation26_spill] sm:$0xff] }
 0x19a   : > { %v1241_v57 = vadd.f32 %v1193_v50, %v962_v49 }
 0x19b   : > { %v1474_v36 = vpop.f32.mrf.mxu0  ;;  %3117 = vmatmul.msk.f32.gmra.mxu1 %vm266_vm1, %v4650_v54  ;;  %v4658_v54 = vld [vmem:[#allocation15_spill] sm:$0xff] }
 0x19c   : > { %v4195_v51 = vadd.f32 %v1471_v48, %v1241_v57  ;;  %3183 = vmatmul.msk.f32.gmra.mxu2 %vm266_vm1, %v4655_v30  ;;  %v4663_v57 = vld [vmem:[#allocation13_spill] sm:$0xff] }
 0x19d   : > { %3249 = vmatmul.msk.f32.gmra.mxu3 %vm266_vm1, %v3215_v25 }
 0x19e   : > { %3315 = vmatmul.msk.f32.gmra.mxu0 %vm266_vm1, %v4656_v52 }
 0x19f   : > { %v917_v39 = vpop.f32.mrf.mxu2 }
 0x1a0   : > { %v963_v20 = vadd.f32 %v917_v39, %v672_v11  ;;  %v1196_v19 = vpop.f32.mrf.mxu3  ;;  %v674_v60 = vpop.f32.mrf.mxu1 }
 0x1a1   : > { %v675_v24 = vadd.f32 %v674_v60, %v4660_v35 }
 0x1a2   : > { %v1242_v21 = vadd.f32 %v1196_v19, %v963_v20  ;;  %v3218_v20 = vld [vmem:[%s3425_s5 + $0xc1] sm:$0xff] }
 0x1a3   : > { %v1477_v9 = vpop.f32.mrf.mxu0  ;;  %3118 = vmatmul.msk.f32.gmra.mxu1 %vm266_vm1, %v4653_v1  ;;  %v4661_v1 = vld [vmem:[#allocation19_spill] sm:$0xff] }
 0x1a4   : > { %v4206_v33 = vadd.f32 %v1474_v36, %v1242_v21  ;;  %3184 = vmatmul.msk.f32.gmra.mxu2 %vm266_vm1, %v4658_v54  ;;  %v4665_v21 = vld [vmem:[#allocation29_spill] sm:$0xff] }
 0x1a5   : > { %3250 = vmatmul.msk.f32.gmra.mxu3 %vm266_vm1, %v3216_v23  ;;  %v4666_v23 = vld [vmem:[#allocation17_spill] sm:$0xff] }
 0x1a6   : > { %3316 = vmatmul.msk.f32.gmra.mxu0 %vm266_vm1, %v4659_v3 }
 0x1a7   : > { %v920_v55 = vpop.f32.mrf.mxu2 }
 0x1a8   : > { %v964_v48 = vadd.f32 %v920_v55, %v675_v24  ;;  %v1199_v56 = vpop.f32.mrf.mxu3  ;;  %v677_v37 = vpop.f32.mrf.mxu1 }
 0x1a9   : > { %v678_v25 = vadd.f32 %v677_v37, %v4663_v57 }
 0x1aa   : > { %v1243_v7 = vadd.f32 %v1199_v56, %v964_v48  ;;  %v3219_v56 = vld [vmem:[%s3425_s5 + $0xc9] sm:$0xff] }
 0x1ab   : > { %v1480_v49 = vpop.f32.mrf.mxu0  ;;  %3119 = vmatmul.msk.f32.gmra.mxu1 %vm266_vm1, %v4656_v52  ;;  %v4664_v52 = vld [vmem:[#allocation23_spill] sm:$0xff] }
 0x1ac   : > { %v4217_v50 = vadd.f32 %v1477_v9, %v1243_v7  ;;  %3185 = vmatmul.msk.f32.gmra.mxu2 %vm266_vm1, %v4661_v1 }
 0x1ad   : > { %3251 = vmatmul.msk.f32.gmra.mxu3 %vm266_vm1, %v3217_v31 }
 0x1ae   : > { %3317 = vmatmul.msk.f32.gmra.mxu0 %vm266_vm1, %v4662_v5 }
 0x1af   : > { %v923_v36 = vpop.f32.mrf.mxu2 }
 0x1b0   : > { %v965_v30 = vadd.f32 %v923_v36, %v678_v25  ;;  %v1202_v17 = vpop.f32.mrf.mxu3  ;;  %v680_v11 = vpop.f32.mrf.mxu1 }
 0x1b1   : > { %v681_v9 = vadd.f32 %v680_v11, %v4666_v23 }
 0x1b2   : > { %v1244_v39 = vadd.f32 %v1202_v17, %v965_v30  ;;  %v3220_v30 = vld [vmem:[%s3425_s5 + $0xd9] sm:$0xff] }
 0x1b3   : > { %v1483_v19 = vpop.f32.mrf.mxu0  ;;  %3120 = vmatmul.msk.f32.gmra.mxu1 %vm266_vm1, %v4659_v3  ;;  %v4667_v3 = vld [vmem:[#allocation21_spill] sm:$0xff] }
 0x1b4   : > { %v4228_v60 = vadd.f32 %v1480_v49, %v1244_v39  ;;  %3186 = vmatmul.msk.f32.gmra.mxu2 %vm266_vm1, %v4664_v52 }
 0x1b5   : > { %3252 = vmatmul.msk.f32.gmra.mxu3 %vm266_vm1, %v3218_v20 }
 0x1b6   : > { %3318 = vmatmul.msk.f32.gmra.mxu0 %vm266_vm1, %v4665_v21 }
 0x1b7   : > { %v926_v54 = vpop.f32.mrf.mxu2 }
 0x1b8   : > { %v966_v35 = vadd.f32 %v926_v54, %v681_v9  ;;  %v1205_v24 = vpop.f32.mrf.mxu3  ;;  %v683_v55 = vpop.f32.mrf.mxu1  ;;  %v3221_v9 = vld [vmem:[%s3425_s5 + $0xe1] sm:$0xff] }
 0x1b9   : > { %v684_v31 = vadd.f32 %v683_v55, %v4667_v3  ;;  %v3222_v3 = vld [vmem:[%s3425_s5 + $0xf1] sm:$0xff] }
 0x1ba   : > { %v1245_v48 = vadd.f32 %v1205_v24, %v966_v35 }
 0x1bb   : > { %v1486_v37 = vpop.f32.mrf.mxu0  ;;  %3121 = vmatmul.msk.f32.gmra.mxu1 %vm266_vm1, %v4662_v5 }
 0x1bc   : > { %v4239_v7 = vadd.f32 %v1483_v19, %v1245_v48  ;;  %3187 = vmatmul.msk.f32.gmra.mxu2 %vm266_vm1, %v3847_v44  ;;  %v4668_v44 = vld [vmem:[#allocation25_spill] sm:$0xff] }
 0x1bd   : > { %3253 = vmatmul.msk.f32.gmra.mxu3 %vm266_vm1, %v3219_v56 }
 0x1be   : > { %3319 = vmatmul.msk.f32.gmra.mxu0 %vm266_vm1, %v3879_v2 }
 0x1bf   : > { %v929_v49 = vpop.f32.mrf.mxu2 }
 0x1c0   : > { %v967_v1 = vadd.f32 %v929_v49, %v684_v31  ;;  %v1208_v57 = vpop.f32.mrf.mxu3  ;;  %v686_v25 = vpop.f32.mrf.mxu1 }
 0x1c1   : > { %v687_v5 = vadd.f32 %v686_v25, %v4668_v44 }
 0x1c2   : > { %v1246_v36 = vadd.f32 %v1208_v57, %v967_v1 }
 0x1c3   : > { %v1489_v17 = vpop.f32.mrf.mxu0  ;;  %3122 = vmatmul.msk.f32.gmra.mxu1 %vm266_vm1, %v4665_v21 }
 0x1c4   : > { %v4250_v11 = vadd.f32 %v1486_v37, %v1246_v36  ;;  %3188 = vmatmul.msk.f32.gmra.mxu2 %vm266_vm1, %v3867_v61  ;;  %v4669_v61 = vld [vmem:[#allocation28_spill] sm:$0xff] }
 0x1c5   : > { %3254 = vmatmul.msk.f32.gmra.mxu3 %vm266_vm1, %v3220_v30 }
 0x1c6   : > { %3320 = vmatmul.msk.f32.gmra.mxu0 %vm266_vm1, %v3896_v27 }
 0x1c7   : > { %v932_v39 = vpop.f32.mrf.mxu2 }
 0x1c8   : > { %v968_v20 = vadd.f32 %v932_v39, %v687_v5  ;;  %v1211_v19 = vpop.f32.mrf.mxu3  ;;  %v689_v52 = vpop.f32.mrf.mxu1  ;;  %v4292_v5 = vld [vmem:[%s4577_s3] ss:$0 sm:$0xff]  ;;  %v4671_v39 = vld [vmem:[#allocation31_spill] sm:$0xff] }
 0x1c9   : > { %v690_v35 = vadd.f32 %v689_v52, %v4669_v61 }
 0x1ca   : > { %v1247_v23 = vadd.f32 %v1211_v19, %v968_v20 }
 0x1cb   : > { %v1492_v54 = vpop.f32.mrf.mxu0  ;;  %3123 = vmatmul.msk.f32.gmra.mxu1 %vm266_vm1, %v3879_v2 }
 0x1cc   : > { %v4261_v21 = vadd.f32 %v1489_v17, %v1247_v23  ;;  %3189 = vmatmul.msk.f32.gmra.mxu2 %vm266_vm1, %v3882_v58  ;;  %v4670_v58 = vld [vmem:[#allocation30_spill] sm:$0xff] }
 0x1cd   : > { %3255 = vmatmul.msk.f32.gmra.mxu3 %vm266_vm1, %v3221_v9 }
 0x1ce   : > { %3321 = vmatmul.msk.f32.gmra.mxu0 %vm266_vm1, %v3913_v62 }
 0x1cf   : > { %v935_v24 = vpop.f32.mrf.mxu2 }
 0x1d0   : > { %v969_v55 = vadd.f32 %v935_v24, %v690_v35  ;;  %v1214_v48 = vpop.f32.mrf.mxu3  ;;  %v1677_v56 = vpop.f32.mrf.mxu1  ;;  %v3224_v35 = vld [vmem:[%s3425_s5 + $0x109] sm:$0xff] }
 0x1d1   : > { %v1773_v49 = vadd.f32 %v1677_v56, %v4670_v58 }
 0x1d2   : > { %v1248_v37 = vadd.f32 %v1214_v48, %v969_v55  ;;  %v4672_v48 = vld [vmem:[#allocation32_spill] sm:$0xff] }
 0x1d3   : > { %v2512_v31 = vpop.f32.mrf.mxu0  ;;  %3124 = vmatmul.msk.f32.gmra.mxu1 %vm266_vm1, %v3896_v27  ;;  %v4286_v27 = vld [vmem:[%s4576_s2] ss:$0 sm:$0xff] }
 0x1d4   : > { %v4273_v2 = vadd.f32 %v1492_v54, %v1248_v37  ;;  %3190 = vmatmul.msk.f32.gmra.mxu2 %vm266_vm1, %v3899_v6  ;;  %v3223_v6 = vld [vmem:[%s3425_s5 + $0xf9] sm:$0xff] }
 0x1d5   : > { %3256 = vmatmul.msk.f32.gmra.mxu3 %vm266_vm1, %v3222_v3 }
 0x1d6   : > { %3322 = vmatmul.msk.f32.gmra.mxu0 %vm266_vm1, %v3930_v4 }
 0x1d7   : > { %v1956_v1 = vpop.f32.mrf.mxu2 }
 0x1d8   : > { %v2052_v57 = vadd.f32 %v1956_v1, %v1773_v49  ;;  %v2234_v25 = vpop.f32.mrf.mxu3  ;;  %v1680_v36 = vpop.f32.mrf.mxu1 }
 0x1d9   : > { %v1774_v20 = vadd.f32 %v1680_v36, %v4671_v39 }
 0x1da   : > { %v2330_v30 = vadd.f32 %v2234_v25, %v2052_v57  ;;  %v3225_v25 = vld [vmem:[%s3425_s5 + $0x111] sm:$0xff] }
 0x1db   : > { %v2515_v17 = vpop.f32.mrf.mxu0  ;;  %3125 = vmatmul.msk.f32.gmra.mxu1 %vm266_vm1, %v3913_v62 }
 0x1dc   : > { %v2608_v44 = vadd.f32 %v2512_v31, %v2330_v30  ;;  %3191 = vmatmul.msk.f32.gmra.mxu2 %vm266_vm1, %v3916_v13  ;;  %v4673_v30 = vld [vmem:[#allocation33_spill] sm:$0xff] }
 0x1dd   : > { %3257 = vmatmul.msk.f32.gmra.mxu3 %vm266_vm1, %v3223_v6 }
 0x1de   : > { %3323 = vmatmul.msk.f32.gmra.mxu0 %vm266_vm1, %v3947_v16  ;;  %v2644_v19 = vmul.f32 %v4286_v27, %v2608_v44 }
 0x1df   : > { %v1959_v52 = vpop.f32.mrf.mxu2 }
 0x1e0   : > { %v2680_v23 = vadd.f32 %v4292_v5, %v2644_v19  ;;  %v2053_v9 = vadd.f32 %v1959_v52, %v1774_v20  ;;  %v2237_v54 = vpop.f32.mrf.mxu3  ;;  %v1683_v62 = vpop.f32.mrf.mxu1 }
 0x1e1   : > { %v1775_v56 = vadd.f32 %v1683_v62, %v4672_v48  ;;  %v4674_v62 = vld [vmem:[#allocation34_spill] sm:$0xff] }
 0x1e2   : > { %v2712_v13 = vmax.f32 %v2680_v23, 0.0  ;;  %v2331_v61 = vadd.f32 %v2237_v54, %v2053_v9  ;;  %v3226_v9 = vld [vmem:[%s3425_s5 + $0x121] sm:$0xff] }
 0x1e3   : > { %v2518_v24 = vpop.f32.mrf.mxu0  ;;  %3126 = vmatmul.msk.f32.gmra.mxu1 %vm266_vm1, %v3930_v4 }
 0x1e4   : > { %2745 = vst.msk [vmem:[%s4307_s23] sm:$0xff] %vm2744_vm2, %v2712_v13  ;;  %v2609_v55 = vadd.f32 %v2515_v17, %v2331_v61  ;;  %3192 = vmatmul.msk.f32.gmra.mxu2 %vm266_vm1, %v3933_v14 }
 0x1e5   : > { %3258 = vmatmul.msk.f32.gmra.mxu3 %vm266_vm1, %v3224_v35 }
 0x1e6   : > { %3324 = vmatmul.msk.f32.gmra.mxu0 %vm266_vm1, %v3964_v32  ;;  %v2645_v37 = vmul.f32 %v4286_v27, %v2609_v55 }
 0x1e7   : > { %v1962_v3 = vpop.f32.mrf.mxu2 }
 0x1e8   : > { %v2681_v31 = vadd.f32 %v4292_v5, %v2645_v37  ;;  %v2054_v58 = vadd.f32 %v1962_v3, %v1775_v56  ;;  %v2240_v49 = vpop.f32.mrf.mxu3  ;;  %v1686_v1 = vpop.f32.mrf.mxu1  ;;  %v3227_v3 = vld [vmem:[%s3425_s5 + $0x129] sm:$0xff] }
 0x1e9   : > { %v1776_v6 = vadd.f32 %v1686_v1, %v4673_v30 }
 0x1ea   : > { %v2713_v57 = vmax.f32 %v2681_v31, 0.0  ;;  %v2332_v4 = vadd.f32 %v2240_v49, %v2054_v58  ;;  %v4675_v58 = vld [vmem:[#allocation35_spill] sm:$0xff] }
 0x1eb   : > { %v2521_v36 = vpop.f32.mrf.mxu0  ;;  %3127 = vmatmul.msk.f32.gmra.mxu1 %vm266_vm1, %v3947_v16 }
 0x1ec   : > { %2746 = vst.msk [vmem:[%s4307_s23 + $0x8] sm:$0xff] %vm2744_vm2, %v2713_v57  ;;  %v2610_v14 = vadd.f32 %v2518_v24, %v2332_v4  ;;  %3193 = vmatmul.msk.f32.gmra.mxu2 %vm266_vm1, %v3950_v18 }
 0x1ed   : > { %3259 = vmatmul.msk.f32.gmra.mxu3 %vm266_vm1, %v3225_v25 }
 0x1ee   : > { %3325 = vmatmul.msk.f32.gmra.mxu0 %vm266_vm1, %v3981_v45  ;;  %v2646_v17 = vmul.f32 %v4286_v27, %v2610_v14 }
 0x1ef   : > { %v1965_v44 = vpop.f32.mrf.mxu2 }
 0x1f0   : > { %v2682_v39 = vadd.f32 %v4292_v5, %v2646_v17  ;;  %v2055_v20 = vadd.f32 %v1965_v44, %v1776_v6  ;;  %v2243_v19 = vpop.f32.mrf.mxu3  ;;  %v1689_v52 = vpop.f32.mrf.mxu1  ;;  %v3228_v6 = vld [vmem:[%s3425_s5 + $0x139] sm:$0xff] }
 0x1f1   : > { %v1777_v13 = vadd.f32 %v1689_v52, %v4674_v62 }
 0x1f2   : > { %v2714_v23 = vmax.f32 %v2682_v39, 0.0  ;;  %v2333_v16 = vadd.f32 %v2243_v19, %v2055_v20 }
 0x1f3   : > { %v2524_v54 = vpop.f32.mrf.mxu0  ;;  %3128 = vmatmul.msk.f32.gmra.mxu1 %vm266_vm1, %v3964_v32 }
 0x1f4   : > { %2747 = vst.msk [vmem:[%s4307_s23 + $0x10] sm:$0xff] %vm2744_vm2, %v2714_v23  ;;  %v2611_v18 = vadd.f32 %v2521_v36, %v2333_v16  ;;  %3194 = vmatmul.msk.f32.gmra.mxu2 %vm266_vm1, %v3967_v22 }
 0x1f5   : > { %3260 = vmatmul.msk.f32.gmra.mxu3 %vm266_vm1, %v3226_v9  ;;  %v3163_v9 = vld [vmem:[%s3425_s5 + $0x140] sm:$0xff] }
 0x1f6   : > { %3326 = vmatmul.msk.f32.gmra.mxu0 %vm266_vm1, %v3998_v0  ;;  %v2647_v61 = vmul.f32 %v4286_v27, %v2611_v18  ;;  %v3229_v18 = vld [vmem:[%s3425_s5 + $0x141] sm:$0xff] }
 0x1f7   : > { %v1968_v35 = vpop.f32.mrf.mxu2 }
 0x1f8   : > { %v2683_v24 = vadd.f32 %v4292_v5, %v2647_v61  ;;  %v2056_v55 = vadd.f32 %v1968_v35, %v1777_v13  ;;  %v2246_v48 = vpop.f32.mrf.mxu3  ;;  %v1692_v56 = vpop.f32.mrf.mxu1  ;;  %v4677_v13 = vld [vmem:[#allocation37_spill] sm:$0xff] }
 0x1f9   : > { %v1778_v49 = vadd.f32 %v1692_v56, %v4675_v58  ;;  %v3230_v58 = vld [vmem:[%s3425_s5 + $0x151] sm:$0xff] }
 0x1fa   : > { %v2715_v37 = vmax.f32 %v2683_v24, 0.0  ;;  %v2334_v32 = vadd.f32 %v2246_v48, %v2056_v55 }
 0x1fb   : > { %v2527_v31 = vpop.f32.mrf.mxu0  ;;  %3129 = vmatmul.msk.f32.gmra.mxu1 %vm266_vm1, %v3981_v45 }
 0x1fc   : > { %2748 = vst.msk [vmem:[%s4307_s23 + $0x18] sm:$0xff] %vm2744_vm2, %v2715_v37  ;;  %v2612_v22 = vadd.f32 %v2524_v54, %v2334_v32  ;;  %3195 = vmatmul.msk.f32.gmra.mxu2 %vm266_vm1, %v3984_v29  ;;  %v3098_v32 = vld [vmem:[%s3425_s5 + $0x13a] sm:$0xff] }
 0x1fd   : > { %3261 = vmatmul.msk.f32.gmra.mxu3 %vm266_vm1, %v3227_v3  ;;  %v3164_v3 = vld [vmem:[%s3425_s5 + $0x150] sm:$0xff] }
 0x1fe   : > { %3327 = vmatmul.msk.f32.gmra.mxu0 %vm266_vm1, %v4015_v26  ;;  %v2648_v1 = vmul.f32 %v4286_v27, %v2612_v22  ;;  %v4676_v26 = vld [vmem:[#allocation36_spill] sm:$0xff] }
 0x1ff   : > { %v1971_v57 = vpop.f32.mrf.mxu2 }
 0x200   : > { %v2684_v4 = vadd.f32 %v4292_v5, %v2648_v1  ;;  %v2057_v25 = vadd.f32 %v1971_v57, %v1778_v49  ;;  %v2249_v36 = vpop.f32.mrf.mxu3  ;;  %v1695_v14 = vpop.f32.mrf.mxu1  ;;  %v3296_v1 = vld [vmem:[%s3425_s5 + $0x152] sm:$0xff]  ;;  %v4678_v57 = vld [vmem:[#allocation38_spill] sm:$0xff] }
 0x201   : > { %v1779_v44 = vadd.f32 %v1695_v14, %v4676_v26 }
 0x202   : > { %v2716_v30 = vmax.f32 %v2684_v4, 0.0  ;;  %v2335_v45 = vadd.f32 %v2249_v36, %v2057_v25 }
 0x203   : > { %v2530_v29 = vpop.f32.mrf.mxu0  ;;  %3130 = vmatmul.msk.f32.gmra.mxu1 %vm266_vm1, %v3998_v0  ;;  %v3097_v0 = vld [vmem:[%s3425_s5 + $0x12a] sm:$0xff] }
 0x204   : > { %2749 = vst.msk [vmem:[%s4307_s23 + $0x20] sm:$0xff] %vm2744_vm2, %v2716_v30  ;;  %v2613_v17 = vadd.f32 %v2527_v31, %v2335_v45  ;;  %3196 = vmatmul.msk.f32.gmra.mxu2 %vm266_vm1, %v4001_v34 }
 0x205   : > { %3262 = vmatmul.msk.f32.gmra.mxu3 %vm266_vm1, %v3228_v6 }
 0x206   : > { %3328 = vmatmul.msk.f32.gmra.mxu0 %vm266_vm1, %v4029_v10  ;;  %v2649_v39 = vmul.f32 %v4286_v27, %v2613_v17  ;;  %v3165_v17 = vld [vmem:[%s3425_s5 + $0x158] sm:$0xff] }
 0x207   : > { %v1974_v20 = vpop.f32.mrf.mxu2 }
 0x208   : > { %v2685_v19 = vadd.f32 %v4292_v5, %v2649_v39  ;;  %v2058_v52 = vadd.f32 %v1974_v20, %v1779_v44  ;;  %v2252_v23 = vpop.f32.mrf.mxu3  ;;  %v1698_v16 = vpop.f32.mrf.mxu1  ;;  %v3231_v39 = vld [vmem:[%s3425_s5 + $0x159] sm:$0xff] }
 0x209   : > { %v1780_v61 = vadd.f32 %v1698_v16, %v4677_v13 }
 0x20a   : > { %v2717_v54 = vmax.f32 %v2685_v19, 0.0  ;;  %v2336_v34 = vadd.f32 %v2252_v23, %v2058_v52  ;;  %v3297_v19 = vld [vmem:[%s3425_s5 + $0x15a] sm:$0xff]  ;;  %v4679_v23 = vld [vmem:[#allocation39_spill] sm:$0xff] }
 0x20b   : > { %v2533_v62 = vpop.f32.mrf.mxu0  ;;  %3131 = vmatmul.msk.f32.gmra.mxu1 %vm266_vm1, %v3097_v0 }
 0x20c   : > { %2750 = vst.msk [vmem:[%s4307_s23 + $0x28] sm:$0xff] %vm2744_vm2, %v2717_v54  ;;  %v2614_v10 = vadd.f32 %v2530_v29, %v2336_v34  ;;  %3197 = vmatmul.msk.f32.gmra.mxu2 %vm266_vm1, %v3163_v9  ;;  %v3099_v29 = vld [vmem:[%s3425_s5 + $0x142] sm:$0xff] }
 0x20d   : > { %3263 = vmatmul.msk.f32.gmra.mxu3 %vm266_vm1, %v3229_v18 }
 0x20e   : > { %3329 = vmatmul.msk.f32.gmra.mxu0 %vm266_vm1, %v4043_v46  ;;  %v2650_v35 = vmul.f32 %v4286_v27, %v2614_v10  ;;  %v3166_v10 = vld [vmem:[%s3425_s5 + $0x168] sm:$0xff] }
 0x20f   : > { %v1977_v24 = vpop.f32.mrf.mxu2 }
 0x210   : > { %v2686_v55 = vadd.f32 %v4292_v5, %v2650_v35  ;;  %v2059_v48 = vadd.f32 %v1977_v24, %v1780_v61  ;;  %v2255_v56 = vpop.f32.mrf.mxu3  ;;  %v1701_v37 = vpop.f32.mrf.mxu1  ;;  %v3232_v35 = vld [vmem:[%s3425_s5 + $0x169] sm:$0xff] }
 0x211   : > { %v1781_v4 = vadd.f32 %v1701_v37, %v4678_v57  ;;  %v3233_v57 = vld [vmem:[%s3425_s5 + $0x171] sm:$0xff] }
 0x212   : > { %v2718_v31 = vmax.f32 %v2686_v55, 0.0  ;;  %v2337_v22 = vadd.f32 %v2255_v56, %v2059_v48  ;;  %v3298_v55 = vld [vmem:[%s3425_s5 + $0x16a] sm:$0xff] }
 0x213   : > { %v2536_v49 = vpop.f32.mrf.mxu0  ;;  %3132 = vmatmul.msk.f32.gmra.mxu1 %vm266_vm1, %v3098_v32 }
 0x214   : > { %2751 = vst.msk [vmem:[%s4307_s23 + $0x30] sm:$0xff] %vm2744_vm2, %v2718_v31  ;;  %v2615_v46 = vadd.f32 %v2533_v62, %v2337_v22  ;;  %3198 = vmatmul.msk.f32.gmra.mxu2 %vm266_vm1, %v3164_v3 }
 0x215   : > { %3264 = vmatmul.msk.f32.gmra.mxu3 %vm266_vm1, %v3230_v58 }
 0x216   : > { %3330 = vmatmul.msk.f32.gmra.mxu0 %vm266_vm1, %v3296_v1  ;;  %v2651_v25 = vmul.f32 %v4286_v27, %v2615_v46 }
 0x217   : > { %v1980_v36 = vpop.f32.mrf.mxu2 }
 0x218   : > { %v2687_v14 = vadd.f32 %v4292_v5, %v2651_v25  ;;  %v2060_v30 = vadd.f32 %v1980_v36, %v1781_v4  ;;  %v2258_v45 = vpop.f32.mrf.mxu3  ;;  %v1704_v6 = vpop.f32.mrf.mxu1  ;;  %v3299_v25 = vld [vmem:[%s3425_s5 + $0x172] sm:$0xff] }
 0x219   : > { %v1782_v16 = vadd.f32 %v1704_v6, %v4679_v23 }
 0x21a   : > { %v2719_v26 = vmax.f32 %v2687_v14, 0.0  ;;  %v2338_v44 = vadd.f32 %v2258_v45, %v2060_v30 }
 0x21b   : > { %v2539_v20 = vpop.f32.mrf.mxu0  ;;  %3133 = vmatmul.msk.f32.gmra.mxu1 %vm266_vm1, %v3099_v29 }
 0x21c   : > { %2752 = vst.msk [vmem:[%s4307_s23 + $0x38] sm:$0xff] %vm2744_vm2, %v2719_v26  ;;  %v2616_v52 = vadd.f32 %v2536_v49, %v2338_v44  ;;  %3199 = vmatmul.msk.f32.gmra.mxu2 %vm266_vm1, %v3165_v17  ;;  %v3167_v49 = vld [vmem:[%s3425_s5 + $0x170] sm:$0xff]  ;;  %v3168_v26 = vld [vmem:[%s3425_s5 + $0x180] sm:$0xff] }
 0x21d   : > { %3265 = vmatmul.msk.f32.gmra.mxu3 %vm266_vm1, %v3231_v39 }
 0x21e   : > { %3331 = vmatmul.msk.f32.gmra.mxu0 %vm266_vm1, %v3297_v19  ;;  %v2652_v0 = vmul.f32 %v4286_v27, %v2616_v52  ;;  %v3300_v52 = vld [vmem:[%s3425_s5 + $0x182] sm:$0xff] }
 0x21f   : > { %v1983_v9 = vpop.f32.mrf.mxu2 }
 0x220   : > { %v2688_v54 = vadd.f32 %v4292_v5, %v2652_v0  ;;  %v2061_v34 = vadd.f32 %v1983_v9, %v1782_v16  ;;  %v2261_v18 = vpop.f32.mrf.mxu3  ;;  %v1707_v62 = vpop.f32.mrf.mxu1 }
 0x221   : > { %v1783_v56 = vadd.f32 %v1707_v62, %v4046_v28 }
 0x222   : > { %v2720_v13 = vmax.f32 %v2688_v54, 0.0  ;;  %v2339_v61 = vadd.f32 %v2261_v18, %v2061_v34 }
 0x223   : > { %v2542_v24 = vpop.f32.mrf.mxu0  ;;  %3134 = vmatmul.msk.f32.gmra.mxu1 %vm266_vm1, %v3296_v1 }
 0x224   : > { %2753 = vst.msk [vmem:[%s4307_s23 + $0x40] sm:$0xff] %vm2744_vm2, %v2720_v13  ;;  %v2617_v48 = vadd.f32 %v2539_v20, %v2339_v61  ;;  %3200 = vmatmul.msk.f32.gmra.mxu2 %vm266_vm1, %v3166_v10  ;;  %v3234_v20 = vld [vmem:[%s3425_s5 + $0x181] sm:$0xff] }
 0x225   : > { %3266 = vmatmul.msk.f32.gmra.mxu3 %vm266_vm1, %v3232_v35  ;;  %v3169_v10 = vld [vmem:[%s3425_s5 + $0x188] sm:$0xff] }
 0x226   : > { %3332 = vmatmul.msk.f32.gmra.mxu0 %vm266_vm1, %v3298_v55  ;;  %v2653_v37 = vmul.f32 %v4286_v27, %v2617_v48  ;;  %v3235_v35 = vld [vmem:[%s3425_s5 + $0x189] sm:$0xff] }
 0x227   : > { %v1986_v32 = vpop.f32.mrf.mxu2 }
 0x228   : > { %v2689_v3 = vadd.f32 %v4292_v5, %v2653_v37  ;;  %v2062_v31 = vadd.f32 %v1986_v32, %v1783_v56  ;;  %v2264_v22 = vpop.f32.mrf.mxu3  ;;  %v1710_v58 = vpop.f32.mrf.mxu1 }
 0x229   : > { %v1784_v28 = vadd.f32 %v1710_v58, %v4057_v8  ;;  %v4680_v8 = vld [vmem:[#allocation40_spill] sm:$0xff] }
 0x22a   : > { %v2721_v1 = vmax.f32 %v2689_v3, 0.0  ;;  %v2340_v46 = vadd.f32 %v2264_v22, %v2062_v31 }
 0x22b   : > { %v2545_v4 = vpop.f32.mrf.mxu0  ;;  %3135 = vmatmul.msk.f32.gmra.mxu1 %vm266_vm1, %v3297_v19 }
 0x22c   : > { %2754 = vst.msk [vmem:[%s4307_s23 + $0x48] sm:$0xff] %vm2744_vm2, %v2721_v1  ;;  %v2618_v36 = vadd.f32 %v2542_v24, %v2340_v46  ;;  %3201 = vmatmul.msk.f32.gmra.mxu2 %vm266_vm1, %v3167_v49  ;;  %v3170_v49 = vld [vmem:[%s3425_s5 + $0x198] sm:$0xff] }
 0x22d   : > { %3267 = vmatmul.msk.f32.gmra.mxu3 %vm266_vm1, %v3233_v57  ;;  %v3236_v57 = vld [vmem:[%s3425_s5 + $0x199] sm:$0xff] }
 0x22e   : > { %3333 = vmatmul.msk.f32.gmra.mxu0 %vm266_vm1, %v3299_v25  ;;  %v2654_v14 = vmul.f32 %v4286_v27, %v2618_v36 }
 0x22f   : > { %v1989_v30 = vpop.f32.mrf.mxu2 }
 0x230   : > { %v2690_v45 = vadd.f32 %v4292_v5, %v2654_v14  ;;  %v2063_v6 = vadd.f32 %v1989_v30, %v1784_v28  ;;  %v2267_v29 = vpop.f32.mrf.mxu3  ;;  %v1713_v17 = vpop.f32.mrf.mxu1 }
 0x231   : > { %v1785_v16 = vadd.f32 %v1713_v17, %v4680_v8  ;;  %v3171_v17 = vld [vmem:[%s3425_s5 + $0x1a0] sm:$0xff] }
 0x232   : > { %v2722_v44 = vmax.f32 %v2690_v45, 0.0  ;;  %v2341_v39 = vadd.f32 %v2267_v29, %v2063_v6 }
 0x233   : > { %v2548_v19 = vpop.f32.mrf.mxu0  ;;  %3136 = vmatmul.msk.f32.gmra.mxu1 %vm266_vm1, %v3298_v55  ;;  %v3301_v55 = vld [vmem:[%s3425_s5 + $0x18a] sm:$0xff] }
 0x234   : > { %2755 = vst.msk [vmem:[%s4307_s23 + $0x50] sm:$0xff] %vm2744_vm2, %v2722_v44  ;;  %v2619_v23 = vadd.f32 %v2545_v4, %v2341_v39  ;;  %3202 = vmatmul.msk.f32.gmra.mxu2 %vm266_vm1, %v3168_v26  ;;  %v3237_v39 = vld [vmem:[%s3425_s5 + $0x1a1] sm:$0xff] }
 0x235   : > { %3268 = vmatmul.msk.f32.gmra.mxu3 %vm266_vm1, %v3234_v20 }
 0x236   : > { %3334 = vmatmul.msk.f32.gmra.mxu0 %vm266_vm1, %v3300_v52  ;;  %v2655_v0 = vmul.f32 %v4286_v27, %v2619_v23 }
 0x237   : > { %v1992_v9 = vpop.f32.mrf.mxu2 }
 0x238   : > { %v2691_v54 = vadd.f32 %v4292_v5, %v2655_v0  ;;  %v2064_v34 = vadd.f32 %v1992_v9, %v1785_v16  ;;  %v2270_v18 = vpop.f32.mrf.mxu3  ;;  %v1716_v62 = vpop.f32.mrf.mxu1 }
 0x239   : > { %v1786_v56 = vadd.f32 %v1716_v62, %v4078_v12 }
 0x23a   : > { %v2723_v13 = vmax.f32 %v2691_v54, 0.0  ;;  %v2342_v61 = vadd.f32 %v2270_v18, %v2064_v34 }
 0x23b   : > { %v2551_v24 = vpop.f32.mrf.mxu0  ;;  %3137 = vmatmul.msk.f32.gmra.mxu1 %vm266_vm1, %v3299_v25  ;;  %v3302_v25 = vld [vmem:[%s3425_s5 + $0x19a] sm:$0xff] }
 0x23c   : > { %2756 = vst.msk [vmem:[%s4307_s23 + $0x58] sm:$0xff] %vm2744_vm2, %v2723_v13  ;;  %v2620_v48 = vadd.f32 %v2548_v19, %v2342_v61  ;;  %3203 = vmatmul.msk.f32.gmra.mxu2 %vm266_vm1, %v3169_v10  ;;  %v3303_v19 = vld [vmem:[%s3425_s5 + $0x1a2] sm:$0xff] }
 0x23d   : > { %3269 = vmatmul.msk.f32.gmra.mxu3 %vm266_vm1, %v3235_v35 }
 0x23e   : > { %3335 = vmatmul.msk.f32.gmra.mxu0 %vm266_vm1, %v3301_v55  ;;  %v2656_v37 = vmul.f32 %v4286_v27, %v2620_v48 }
 0x23f   : > { %v1995_v32 = vpop.f32.mrf.mxu2 }
 0x240   : > { %v2692_v3 = vadd.f32 %v4292_v5, %v2656_v37  ;;  %v2065_v31 = vadd.f32 %v1995_v32, %v1786_v56  ;;  %v2273_v22 = vpop.f32.mrf.mxu3  ;;  %v1719_v58 = vpop.f32.mrf.mxu1 }
 0x241   : > { %v1787_v12 = vadd.f32 %v1719_v58, %v4088_v59 }
 0x242   : > { %v2724_v1 = vmax.f32 %v2692_v3, 0.0  ;;  %v2343_v46 = vadd.f32 %v2273_v22, %v2065_v31 }
 0x243   : > { %v2554_v4 = vpop.f32.mrf.mxu0  ;;  %3138 = vmatmul.msk.f32.gmra.mxu1 %vm266_vm1, %v3300_v52 }
 0x244   : > { %2757 = vst.msk [vmem:[%s4307_s23 + $0x60] sm:$0xff] %vm2744_vm2, %v2724_v1  ;;  %v2621_v36 = vadd.f32 %v2551_v24, %v2343_v46  ;;  %3204 = vmatmul.msk.f32.gmra.mxu2 %vm266_vm1, %v3170_v49 }
 0x245   : > { %3270 = vmatmul.msk.f32.gmra.mxu3 %vm266_vm1, %v3236_v57 }
 0x246   : > { %3336 = vmatmul.msk.f32.gmra.mxu0 %vm266_vm1, %v3302_v25  ;;  %v2657_v28 = vmul.f32 %v4286_v27, %v2621_v36 }
 0x247   : > { %v1998_v14 = vpop.f32.mrf.mxu2 }
 0x248   : > { %v2693_v30 = vadd.f32 %v4292_v5, %v2657_v28  ;;  %v2066_v45 = vadd.f32 %v1998_v14, %v1787_v12  ;;  %v2276_v6 = vpop.f32.mrf.mxu3  ;;  %v1722_v29 = vpop.f32.mrf.mxu1 }
 0x249   : > { %v1788_v59 = vadd.f32 %v1722_v29, %v4095_v41 }
 0x24a   : > { %v2725_v26 = vmax.f32 %v2693_v30, 0.0  ;;  %v2344_v44 = vadd.f32 %v2276_v6, %v2066_v45 }
 0x24b   : > { %v2557_v20 = vpop.f32.mrf.mxu0  ;;  %3139 = vmatmul.msk.f32.gmra.mxu1 %vm266_vm1, %v3301_v55 }
 0x24c   : > { %2758 = vst.msk [vmem:[%s4307_s23 + $0x68] sm:$0xff] %vm2744_vm2, %v2725_v26  ;;  %v2622_v52 = vadd.f32 %v2554_v4, %v2344_v44  ;;  %3205 = vmatmul.msk.f32.gmra.mxu2 %vm266_vm1, %v3171_v17 }
 0x24d   : > { %3271 = vmatmul.msk.f32.gmra.mxu3 %vm266_vm1, %v3237_v39 }
 0x24e   : > { %3337 = vmatmul.msk.f32.gmra.mxu0 %vm266_vm1, %v3303_v19  ;;  %v2658_v23 = vmul.f32 %v4286_v27, %v2622_v52 }
 0x24f   : > { %v2001_v8 = vpop.f32.mrf.mxu2 }
 0x250   : > { %v2694_v16 = vadd.f32 %v4292_v5, %v2658_v23  ;;  %v2067_v0 = vadd.f32 %v2001_v8, %v1788_v59  ;;  %v2279_v9 = vpop.f32.mrf.mxu3  ;;  %v1725_v54 = vpop.f32.mrf.mxu1 }
 0x251   : > { %v1789_v13 = vadd.f32 %v1725_v54, %v4106_v42 }
 0x252   : > { %v2726_v34 = vmax.f32 %v2694_v16, 0.0  ;;  %v2345_v18 = vadd.f32 %v2279_v9, %v2067_v0 }
 0x253   : > { %v2560_v62 = vpop.f32.mrf.mxu0 }
 0x254   : > { %2759 = vst.msk [vmem:[%s4307_s23 + $0x70] sm:$0xff] %vm2744_vm2, %v2726_v34  ;;  %v2623_v10 = vadd.f32 %v2557_v20, %v2345_v18 }
 0x256   : > { %v2659_v61 = vmul.f32 %v4286_v27, %v2623_v10 }
 0x257   : > { %v2004_v41 = vpop.f32.mrf.mxu2 }
 0x258   : > { %v2695_v35 = vadd.f32 %v4292_v5, %v2659_v61  ;;  %v2068_v24 = vadd.f32 %v2004_v41, %v1789_v13  ;;  %v2282_v55 = vpop.f32.mrf.mxu3  ;;  %v1728_v48 = vpop.f32.mrf.mxu1 }
 0x259   : > { %v1790_v31 = vadd.f32 %v1728_v48, %v4117_v43 }
 0x25a   : > { %v2727_v56 = vmax.f32 %v2695_v35, 0.0  ;;  %v2346_v37 = vadd.f32 %v2282_v55, %v2068_v24 }
 0x25b   : > { %v2563_v32 = vpop.f32.mrf.mxu0 }
 0x25c   : > { %2760 = vst.msk [vmem:[%s4307_s23 + $0x78] sm:$0xff] %vm2744_vm2, %v2727_v56  ;;  %v2624_v3 = vadd.f32 %v2560_v62, %v2346_v37 }
 0x25e   : > { %v2660_v22 = vmul.f32 %v4286_v27, %v2624_v3 }
 0x25f   : > { %v2007_v42 = vpop.f32.mrf.mxu2 }
 0x260   : > { %v2696_v58 = vadd.f32 %v4292_v5, %v2660_v22  ;;  %v2069_v49 = vadd.f32 %v2007_v42, %v1790_v31  ;;  %v2285_v1 = vpop.f32.mrf.mxu3  ;;  %v1731_v46 = vpop.f32.mrf.mxu1 }
 0x261   : > { %v1791_v12 = vadd.f32 %v1731_v46, %v4128_v38 }
 0x262   : > { %v2728_v57 = vmax.f32 %v2696_v58, 0.0  ;;  %v2347_v4 = vadd.f32 %v2285_v1, %v2069_v49 }
 0x263   : > { %v2566_v25 = vpop.f32.mrf.mxu0 }
 0x264   : > { %2761 = vst.msk [vmem:[%s4307_s23 + $0x80] sm:$0xff] %vm2744_vm2, %v2728_v57  ;;  %v2625_v36 = vadd.f32 %v2563_v32, %v2347_v4 }
 0x266   : > { %v2661_v28 = vmul.f32 %v4286_v27, %v2625_v36 }
 0x267   : > { %v2010_v43 = vpop.f32.mrf.mxu2 }
 0x268   : > { %v2697_v14 = vadd.f32 %v4292_v5, %v2661_v28  ;;  %v2070_v30 = vadd.f32 %v2010_v43, %v1791_v12  ;;  %v2288_v45 = vpop.f32.mrf.mxu3  ;;  %v1734_v6 = vpop.f32.mrf.mxu1 }
 0x269   : > { %v1792_v39 = vadd.f32 %v1734_v6, %v4140_v53 }
 0x26a   : > { %v2729_v29 = vmax.f32 %v2697_v14, 0.0  ;;  %v2348_v17 = vadd.f32 %v2288_v45, %v2070_v30 }
 0x26b   : > { %v2569_v26 = vpop.f32.mrf.mxu0 }
 0x26c   : > { %2762 = vst.msk [vmem:[%s4307_s23 + $0x88] sm:$0xff] %vm2744_vm2, %v2729_v29  ;;  %v2626_v44 = vadd.f32 %v2566_v25, %v2348_v17 }
 0x26e   : > { %v2662_v20 = vmul.f32 %v4286_v27, %v2626_v44 }
 0x26f   : > { %v2013_v38 = vpop.f32.mrf.mxu2 }
 0x270   : > { %v2698_v19 = vadd.f32 %v4292_v5, %v2662_v20  ;;  %v2071_v52 = vadd.f32 %v2013_v38, %v1792_v39  ;;  %v2291_v59 = vpop.f32.mrf.mxu3  ;;  %v1737_v23 = vpop.f32.mrf.mxu1 }
 0x271   : > { %v1793_v54 = vadd.f32 %v1737_v23, %v4151_v47 }
 0x272   : > { %v2730_v8 = vmax.f32 %v2698_v19, 0.0  ;;  %v2349_v16 = vadd.f32 %v2291_v59, %v2071_v52 }
 0x273   : > { %v2572_v0 = vpop.f32.mrf.mxu0 }
 0x274   : > { %2763 = vst.msk [vmem:[%s4307_s23 + $0x90] sm:$0xff] %vm2744_vm2, %v2730_v8  ;;  %v2627_v9 = vadd.f32 %v2569_v26, %v2349_v16 }
 0x276   : > { %v2663_v34 = vmul.f32 %v4286_v27, %v2627_v9 }
 0x277   : > { %v2016_v53 = vpop.f32.mrf.mxu2 }
 0x278   : > { %v2699_v18 = vadd.f32 %v4292_v5, %v2663_v34  ;;  %v2072_v62 = vadd.f32 %v2016_v53, %v1793_v54  ;;  %v2294_v10 = vpop.f32.mrf.mxu3  ;;  %v1740_v13 = vpop.f32.mrf.mxu1 }
 0x279   : > { %v1794_v55 = vadd.f32 %v1740_v13, %v4162_v15 }
 0x27a   : > { %v2731_v61 = vmax.f32 %v2699_v18, 0.0  ;;  %v2350_v41 = vadd.f32 %v2294_v10, %v2072_v62 }
 0x27b   : > { %v2575_v35 = vpop.f32.mrf.mxu0 }
 0x27c   : > { %2764 = vst.msk [vmem:[%s4307_s23 + $0x98] sm:$0xff] %vm2744_vm2, %v2731_v61  ;;  %v2628_v24 = vadd.f32 %v2572_v0, %v2350_v41 }
 0x27e   : > { %v2664_v48 = vmul.f32 %v4286_v27, %v2628_v24 }
 0x27f   : > { %v2019_v47 = vpop.f32.mrf.mxu2 }
 0x280   : > { %v2700_v56 = vadd.f32 %v4292_v5, %v2664_v48  ;;  %v2073_v37 = vadd.f32 %v2019_v47, %v1794_v55  ;;  %v2297_v32 = vpop.f32.mrf.mxu3  ;;  %v1743_v3 = vpop.f32.mrf.mxu1 }
 0x281   : > { %v1795_v49 = vadd.f32 %v1743_v3, %v4173_v40 }
 0x282   : > { %v2732_v31 = vmax.f32 %v2700_v56, 0.0  ;;  %v2351_v22 = vadd.f32 %v2297_v32, %v2073_v37 }
 0x283   : > { %v2578_v42 = vpop.f32.mrf.mxu0 }
 0x284   : > { %2765 = vst.msk [vmem:[%s4307_s23 + $0xa0] sm:$0xff] %vm2744_vm2, %v2732_v31  ;;  %v2629_v58 = vadd.f32 %v2575_v35, %v2351_v22 }
 0x286   : > { %v2665_v1 = vmul.f32 %v4286_v27, %v2629_v58 }
 0x287   : > { %v2022_v15 = vpop.f32.mrf.mxu2 }
 0x288   : > { %v2701_v46 = vadd.f32 %v4292_v5, %v2665_v1  ;;  %v2074_v57 = vadd.f32 %v2022_v15, %v1795_v49  ;;  %v2300_v4 = vpop.f32.mrf.mxu3  ;;  %v1746_v25 = vpop.f32.mrf.mxu1 }
 0x289   : > { %v1796_v14 = vadd.f32 %v1746_v25, %v4184_v63 }
 0x28a   : > { %v2733_v36 = vmax.f32 %v2701_v46, 0.0  ;;  %v2352_v12 = vadd.f32 %v2300_v4, %v2074_v57 }
 0x28b   : > { %v2581_v28 = vpop.f32.mrf.mxu0 }
 0x28c   : > { %2766 = vst.msk [vmem:[%s4307_s23 + $0xa8] sm:$0xff] %vm2744_vm2, %v2733_v36  ;;  %v2630_v43 = vadd.f32 %v2578_v42, %v2352_v12 }
 0x28e   : > { %v2666_v30 = vmul.f32 %v4286_v27, %v2630_v43 }
 0x28f   : > { %v2025_v40 = vpop.f32.mrf.mxu2 }
 0x290   : > { %v2702_v45 = vadd.f32 %v4292_v5, %v2666_v30  ;;  %v2075_v6 = vadd.f32 %v2025_v40, %v1796_v14  ;;  %v2303_v29 = vpop.f32.mrf.mxu3  ;;  %v1749_v17 = vpop.f32.mrf.mxu1 }
 0x291   : > { %v1797_v38 = vadd.f32 %v1749_v17, %v4195_v51 }
 0x292   : > { %v2734_v26 = vmax.f32 %v2702_v45, 0.0  ;;  %v2353_v44 = vadd.f32 %v2303_v29, %v2075_v6 }
 0x293   : > { %v2584_v39 = vpop.f32.mrf.mxu0 }
 0x294   : > { %2767 = vst.msk [vmem:[%s4307_s23 + $0xb0] sm:$0xff] %vm2744_vm2, %v2734_v26  ;;  %v2631_v20 = vadd.f32 %v2581_v28, %v2353_v44 }
 0x296   : > { %v2667_v19 = vmul.f32 %v4286_v27, %v2631_v20 }
 0x297   : > { %v2028_v63 = vpop.f32.mrf.mxu2 }
 0x298   : > { %v2703_v52 = vadd.f32 %v4292_v5, %v2667_v19  ;;  %v2076_v59 = vadd.f32 %v2028_v63, %v1797_v38  ;;  %v2306_v23 = vpop.f32.mrf.mxu3  ;;  %v1752_v8 = vpop.f32.mrf.mxu1 }
 0x299   : > { %v1798_v34 = vadd.f32 %v1752_v8, %v4206_v33 }
 0x29a   : > { %v2735_v16 = vmax.f32 %v2703_v52, 0.0  ;;  %v2354_v0 = vadd.f32 %v2306_v23, %v2076_v59 }
 0x29b   : > { %v2587_v9 = vpop.f32.mrf.mxu0 }
 0x29c   : > { %2768 = vst.msk [vmem:[%s4307_s23 + $0xb8] sm:$0xff] %vm2744_vm2, %v2735_v16  ;;  %v2632_v54 = vadd.f32 %v2584_v39, %v2354_v0 }
 0x29e   : > { %v2668_v53 = vmul.f32 %v4286_v27, %v2632_v54 }
 0x29f   : > { %v2031_v51 = vpop.f32.mrf.mxu2 }
 0x2a0   : > { %v2704_v18 = vadd.f32 %v4292_v5, %v2668_v53  ;;  %v2077_v62 = vadd.f32 %v2031_v51, %v1798_v34  ;;  %v2309_v10 = vpop.f32.mrf.mxu3  ;;  %v1755_v13 = vpop.f32.mrf.mxu1 }
 0x2a1   : > { %v1799_v55 = vadd.f32 %v1755_v13, %v4217_v50 }
 0x2a2   : > { %v2736_v61 = vmax.f32 %v2704_v18, 0.0  ;;  %v2355_v41 = vadd.f32 %v2309_v10, %v2077_v62 }
 0x2a3   : > { %v2590_v35 = vpop.f32.mrf.mxu0 }
 0x2a4   : > { %2769 = vst.msk [vmem:[%s4307_s23 + $0xc0] sm:$0xff] %vm2744_vm2, %v2736_v61  ;;  %v2633_v24 = vadd.f32 %v2587_v9, %v2355_v41 }
 0x2a6   : > { %v2669_v48 = vmul.f32 %v4286_v27, %v2633_v24 }
 0x2a7   : > { %v2034_v33 = vpop.f32.mrf.mxu2 }
 0x2a8   : > { %v2705_v47 = vadd.f32 %v4292_v5, %v2669_v48  ;;  %v2078_v56 = vadd.f32 %v2034_v33, %v1799_v55  ;;  %v2312_v37 = vpop.f32.mrf.mxu3  ;;  %v1758_v32 = vpop.f32.mrf.mxu1 }
 0x2a9   : > { %v1800_v58 = vadd.f32 %v1758_v32, %v4228_v60 }
 0x2aa   : > { %v2737_v3 = vmax.f32 %v2705_v47, 0.0  ;;  %v2356_v31 = vadd.f32 %v2312_v37, %v2078_v56 }
 0x2ab   : > { %v2593_v22 = vpop.f32.mrf.mxu0 }
 0x2ac   : > { %2770 = vst.msk [vmem:[%s4307_s23 + $0xc8] sm:$0xff] %vm2744_vm2, %v2737_v3  ;;  %v2634_v42 = vadd.f32 %v2590_v35, %v2356_v31 }
 0x2ae   : > { %v2670_v49 = vmul.f32 %v4286_v27, %v2634_v42 }
 0x2af   : > { %v2037_v50 = vpop.f32.mrf.mxu2 }
 0x2b0   : > { %v2706_v1 = vadd.f32 %v4292_v5, %v2670_v49  ;;  %v2079_v15 = vadd.f32 %v2037_v50, %v1800_v58  ;;  %v2315_v46 = vpop.f32.mrf.mxu3  ;;  %v1761_v57 = vpop.f32.mrf.mxu1 }
 0x2b1   : > { %v1801_v28 = vadd.f32 %v1761_v57, %v4239_v7 }
 0x2b2   : > { %v2738_v4 = vmax.f32 %v2706_v1, 0.0  ;;  %v2357_v25 = vadd.f32 %v2315_v46, %v2079_v15 }
 0x2b3   : > { %v2596_v36 = vpop.f32.mrf.mxu0 }
 0x2b4   : > { %2771 = vst.msk [vmem:[%s4307_s23 + $0xd0] sm:$0xff] %vm2744_vm2, %v2738_v4  ;;  %v2635_v12 = vadd.f32 %v2593_v22, %v2357_v25 }
 0x2b6   : > { %v2671_v43 = vmul.f32 %v4286_v27, %v2635_v12 }
 0x2b7   : > { %v2040_v60 = vpop.f32.mrf.mxu2 }
 0x2b8   : > { %v2707_v14 = vadd.f32 %v4292_v5, %v2671_v43  ;;  %v2080_v30 = vadd.f32 %v2040_v60, %v1801_v28  ;;  %v2318_v40 = vpop.f32.mrf.mxu3  ;;  %v1764_v45 = vpop.f32.mrf.mxu1 }
 0x2b9   : > { %v1802_v44 = vadd.f32 %v1764_v45, %v4250_v11 }
 0x2ba   : > { %v2739_v6 = vmax.f32 %v2707_v14, 0.0  ;;  %v2358_v29 = vadd.f32 %v2318_v40, %v2080_v30 }
 0x2bb   : > { %v2599_v26 = vpop.f32.mrf.mxu0 }
 0x2bc   : > { %2772 = vst.msk [vmem:[%s4307_s23 + $0xd8] sm:$0xff] %vm2744_vm2, %v2739_v6  ;;  %v2636_v17 = vadd.f32 %v2596_v36, %v2358_v29 }
 0x2be   : > { %v2672_v39 = vmul.f32 %v4286_v27, %v2636_v17 }
 0x2bf   : > { %v2043_v7 = vpop.f32.mrf.mxu2 }
 0x2c0   : > { %v2708_v20 = vadd.f32 %v4292_v5, %v2672_v39  ;;  %v2081_v38 = vadd.f32 %v2043_v7, %v1802_v44  ;;  %v2321_v19 = vpop.f32.mrf.mxu3  ;;  %v1767_v63 = vpop.f32.mrf.mxu1 }
 0x2c1   : > { %v1803_v8 = vadd.f32 %v1767_v63, %v4261_v21 }
 0x2c2   : > { %v2740_v52 = vmax.f32 %v2708_v20, 0.0  ;;  %v2359_v59 = vadd.f32 %v2321_v19, %v2081_v38 }
 0x2c3   : > { %v2602_v11 = vpop.f32.mrf.mxu0 }
 0x2c4   : > { %2773 = vst.msk [vmem:[%s4307_s23 + $0xe0] sm:$0xff] %vm2744_vm2, %v2740_v52  ;;  %v2637_v23 = vadd.f32 %v2599_v26, %v2359_v59 }
 0x2c6   : > { %v2673_v16 = vmul.f32 %v4286_v27, %v2637_v23 }
 0x2c7   : > { %v2046_v0 = vpop.f32.mrf.mxu2 }
 0x2c8   : > { %v2709_v9 = vadd.f32 %v4292_v5, %v2673_v16  ;;  %v2082_v54 = vadd.f32 %v2046_v0, %v1803_v8  ;;  %v2324_v34 = vpop.f32.mrf.mxu3  ;;  %v1770_v18 = vpop.f32.mrf.mxu1 }
 0x2c9   : > { %v1804_v10 = vadd.f32 %v1770_v18, %v4273_v2 }
 0x2ca   : > { %v2741_v53 = vmax.f32 %v2709_v9, 0.0  ;;  %v2360_v51 = vadd.f32 %v2324_v34, %v2082_v54 }
 0x2cb   : > { %v2605_v24 = vpop.f32.mrf.mxu0 }
 0x2cc   : > { %2774 = vst.msk [vmem:[%s4307_s23 + $0xe8] sm:$0xff] %vm2744_vm2, %v2741_v53  ;;  %v2638_v62 = vadd.f32 %v2602_v11, %v2360_v51 }
 0x2ce   : > { %v2674_v21 = vmul.f32 %v4286_v27, %v2638_v62 }
 0x2cf   : > { %v2049_v13 = vpop.f32.mrf.mxu2 }
 0x2d0   : > { %v2710_v61 = vadd.f32 %v4292_v5, %v2674_v21  ;;  %v2083_v41 = vadd.f32 %v2049_v13, %v1804_v10  ;;  %v2327_v35 = vpop.f32.mrf.mxu3 }
 0x2d2   : > { %v2742_v55 = vmax.f32 %v2710_v61, 0.0  ;;  %v2361_v48 = vadd.f32 %v2327_v35, %v2083_v41 }
 0x2d4   : > { %2775 = vst.msk [vmem:[%s4307_s23 + $0xf0] sm:$0xff] %vm2744_vm2, %v2742_v55  ;;  %v2639_v33 = vadd.f32 %v2605_v24, %v2361_v48 }
 0x2d6   : > { %v2675_v47 = vmul.f32 %v4286_v27, %v2639_v33 }
 0x2d8   : > { %v2711_v56 = vadd.f32 %v4292_v5, %v2675_v47 }
 0x2da   : > { %v2743_v37 = vmax.f32 %v2711_v56, 0.0 }
 0x2dc   : > { %2776 = vst.msk [vmem:[%s4307_s23 + $0xf8] sm:$0xff] %vm2744_vm2, %v2743_v37 }
 0x2dd PF: > { %s14_s15 = sadd.s32 1, %s3360_s15  }
 0x2de   : > { %p11_p5 = scmp.ge.s32.totalorder %s14_s15, 4  }
 0x2e0   :  { %13 = sbr.rel (!%p11_p5) target bundleno = 1 (0x1), region = 76 }

// kernel: conv_block_forward.6
= control target key start
LH: loop header
LB: loop body
LE: loop exit
PB: predicated region body
PF: predicated region fallthrough
CT: control target
= control target key end

     0   :  { %s3358_s9 = smov 0   ;;  %s4673_s0 = inlined_call_operand.vmem [shape: f32[2,18,18,8], index: 0, kind: input, shape index: {}]   ;;  %s4674_s1 = inlined_call_operand.vmem [shape: f32[9,8,8], index: 1, kind: input, shape index: {}]   ;;  %s4675_s2 = inlined_call_operand.vmem [shape: f32[2,2,8], index: 2, kind: output, shape index: {}]  }
   0x1 LB: > { %s2822_s10 = sadd.s32 4294967295, %s3340_s9   ;;  %p2826_p0 = scmp.ge.s32.totalorder %s3340_s9, 1  ;;  %s3340_s9 = sphi %s3358_s9, %s12_s9  }
   0x2   : > { %p112_p1 = scmp.lt.s32.totalorder %s3340_s9, 3 }
   0x4   : > { %p113_p2 = pnand %p2826_p0, %p112_p1 }
   0x6   : > { %116 = sbr.rel (%p113_p2) target bundleno = 823 (0x337), region = 28 }
   0xb   : > { %v2829_v0 = vld [vmem:[%s4674_s1 + $0x8] sm:$0xff]  ;;  %p133_p3 = scmp.lt.s32.totalorder %s2822_s10, 1  ;;  %v2894_v1 = vld [vmem:[%s4674_s1 + $0x10] sm:$0xff]  ;;  %v2959_v2 = vld [vmem:[%s4674_s1 + $0x18] sm:$0xff]  ;;  %vm209_vm0 = vcmask 64512   ;;  %vm2765_vm2 = vcmask 1040384  }
   0xc   : > { %3319 = vmatpush.msra.mxu1 %v2829_v0  ;;  %3320 = vmatpush.msra.mxu2 %v2829_v0  ;;  %v174_v3 = vld [vmem:[%s4674_s1] sm:$0xff]  ;;  %v3154_v25 = vld [vmem:[%s4674_s1 + $0x30] sm:$0xff]  ;;  %v3219_v26 = vld [vmem:[%s4674_s1 + $0x38] sm:$0xff]  ;;  %vm2767_vm3 = vcmask 58368  }
   0xd   : > { %s4796_s10 = smov (!%p133_p3, %s2822_s10), 1  ;;  %3321 = vmatpush.msra.mxu3 %v2829_v0  ;;  %v3024_v4 = vld [vmem:[%s4674_s1 + $0x20] sm:$0xff]  ;;  %321 = vmatpush.msra.mxu0 %v2829_v0  ;;  %v3089_v27 = vld [vmem:[%s4674_s1 + $0x28] sm:$0xff] }
   0xe   : > { %773 = vmatpush.msrb.mxu2 %v2894_v1  ;;  %530 = vmatpush.msrb.mxu1 %v174_v3  ;;  %s3322_s21 = smul.u32 432, %s4796_s10  ;;  %v3284_v32 = vld [vmem:[%s4674_s1 + $0x40] sm:$0xff]  ;;  %s2828_s5 = sshll.u32 %s4796_s10, 1 }
   0xf   : > { %1049 = vmatpush.msrb.mxu3 %v2959_v2  ;;  %1324 = vmatpush.msrb.mxu0 %v3024_v4  ;;  %s141_s8 = scalar_lea.vmem %s4675_s2, %s2828_s5 }
  0x10   : > { %s3387_s24 = scalar_lea.vmem %s4673_s0, %s3322_s21 }
  0x11   : > { %v3390_v5 = vld [vmem:[%s3387_s24 + $0x61] sm:$0xff]  ;;  %v3407_v9 = vld [vmem:[%s3387_s24 + $0x69] sm:$0xff]  ;;  %v3424_v13 = vld [vmem:[%s3387_s24 + $0x79] sm:$0xff] }
  0x12   : > { %v3393_v6 = vld [vmem:[%s3387_s24 + $0xc1] sm:$0xff]  ;;  %2838 = vmatmul.msk.f32.vlgmr.msra.gmra.mxu1 %vm209_vm0, %v3390_v5  ;;  %v3410_v10 = vld [vmem:[%s3387_s24 + $0xc9] sm:$0xff]  ;;  %v3427_v14 = vld [vmem:[%s3387_s24 + $0xd9] sm:$0xff] }
  0x13   : > { %v3396_v7 = vld [vmem:[%s3387_s24 + $0x121] sm:$0xff]  ;;  %2846 = vmatmul.msk.f32.vlgmr.msra.gmra.mxu2 %vm209_vm0, %v3393_v6  ;;  %v3413_v11 = vld [vmem:[%s3387_s24 + $0x129] sm:$0xff]  ;;  %v3430_v15 = vld [vmem:[%s3387_s24 + $0x139] sm:$0xff]  ;;  %1599 = vmatpush.msra.mxu1 %v3089_v27 }
  0x14   : > { %v175_v8 = vld [vmem:[%s3387_s24 + $0x1] sm:$0xff]  ;;  %2854 = vmatmul.msk.f32.vlgmr.msra.gmra.mxu3 %vm209_vm0, %v3396_v7  ;;  %v176_v12 = vld [vmem:[%s3387_s24 + $0x9] sm:$0xff]  ;;  %v177_v16 = vld [vmem:[%s3387_s24 + $0x19] sm:$0xff]  ;;  %1875 = vmatpush.msra.mxu2 %v3154_v25 }
  0x15   : > { %2830 = vmatmul.msk.f32.vlgmr.msra.gmra.mxu0 %vm209_vm0, %v175_v8  ;;  %v3441_v17 = vld [vmem:[%s3387_s24 + $0x81] sm:$0xff]  ;;  %v3458_v21 = vld [vmem:[%s3387_s24 + $0x91] sm:$0xff]  ;;  %2150 = vmatpush.msra.mxu3 %v3219_v26  ;;  %v3487_v28 = vld [vmem:[%s3387_s24 + $0x99] sm:$0xff] }
  0x16   : > { %v3444_v18 = vld [vmem:[%s3387_s24 + $0xe1] sm:$0xff]  ;;  %v3461_v22 = vld [vmem:[%s3387_s24 + $0xf1] sm:$0xff]  ;;  %v3490_v29 = vld [vmem:[%s3387_s24 + $0xf9] sm:$0xff]  ;;  %2425 = vmatpush.msra.mxu0 %v3284_v32 }
  0x17   : > { %v3447_v19 = vld [vmem:[%s3387_s24 + $0x141] sm:$0xff]  ;;  %v3464_v23 = vld [vmem:[%s3387_s24 + $0x151] sm:$0xff]  ;;  %v3493_v30 = vld [vmem:[%s3387_s24 + $0x159] sm:$0xff] }
  0x18   : > { %v178_v20 = vld [vmem:[%s3387_s24 + $0x21] sm:$0xff]  ;;  %v3467_v24 = vld [vmem:[%s3387_s24 + $0x31] sm:$0xff]  ;;  %v3496_v31 = vld [vmem:[%s3387_s24 + $0x39] sm:$0xff] }
  0x19   : > { %v3510_v33 = vld [vmem:[%s3387_s24 + $0xa9] sm:$0xff]  ;;  %v3530_v37 = vld [vmem:[%s3387_s24 + $0xb1] sm:$0xff]  ;;  %v142_v41 = vld [vmem:[%s3387_s24] sm:$0xff] }
  0x1a   : > { %2839 = vmatmul.msk.f32.gmra.mxu1 %vm209_vm0, %v3407_v9  ;;  %v3513_v34 = vld [vmem:[%s3387_s24 + $0x109] sm:$0xff]  ;;  %v3533_v38 = vld [vmem:[%s3387_s24 + $0x111] sm:$0xff]  ;;  %v2928_v46 = vld [vmem:[%s3387_s24 + $0x20] sm:$0xff] }
  0x1b   : > { %2847 = vmatmul.msk.f32.gmra.mxu2 %vm209_vm0, %v3410_v10  ;;  %v3516_v35 = vld [vmem:[%s3387_s24 + $0x169] sm:$0xff]  ;;  %v3536_v39 = vld [vmem:[%s3387_s24 + $0x171] sm:$0xff]  ;;  %v3564_v47 = vld [vmem:[%s3387_s24 + $0x1a] sm:$0xff] }
  0x1c   : > { %2855 = vmatmul.msk.f32.gmra.mxu3 %vm209_vm0, %v3413_v11  ;;  %v3519_v36 = vld [vmem:[%s3387_s24 + $0x49] sm:$0xff]  ;;  %v3539_v40 = vld [vmem:[%s3387_s24 + $0x51] sm:$0xff]  ;;  %v3604_v53 = vld [vmem:[%s3387_s24 + $0x3a] sm:$0xff] }
  0x1d   : > { %2831 = vmatmul.msk.f32.gmra.mxu0 %vm209_vm0, %v176_v12  ;;  %v628_v42 = vld [vmem:[%s3387_s24 + $0x2] sm:$0xff]  ;;  %v2927_v43 = vld [vmem:[%s3387_s24 + $0x18] sm:$0xff]  ;;  %v629_v45 = vld [vmem:[%s3387_s24 + $0xa] sm:$0xff] }
  0x1e   : > { %v143_v44 = vld [vmem:[%s3387_s24 + $0x8] sm:$0xff]  ;;  %v3567_v48 = vld [vmem:[%s3387_s24 + $0x30] sm:$0xff]  ;;  %v3580_v50 = vld [vmem:[%s3387_s24 + $0x38] sm:$0xff] }
  0x1f   : > { %v3577_v49 = vld [vmem:[%s3387_s24 + $0x22] sm:$0xff]  ;;  %v3590_v51 = vld [vmem:[%s3387_s24 + $0x32] sm:$0xff]  ;;  %v3618_v55 = vld [vmem:[%s3387_s24 + $0x4a] sm:$0xff] }
  0x20   : > { %v3593_v52 = vld [vmem:[%s3387_s24 + $0x48] sm:$0xff]  ;;  %v3607_v54 = vld [vmem:[%s3387_s24 + $0x50] sm:$0xff]  ;;  %v3621_v56 = vld [vmem:[%s3387_s24 + $0x60] sm:$0xff] }
  0x21   : > { %v3632_v57 = vld [vmem:[%s3387_s24 + $0x52] sm:$0xff]  ;;  %v3635_v58 = vld [vmem:[%s3387_s24 + $0x68] sm:$0xff]  ;;  %v3673_v3 = vld [vmem:[%s3387_s24 + $0x80] sm:$0xff] }
  0x22   : > { %2840 = vmatmul.msk.f32.gmra.mxu1 %vm209_vm0, %v3424_v13  ;;  %4705 = vst [vmem:[#allocation2_spill] sm:$0xff] %v3635_v58  ;;  %v3648_v60 = vld [vmem:[%s3387_s24 + $0x62] sm:$0xff]  ;;  %v3651_v61 = vld [vmem:[%s3387_s24 + $0x78] sm:$0xff]  ;;  %v3670_v2 = vld [vmem:[%s3387_s24 + $0x6a] sm:$0xff] }
  0x23   : > { %2848 = vmatmul.msk.f32.gmra.mxu2 %vm209_vm0, %v3427_v14  ;;  %4706 = vst [vmem:[#allocation3_spill] sm:$0xff] %v3651_v61  ;;  %v3692_v12 = vld [vmem:[%s3387_s24 + $0x7a] sm:$0xff]  ;;  %v3714_v26 = vld [vmem:[%s3387_s24 + $0x82] sm:$0xff] }
  0x24   : > { %2856 = vmatmul.msk.f32.gmra.mxu3 %vm209_vm0, %v3430_v15  ;;  %4708 = vst [vmem:[#allocation5_spill] sm:$0xff] %v3670_v2  ;;  %v3717_v27 = vld [vmem:[%s3387_s24 + $0x98] sm:$0xff] }
  0x25   : > { %2832 = vmatmul.msk.f32.gmra.mxu0 %vm209_vm0, %v177_v16  ;;  %4709 = vst [vmem:[#allocation6_spill] sm:$0xff] %v3673_v3 }
  0x26   : > { %4711 = vst [vmem:[#allocation8_spill] sm:$0xff] %v3692_v12 }
  0x27   : > { %4714 = vst [vmem:[#allocation11_spill] sm:$0xff] %v3714_v26 }
  0x28   : > { %4715 = vst [vmem:[#allocation12_spill] sm:$0xff] %v3717_v27 }
  0x2a   : > { %2841 = vmatmul.msk.f32.gmra.mxu1 %vm209_vm0, %v3441_v17 }
  0x2b   : > { %2849 = vmatmul.msk.f32.gmra.mxu2 %vm209_vm0, %v3444_v18 }
  0x2c   : > { %2857 = vmatmul.msk.f32.gmra.mxu3 %vm209_vm0, %v3447_v19 }
  0x2d   : > { %2833 = vmatmul.msk.f32.gmra.mxu0 %vm209_vm0, %v178_v20 }
  0x32   : > { %2842 = vmatmul.msk.f32.gmra.mxu1 %vm209_vm0, %v3458_v21 }
  0x33   : > { %2850 = vmatmul.msk.f32.gmra.mxu2 %vm209_vm0, %v3461_v22 }
  0x34   : > { %2858 = vmatmul.msk.f32.gmra.mxu3 %vm209_vm0, %v3464_v23 }
  0x35   : > { %2834 = vmatmul.msk.f32.gmra.mxu0 %vm209_vm0, %v3467_v24 }
  0x3a   : > { %2843 = vmatmul.msk.f32.gmra.mxu1 %vm209_vm0, %v3487_v28 }
  0x3b   : > { %2851 = vmatmul.msk.f32.gmra.mxu2 %vm209_vm0, %v3490_v29 }
  0x3c   : > { %2859 = vmatmul.msk.f32.gmra.mxu3 %vm209_vm0, %v3493_v30 }
  0x3d   : > { %2835 = vmatmul.msk.f32.gmra.mxu0 %vm209_vm0, %v3496_v31 }
  0x42   : > { %2844 = vmatmul.msk.f32.gmra.mxu1 %vm209_vm0, %v3510_v33 }
  0x43   : > { %2852 = vmatmul.msk.f32.gmra.mxu2 %vm209_vm0, %v3513_v34 }
  0x44   : > { %2860 = vmatmul.msk.f32.gmra.mxu3 %vm209_vm0, %v3516_v35 }
  0x45   : > { %2836 = vmatmul.msk.f32.gmra.mxu0 %vm209_vm0, %v3519_v36 }
  0x4a   : > { %2845 = vmatmul.msk.f32.gmra.mxu1 %vm209_vm0, %v3530_v37 }
  0x4b   : > { %2853 = vmatmul.msk.f32.gmra.mxu2 %vm209_vm0, %v3533_v38 }
  0x4c   : > { %2861 = vmatmul.msk.f32.gmra.mxu3 %vm209_vm0, %v3536_v39 }
  0x4d   : > { %2837 = vmatmul.msk.f32.gmra.mxu0 %vm209_vm0, %v3539_v40 }
  0x52   : > { %2862 = vmatmul.msk.f32.vlgmr.msrb.gmra.mxu1 %vm209_vm0, %v142_v41 }
  0x53   : > { %2895 = vmatmul.msk.f32.vlgmr.msrb.gmra.mxu2 %vm209_vm0, %v628_v42 }
  0x54   : > { %2960 = vmatmul.msk.f32.vlgmr.msrb.gmra.mxu3 %vm209_vm0, %v2927_v43 }
  0x55   : > { %3025 = vmatmul.msk.f32.vlgmr.msrb.gmra.mxu0 %vm209_vm0, %v177_v16 }
  0x5a   : > { %2863 = vmatmul.msk.f32.gmra.mxu1 %vm209_vm0, %v143_v44  ;;  %v3739_v44 = vld [vmem:[%s3387_s24 + $0xa8] sm:$0xff] }
  0x5b   : > { %2896 = vmatmul.msk.f32.gmra.mxu2 %vm209_vm0, %v629_v45  ;;  %4718 = vst [vmem:[#allocation15_spill] sm:$0xff] %v3739_v44 }
  0x5c   : > { %2961 = vmatmul.msk.f32.gmra.mxu3 %vm209_vm0, %v2928_v46 }
  0x5d   : > { %3026 = vmatmul.msk.f32.gmra.mxu0 %vm209_vm0, %v178_v20 }
  0x62   : > { %2864 = vmatmul.msk.f32.gmra.mxu1 %vm209_vm0, %v2927_v43  ;;  %v3736_v43 = vld [vmem:[%s3387_s24 + $0x92] sm:$0xff] }
  0x63   : > { %2897 = vmatmul.msk.f32.gmra.mxu2 %vm209_vm0, %v3564_v47  ;;  %4717 = vst [vmem:[#allocation14_spill] sm:$0xff] %v3736_v43 }
  0x64   : > { %2962 = vmatmul.msk.f32.gmra.mxu3 %vm209_vm0, %v3567_v48 }
  0x65   : > { %3027 = vmatmul.msk.f32.gmra.mxu0 %vm209_vm0, %v3467_v24 }
  0x6a   : > { %2865 = vmatmul.msk.f32.gmra.mxu1 %vm209_vm0, %v2928_v46 }
  0x6b   : > { %2898 = vmatmul.msk.f32.gmra.mxu2 %vm209_vm0, %v3577_v49 }
  0x6c   : > { %2963 = vmatmul.msk.f32.gmra.mxu3 %vm209_vm0, %v3580_v50 }
  0x6d   : > { %3028 = vmatmul.msk.f32.gmra.mxu0 %vm209_vm0, %v3496_v31 }
  0x72   : > { %2866 = vmatmul.msk.f32.gmra.mxu1 %vm209_vm0, %v3567_v48 }
  0x73   : > { %2899 = vmatmul.msk.f32.gmra.mxu2 %vm209_vm0, %v3590_v51 }
  0x74   : > { %2964 = vmatmul.msk.f32.gmra.mxu3 %vm209_vm0, %v3593_v52 }
  0x75   : > { %3029 = vmatmul.msk.f32.gmra.mxu0 %vm209_vm0, %v3519_v36 }
  0x7a   : > { %2867 = vmatmul.msk.f32.gmra.mxu1 %vm209_vm0, %v3580_v50 }
  0x7b   : > { %2900 = vmatmul.msk.f32.gmra.mxu2 %vm209_vm0, %v3604_v53 }
  0x7c   : > { %2965 = vmatmul.msk.f32.gmra.mxu3 %vm209_vm0, %v3607_v54 }
  0x7d   : > { %3030 = vmatmul.msk.f32.gmra.mxu0 %vm209_vm0, %v3539_v40 }
  0x82   : > { %2868 = vmatmul.msk.f32.gmra.mxu1 %vm209_vm0, %v3593_v52 }
  0x83   : > { %2901 = vmatmul.msk.f32.gmra.mxu2 %vm209_vm0, %v3618_v55 }
  0x84   : > { %2966 = vmatmul.msk.f32.gmra.mxu3 %vm209_vm0, %v3621_v56 }
  0x85   : > { %3031 = vmatmul.msk.f32.gmra.mxu0 %vm209_vm0, %v3390_v5 }
  0x8a   : > { %2869 = vmatmul.msk.f32.gmra.mxu1 %vm209_vm0, %v3607_v54 }
  0x8b   : > { %2902 = vmatmul.msk.f32.gmra.mxu2 %vm209_vm0, %v3632_v57 }
  0x8c   : > { %2967 = vmatmul.msk.f32.gmra.mxu3 %vm209_vm0, %v3635_v58 }
  0x8d   : > { %3032 = vmatmul.msk.f32.gmra.mxu0 %vm209_vm0, %v3407_v9 }
  0x8f   : > { %v3645_v59 = vpop.f32.mrf.mxu1 }
  0x92   : > { %v3653_v62 = vpop.f32.mrf.mxu0  ;;  %2870 = vmatmul.msk.f32.gmra.mxu1 %vm209_vm0, %v3621_v56 }
  0x93   : > { %2903 = vmatmul.msk.f32.gmra.mxu2 %vm209_vm0, %v3648_v60 }
  0x94   : > { %2968 = vmatmul.msk.f32.gmra.mxu3 %vm209_vm0, %v3651_v61 }
  0x95   : > { %3033 = vmatmul.msk.f32.gmra.mxu0 %vm209_vm0, %v3424_v13  ;;  %v3695_v13 = vld [vmem:[%s3387_s24 + $0x90] sm:$0xff] }
  0x96   : > { %v3663_v63 = vpop.f32.mrf.mxu2  ;;  %4712 = vst [vmem:[#allocation9_spill] sm:$0xff] %v3695_v13 }
  0x97   : > { %v3665_v0 = vpop.f32.mrf.mxu3  ;;  %v3667_v1 = vpop.f32.mrf.mxu1 }
  0x98   : > { %4707 = vst [vmem:[#allocation4_spill] sm:$0xff] %v3665_v0 }
  0x9a   : > { %v3675_v4 = vpop.f32.mrf.mxu0  ;;  %2871 = vmatmul.msk.f32.gmra.mxu1 %vm209_vm0, %v3635_v58  ;;  %v3840_v58 = vld [vmem:[%s3387_s24 + $0xe0] sm:$0xff] }
  0x9b   : > { %2904 = vmatmul.msk.f32.gmra.mxu2 %vm209_vm0, %v3670_v2  ;;  %v3837_v2 = vld [vmem:[%s3387_s24 + $0xca] sm:$0xff] }
  0x9c   : > { %2969 = vmatmul.msk.f32.gmra.mxu3 %vm209_vm0, %v3673_v3 }
  0x9d   : > { %3034 = vmatmul.msk.f32.gmra.mxu0 %vm209_vm0, %v3441_v17 }
  0x9e   : > { %v3685_v5 = vpop.f32.mrf.mxu2 }
  0x9f   : > { %v3687_v8 = vpop.f32.mrf.mxu3  ;;  %v3689_v9 = vpop.f32.mrf.mxu1 }
  0xa0   : > { %4710 = vst [vmem:[#allocation7_spill] sm:$0xff] %v3687_v8  ;;  %v3761_v8 = vld [vmem:[%s3387_s24 + $0xb0] sm:$0xff] }
  0xa1   : > { %4722 = vst [vmem:[#allocation19_spill] sm:$0xff] %v3761_v8 }
  0xa2   : > { %v3697_v16 = vpop.f32.mrf.mxu0  ;;  %2872 = vmatmul.msk.f32.gmra.mxu1 %vm209_vm0, %v3651_v61  ;;  %v3825_v61 = vld [vmem:[%s3387_s24 + $0xd8] sm:$0xff] }
  0xa3   : > { %2905 = vmatmul.msk.f32.gmra.mxu2 %vm209_vm0, %v3692_v12 }
  0xa4   : > { %2970 = vmatmul.msk.f32.gmra.mxu3 %vm209_vm0, %v3695_v13 }
  0xa5   : > { %3035 = vmatmul.msk.f32.gmra.mxu0 %vm209_vm0, %v3458_v21 }
  0xa6   : > { %v3707_v17 = vpop.f32.mrf.mxu2 }
  0xa7   : > { %v3709_v20 = vpop.f32.mrf.mxu3  ;;  %v3711_v25 = vpop.f32.mrf.mxu1 }
  0xa8   : > { %4713 = vst [vmem:[#allocation10_spill] sm:$0xff] %v3709_v20  ;;  %v3758_v20 = vld [vmem:[%s3387_s24 + $0x9a] sm:$0xff] }
  0xa9   : > { %4721 = vst [vmem:[#allocation18_spill] sm:$0xff] %v3758_v20 }
  0xaa   : > { %v3719_v32 = vpop.f32.mrf.mxu0  ;;  %2873 = vmatmul.msk.f32.gmra.mxu1 %vm209_vm0, %v3673_v3  ;;  %v3802_v3 = vld [vmem:[%s3387_s24 + $0xb2] sm:$0xff] }
  0xab   : > { %2906 = vmatmul.msk.f32.gmra.mxu2 %vm209_vm0, %v3714_v26  ;;  %4729 = vst [vmem:[#allocation26_spill] sm:$0xff] %v3802_v3 }
  0xac   : > { %2971 = vmatmul.msk.f32.gmra.mxu3 %vm209_vm0, %v3717_v27 }
  0xad   : > { %3036 = vmatmul.msk.f32.gmra.mxu0 %vm209_vm0, %v3487_v28 }
  0xae   : > { %v3729_v21 = vpop.f32.mrf.mxu2 }
  0xaf   : > { %v3731_v41 = vpop.f32.mrf.mxu3  ;;  %v3733_v42 = vpop.f32.mrf.mxu1 }
  0xb0   : > { %4716 = vst [vmem:[#allocation13_spill] sm:$0xff] %v3731_v41 }
  0xb2   : > { %v3741_v45 = vpop.f32.mrf.mxu0  ;;  %2874 = vmatmul.msk.f32.gmra.mxu1 %vm209_vm0, %v3695_v13  ;;  %v3780_v13 = vld [vmem:[%s3387_s24 + $0xaa] sm:$0xff] }
  0xb3   : > { %2907 = vmatmul.msk.f32.gmra.mxu2 %vm209_vm0, %v3736_v43  ;;  %4725 = vst [vmem:[#allocation22_spill] sm:$0xff] %v3780_v13 }
  0xb4   : > { %2972 = vmatmul.msk.f32.gmra.mxu3 %vm209_vm0, %v3739_v44 }
  0xb5   : > { %3037 = vmatmul.msk.f32.gmra.mxu0 %vm209_vm0, %v3510_v33 }
  0xb6   : > { %v3751_v28 = vpop.f32.mrf.mxu2 }
  0xb7   : > { %4719 = vst [vmem:[#allocation16_spill] sm:$0xff] %v3751_v28  ;;  %v3753_v46 = vpop.f32.mrf.mxu3  ;;  %v3755_v41 = vpop.f32.mrf.mxu1 }
  0xb8   : > { %4720 = vst [vmem:[#allocation17_spill] sm:$0xff] %v3753_v46 }
  0xba   : > { %v3763_v0 = vpop.f32.mrf.mxu0  ;;  %2875 = vmatmul.msk.f32.gmra.mxu1 %vm209_vm0, %v3717_v27  ;;  %v3783_v27 = vld [vmem:[%s3387_s24 + $0xc0] sm:$0xff] }
  0xbb   : > { %2908 = vmatmul.msk.f32.gmra.mxu2 %vm209_vm0, %v3758_v20  ;;  %4726 = vst [vmem:[#allocation23_spill] sm:$0xff] %v3783_v27 }
  0xbc   : > { %2973 = vmatmul.msk.f32.gmra.mxu3 %vm209_vm0, %v3761_v8 }
  0xbd   : > { %3038 = vmatmul.msk.f32.gmra.mxu0 %vm209_vm0, %v3530_v37 }
  0xbe   : > { %v3773_v33 = vpop.f32.mrf.mxu2 }
  0xbf   : > { %4723 = vst [vmem:[#allocation20_spill] sm:$0xff] %v3773_v33  ;;  %v3775_v46 = vpop.f32.mrf.mxu3  ;;  %v3777_v43 = vpop.f32.mrf.mxu1 }
  0xc0   : > { %4724 = vst [vmem:[#allocation21_spill] sm:$0xff] %v3775_v46 }
  0xc2   : > { %v3785_v26 = vpop.f32.mrf.mxu0  ;;  %2876 = vmatmul.msk.f32.gmra.mxu1 %vm209_vm0, %v3739_v44  ;;  %v3805_v44 = vld [vmem:[%s3387_s24 + $0xc8] sm:$0xff] }
  0xc3   : > { %2909 = vmatmul.msk.f32.gmra.mxu2 %vm209_vm0, %v3780_v13 }
  0xc4   : > { %2974 = vmatmul.msk.f32.gmra.mxu3 %vm209_vm0, %v3783_v27 }
  0xc5   : > { %3039 = vmatmul.msk.f32.gmra.mxu0 %vm209_vm0, %v3393_v6 }
  0xc6   : > { %v3795_v37 = vpop.f32.mrf.mxu2 }
  0xc7   : > { %4727 = vst [vmem:[#allocation24_spill] sm:$0xff] %v3795_v37  ;;  %v3797_v46 = vpop.f32.mrf.mxu3  ;;  %v3799_v20 = vpop.f32.mrf.mxu1  ;;  %v3822_v37 = vld [vmem:[%s3387_s24 + $0xc2] sm:$0xff] }
  0xc8   : > { %4728 = vst [vmem:[#allocation25_spill] sm:$0xff] %v3797_v46 }
  0xc9   : > { %4732 = vst [vmem:[#allocation29_spill] sm:$0xff] %v3822_v37 }
  0xca   : > { %v3807_v12 = vpop.f32.mrf.mxu0  ;;  %2877 = vmatmul.msk.f32.gmra.mxu1 %vm209_vm0, %v3761_v8 }
  0xcb   : > { %2910 = vmatmul.msk.f32.gmra.mxu2 %vm209_vm0, %v3802_v3 }
  0xcc   : > { %2975 = vmatmul.msk.f32.gmra.mxu3 %vm209_vm0, %v3805_v44 }
  0xcd   : > { %3040 = vmatmul.msk.f32.gmra.mxu0 %vm209_vm0, %v3410_v10 }
  0xce   : > { %v3817_v6 = vpop.f32.mrf.mxu2 }
  0xcf   : > { %4730 = vst [vmem:[#allocation27_spill] sm:$0xff] %v3817_v6  ;;  %v3819_v46 = vpop.f32.mrf.mxu3  ;;  %v532_v13 = vpop.f32.mrf.mxu1 }
  0xd0   : > { %4731 = vst [vmem:[#allocation28_spill] sm:$0xff] %v3819_v46  ;;  %v533_v10 = vadd.f32 %v532_v13, %v3653_v62 }
  0xd2   : > { %v1326_v8 = vpop.f32.mrf.mxu0  ;;  %2878 = vmatmul.msk.f32.gmra.mxu1 %vm209_vm0, %v3783_v27 }
  0xd3   : > { %2911 = vmatmul.msk.f32.gmra.mxu2 %vm209_vm0, %v3822_v37 }
  0xd4   : > { %2976 = vmatmul.msk.f32.gmra.mxu3 %vm209_vm0, %v3825_v61 }
  0xd5   : > { %3041 = vmatmul.msk.f32.gmra.mxu0 %vm209_vm0, %v3427_v14 }
  0xd6   : > { %v775_v46 = vpop.f32.mrf.mxu2 }
  0xd7   : > { %v871_v3 = vadd.f32 %v775_v46, %v533_v10  ;;  %v1051_v6 = vpop.f32.mrf.mxu3  ;;  %v535_v33 = vpop.f32.mrf.mxu1 }
  0xd8   : > { %v536_v14 = vadd.f32 %v535_v33, %v3675_v4 }
  0xd9   : > { %v1147_v27 = vadd.f32 %v1051_v6, %v871_v3  ;;  %v3857_v6 = vld [vmem:[%s3387_s24 + $0xf0] sm:$0xff] }
  0xda   : > { %v1329_v37 = vpop.f32.mrf.mxu0  ;;  %2879 = vmatmul.msk.f32.gmra.mxu1 %vm209_vm0, %v3805_v44 }
  0xdb   : > { %v3842_v28 = vadd.f32 %v1326_v8, %v1147_v27  ;;  %2912 = vmatmul.msk.f32.gmra.mxu2 %vm209_vm0, %v3837_v2  ;;  %v3854_v27 = vld [vmem:[%s3387_s24 + $0xda] sm:$0xff] }
  0xdc   : > { %2977 = vmatmul.msk.f32.gmra.mxu3 %vm209_vm0, %v3840_v58 }
  0xdd   : > { %4733 = vst [vmem:[#allocation30_spill] sm:$0xff] %v3842_v28  ;;  %3042 = vmatmul.msk.f32.gmra.mxu0 %vm209_vm0, %v3444_v18 }
  0xde   : > { %v778_v62 = vpop.f32.mrf.mxu2 }
  0xdf   : > { %v872_v3 = vadd.f32 %v778_v62, %v536_v14  ;;  %v1054_v13 = vpop.f32.mrf.mxu3  ;;  %v538_v8 = vpop.f32.mrf.mxu1  ;;  %v3871_v62 = vld [vmem:[%s3387_s24 + $0xe2] sm:$0xff] }
  0xe0   : > { %v539_v18 = vadd.f32 %v538_v8, %v3697_v16 }
  0xe1   : > { %v1148_v46 = vadd.f32 %v1054_v13, %v872_v3  ;;  %v3874_v13 = vld [vmem:[%s3387_s24 + $0xf8] sm:$0xff] }
  0xe2   : > { %v1332_v10 = vpop.f32.mrf.mxu0  ;;  %2880 = vmatmul.msk.f32.gmra.mxu1 %vm209_vm0, %v3825_v61 }
  0xe3   : > { %v3859_v28 = vadd.f32 %v1329_v37, %v1148_v46  ;;  %2913 = vmatmul.msk.f32.gmra.mxu2 %vm209_vm0, %v3854_v27 }
  0xe4   : > { %2978 = vmatmul.msk.f32.gmra.mxu3 %vm209_vm0, %v3857_v6 }
  0xe5   : > { %4734 = vst [vmem:[#allocation31_spill] sm:$0xff] %v3859_v28  ;;  %3043 = vmatmul.msk.f32.gmra.mxu0 %vm209_vm0, %v3461_v22 }
  0xe6   : > { %v781_v4 = vpop.f32.mrf.mxu2 }
  0xe7   : > { %v873_v33 = vadd.f32 %v781_v4, %v539_v18  ;;  %v1057_v14 = vpop.f32.mrf.mxu3  ;;  %v541_v37 = vpop.f32.mrf.mxu1  ;;  %v3888_v4 = vld [vmem:[%s3387_s24 + $0xf2] sm:$0xff] }
  0xe8   : > { %v542_v22 = vadd.f32 %v541_v37, %v3719_v32 }
  0xe9   : > { %v1149_v3 = vadd.f32 %v1057_v14, %v873_v33  ;;  %v3891_v14 = vld [vmem:[%s3387_s24 + $0x108] sm:$0xff] }
  0xea   : > { %v1335_v46 = vpop.f32.mrf.mxu0  ;;  %2881 = vmatmul.msk.f32.gmra.mxu1 %vm209_vm0, %v3840_v58 }
  0xeb   : > { %v3876_v28 = vadd.f32 %v1332_v10, %v1149_v3  ;;  %2914 = vmatmul.msk.f32.gmra.mxu2 %vm209_vm0, %v3871_v62 }
  0xec   : > { %2979 = vmatmul.msk.f32.gmra.mxu3 %vm209_vm0, %v3874_v13 }
  0xed   : > { %4735 = vst [vmem:[#allocation32_spill] sm:$0xff] %v3876_v28  ;;  %3044 = vmatmul.msk.f32.gmra.mxu0 %vm209_vm0, %v3490_v29 }
  0xee   : > { %v784_v16 = vpop.f32.mrf.mxu2 }
  0xef   : > { %v874_v8 = vadd.f32 %v784_v16, %v542_v22  ;;  %v1060_v18 = vpop.f32.mrf.mxu3  ;;  %v544_v10 = vpop.f32.mrf.mxu1  ;;  %v3905_v16 = vld [vmem:[%s3387_s24 + $0xfa] sm:$0xff] }
  0xf0   : > { %v545_v29 = vadd.f32 %v544_v10, %v3741_v45 }
  0xf1   : > { %v1150_v33 = vadd.f32 %v1060_v18, %v874_v8  ;;  %v3908_v18 = vld [vmem:[%s3387_s24 + $0x110] sm:$0xff] }
  0xf2   : > { %v1338_v3 = vpop.f32.mrf.mxu0  ;;  %2882 = vmatmul.msk.f32.gmra.mxu1 %vm209_vm0, %v3857_v6 }
  0xf3   : > { %v3893_v28 = vadd.f32 %v1335_v46, %v1150_v33  ;;  %2915 = vmatmul.msk.f32.gmra.mxu2 %vm209_vm0, %v3888_v4 }
  0xf4   : > { %2980 = vmatmul.msk.f32.gmra.mxu3 %vm209_vm0, %v3891_v14 }
  0xf5   : > { %4736 = vst [vmem:[#allocation33_spill] sm:$0xff] %v3893_v28  ;;  %3045 = vmatmul.msk.f32.gmra.mxu0 %vm209_vm0, %v3513_v34 }
  0xf6   : > { %v787_v32 = vpop.f32.mrf.mxu2 }
  0xf7   : > { %v875_v37 = vadd.f32 %v787_v32, %v545_v29  ;;  %v1063_v22 = vpop.f32.mrf.mxu3  ;;  %v547_v46 = vpop.f32.mrf.mxu1  ;;  %v3922_v32 = vld [vmem:[%s3387_s24 + $0x10a] sm:$0xff] }
  0xf8   : > { %v548_v34 = vadd.f32 %v547_v46, %v3763_v0 }
  0xf9   : > { %v1151_v8 = vadd.f32 %v1063_v22, %v875_v37  ;;  %v3925_v22 = vld [vmem:[%s3387_s24 + $0x120] sm:$0xff] }
  0xfa   : > { %v1341_v33 = vpop.f32.mrf.mxu0  ;;  %2883 = vmatmul.msk.f32.gmra.mxu1 %vm209_vm0, %v3874_v13 }
  0xfb   : > { %v3910_v28 = vadd.f32 %v1338_v3, %v1151_v8  ;;  %2916 = vmatmul.msk.f32.gmra.mxu2 %vm209_vm0, %v3905_v16 }
  0xfc   : > { %2981 = vmatmul.msk.f32.gmra.mxu3 %vm209_vm0, %v3908_v18 }
  0xfd   : > { %4737 = vst [vmem:[#allocation34_spill] sm:$0xff] %v3910_v28  ;;  %3046 = vmatmul.msk.f32.gmra.mxu0 %vm209_vm0, %v3533_v38 }
  0xfe   : > { %v790_v45 = vpop.f32.mrf.mxu2 }
  0xff   : > { %v876_v10 = vadd.f32 %v790_v45, %v548_v34  ;;  %v1066_v29 = vpop.f32.mrf.mxu3  ;;  %v550_v3 = vpop.f32.mrf.mxu1  ;;  %v3939_v45 = vld [vmem:[%s3387_s24 + $0x112] sm:$0xff] }
 0x100   : > { %v551_v38 = vadd.f32 %v550_v3, %v3785_v26 }
 0x101   : > { %v1152_v37 = vadd.f32 %v1066_v29, %v876_v10  ;;  %v3942_v29 = vld [vmem:[%s3387_s24 + $0x128] sm:$0xff] }
 0x102   : > { %v1344_v8 = vpop.f32.mrf.mxu0  ;;  %2884 = vmatmul.msk.f32.gmra.mxu1 %vm209_vm0, %v3891_v14 }
 0x103   : > { %v3927_v28 = vadd.f32 %v1341_v33, %v1152_v37  ;;  %2917 = vmatmul.msk.f32.gmra.mxu2 %vm209_vm0, %v3922_v32 }
 0x104   : > { %2982 = vmatmul.msk.f32.gmra.mxu3 %vm209_vm0, %v3925_v22 }
 0x105   : > { %4738 = vst [vmem:[#allocation35_spill] sm:$0xff] %v3927_v28  ;;  %3047 = vmatmul.msk.f32.gmra.mxu0 %vm209_vm0, %v3396_v7 }
 0x106   : > { %v793_v0 = vpop.f32.mrf.mxu2 }
 0x107   : > { %v877_v46 = vadd.f32 %v793_v0, %v551_v38  ;;  %v1069_v34 = vpop.f32.mrf.mxu3  ;;  %v553_v33 = vpop.f32.mrf.mxu1  ;;  %v3956_v0 = vld [vmem:[%s3387_s24 + $0x122] sm:$0xff] }
 0x108   : > { %v554_v7 = vadd.f32 %v553_v33, %v3807_v12 }
 0x109   : > { %v1153_v10 = vadd.f32 %v1069_v34, %v877_v46  ;;  %v3959_v34 = vld [vmem:[%s3387_s24 + $0x138] sm:$0xff] }
 0x10a   : > { %v1347_v37 = vpop.f32.mrf.mxu0  ;;  %2885 = vmatmul.msk.f32.gmra.mxu1 %vm209_vm0, %v3908_v18 }
 0x10b   : > { %v3944_v28 = vadd.f32 %v1344_v8, %v1153_v10  ;;  %2918 = vmatmul.msk.f32.gmra.mxu2 %vm209_vm0, %v3939_v45 }
 0x10c   : > { %2983 = vmatmul.msk.f32.gmra.mxu3 %vm209_vm0, %v3942_v29 }
 0x10d   : > { %4739 = vst [vmem:[#allocation36_spill] sm:$0xff] %v3944_v28  ;;  %3048 = vmatmul.msk.f32.gmra.mxu0 %vm209_vm0, %v3413_v11 }
 0x10e   : > { %v796_v26 = vpop.f32.mrf.mxu2 }
 0x10f   : > { %v878_v3 = vadd.f32 %v796_v26, %v554_v7  ;;  %v1072_v38 = vpop.f32.mrf.mxu3  ;;  %v556_v8 = vpop.f32.mrf.mxu1  ;;  %v3973_v26 = vld [vmem:[%s3387_s24 + $0x12a] sm:$0xff] }
 0x110   : > { %v557_v11 = vadd.f32 %v556_v8, %v3645_v59 }
 0x111   : > { %v1154_v46 = vadd.f32 %v1072_v38, %v878_v3  ;;  %v3976_v38 = vld [vmem:[%s3387_s24 + $0x140] sm:$0xff] }
 0x112   : > { %v1350_v10 = vpop.f32.mrf.mxu0  ;;  %2886 = vmatmul.msk.f32.gmra.mxu1 %vm209_vm0, %v3925_v22 }
 0x113   : > { %v3961_v28 = vadd.f32 %v1347_v37, %v1154_v46  ;;  %2919 = vmatmul.msk.f32.gmra.mxu2 %vm209_vm0, %v3956_v0 }
 0x114   : > { %2984 = vmatmul.msk.f32.gmra.mxu3 %vm209_vm0, %v3959_v34 }
 0x115   : > { %4740 = vst [vmem:[#allocation37_spill] sm:$0xff] %v3961_v28  ;;  %3049 = vmatmul.msk.f32.gmra.mxu0 %vm209_vm0, %v3430_v15 }
 0x116   : > { %v799_v12 = vpop.f32.mrf.mxu2 }
 0x117   : > { %v879_v33 = vadd.f32 %v799_v12, %v557_v11  ;;  %v1075_v7 = vpop.f32.mrf.mxu3  ;;  %v559_v37 = vpop.f32.mrf.mxu1  ;;  %v3990_v12 = vld [vmem:[%s3387_s24 + $0x13a] sm:$0xff] }
 0x118   : > { %v560_v15 = vadd.f32 %v559_v37, %v3667_v1 }
 0x119   : > { %v1155_v3 = vadd.f32 %v1075_v7, %v879_v33  ;;  %v3993_v7 = vld [vmem:[%s3387_s24 + $0x150] sm:$0xff] }
 0x11a   : > { %v1353_v46 = vpop.f32.mrf.mxu0  ;;  %2887 = vmatmul.msk.f32.gmra.mxu1 %vm209_vm0, %v3942_v29 }
 0x11b   : > { %v3978_v28 = vadd.f32 %v1350_v10, %v1155_v3  ;;  %2920 = vmatmul.msk.f32.gmra.mxu2 %vm209_vm0, %v3973_v26 }
 0x11c   : > { %2985 = vmatmul.msk.f32.gmra.mxu3 %vm209_vm0, %v3976_v38 }
 0x11d   : > { %4741 = vst [vmem:[#allocation38_spill] sm:$0xff] %v3978_v28  ;;  %3050 = vmatmul.msk.f32.gmra.mxu0 %vm209_vm0, %v3447_v19 }
 0x11e   : > { %v802_v59 = vpop.f32.mrf.mxu2 }
 0x11f   : > { %v880_v8 = vadd.f32 %v802_v59, %v560_v15  ;;  %v1078_v11 = vpop.f32.mrf.mxu3  ;;  %v562_v10 = vpop.f32.mrf.mxu1  ;;  %v4007_v59 = vld [vmem:[%s3387_s24 + $0x142] sm:$0xff] }
 0x120   : > { %v563_v19 = vadd.f32 %v562_v10, %v3689_v9 }
 0x121   : > { %v1156_v33 = vadd.f32 %v1078_v11, %v880_v8  ;;  %v4010_v11 = vld [vmem:[%s3387_s24 + $0x158] sm:$0xff] }
 0x122   : > { %v1356_v3 = vpop.f32.mrf.mxu0  ;;  %2888 = vmatmul.msk.f32.gmra.mxu1 %vm209_vm0, %v3959_v34 }
 0x123   : > { %v3995_v28 = vadd.f32 %v1353_v46, %v1156_v33  ;;  %2921 = vmatmul.msk.f32.gmra.mxu2 %vm209_vm0, %v3990_v12 }
 0x124   : > { %2986 = vmatmul.msk.f32.gmra.mxu3 %vm209_vm0, %v3993_v7 }
 0x125   : > { %4742 = vst [vmem:[#allocation39_spill] sm:$0xff] %v3995_v28  ;;  %3051 = vmatmul.msk.f32.gmra.mxu0 %vm209_vm0, %v3464_v23 }
 0x126   : > { %v805_v1 = vpop.f32.mrf.mxu2 }
 0x127   : > { %v881_v37 = vadd.f32 %v805_v1, %v563_v19  ;;  %v1081_v15 = vpop.f32.mrf.mxu3  ;;  %v565_v46 = vpop.f32.mrf.mxu1  ;;  %v4024_v1 = vld [vmem:[%s3387_s24 + $0x152] sm:$0xff] }
 0x128   : > { %v566_v23 = vadd.f32 %v565_v46, %v3711_v25 }
 0x129   : > { %v1157_v8 = vadd.f32 %v1081_v15, %v881_v37  ;;  %v4027_v15 = vld [vmem:[%s3387_s24 + $0x168] sm:$0xff] }
 0x12a   : > { %v1359_v33 = vpop.f32.mrf.mxu0  ;;  %2889 = vmatmul.msk.f32.gmra.mxu1 %vm209_vm0, %v3976_v38 }
 0x12b   : > { %v4012_v28 = vadd.f32 %v1356_v3, %v1157_v8  ;;  %2922 = vmatmul.msk.f32.gmra.mxu2 %vm209_vm0, %v4007_v59 }
 0x12c   : > { %2987 = vmatmul.msk.f32.gmra.mxu3 %vm209_vm0, %v4010_v11 }
 0x12d   : > { %4743 = vst [vmem:[#allocation40_spill] sm:$0xff] %v4012_v28  ;;  %3052 = vmatmul.msk.f32.gmra.mxu0 %vm209_vm0, %v3493_v30 }
 0x12e   : > { %v808_v9 = vpop.f32.mrf.mxu2 }
 0x12f   : > { %v882_v10 = vadd.f32 %v808_v9, %v566_v23  ;;  %v1084_v19 = vpop.f32.mrf.mxu3  ;;  %v568_v3 = vpop.f32.mrf.mxu1  ;;  %v4041_v9 = vld [vmem:[%s3387_s24 + $0x15a] sm:$0xff] }
 0x130   : > { %v569_v30 = vadd.f32 %v568_v3, %v3733_v42  ;;  %4745 = vst [vmem:[#allocation42_spill] sm:$0xff] %v4041_v9 }
 0x131   : > { %v1158_v37 = vadd.f32 %v1084_v19, %v882_v10  ;;  %v4044_v19 = vld [vmem:[%s3387_s24 + $0x170] sm:$0xff] }
 0x132   : > { %v1362_v8 = vpop.f32.mrf.mxu0  ;;  %2890 = vmatmul.msk.f32.gmra.mxu1 %vm209_vm0, %v3993_v7 }
 0x133   : > { %v4029_v28 = vadd.f32 %v1359_v33, %v1158_v37  ;;  %2923 = vmatmul.msk.f32.gmra.mxu2 %vm209_vm0, %v4024_v1 }
 0x134   : > { %2988 = vmatmul.msk.f32.gmra.mxu3 %vm209_vm0, %v4027_v15 }
 0x135   : > { %4744 = vst [vmem:[#allocation41_spill] sm:$0xff] %v4029_v28  ;;  %3053 = vmatmul.msk.f32.gmra.mxu0 %vm209_vm0, %v3516_v35 }
 0x136   : > { %v811_v25 = vpop.f32.mrf.mxu2 }
 0x137   : > { %v883_v46 = vadd.f32 %v811_v25, %v569_v30  ;;  %v1087_v23 = vpop.f32.mrf.mxu3  ;;  %v571_v33 = vpop.f32.mrf.mxu1 }
 0x138   : > { %v572_v35 = vadd.f32 %v571_v33, %v3755_v41 }
 0x139   : > { %v1159_v10 = vadd.f32 %v1087_v23, %v883_v46  ;;  %v4061_v23 = vld [vmem:[%s3387_s24 + $0x180] sm:$0xff] }
 0x13a   : > { %v1365_v37 = vpop.f32.mrf.mxu0  ;;  %2891 = vmatmul.msk.f32.gmra.mxu1 %vm209_vm0, %v4010_v11 }
 0x13b   : > { %v4046_v28 = vadd.f32 %v1362_v8, %v1159_v10  ;;  %2924 = vmatmul.msk.f32.gmra.mxu2 %vm209_vm0, %v4041_v9  ;;  %v4058_v8 = vld [vmem:[%s3387_s24 + $0x16a] sm:$0xff] }
 0x13c   : > { %2989 = vmatmul.msk.f32.gmra.mxu3 %vm209_vm0, %v4044_v19  ;;  %4747 = vst [vmem:[#allocation44_spill] sm:$0xff] %v4058_v8 }
 0x13d   : > { %4746 = vst [vmem:[#allocation43_spill] sm:$0xff] %v4046_v28  ;;  %3054 = vmatmul.msk.f32.gmra.mxu0 %vm209_vm0, %v3536_v39  ;;  %v4064_v28 = vld [vmem:[%s3387_s24 + $0x181] sm:$0xff] }
 0x13e   : > { %v814_v42 = vpop.f32.mrf.mxu2 }
 0x13f   : > { %v884_v3 = vadd.f32 %v814_v42, %v572_v35  ;;  %v1090_v30 = vpop.f32.mrf.mxu3  ;;  %v574_v25 = vpop.f32.mrf.mxu1 }
 0x140   : > { %v575_v39 = vadd.f32 %v574_v25, %v3777_v43 }
 0x141   : > { %v1160_v46 = vadd.f32 %v1090_v30, %v884_v3  ;;  %v4081_v30 = vld [vmem:[%s3387_s24 + $0x188] sm:$0xff] }
 0x142   : > { %v1368_v10 = vpop.f32.mrf.mxu0  ;;  %2892 = vmatmul.msk.f32.gmra.mxu1 %vm209_vm0, %v4027_v15 }
 0x143   : > { %v4066_v9 = vadd.f32 %v1365_v37, %v1160_v46  ;;  %2925 = vmatmul.msk.f32.gmra.mxu2 %vm209_vm0, %v4058_v8  ;;  %v4078_v37 = vld [vmem:[%s3387_s24 + $0x172] sm:$0xff] }
 0x144   : > { %2990 = vmatmul.msk.f32.gmra.mxu3 %vm209_vm0, %v4061_v23 }
 0x145   : > { %4748 = vst [vmem:[#allocation45_spill] sm:$0xff] %v4066_v9  ;;  %3055 = vmatmul.msk.f32.gmra.mxu0 %vm209_vm0, %v4064_v28  ;;  %v4084_v9 = vld [vmem:[%s3387_s24 + $0x189] sm:$0xff] }
 0x146   : > { %v817_v41 = vpop.f32.mrf.mxu2 }
 0x147   : > { %v885_v33 = vadd.f32 %v817_v41, %v575_v39  ;;  %v1093_v35 = vpop.f32.mrf.mxu3  ;;  %v577_v42 = vpop.f32.mrf.mxu1 }
 0x148   : > { %v578_v43 = vadd.f32 %v577_v42, %v3799_v20 }
 0x149   : > { %v1161_v3 = vadd.f32 %v1093_v35, %v885_v33 }
 0x14a   : > { %v1371_v46 = vpop.f32.mrf.mxu0  ;;  %2893 = vmatmul.msk.f32.gmra.mxu1 %vm209_vm0, %v4044_v19 }
 0x14b   : > { %v4086_v8 = vadd.f32 %v1368_v10, %v1161_v3  ;;  %2926 = vmatmul.msk.f32.gmra.mxu2 %vm209_vm0, %v4078_v37 }
 0x14c   : > { %2991 = vmatmul.msk.f32.gmra.mxu3 %vm209_vm0, %v4081_v30 }
 0x14d   : > { %3056 = vmatmul.msk.f32.gmra.mxu0 %vm209_vm0, %v4084_v9 }
 0x14e   : > { %v820_v25 = vpop.f32.mrf.mxu2 }
 0x14f   : > { %v886_v39 = vadd.f32 %v820_v25, %v578_v43  ;;  %v1096_v41 = vpop.f32.mrf.mxu3  ;;  %v580_v33 = vpop.f32.mrf.mxu1 }
 0x150   : > { %v581_v20 = vadd.f32 %v580_v33, %v3663_v63 }
 0x151   : > { %v1162_v10 = vadd.f32 %v1096_v41, %v886_v39 }
 0x152   : > { %v1374_v35 = vpop.f32.mrf.mxu0  ;;  %3090 = vmatmul.msk.f32.vlgmr.msra.gmra.mxu1 %vm209_vm0, %v3564_v47 }
 0x153   : > { %v4097_v3 = vadd.f32 %v1371_v46, %v1162_v10  ;;  %3155 = vmatmul.msk.f32.vlgmr.msra.gmra.mxu2 %vm209_vm0, %v3567_v48 }
 0x154   : > { %3220 = vmatmul.msk.f32.vlgmr.msra.gmra.mxu3 %vm209_vm0, %v3467_v24 }
 0x155   : > { %3285 = vmatmul.msk.f32.vlgmr.msra.gmra.mxu0 %vm209_vm0, %v3590_v51 }
 0x156   : > { %v823_v42 = vpop.f32.mrf.mxu2 }
 0x157   : > { %v887_v43 = vadd.f32 %v823_v42, %v581_v20  ;;  %v1099_v25 = vpop.f32.mrf.mxu3  ;;  %v583_v39 = vpop.f32.mrf.mxu1 }
 0x158   : > { %v584_v24 = vadd.f32 %v583_v39, %v3685_v5 }
 0x159   : > { %v1163_v46 = vadd.f32 %v1099_v25, %v887_v43 }
 0x15a   : > { %v1377_v41 = vpop.f32.mrf.mxu0  ;;  %3091 = vmatmul.msk.f32.gmra.mxu1 %vm209_vm0, %v3577_v49 }
 0x15b   : > { %v4108_v10 = vadd.f32 %v1374_v35, %v1163_v46  ;;  %3156 = vmatmul.msk.f32.gmra.mxu2 %vm209_vm0, %v3580_v50 }
 0x15c   : > { %3221 = vmatmul.msk.f32.gmra.mxu3 %vm209_vm0, %v3496_v31 }
 0x15d   : > { %3286 = vmatmul.msk.f32.gmra.mxu0 %vm209_vm0, %v3604_v53 }
 0x15e   : > { %v826_v47 = vpop.f32.mrf.mxu2 }
 0x15f   : > { %v888_v48 = vadd.f32 %v826_v47, %v584_v24  ;;  %v1102_v63 = vpop.f32.mrf.mxu3  ;;  %v586_v33 = vpop.f32.mrf.mxu1  ;;  %v3191_v47 = vld [vmem:[%s3387_s24 + $0x61] sm:$0xff] }
 0x160   : > { %v587_v31 = vadd.f32 %v586_v33, %v3707_v17 }
 0x161   : > { %v1164_v35 = vadd.f32 %v1102_v63, %v888_v48 }
 0x162   : > { %v1380_v20 = vpop.f32.mrf.mxu0  ;;  %3092 = vmatmul.msk.f32.gmra.mxu1 %vm209_vm0, %v3590_v51 }
 0x163   : > { %v4119_v42 = vadd.f32 %v1377_v41, %v1164_v35  ;;  %3157 = vmatmul.msk.f32.gmra.mxu2 %vm209_vm0, %v3593_v52 }
 0x164   : > { %3222 = vmatmul.msk.f32.gmra.mxu3 %vm209_vm0, %v3519_v36 }
 0x165   : > { %3287 = vmatmul.msk.f32.gmra.mxu0 %vm209_vm0, %v3618_v55 }
 0x166   : > { %v829_v49 = vpop.f32.mrf.mxu2 }
 0x167   : > { %v889_v50 = vadd.f32 %v829_v49, %v587_v31  ;;  %v1105_v5 = vpop.f32.mrf.mxu3  ;;  %v589_v43 = vpop.f32.mrf.mxu1  ;;  %v3192_v31 = vld [vmem:[%s3387_s24 + $0x69] sm:$0xff] }
 0x168   : > { %v590_v36 = vadd.f32 %v589_v43, %v3729_v21 }
 0x169   : > { %v1165_v25 = vadd.f32 %v1105_v5, %v889_v50  ;;  %v4752_v5 = vld [vmem:[#allocation20_spill] sm:$0xff] }
 0x16a   : > { %v1383_v39 = vpop.f32.mrf.mxu0  ;;  %3093 = vmatmul.msk.f32.gmra.mxu1 %vm209_vm0, %v3604_v53 }
 0x16b   : > { %v4130_v46 = vadd.f32 %v1380_v20, %v1165_v25  ;;  %3158 = vmatmul.msk.f32.gmra.mxu2 %vm209_vm0, %v3607_v54 }
 0x16c   : > { %3223 = vmatmul.msk.f32.gmra.mxu3 %vm209_vm0, %v3539_v40  ;;  %v4749_v40 = vld [vmem:[#allocation16_spill] sm:$0xff] }
 0x16d   : > { %3288 = vmatmul.msk.f32.gmra.mxu0 %vm209_vm0, %v3632_v57 }
 0x16e   : > { %v832_v51 = vpop.f32.mrf.mxu2 }
 0x16f   : > { %v890_v52 = vadd.f32 %v832_v51, %v590_v36  ;;  %v1108_v17 = vpop.f32.mrf.mxu3  ;;  %v592_v41 = vpop.f32.mrf.mxu1 }
 0x170   : > { %v593_v54 = vadd.f32 %v592_v41, %v4749_v40 }
 0x171   : > { %v1166_v24 = vadd.f32 %v1108_v17, %v890_v52  ;;  %v3193_v17 = vld [vmem:[%s3387_s24 + $0x79] sm:$0xff] }
 0x172   : > { %v1386_v48 = vpop.f32.mrf.mxu0  ;;  %3094 = vmatmul.msk.f32.gmra.mxu1 %vm209_vm0, %v3618_v55  ;;  %v4750_v55 = vld [vmem:[#allocation2_spill] sm:$0xff] }
 0x173   : > { %v4142_v53 = vadd.f32 %v1383_v39, %v1166_v24  ;;  %3159 = vmatmul.msk.f32.gmra.mxu2 %vm209_vm0, %v3621_v56  ;;  %v4751_v56 = vld [vmem:[#allocation5_spill] sm:$0xff] }
 0x174   : > { %3224 = vmatmul.msk.f32.gmra.mxu3 %vm209_vm0, %v3191_v47  ;;  %v4754_v47 = vld [vmem:[#allocation8_spill] sm:$0xff] }
 0x175   : > { %3289 = vmatmul.msk.f32.gmra.mxu0 %vm209_vm0, %v3648_v60 }
 0x176   : > { %v835_v21 = vpop.f32.mrf.mxu2 }
 0x177   : > { %v891_v63 = vadd.f32 %v835_v21, %v593_v54  ;;  %v1111_v33 = vpop.f32.mrf.mxu3  ;;  %v595_v35 = vpop.f32.mrf.mxu1 }
 0x178   : > { %v596_v43 = vadd.f32 %v595_v35, %v4752_v5  ;;  %v4758_v5 = vld [vmem:[#allocation27_spill] sm:$0xff] }
 0x179   : > { %v1167_v20 = vadd.f32 %v1111_v33, %v891_v63 }
 0x17a   : > { %v1389_v49 = vpop.f32.mrf.mxu0  ;;  %3095 = vmatmul.msk.f32.gmra.mxu1 %vm209_vm0, %v3632_v57  ;;  %v4753_v57 = vld [vmem:[#allocation3_spill] sm:$0xff] }
 0x17b   : > { %v4153_v50 = vadd.f32 %v1386_v48, %v1167_v20  ;;  %3160 = vmatmul.msk.f32.gmra.mxu2 %vm209_vm0, %v4750_v55  ;;  %v4755_v48 = vld [vmem:[#allocation24_spill] sm:$0xff]  ;;  %v3194_v20 = vld [vmem:[%s3387_s24 + $0x81] sm:$0xff] }
 0x17c   : > { %3225 = vmatmul.msk.f32.gmra.mxu3 %vm209_vm0, %v3192_v31  ;;  %v4757_v55 = vld [vmem:[#allocation11_spill] sm:$0xff] }
 0x17d   : > { %3290 = vmatmul.msk.f32.gmra.mxu0 %vm209_vm0, %v4751_v56 }
 0x17e   : > { %v838_v25 = vpop.f32.mrf.mxu2 }
 0x17f   : > { %v892_v39 = vadd.f32 %v838_v25, %v596_v43  ;;  %v1114_v36 = vpop.f32.mrf.mxu3  ;;  %v598_v51 = vpop.f32.mrf.mxu1 }
 0x180   : > { %v599_v40 = vadd.f32 %v598_v51, %v4755_v48  ;;  %v4760_v48 = vld [vmem:[#allocation14_spill] sm:$0xff] }
 0x181   : > { %v1168_v52 = vadd.f32 %v1114_v36, %v892_v39 }
 0x182   : > { %v1392_v41 = vpop.f32.mrf.mxu0  ;;  %3096 = vmatmul.msk.f32.gmra.mxu1 %vm209_vm0, %v3648_v60  ;;  %v4756_v60 = vld [vmem:[#allocation6_spill] sm:$0xff] }
 0x183   : > { %v4164_v24 = vadd.f32 %v1389_v49, %v1168_v52  ;;  %3161 = vmatmul.msk.f32.gmra.mxu2 %vm209_vm0, %v4753_v57 }
 0x184   : > { %3226 = vmatmul.msk.f32.gmra.mxu3 %vm209_vm0, %v3193_v17  ;;  %v3195_v17 = vld [vmem:[%s3387_s24 + $0x91] sm:$0xff] }
 0x185   : > { %3291 = vmatmul.msk.f32.gmra.mxu0 %vm209_vm0, %v4754_v47 }
 0x186   : > { %v841_v54 = vpop.f32.mrf.mxu2 }
 0x187   : > { %v893_v21 = vadd.f32 %v841_v54, %v599_v40  ;;  %v1117_v63 = vpop.f32.mrf.mxu3  ;;  %v601_v33 = vpop.f32.mrf.mxu1  ;;  %v4761_v40 = vld [vmem:[#allocation4_spill] sm:$0xff] }
 0x188   : > { %v602_v43 = vadd.f32 %v601_v33, %v4758_v5 }
 0x189   : > { %v1169_v35 = vadd.f32 %v1117_v63, %v893_v21 }
 0x18a   : > { %v1395_v31 = vpop.f32.mrf.mxu0  ;;  %3097 = vmatmul.msk.f32.gmra.mxu1 %vm209_vm0, %v4751_v56  ;;  %v4759_v56 = vld [vmem:[#allocation9_spill] sm:$0xff] }
 0x18b   : > { %v4175_v49 = vadd.f32 %v1392_v41, %v1169_v35  ;;  %3162 = vmatmul.msk.f32.gmra.mxu2 %vm209_vm0, %v4756_v60 }
 0x18c   : > { %3227 = vmatmul.msk.f32.gmra.mxu3 %vm209_vm0, %v3194_v20 }
 0x18d   : > { %3292 = vmatmul.msk.f32.gmra.mxu0 %vm209_vm0, %v4757_v55 }
 0x18e   : > { %v844_v25 = vpop.f32.mrf.mxu2 }
 0x18f   : > { %v894_v39 = vadd.f32 %v844_v25, %v602_v43  ;;  %v1120_v36 = vpop.f32.mrf.mxu3  ;;  %v604_v51 = vpop.f32.mrf.mxu1  ;;  %v4763_v43 = vld [vmem:[#allocation18_spill] sm:$0xff]  ;;  %v4764_v25 = vld [vmem:[#allocation7_spill] sm:$0xff] }
 0x190   : > { %v605_v54 = vadd.f32 %v604_v51, %v4761_v40 }
 0x191   : > { %v1170_v52 = vadd.f32 %v1120_v36, %v894_v39 }
 0x192   : > { %v1398_v41 = vpop.f32.mrf.mxu0  ;;  %3098 = vmatmul.msk.f32.gmra.mxu1 %vm209_vm0, %v4754_v47  ;;  %v4762_v47 = vld [vmem:[#allocation12_spill] sm:$0xff] }
 0x193   : > { %v4186_v57 = vadd.f32 %v1395_v31, %v1170_v52  ;;  %3163 = vmatmul.msk.f32.gmra.mxu2 %vm209_vm0, %v4759_v56  ;;  %v3196_v31 = vld [vmem:[%s3387_s24 + $0x99] sm:$0xff]  ;;  %v3197_v56 = vld [vmem:[%s3387_s24 + $0xa9] sm:$0xff] }
 0x194   : > { %3228 = vmatmul.msk.f32.gmra.mxu3 %vm209_vm0, %v3195_v17 }
 0x195   : > { %3293 = vmatmul.msk.f32.gmra.mxu0 %vm209_vm0, %v4760_v48 }
 0x196   : > { %v847_v21 = vpop.f32.mrf.mxu2 }
 0x197   : > { %v895_v63 = vadd.f32 %v847_v21, %v605_v54  ;;  %v1123_v33 = vpop.f32.mrf.mxu3  ;;  %v607_v35 = vpop.f32.mrf.mxu1  ;;  %v4766_v21 = vld [vmem:[#allocation22_spill] sm:$0xff] }
 0x198   : > { %v608_v39 = vadd.f32 %v607_v35, %v4764_v25  ;;  %v3198_v25 = vld [vmem:[%s3387_s24 + $0xb1] sm:$0xff] }
 0x199   : > { %v1171_v20 = vadd.f32 %v1123_v33, %v895_v63  ;;  %v4767_v63 = vld [vmem:[#allocation10_spill] sm:$0xff] }
 0x19a   : > { %v1401_v60 = vpop.f32.mrf.mxu0  ;;  %3099 = vmatmul.msk.f32.gmra.mxu1 %vm209_vm0, %v4757_v55  ;;  %v4765_v55 = vld [vmem:[#allocation15_spill] sm:$0xff] }
 0x19b   : > { %v4197_v5 = vadd.f32 %v1398_v41, %v1171_v20  ;;  %3164 = vmatmul.msk.f32.gmra.mxu2 %vm209_vm0, %v4762_v47 }
 0x19c   : > { %3229 = vmatmul.msk.f32.gmra.mxu3 %vm209_vm0, %v3196_v31 }
 0x19d   : > { %3294 = vmatmul.msk.f32.gmra.mxu0 %vm209_vm0, %v4763_v43 }
 0x19e   : > { %v850_v36 = vpop.f32.mrf.mxu2 }
 0x19f   : > { %v896_v51 = vadd.f32 %v850_v36, %v608_v39  ;;  %v1126_v52 = vpop.f32.mrf.mxu3  ;;  %v610_v17 = vpop.f32.mrf.mxu1 }
 0x1a0   : > { %v611_v33 = vadd.f32 %v610_v17, %v4767_v63 }
 0x1a1   : > { %v1172_v41 = vadd.f32 %v1126_v52, %v896_v51  ;;  %v4769_v51 = vld [vmem:[#allocation26_spill] sm:$0xff]  ;;  %v4770_v52 = vld [vmem:[#allocation13_spill] sm:$0xff] }
 0x1a2   : > { %v1404_v40 = vpop.f32.mrf.mxu0  ;;  %3100 = vmatmul.msk.f32.gmra.mxu1 %vm209_vm0, %v4760_v48  ;;  %v4768_v48 = vld [vmem:[#allocation19_spill] sm:$0xff] }
 0x1a3   : > { %v4208_v54 = vadd.f32 %v1401_v60, %v1172_v41  ;;  %3165 = vmatmul.msk.f32.gmra.mxu2 %vm209_vm0, %v4765_v55 }
 0x1a4   : > { %3230 = vmatmul.msk.f32.gmra.mxu3 %vm209_vm0, %v3197_v56 }
 0x1a5   : > { %3295 = vmatmul.msk.f32.gmra.mxu0 %vm209_vm0, %v4766_v21 }
 0x1a6   : > { %v853_v35 = vpop.f32.mrf.mxu2 }
 0x1a7   : > { %v897_v20 = vadd.f32 %v853_v35, %v611_v33  ;;  %v1129_v31 = vpop.f32.mrf.mxu3  ;;  %v613_v47 = vpop.f32.mrf.mxu1  ;;  %v3199_v33 = vld [vmem:[%s3387_s24 + $0xc1] sm:$0xff] }
 0x1a8   : > { %v614_v17 = vadd.f32 %v613_v47, %v4770_v52  ;;  %v4773_v47 = vld [vmem:[#allocation17_spill] sm:$0xff] }
 0x1a9   : > { %v1173_v60 = vadd.f32 %v1129_v31, %v897_v20  ;;  %v4772_v31 = vld [vmem:[#allocation29_spill] sm:$0xff] }
 0x1aa   : > { %v1407_v39 = vpop.f32.mrf.mxu0  ;;  %3101 = vmatmul.msk.f32.gmra.mxu1 %vm209_vm0, %v4763_v43  ;;  %v4771_v43 = vld [vmem:[#allocation23_spill] sm:$0xff] }
 0x1ab   : > { %v4219_v36 = vadd.f32 %v1404_v40, %v1173_v60  ;;  %3166 = vmatmul.msk.f32.gmra.mxu2 %vm209_vm0, %v4768_v48 }
 0x1ac   : > { %3231 = vmatmul.msk.f32.gmra.mxu3 %vm209_vm0, %v3198_v25 }
 0x1ad   : > { %3296 = vmatmul.msk.f32.gmra.mxu0 %vm209_vm0, %v4769_v51 }
 0x1ae   : > { %v856_v41 = vpop.f32.mrf.mxu2 }
 0x1af   : > { %v898_v56 = vadd.f32 %v856_v41, %v614_v17  ;;  %v1132_v55 = vpop.f32.mrf.mxu3  ;;  %v616_v63 = vpop.f32.mrf.mxu1  ;;  %v3200_v41 = vld [vmem:[%s3387_s24 + $0xc9] sm:$0xff] }
 0x1b0   : > { %v617_v60 = vadd.f32 %v616_v63, %v4773_v47 }
 0x1b1   : > { %v1174_v40 = vadd.f32 %v1132_v55, %v898_v56 }
 0x1b2   : > { %v1410_v35 = vpop.f32.mrf.mxu0  ;;  %3102 = vmatmul.msk.f32.gmra.mxu1 %vm209_vm0, %v4766_v21  ;;  %v4774_v21 = vld [vmem:[#allocation21_spill] sm:$0xff] }
 0x1b3   : > { %v4230_v20 = vadd.f32 %v1407_v39, %v1174_v40  ;;  %3167 = vmatmul.msk.f32.gmra.mxu2 %vm209_vm0, %v4771_v43 }
 0x1b4   : > { %3232 = vmatmul.msk.f32.gmra.mxu3 %vm209_vm0, %v3199_v33 }
 0x1b5   : > { %3297 = vmatmul.msk.f32.gmra.mxu0 %vm209_vm0, %v4772_v31 }
 0x1b6   : > { %v859_v25 = vpop.f32.mrf.mxu2 }
 0x1b7   : > { %v899_v48 = vadd.f32 %v859_v25, %v617_v60  ;;  %v1135_v52 = vpop.f32.mrf.mxu3  ;;  %v619_v17 = vpop.f32.mrf.mxu1  ;;  %v3201_v60 = vld [vmem:[%s3387_s24 + $0xd9] sm:$0xff] }
 0x1b8   : > { %v620_v63 = vadd.f32 %v619_v17, %v4774_v21  ;;  %v3202_v21 = vld [vmem:[%s3387_s24 + $0xe1] sm:$0xff] }
 0x1b9   : > { %v1175_v39 = vadd.f32 %v1135_v52, %v899_v48 }
 0x1ba   : > { %v1413_v56 = vpop.f32.mrf.mxu0  ;;  %3103 = vmatmul.msk.f32.gmra.mxu1 %vm209_vm0, %v4769_v51 }
 0x1bb   : > { %v4241_v55 = vadd.f32 %v1410_v35, %v1175_v39  ;;  %3168 = vmatmul.msk.f32.gmra.mxu2 %vm209_vm0, %v3805_v44  ;;  %v4775_v44 = vld [vmem:[#allocation25_spill] sm:$0xff] }
 0x1bc   : > { %3233 = vmatmul.msk.f32.gmra.mxu3 %vm209_vm0, %v3200_v41 }
 0x1bd   : > { %3298 = vmatmul.msk.f32.gmra.mxu0 %vm209_vm0, %v3837_v2 }
 0x1be   : > { %v862_v40 = vpop.f32.mrf.mxu2 }
 0x1bf   : > { %v900_v33 = vadd.f32 %v862_v40, %v620_v63  ;;  %v1138_v43 = vpop.f32.mrf.mxu3  ;;  %v622_v47 = vpop.f32.mrf.mxu1 }
 0x1c0   : > { %v623_v51 = vadd.f32 %v622_v47, %v4775_v44 }
 0x1c1   : > { %v1176_v35 = vadd.f32 %v1138_v43, %v900_v33 }
 0x1c2   : > { %v1416_v25 = vpop.f32.mrf.mxu0  ;;  %3104 = vmatmul.msk.f32.gmra.mxu1 %vm209_vm0, %v4772_v31 }
 0x1c3   : > { %v4252_v48 = vadd.f32 %v1413_v56, %v1176_v35  ;;  %3169 = vmatmul.msk.f32.gmra.mxu2 %vm209_vm0, %v3825_v61  ;;  %v4776_v61 = vld [vmem:[#allocation28_spill] sm:$0xff] }
 0x1c4   : > { %3234 = vmatmul.msk.f32.gmra.mxu3 %vm209_vm0, %v3201_v60 }
 0x1c5   : > { %3299 = vmatmul.msk.f32.gmra.mxu0 %vm209_vm0, %v3854_v27 }
 0x1c6   : > { %v865_v52 = vpop.f32.mrf.mxu2 }
 0x1c7   : > { %v901_v17 = vadd.f32 %v865_v52, %v623_v51  ;;  %v1141_v39 = vpop.f32.mrf.mxu3  ;;  %v625_v41 = vpop.f32.mrf.mxu1 }
 0x1c8   : > { %v626_v31 = vadd.f32 %v625_v41, %v4776_v61 }
 0x1c9   : > { %v1177_v56 = vadd.f32 %v1141_v39, %v901_v17 }
 0x1ca   : > { %v1419_v63 = vpop.f32.mrf.mxu0  ;;  %3105 = vmatmul.msk.f32.gmra.mxu1 %vm209_vm0, %v3837_v2 }
 0x1cb   : > { %v4263_v40 = vadd.f32 %v1416_v25, %v1177_v56  ;;  %3170 = vmatmul.msk.f32.gmra.mxu2 %vm209_vm0, %v3840_v58  ;;  %v3203_v25 = vld [vmem:[%s3387_s24 + $0xf1] sm:$0xff]  ;;  %v4777_v58 = vld [vmem:[#allocation30_spill] sm:$0xff] }
 0x1cc   : > { %3235 = vmatmul.msk.f32.gmra.mxu3 %vm209_vm0, %v3202_v21  ;;  %v3204_v21 = vld [vmem:[%s3387_s24 + $0xf9] sm:$0xff] }
 0x1cd   : > { %3300 = vmatmul.msk.f32.gmra.mxu0 %vm209_vm0, %v3871_v62 }
 0x1ce   : > { %v868_v33 = vpop.f32.mrf.mxu2 }
 0x1cf   : > { %v902_v43 = vadd.f32 %v868_v33, %v626_v31  ;;  %v1144_v47 = vpop.f32.mrf.mxu3  ;;  %v1601_v35 = vpop.f32.mrf.mxu1 }
 0x1d0   : > { %v1697_v2 = vadd.f32 %v1601_v35, %v4777_v58 }
 0x1d1   : > { %v1178_v60 = vadd.f32 %v1144_v47, %v902_v43 }
 0x1d2   : > { %v2427_v44 = vpop.f32.mrf.mxu0  ;;  %3106 = vmatmul.msk.f32.gmra.mxu1 %vm209_vm0, %v3854_v27  ;;  %v4778_v27 = vld [vmem:[#allocation31_spill] sm:$0xff] }
 0x1d3   : > { %v4274_v51 = vadd.f32 %v1419_v63, %v1178_v60  ;;  %3171 = vmatmul.msk.f32.gmra.mxu2 %vm209_vm0, %v3857_v6  ;;  %v3205_v60 = vld [vmem:[%s3387_s24 + $0x109] sm:$0xff] }
 0x1d4   : > { %3236 = vmatmul.msk.f32.gmra.mxu3 %vm209_vm0, %v3203_v25 }
 0x1d5   : > { %3301 = vmatmul.msk.f32.gmra.mxu0 %vm209_vm0, %v3888_v4 }
 0x1d6   : > { %v1877_v52 = vpop.f32.mrf.mxu2 }
 0x1d7   : > { %v1973_v17 = vadd.f32 %v1877_v52, %v1697_v2  ;;  %v2152_v39 = vpop.f32.mrf.mxu3  ;;  %v1604_v41 = vpop.f32.mrf.mxu1 }
 0x1d8   : > { %v1698_v6 = vadd.f32 %v1604_v41, %v4778_v27  ;;  %v3206_v41 = vld [vmem:[%s3387_s24 + $0x111] sm:$0xff] }
 0x1d9   : > { %v2248_v56 = vadd.f32 %v2152_v39, %v1973_v17 }
 0x1da   : > { %v2430_v63 = vpop.f32.mrf.mxu0  ;;  %3107 = vmatmul.msk.f32.gmra.mxu1 %vm209_vm0, %v3871_v62  ;;  %v4779_v62 = vld [vmem:[#allocation32_spill] sm:$0xff] }
 0x1db   : > { %v4285_v61 = vadd.f32 %v2427_v44, %v2248_v56  ;;  %3172 = vmatmul.msk.f32.gmra.mxu2 %vm209_vm0, %v3874_v13 }
 0x1dc   : > { %3237 = vmatmul.msk.f32.gmra.mxu3 %vm209_vm0, %v3204_v21 }
 0x1dd   : > { %3302 = vmatmul.msk.f32.gmra.mxu0 %vm209_vm0, %v3905_v16 }
 0x1de   : > { %v1880_v31 = vpop.f32.mrf.mxu2 }
 0x1df   : > { %v1974_v33 = vadd.f32 %v1880_v31, %v1698_v6  ;;  %v2155_v43 = vpop.f32.mrf.mxu3  ;;  %v1607_v47 = vpop.f32.mrf.mxu1 }
 0x1e0   : > { %v1699_v13 = vadd.f32 %v1607_v47, %v4779_v62 }
 0x1e1   : > { %v2249_v35 = vadd.f32 %v2155_v43, %v1974_v33  ;;  %v3207_v43 = vld [vmem:[%s3387_s24 + $0x121] sm:$0xff] }
 0x1e2   : > { %v2433_v25 = vpop.f32.mrf.mxu0  ;;  %3108 = vmatmul.msk.f32.gmra.mxu1 %vm209_vm0, %v3888_v4  ;;  %v4780_v4 = vld [vmem:[#allocation33_spill] sm:$0xff] }
 0x1e3   : > { %v4296_v44 = vadd.f32 %v2430_v63, %v2249_v35  ;;  %3173 = vmatmul.msk.f32.gmra.mxu2 %vm209_vm0, %v3891_v14 }
 0x1e4   : > { %3238 = vmatmul.msk.f32.gmra.mxu3 %vm209_vm0, %v3205_v60 }
 0x1e5   : > { %3303 = vmatmul.msk.f32.gmra.mxu0 %vm209_vm0, %v3922_v32 }
 0x1e6   : > { %v1883_v58 = vpop.f32.mrf.mxu2 }
 0x1e7   : > { %v1975_v2 = vadd.f32 %v1883_v58, %v1699_v13  ;;  %v2158_v52 = vpop.f32.mrf.mxu3  ;;  %v1610_v17 = vpop.f32.mrf.mxu1 }
 0x1e8   : > { %v1700_v14 = vadd.f32 %v1610_v17, %v4780_v4 }
 0x1e9   : > { %v2250_v39 = vadd.f32 %v2158_v52, %v1975_v2  ;;  %v3208_v2 = vld [vmem:[%s3387_s24 + $0x129] sm:$0xff] }
 0x1ea   : > { %v2436_v56 = vpop.f32.mrf.mxu0  ;;  %3109 = vmatmul.msk.f32.gmra.mxu1 %vm209_vm0, %v3905_v16  ;;  %v4781_v16 = vld [vmem:[#allocation34_spill] sm:$0xff] }
 0x1eb   : > { %v4307_v21 = vadd.f32 %v2433_v25, %v2250_v39  ;;  %3174 = vmatmul.msk.f32.gmra.mxu2 %vm209_vm0, %v3908_v18 }
 0x1ec   : > { %3239 = vmatmul.msk.f32.gmra.mxu3 %vm209_vm0, %v3206_v41 }
 0x1ed   : > { %3304 = vmatmul.msk.f32.gmra.mxu0 %vm209_vm0, %v3939_v45 }
 0x1ee   : > { %v1886_v63 = vpop.f32.mrf.mxu2 }
 0x1ef   : > { %v1976_v27 = vadd.f32 %v1886_v63, %v1700_v14  ;;  %v2161_v6 = vpop.f32.mrf.mxu3  ;;  %v1613_v31 = vpop.f32.mrf.mxu1  ;;  %v3209_v63 = vld [vmem:[%s3387_s24 + $0x139] sm:$0xff] }
 0x1f0   : > { %v1701_v18 = vadd.f32 %v1613_v31, %v4781_v16 }
 0x1f1   : > { %v2251_v33 = vadd.f32 %v2161_v6, %v1976_v27 }
 0x1f2   : > { %v2439_v47 = vpop.f32.mrf.mxu0  ;;  %3110 = vmatmul.msk.f32.gmra.mxu1 %vm209_vm0, %v3922_v32  ;;  %v4782_v32 = vld [vmem:[#allocation35_spill] sm:$0xff] }
 0x1f3   : > { %v4318_v35 = vadd.f32 %v2436_v56, %v2251_v33  ;;  %3175 = vmatmul.msk.f32.gmra.mxu2 %vm209_vm0, %v3925_v22 }
 0x1f4   : > { %3240 = vmatmul.msk.f32.gmra.mxu3 %vm209_vm0, %v3207_v43 }
 0x1f5   : > { %3305 = vmatmul.msk.f32.gmra.mxu0 %vm209_vm0, %v3956_v0 }
 0x1f6   : > { %v1889_v60 = vpop.f32.mrf.mxu2 }
 0x1f7   : > { %v1977_v25 = vadd.f32 %v1889_v60, %v1701_v18  ;;  %v2164_v62 = vpop.f32.mrf.mxu3  ;;  %v1616_v13 = vpop.f32.mrf.mxu1  ;;  %v3210_v18 = vld [vmem:[%s3387_s24 + $0x141] sm:$0xff] }
 0x1f8   : > { %v1702_v22 = vadd.f32 %v1616_v13, %v4782_v32 }
 0x1f9   : > { %v2252_v58 = vadd.f32 %v2164_v62, %v1977_v25 }
 0x1fa   : > { %v2442_v52 = vpop.f32.mrf.mxu0  ;;  %3111 = vmatmul.msk.f32.gmra.mxu1 %vm209_vm0, %v3939_v45  ;;  %v4783_v45 = vld [vmem:[#allocation36_spill] sm:$0xff] }
 0x1fb   : > { %v4329_v17 = vadd.f32 %v2439_v47, %v2252_v58  ;;  %3176 = vmatmul.msk.f32.gmra.mxu2 %vm209_vm0, %v3942_v29 }
 0x1fc   : > { %3241 = vmatmul.msk.f32.gmra.mxu3 %vm209_vm0, %v3208_v2 }
 0x1fd   : > { %3306 = vmatmul.msk.f32.gmra.mxu0 %vm209_vm0, %v3973_v26 }
 0x1fe   : > { %v1892_v39 = vpop.f32.mrf.mxu2 }
 0x1ff   : > { %v1978_v41 = vadd.f32 %v1892_v39, %v1702_v22  ;;  %v2167_v56 = vpop.f32.mrf.mxu3  ;;  %v1619_v4 = vpop.f32.mrf.mxu1  ;;  %v3211_v39 = vld [vmem:[%s3387_s24 + $0x151] sm:$0xff] }
 0x200   : > { %v1703_v29 = vadd.f32 %v1619_v4, %v4783_v45 }
 0x201   : > { %v2253_v14 = vadd.f32 %v2167_v56, %v1978_v41 }
 0x202   : > { %v2445_v27 = vpop.f32.mrf.mxu0  ;;  %3112 = vmatmul.msk.f32.gmra.mxu1 %vm209_vm0, %v3956_v0  ;;  %v4784_v0 = vld [vmem:[#allocation37_spill] sm:$0xff] }
 0x203   : > { %v4340_v6 = vadd.f32 %v2442_v52, %v2253_v14  ;;  %3177 = vmatmul.msk.f32.gmra.mxu2 %vm209_vm0, %v3959_v34  ;;  %v4785_v52 = vld [vmem:[#allocation38_spill] sm:$0xff] }
 0x204   : > { %3242 = vmatmul.msk.f32.gmra.mxu3 %vm209_vm0, %v3209_v63  ;;  %v4786_v63 = vld [vmem:[#allocation39_spill] sm:$0xff] }
 0x205   : > { %3307 = vmatmul.msk.f32.gmra.mxu0 %vm209_vm0, %v3990_v12 }
 0x206   : > { %v1895_v31 = vpop.f32.mrf.mxu2 }
 0x207   : > { %v1979_v33 = vadd.f32 %v1895_v31, %v1703_v29  ;;  %v2170_v43 = vpop.f32.mrf.mxu3  ;;  %v1622_v47 = vpop.f32.mrf.mxu1  ;;  %v3212_v29 = vld [vmem:[%s3387_s24 + $0x159] sm:$0xff] }
 0x208   : > { %v1704_v34 = vadd.f32 %v1622_v47, %v4784_v0 }
 0x209   : > { %v2254_v16 = vadd.f32 %v2170_v43, %v1979_v33 }
 0x20a   : > { %v2448_v60 = vpop.f32.mrf.mxu0  ;;  %3113 = vmatmul.msk.f32.gmra.mxu1 %vm209_vm0, %v3973_v26 }
 0x20b   : > { %v4351_v25 = vadd.f32 %v2445_v27, %v2254_v16  ;;  %3178 = vmatmul.msk.f32.gmra.mxu2 %vm209_vm0, %v3976_v38 }
 0x20c   : > { %3243 = vmatmul.msk.f32.gmra.mxu3 %vm209_vm0, %v3210_v18  ;;  %v4788_v18 = vld [vmem:[#allocation40_spill] sm:$0xff] }
 0x20d   : > { %3308 = vmatmul.msk.f32.gmra.mxu0 %vm209_vm0, %v4007_v59 }
 0x20e   : > { %v1898_v62 = vpop.f32.mrf.mxu2 }
 0x20f   : > { %v1980_v13 = vadd.f32 %v1898_v62, %v1704_v34  ;;  %v2173_v58 = vpop.f32.mrf.mxu3  ;;  %v1625_v2 = vpop.f32.mrf.mxu1  ;;  %v3213_v34 = vld [vmem:[%s3387_s24 + $0x169] sm:$0xff] }
 0x210   : > { %v1705_v32 = vadd.f32 %v1625_v2, %v4785_v52 }
 0x211   : > { %v2255_v22 = vadd.f32 %v2173_v58, %v1980_v13 }
 0x212   : > { %v2451_v26 = vpop.f32.mrf.mxu0  ;;  %3114 = vmatmul.msk.f32.gmra.mxu1 %vm209_vm0, %v3990_v12  ;;  %v4787_v12 = vld [vmem:[#allocation42_spill] sm:$0xff] }
 0x213   : > { %v4363_v41 = vadd.f32 %v2448_v60, %v2255_v22  ;;  %3179 = vmatmul.msk.f32.gmra.mxu2 %vm209_vm0, %v3993_v7 }
 0x214   : > { %3244 = vmatmul.msk.f32.gmra.mxu3 %vm209_vm0, %v3211_v39 }
 0x215   : > { %3309 = vmatmul.msk.f32.gmra.mxu0 %vm209_vm0, %v4024_v1 }
 0x216   : > { %v1901_v38 = vpop.f32.mrf.mxu2 }
 0x217   : > { %v1981_v56 = vadd.f32 %v1901_v38, %v1705_v32  ;;  %v2176_v4 = vpop.f32.mrf.mxu3  ;;  %v1628_v14 = vpop.f32.mrf.mxu1  ;;  %v4790_v32 = vld [vmem:[#allocation41_spill] sm:$0xff] }
 0x218   : > { %v1706_v27 = vadd.f32 %v1628_v14, %v4786_v63  ;;  %v4791_v63 = vld [vmem:[#allocation43_spill] sm:$0xff] }
 0x219   : > { %v2256_v45 = vadd.f32 %v2176_v4, %v1981_v56 }
 0x21a   : > { %v2454_v31 = vpop.f32.mrf.mxu0  ;;  %3115 = vmatmul.msk.f32.gmra.mxu1 %vm209_vm0, %v4007_v59  ;;  %v4789_v59 = vld [vmem:[#allocation44_spill] sm:$0xff] }
 0x21b   : > { %v4374_v33 = vadd.f32 %v2451_v26, %v2256_v45  ;;  %3180 = vmatmul.msk.f32.gmra.mxu2 %vm209_vm0, %v4010_v11  ;;  %v3214_v26 = vld [vmem:[%s3387_s24 + $0x171] sm:$0xff] }
 0x21c   : > { %3245 = vmatmul.msk.f32.gmra.mxu3 %vm209_vm0, %v3212_v29 }
 0x21d   : > { %3310 = vmatmul.msk.f32.gmra.mxu0 %vm209_vm0, %v4787_v12 }
 0x21e   : > { %v1904_v7 = vpop.f32.mrf.mxu2 }
 0x21f   : > { %v1982_v43 = vadd.f32 %v1904_v7, %v1706_v27  ;;  %v2179_v47 = vpop.f32.mrf.mxu3  ;;  %v1631_v16 = vpop.f32.mrf.mxu1 }
 0x220   : > { %v1707_v60 = vadd.f32 %v1631_v16, %v4788_v18  ;;  %v4792_v16 = vld [vmem:[#allocation45_spill] sm:$0xff] }
 0x221   : > { %v2257_v0 = vadd.f32 %v2179_v47, %v1982_v43 }
 0x222   : > { %v2457_v62 = vpop.f32.mrf.mxu0  ;;  %3116 = vmatmul.msk.f32.gmra.mxu1 %vm209_vm0, %v4024_v1 }
 0x223   : > { %v4385_v13 = vadd.f32 %v2454_v31, %v2257_v0  ;;  %3181 = vmatmul.msk.f32.gmra.mxu2 %vm209_vm0, %v4027_v15  ;;  %v3280_v31 = vld [vmem:[%s3387_s24 + $0x182] sm:$0xff] }
 0x224   : > { %3246 = vmatmul.msk.f32.gmra.mxu3 %vm209_vm0, %v3213_v34  ;;  %v3281_v34 = vld [vmem:[%s3387_s24 + $0x18a] sm:$0xff] }
 0x225   : > { %3311 = vmatmul.msk.f32.gmra.mxu0 %vm209_vm0, %v4789_v59 }
 0x226   : > { %v1907_v11 = vpop.f32.mrf.mxu2 }
 0x227   : > { %v1983_v58 = vadd.f32 %v1907_v11, %v1707_v60  ;;  %v2182_v2 = vpop.f32.mrf.mxu3  ;;  %v1634_v52 = vpop.f32.mrf.mxu1 }
 0x228   : > { %v1708_v22 = vadd.f32 %v1634_v52, %v4790_v32  ;;  %v3217_v32 = vld [vmem:[%s3387_s24 + $0x199] sm:$0xff] }
 0x229   : > { %v2258_v39 = vadd.f32 %v2182_v2, %v1983_v58  ;;  %v3152_v58 = vld [vmem:[%s3387_s24 + $0x198] sm:$0xff] }
 0x22a   : > { %v2460_v38 = vpop.f32.mrf.mxu0  ;;  %3117 = vmatmul.msk.f32.gmra.mxu1 %vm209_vm0, %v4787_v12 }
 0x22b   : > { %v4396_v56 = vadd.f32 %v2457_v62, %v2258_v39  ;;  %3182 = vmatmul.msk.f32.gmra.mxu2 %vm209_vm0, %v4044_v19 }
 0x22c   : > { %3247 = vmatmul.msk.f32.gmra.mxu3 %vm209_vm0, %v3214_v26 }
 0x22d   : > { %3312 = vmatmul.msk.f32.gmra.mxu0 %vm209_vm0, %v4078_v37 }
 0x22e   : > { %v1910_v1 = vpop.f32.mrf.mxu2 }
 0x22f   : > { %v1984_v15 = vadd.f32 %v1910_v1, %v1708_v22  ;;  %v2185_v4 = vpop.f32.mrf.mxu3  ;;  %v1637_v14 = vpop.f32.mrf.mxu1  ;;  %v3282_v22 = vld [vmem:[%s3387_s24 + $0x19a] sm:$0xff] }
 0x230   : > { %v1709_v27 = vadd.f32 %v1637_v14, %v4791_v63  ;;  %v3283_v63 = vld [vmem:[%s3387_s24 + $0x1a2] sm:$0xff] }
 0x231   : > { %v2259_v45 = vadd.f32 %v2185_v4, %v1984_v15  ;;  %v3218_v4 = vld [vmem:[%s3387_s24 + $0x1a1] sm:$0xff] }
 0x232   : > { %v2463_v29 = vpop.f32.mrf.mxu0  ;;  %3118 = vmatmul.msk.f32.gmra.mxu1 %vm209_vm0, %v4789_v59 }
 0x233   : > { %v4407_v7 = vadd.f32 %v2460_v38, %v2259_v45  ;;  %3183 = vmatmul.msk.f32.gmra.mxu2 %vm209_vm0, %v4061_v23  ;;  %v3153_v38 = vld [vmem:[%s3387_s24 + $0x1a0] sm:$0xff] }
 0x234   : > { %3248 = vmatmul.msk.f32.gmra.mxu3 %vm209_vm0, %v4064_v28 }
 0x235   : > { %3313 = vmatmul.msk.f32.gmra.mxu0 %vm209_vm0, %v3280_v31 }
 0x236   : > { %v1913_v19 = vpop.f32.mrf.mxu2 }
 0x237   : > { %v1985_v12 = vadd.f32 %v1913_v19, %v1709_v27  ;;  %v2188_v43 = vpop.f32.mrf.mxu3  ;;  %v1640_v47 = vpop.f32.mrf.mxu1 }
 0x238   : > { %v1710_v18 = vadd.f32 %v1640_v47, %v4792_v16 }
 0x239   : > { %v2260_v60 = vadd.f32 %v2188_v43, %v1985_v12 }
 0x23a   : > { %v2466_v0 = vpop.f32.mrf.mxu0  ;;  %3119 = vmatmul.msk.f32.gmra.mxu1 %vm209_vm0, %v4078_v37 }
 0x23b   : > { %v4418_v62 = vadd.f32 %v2463_v29, %v2260_v60  ;;  %3184 = vmatmul.msk.f32.gmra.mxu2 %vm209_vm0, %v4081_v30 }
 0x23c   : > { %3249 = vmatmul.msk.f32.gmra.mxu3 %vm209_vm0, %v4084_v9 }
 0x23d   : > { %3314 = vmatmul.msk.f32.gmra.mxu0 %vm209_vm0, %v3281_v34 }
 0x23e   : > { %v1916_v28 = vpop.f32.mrf.mxu2 }
 0x23f   : > { %v1986_v23 = vadd.f32 %v1916_v28, %v1710_v18  ;;  %v2191_v59 = vpop.f32.mrf.mxu3  ;;  %v1643_v11 = vpop.f32.mrf.mxu1 }
 0x240   : > { %v1711_v2 = vadd.f32 %v1643_v11, %v4086_v8 }
 0x241   : > { %v2261_v52 = vadd.f32 %v2191_v59, %v1986_v23 }
 0x242   : > { %v2469_v37 = vpop.f32.mrf.mxu0  ;;  %3120 = vmatmul.msk.f32.gmra.mxu1 %vm209_vm0, %v3280_v31 }
 0x243   : > { %v4431_v30 = vadd.f32 %v2466_v0, %v2261_v52  ;;  %3185 = vmatmul.msk.f32.gmra.mxu2 %vm209_vm0, %v3152_v58 }
 0x244   : > { %3250 = vmatmul.msk.f32.gmra.mxu3 %vm209_vm0, %v3217_v32 }
 0x245   : > { %3315 = vmatmul.msk.f32.gmra.mxu0 %vm209_vm0, %v3282_v22 }
 0x246   : > { %v1919_v9 = vpop.f32.mrf.mxu2 }
 0x247   : > { %v1987_v39 = vadd.f32 %v1919_v9, %v1711_v2  ;;  %v2194_v26 = vpop.f32.mrf.mxu3  ;;  %v1646_v8 = vpop.f32.mrf.mxu1 }
 0x248   : > { %v1712_v1 = vadd.f32 %v1646_v8, %v4097_v3 }
 0x249   : > { %v2262_v15 = vadd.f32 %v2194_v26, %v1987_v39 }
 0x24a   : > { %v2472_v14 = vpop.f32.mrf.mxu0  ;;  %3121 = vmatmul.msk.f32.gmra.mxu1 %vm209_vm0, %v3281_v34 }
 0x24b   : > { %v4441_v27 = vadd.f32 %v2469_v37, %v2262_v15  ;;  %3186 = vmatmul.msk.f32.gmra.mxu2 %vm209_vm0, %v3153_v38 }
 0x24c   : > { %3251 = vmatmul.msk.f32.gmra.mxu3 %vm209_vm0, %v3218_v4 }
 0x24d   : > { %3316 = vmatmul.msk.f32.gmra.mxu0 %vm209_vm0, %v3283_v63 }
 0x24e   : > { %v1922_v45 = vpop.f32.mrf.mxu2 }
 0x24f   : > { %v1988_v29 = vadd.f32 %v1922_v45, %v1712_v1  ;;  %v2197_v31 = vpop.f32.mrf.mxu3  ;;  %v1649_v19 = vpop.f32.mrf.mxu1 }
 0x250   : > { %v1713_v3 = vadd.f32 %v1649_v19, %v4108_v10 }
 0x251   : > { %v2263_v12 = vadd.f32 %v2197_v31, %v1988_v29 }
 0x252   : > { %v2475_v43 = vpop.f32.mrf.mxu0 }
 0x253   : > { %v4448_v47 = vadd.f32 %v2472_v14, %v2263_v12 }
 0x255   : > { %4793 = vst [vmem:[#allocation16_spill] sm:$0xff] %v4448_v47 }
 0x256   : > { %v1925_v16 = vpop.f32.mrf.mxu2 }
 0x257   : > { %v1989_v18 = vadd.f32 %v1925_v16, %v1713_v3  ;;  %v2200_v60 = vpop.f32.mrf.mxu3  ;;  %v1652_v0 = vpop.f32.mrf.mxu1 }
 0x258   : > { %v1714_v34 = vadd.f32 %v1652_v0, %v4119_v42 }
 0x259   : > { %v2264_v28 = vadd.f32 %v2200_v60, %v1989_v18 }
 0x25a   : > { %v2478_v23 = vpop.f32.mrf.mxu0 }
 0x25b   : > { %v4451_v59 = vadd.f32 %v2475_v43, %v2264_v28 }
 0x25e   : > { %v1928_v11 = vpop.f32.mrf.mxu2 }
 0x25f   : > { %v1990_v58 = vadd.f32 %v1928_v11, %v1714_v34  ;;  %v2203_v2 = vpop.f32.mrf.mxu3  ;;  %v1655_v52 = vpop.f32.mrf.mxu1  ;;  %v2556_v34 = vsel %vm209_vm0, %v4296_v44, 0.0  ;;  %v2558_v11 = vsel %vm209_vm0, %v4307_v21, 0.0 }
 0x260   : > { %v1715_v10 = vadd.f32 %v1655_v52, %v4130_v46  ;;  %v2560_v52 = vsel %vm209_vm0, %v4318_v35, 0.0 }
 0x261   : > { %v2265_v32 = vadd.f32 %v2203_v2, %v1990_v58 }
 0x262   : > { %v2481_v37 = vpop.f32.mrf.mxu0 }
 0x263   : > { %v4454_v22 = vadd.f32 %v2478_v23, %v2265_v32  ;;  %v2562_v32 = vsel %vm209_vm0, %v4329_v17, 0.0 }
 0x266   : > { %v1931_v9 = vpop.f32.mrf.mxu2 }
 0x267   : > { %v1991_v39 = vadd.f32 %v1931_v9, %v1715_v10  ;;  %v2206_v26 = vpop.f32.mrf.mxu3  ;;  %v1658_v8 = vpop.f32.mrf.mxu1 }
 0x268   : > { %v1716_v42 = vadd.f32 %v1658_v8, %v4142_v53 }
 0x269   : > { %v2266_v38 = vadd.f32 %v2206_v26, %v1991_v39  ;;  %v2564_v39 = vsel %vm209_vm0, %v4340_v6, 0.0 }
 0x26a   : > { %v2484_v1 = vpop.f32.mrf.mxu0 }
 0x26b   : > { %v4457_v15 = vadd.f32 %v2481_v37, %v2266_v38  ;;  %v2566_v38 = vsel %vm209_vm0, %v4351_v25, 0.0 }
 0x26e   : > { %v1934_v4 = vpop.f32.mrf.mxu2 }
 0x26f   : > { %v1992_v14 = vadd.f32 %v1934_v4, %v1716_v42  ;;  %v2209_v63 = vpop.f32.mrf.mxu3  ;;  %v1661_v45 = vpop.f32.mrf.mxu1 }
 0x270   : > { %v1717_v46 = vadd.f32 %v1661_v45, %v4153_v50  ;;  %v2555_v50 = vsel %vm209_vm0, %v4285_v61, 0.0  ;;  %v2570_v45 = vsel %vm209_vm0, %v4374_v33, 0.0 }
 0x271   : > { %v2267_v29 = vadd.f32 %v2209_v63, %v1992_v14  ;;  %v2557_v2 = vadd.f32 %v2556_v34, %v2555_v50  ;;  %v2568_v14 = vsel %vm209_vm0, %v4363_v41, 0.0 }
 0x272   : > { %v2487_v31 = vpop.f32.mrf.mxu0 }
 0x273   : > { %v4460_v19 = vadd.f32 %v2484_v1, %v2267_v29  ;;  %v2559_v10 = vadd.f32 %v2558_v11, %v2557_v2  ;;  %v2576_v11 = vsel %vm209_vm0, %v4407_v7, 0.0 }
 0x275   : > { %v2561_v37 = vadd.f32 %v2560_v52, %v2559_v10  ;;  %v2578_v52 = vsel %vm209_vm0, %v4418_v62, 0.0 }
 0x276   : > { %v1937_v3 = vpop.f32.mrf.mxu2 }
 0x277   : > { %v1993_v12 = vadd.f32 %v1937_v3, %v1717_v46  ;;  %v2212_v43 = vpop.f32.mrf.mxu3  ;;  %v1664_v16 = vpop.f32.mrf.mxu1  ;;  %v2563_v8 = vadd.f32 %v2562_v32, %v2561_v37  ;;  %v2580_v37 = vsel %vm209_vm0, %v4431_v30, 0.0 }
 0x279   : > { %v2268_v18 = vadd.f32 %v2212_v43, %v1993_v12  ;;  %v2565_v4 = vadd.f32 %v2564_v39, %v2563_v8 }
 0x27a   : > { %v4462_v53 = vpop.f32.mrf.mxu0 }
 0x27b   : > { %v4464_v60 = vadd.f32 %v2487_v31, %v2268_v18  ;;  %v2567_v63 = vadd.f32 %v2566_v38, %v2565_v4  ;;  %v2572_v31 = vsel %vm209_vm0, %v4385_v13, 0.0  ;;  %v2574_v18 = vsel %vm209_vm0, %v4396_v56, 0.0 }
 0x27c   : > { %v2582_v4 = vsel %vm209_vm0, %v4441_v27, 0.0 }
 0x27d   : > { %v2569_v46 = vadd.f32 %v2568_v14, %v2567_v63  ;;  %v1718_v14 = vadd.f32 %v1664_v16, %v4164_v24  ;;  %v2588_v24 = vsel %vm209_vm0, %v4454_v22, 0.0 }
 0x27e   : > { %v1940_v0 = vpop.f32.mrf.mxu2 }
 0x27f   : > { %v2215_v28 = vpop.f32.mrf.mxu3  ;;  %v1667_v23 = vpop.f32.mrf.mxu1  ;;  %v2571_v12 = vadd.f32 %v2570_v45, %v2569_v46  ;;  %v2584_v46 = vsel %vm209_vm0, %v4448_v47, 0.0 }
 0x281   : > { %v2573_v50 = vadd.f32 %v2572_v31, %v2571_v12  ;;  %v1994_v31 = vadd.f32 %v1940_v0, %v1718_v14  ;;  %v1719_v12 = vadd.f32 %v1667_v23, %v4175_v49  ;;  %v2590_v49 = vsel %vm209_vm0, %v4457_v15, 0.0 }
 0x282   : > { %v4472_v58 = vpop.f32.mrf.mxu0 }
 0x283   : > { %v2575_v2 = vadd.f32 %v2574_v18, %v2573_v50  ;;  %v2586_v50 = vsel %vm209_vm0, %v4451_v59, 0.0  ;;  %v2269_v16 = vadd.f32 %v2215_v28, %v1994_v31 }
 0x285   : > { %v2577_v10 = vadd.f32 %v2576_v11, %v2575_v2  ;;  %v4514_v28 = vadd.f32 %v4462_v53, %v2269_v16 }
 0x286   : > { %v1943_v9 = vpop.f32.mrf.mxu2 }
 0x287   : > { %v2218_v26 = vpop.f32.mrf.mxu3  ;;  %v1670_v42 = vpop.f32.mrf.mxu1  ;;  %v2579_v8 = vadd.f32 %v2578_v52, %v2577_v10  ;;  %v1995_v11 = vadd.f32 %v1943_v9, %v1719_v12  ;;  %v2596_v12 = vsel %vm209_vm0, %v4514_v28, 0.0 }
 0x288   : > { %v1720_v2 = vadd.f32 %v1670_v42, %v4186_v57 }
 0x289   : > { %v2581_v45 = vadd.f32 %v2580_v37, %v2579_v8  ;;  %v2270_v23 = vadd.f32 %v2218_v26, %v1995_v11 }
 0x28a   : > { %v2496_v1 = vpop.f32.mrf.mxu0 }
 0x28b   : > { %v2583_v18 = vadd.f32 %v2582_v4, %v2581_v45  ;;  %v2592_v45 = vsel %vm209_vm0, %v4460_v19, 0.0  ;;  %v4519_v31 = vadd.f32 %v4472_v58, %v2270_v23 }
 0x28d   : > { %v2585_v52 = vadd.f32 %v2584_v46, %v2583_v18  ;;  %v2594_v46 = vsel %vm209_vm0, %v4464_v60, 0.0 }
 0x28e   : > { %v1946_v29 = vpop.f32.mrf.mxu2 }
 0x28f   : > { %v2221_v3 = vpop.f32.mrf.mxu3  ;;  %v1673_v43 = vpop.f32.mrf.mxu1  ;;  %v1996_v37 = vadd.f32 %v1946_v29, %v1720_v2  ;;  %v2587_v0 = vadd.f32 %v2586_v50, %v2585_v52  ;;  %v2598_v52 = vsel %vm209_vm0, %v4519_v31, 0.0 }
 0x290   : > { %v1721_v8 = vadd.f32 %v1673_v43, %v4197_v5 }
 0x291   : > { %v2589_v42 = vadd.f32 %v2588_v24, %v2587_v0  ;;  %v2271_v29 = vadd.f32 %v2221_v3, %v1996_v37 }
 0x292   : > { %v2499_v34 = vpop.f32.mrf.mxu0 }
 0x293   : > { %v2591_v43 = vadd.f32 %v2590_v49, %v2589_v42  ;;  %v4524_v18 = vadd.f32 %v2496_v1, %v2271_v29 }
 0x295   : > { %v2600_v24 = vsel %vm209_vm0, %v4524_v18, 0.0 }
 0x296   : > { %v1949_v32 = vpop.f32.mrf.mxu2 }
 0x297   : > { %v2224_v39 = vpop.f32.mrf.mxu3  ;;  %v1676_v38 = vpop.f32.mrf.mxu1  ;;  %v1997_v4 = vadd.f32 %v1949_v32, %v1721_v8  ;;  %v2593_v32 = vadd.f32 %v2592_v45, %v2591_v43 }
 0x298   : > { %v1722_v9 = vadd.f32 %v1676_v38, %v4208_v54 }
 0x299   : > { %v2272_v26 = vadd.f32 %v2224_v39, %v1997_v4  ;;  %v2595_v11 = vadd.f32 %v2594_v46, %v2593_v32 }
 0x29a   : > { %v2502_v63 = vpop.f32.mrf.mxu0 }
 0x29b   : > { %v4528_v58 = vadd.f32 %v2499_v34, %v2272_v26 }
 0x29e   : > { %v1952_v10 = vpop.f32.mrf.mxu2 }
 0x29f   : > { %v2227_v47 = vpop.f32.mrf.mxu3  ;;  %v1679_v14 = vpop.f32.mrf.mxu1  ;;  %v1998_v5 = vadd.f32 %v1952_v10, %v1722_v9 }
 0x2a0   : > { %v1723_v54 = vadd.f32 %v1679_v14, %v4219_v36  ;;  %v2597_v36 = vadd.f32 %v2596_v12, %v2595_v11 }
 0x2a1   : > { %v2273_v53 = vadd.f32 %v2227_v47, %v1998_v5  ;;  %v2602_v47 = vsel %vm209_vm0, %v4528_v58, 0.0 }
 0x2a2   : > { %v2505_v57 = vpop.f32.mrf.mxu0  ;;  %v2599_v1 = vadd.f32 %v2598_v52, %v2597_v36 }
 0x2a3   : > { %v4532_v16 = vadd.f32 %v2502_v63, %v2273_v53 }
 0x2a4   : > { %v2601_v0 = vadd.f32 %v2600_v24, %v2599_v1 }
 0x2a5   : > { %v2604_v34 = vsel %vm209_vm0, %v4532_v16, 0.0 }
 0x2a6   : > { %v1955_v38 = vpop.f32.mrf.mxu2  ;;  %v2603_v4 = vadd.f32 %v2602_v47, %v2601_v0 }
 0x2a7   : > { %v1999_v3 = vadd.f32 %v1955_v38, %v1723_v54  ;;  %v2230_v50 = vpop.f32.mrf.mxu3  ;;  %v1682_v2 = vpop.f32.mrf.mxu1 }
 0x2a8   : > { %v1724_v37 = vadd.f32 %v1682_v2, %v4230_v20  ;;  %v2605_v45 = vadd.f32 %v2604_v34, %v2603_v4 }
 0x2a9   : > { %v2274_v39 = vadd.f32 %v2230_v50, %v1999_v3 }
 0x2aa   : > { %v2508_v10 = vpop.f32.mrf.mxu0 }
 0x2ab   : > { %v4537_v8 = vadd.f32 %v2505_v57, %v2274_v39 }
 0x2ad   : > { %v2606_v63 = vsel %vm209_vm0, %v4537_v8, 0.0 }
 0x2ae   : > { %v1958_v14 = vpop.f32.mrf.mxu2  ;;  %v2607_v20 = vadd.f32 %v2606_v63, %v2605_v45 }
 0x2af   : > { %v2000_v49 = vadd.f32 %v1958_v14, %v1724_v37  ;;  %v2233_v23 = vpop.f32.mrf.mxu3  ;;  %v1685_v9 = vpop.f32.mrf.mxu1 }
 0x2b0   : > { %v1725_v57 = vadd.f32 %v1685_v9, %v4241_v55 }
 0x2b1   : > { %v2275_v42 = vadd.f32 %v2233_v23, %v2000_v49 }
 0x2b2   : > { %v2511_v29 = vpop.f32.mrf.mxu0 }
 0x2b3   : > { %v4543_v5 = vadd.f32 %v2508_v10, %v2275_v42 }
 0x2b5   : > { %v2608_v43 = vsel %vm209_vm0, %v4543_v5, 0.0 }
 0x2b6   : > { %v2609_v46 = vadd.f32 %v2608_v43, %v2607_v20  ;;  %v1961_v26 = vpop.f32.mrf.mxu2 }
 0x2b7   : > { %v2001_v54 = vadd.f32 %v1961_v26, %v1725_v57  ;;  %v2236_v32 = vpop.f32.mrf.mxu3  ;;  %v1688_v38 = vpop.f32.mrf.mxu1 }
 0x2b8   : > { %v1726_v50 = vadd.f32 %v1688_v38, %v4252_v48 }
 0x2b9   : > { %v2276_v12 = vadd.f32 %v2236_v32, %v2001_v54 }
 0x2ba   : > { %v2514_v3 = vpop.f32.mrf.mxu0 }
 0x2bb   : > { %v4548_v53 = vadd.f32 %v2511_v29, %v2276_v12 }
 0x2bd   : > { %v2610_v11 = vsel %vm209_vm0, %v4548_v53, 0.0 }
 0x2be   : > { %v2611_v2 = vadd.f32 %v2610_v11, %v2609_v46  ;;  %v1964_v52 = vpop.f32.mrf.mxu2 }
 0x2bf   : > { %v2002_v55 = vadd.f32 %v1964_v52, %v1726_v50  ;;  %v2239_v39 = vpop.f32.mrf.mxu3  ;;  %v1691_v10 = vpop.f32.mrf.mxu1 }
 0x2c0   : > { %v1727_v1 = vadd.f32 %v1691_v10, %v4263_v40  ;;  %v3342_v40 = vmov 256.0  }
 0x2c1   : > { %v2277_v36 = vadd.f32 %v2239_v39, %v2002_v55  ;;  %3332 = vrcp.f32 %v3342_v40 }
 0x2c2   : > { %v2517_v14 = vpop.f32.mrf.mxu0 }
 0x2c3   : > { %v4553_v24 = vadd.f32 %v2514_v3, %v2277_v36 }
 0x2c5   : > { %v2612_v47 = vsel %vm209_vm0, %v4553_v24, 0.0 }
 0x2c6   : > { %v2613_v37 = vadd.f32 %v2612_v47, %v2611_v2  ;;  %v1967_v0 = vpop.f32.mrf.mxu2 }
 0x2c7   : > { %v2003_v48 = vadd.f32 %v1967_v0, %v1727_v1  ;;  %v2242_v34 = vpop.f32.mrf.mxu3  ;;  %v1694_v23 = vpop.f32.mrf.mxu1 }
 0x2c8   : > { %v1728_v9 = vadd.f32 %v1694_v23, %v4274_v51  ;;  %v3333_v26 = vpop.eup %3332 }
 0x2c9   : > { %v2278_v49 = vadd.f32 %v2242_v34, %v2003_v48  ;;  %v2625_v38 = vmul.f32 256.0, %v3333_v26  ;;  %vm2629_vm1 = vweird.f32 %v3333_v26 }
 0x2ca   : > { %v2520_v57 = vpop.f32.mrf.mxu0 }
 0x2cb   : > { %v4558_v4 = vadd.f32 %v2517_v14, %v2278_v49  ;;  %v2626_v3 = vsub.f32 1.0, %v2625_v38 }
 0x2cd   : > { %v2614_v63 = vsel %vm209_vm0, %v4558_v4, 0.0  ;;  %v2627_v2 = vmul.f32 %v3333_v26, %v2626_v3 }
 0x2ce   : > { %v2615_v42 = vadd.f32 %v2614_v63, %v2613_v37  ;;  %v1970_v45 = vpop.f32.mrf.mxu2 }
 0x2cf   : > { %v2004_v29 = vadd.f32 %v1970_v45, %v1728_v9  ;;  %v2245_v20 = vpop.f32.mrf.mxu3  ;;  %v2628_v55 = vadd.f32 %v3333_v26, %v2627_v2 }
 0x2d1   : > { %v2279_v43 = vadd.f32 %v2245_v20, %v2004_v29  ;;  %v2630_v10 = vsel %vm2629_vm1, %v3333_v26, %v2628_v55 }
 0x2d3   : > { %v4563_v46 = vadd.f32 %v2520_v57, %v2279_v43 }
 0x2d5   : > { %v2616_v54 = vsel %vm209_vm0, %v4563_v46, 0.0 }
 0x2d6   : > { %v2617_v32 = vadd.f32 %v2616_v54, %v2615_v42 }
 0x2d8   : > { %v2618_v51 = vrot.slane %v2617_v32, 4 }
 0x2da   : > { %v2619_v12 = vadd.f32 %v2618_v51, %v2617_v32 }
 0x2dc   : > { %v2620_v50 = vrot.slane %v2619_v12, 2 }
 0x2de   : > { %v2621_v11 = vadd.f32 %v2620_v50, %v2619_v12 }
 0x2e0   : > { %v2622_v52 = vrot.slane %v2621_v11, 1 }
 0x2e2   : > { %v2623_v39 = vadd.f32 %v2622_v52, %v2621_v11 }
 0x2e4   : > { %v4567_v36 = vmul.f32 %v2630_v10, %v2623_v39 }
 0x2e6   : > { %v2632_v1 = vsub.f32 %v4285_v61, %v4567_v36  ;;  %v2633_v47 = vsub.f32 %v4296_v44, %v4567_v36  ;;  %v2634_v37 = vsub.f32 %v4307_v21, %v4567_v36  ;;  %v2635_v0 = vsub.f32 %v4318_v35, %v4567_v36 }
 0x2e7   : > { %v2636_v34 = vsub.f32 %v4329_v17, %v4567_v36  ;;  %v2637_v23 = vsub.f32 %v4340_v6, %v4567_v36  ;;  %v2638_v21 = vsub.f32 %v4351_v25, %v4567_v36  ;;  %v2639_v17 = vsub.f32 %v4363_v41, %v4567_v36 }
 0x2e8   : > { %v2664_v14 = vmul.f32 %v2632_v1, %v2632_v1  ;;  %v2665_v48 = vmul.f32 %v2633_v47, %v2633_v47  ;;  %v2666_v49 = vmul.f32 %v2634_v37, %v2634_v37  ;;  %v2667_v9 = vmul.f32 %v2635_v0, %v2635_v0 }
 0x2e9   : > { %v2668_v42 = vmul.f32 %v2636_v34, %v2636_v34  ;;  %v2669_v40 = vmul.f32 %v2637_v23, %v2637_v23  ;;  %v2640_v20 = vsub.f32 %v4374_v33, %v4567_v36  ;;  %v2670_v57 = vmul.f32 %v2638_v21, %v2638_v21 }
 0x2ea   : > { %v2696_v61 = vsel %vm209_vm0, %v2664_v14, 0.0  ;;  %v2697_v44 = vsel %vm209_vm0, %v2665_v48, 0.0  ;;  %v2699_v35 = vsel %vm209_vm0, %v2666_v49, 0.0  ;;  %v2701_v29 = vsel %vm209_vm0, %v2667_v9, 0.0 }
 0x2eb   : > { %v2698_v63 = vadd.f32 %v2697_v44, %v2696_v61  ;;  %v2703_v43 = vsel %vm209_vm0, %v2668_v42, 0.0  ;;  %v2641_v25 = vsub.f32 %v4385_v13, %v4567_v36  ;;  %v2671_v54 = vmul.f32 %v2639_v17, %v2639_v17 }
 0x2ec   : > { %v2705_v32 = vsel %vm209_vm0, %v2669_v40, 0.0  ;;  %v2642_v41 = vsub.f32 %v4396_v56, %v4567_v36  ;;  %v2672_v51 = vmul.f32 %v2640_v20, %v2640_v20  ;;  %v2707_v12 = vsel %vm209_vm0, %v2670_v57, 0.0 }
 0x2ed   : > { %v2700_v45 = vadd.f32 %v2699_v35, %v2698_v63  ;;  %v2643_v33 = vsub.f32 %v4407_v7, %v4567_v36  ;;  %v2673_v50 = vmul.f32 %v2641_v25, %v2641_v25  ;;  %v2709_v11 = vsel %vm209_vm0, %v2671_v54, 0.0 }
 0x2ee   : > { %v2644_v13 = vsub.f32 %v4418_v62, %v4567_v36  ;;  %v2674_v52 = vmul.f32 %v2642_v41, %v2642_v41  ;;  %v2711_v55 = vsel %vm209_vm0, %v2672_v51, 0.0  ;;  %v2645_v56 = vsub.f32 %v4431_v30, %v4567_v36  ;;  %v4794_v62 = vld [vmem:[#allocation16_spill] sm:$0xff] }
 0x2ef   : > { %v2702_v6 = vadd.f32 %v2701_v29, %v2700_v45  ;;  %v2675_v10 = vmul.f32 %v2643_v33, %v2643_v33  ;;  %v2713_v1 = vsel %vm209_vm0, %v2673_v50, 0.0  ;;  %v2646_v7 = vsub.f32 %v4441_v27, %v4567_v36 }
 0x2f0   : > { %v2676_v37 = vmul.f32 %v2644_v13, %v2644_v13  ;;  %v2715_v0 = vsel %vm209_vm0, %v2674_v52, 0.0  ;;  %v2647_v48 = vsub.f32 %v4794_v62, %v4567_v36  ;;  %v2677_v34 = vmul.f32 %v2645_v56, %v2645_v56 }
 0x2f1   : > { %v2704_v26 = vadd.f32 %v2703_v43, %v2702_v6  ;;  %v2717_v49 = vsel %vm209_vm0, %v2675_v10, 0.0  ;;  %v2648_v30 = vsub.f32 %v4451_v59, %v4567_v36  ;;  %v2678_v9 = vmul.f32 %v2646_v7, %v2646_v7 }
 0x2f2   : > { %v2719_v61 = vsel %vm209_vm0, %v2676_v37, 0.0  ;;  %v2649_v27 = vsub.f32 %v4454_v22, %v4567_v36  ;;  %v2679_v63 = vmul.f32 %v2647_v48, %v2647_v48  ;;  %v2721_v21 = vsel %vm209_vm0, %v2677_v34, 0.0 }
 0x2f3   : > { %v2706_v38 = vadd.f32 %v2705_v32, %v2704_v26  ;;  %v2650_v35 = vsub.f32 %v4457_v15, %v4567_v36  ;;  %v2680_v45 = vmul.f32 %v2648_v30, %v2648_v30  ;;  %v2723_v17 = vsel %vm209_vm0, %v2678_v9, 0.0 }
 0x2f4   : > { %v2651_v59 = vsub.f32 %v4460_v19, %v4567_v36  ;;  %v2681_v29 = vmul.f32 %v2649_v27, %v2649_v27  ;;  %v2725_v6 = vsel %vm209_vm0, %v2679_v63, 0.0  ;;  %v2652_v22 = vsub.f32 %v4464_v60, %v4567_v36 }
 0x2f5   : > { %v2708_v3 = vadd.f32 %v2707_v12, %v2706_v38  ;;  %v2682_v57 = vmul.f32 %v2650_v35, %v2650_v35  ;;  %v2727_v43 = vsel %vm209_vm0, %v2680_v45, 0.0  ;;  %v2653_v15 = vsub.f32 %v4514_v28, %v4567_v36 }
 0x2f6   : > { %v2683_v25 = vmul.f32 %v2651_v59, %v2651_v59  ;;  %v2729_v54 = vsel %vm209_vm0, %v2681_v29, 0.0  ;;  %v2654_v19 = vsub.f32 %v4519_v31, %v4567_v36  ;;  %v2684_v38 = vmul.f32 %v2652_v22, %v2652_v22 }
 0x2f7   : > { %v2710_v2 = vadd.f32 %v2709_v11, %v2708_v3  ;;  %v2731_v41 = vsel %vm209_vm0, %v2682_v57, 0.0  ;;  %v2655_v60 = vsub.f32 %v4524_v18, %v4567_v36  ;;  %v2685_v12 = vmul.f32 %v2653_v15, %v2653_v15 }
 0x2f8   : > { %v2733_v3 = vsel %vm209_vm0, %v2683_v25, 0.0  ;;  %v2656_v28 = vsub.f32 %v4528_v58, %v4567_v36  ;;  %v2686_v50 = vmul.f32 %v2654_v19, %v2654_v19  ;;  %v2735_v11 = vsel %vm209_vm0, %v2684_v38, 0.0 }
 0x2f9   : > { %v2712_v39 = vadd.f32 %v2711_v55, %v2710_v2  ;;  %v2657_v31 = vsub.f32 %v4532_v16, %v4567_v36  ;;  %v2687_v13 = vmul.f32 %v2655_v60, %v2655_v60  ;;  %v2737_v52 = vsel %vm209_vm0, %v2685_v12, 0.0 }
 0x2fa   : > { %v2658_v18 = vsub.f32 %v4537_v8, %v4567_v36  ;;  %v2739_v56 = vsel %vm209_vm0, %v2686_v50, 0.0  ;;  %v2659_v58 = vsub.f32 %v4543_v5, %v4567_v36  ;;  %v2660_v16 = vsub.f32 %v4548_v53, %v4567_v36 }
 0x2fb   : > { %v2714_v47 = vadd.f32 %v2713_v1, %v2712_v39  ;;  %v2688_v39 = vmul.f32 %v2656_v28, %v2656_v28  ;;  %v2689_v1 = vmul.f32 %v2657_v31, %v2657_v31  ;;  %v2661_v8 = vsub.f32 %v4553_v24, %v4567_v36 }
 0x2fc   : > { %v2690_v37 = vmul.f32 %v2658_v18, %v2658_v18  ;;  %v2691_v62 = vmul.f32 %v2659_v58, %v2659_v58  ;;  %v2662_v5 = vsub.f32 %v4558_v4, %v4567_v36  ;;  %v2663_v53 = vsub.f32 %v4563_v46, %v4567_v36 }
 0x2fd   : > { %v2716_v14 = vadd.f32 %v2715_v0, %v2714_v47  ;;  %v2741_v47 = vsel %vm209_vm0, %v2687_v13, 0.0  ;;  %v2743_v0 = vsel %vm209_vm0, %v2688_v39, 0.0  ;;  %v2745_v48 = vsel %vm209_vm0, %v2689_v1, 0.0 }
 0x2fe   : > { %v2693_v9 = vmul.f32 %v2661_v8, %v2661_v8  ;;  %v2694_v24 = vmul.f32 %v2662_v5, %v2662_v5 }
 0x2ff   : > { %v2718_v23 = vadd.f32 %v2717_v49, %v2716_v14  ;;  %v2692_v49 = vmul.f32 %v2660_v16, %v2660_v16 }
 0x300   : > { %v2755_v35 = vsel %vm209_vm0, %v2694_v24, 0.0 }
 0x301   : > { %v2720_v44 = vadd.f32 %v2719_v61, %v2718_v23  ;;  %v2747_v23 = vsel %vm209_vm0, %v2690_v37, 0.0  ;;  %v2749_v61 = vsel %vm209_vm0, %v2691_v62, 0.0  ;;  %v2751_v27 = vsel %vm209_vm0, %v2692_v49, 0.0 }
 0x303   : > { %v2722_v42 = vadd.f32 %v2721_v21, %v2720_v44  ;;  %v2695_v21 = vmul.f32 %v2663_v53, %v2663_v53 }
 0x305   : > { %v2724_v40 = vadd.f32 %v2723_v17, %v2722_v42  ;;  %v2753_v42 = vsel %vm209_vm0, %v2693_v9, 0.0  ;;  %v2757_v17 = vsel %vm209_vm0, %v2695_v21, 0.0 }
 0x307   : > { %v2726_v20 = vadd.f32 %v2725_v6, %v2724_v40 }
 0x309   : > { %v2728_v26 = vadd.f32 %v2727_v43, %v2726_v20 }
 0x30b   : > { %v2730_v32 = vadd.f32 %v2729_v54, %v2728_v26 }
 0x30d   : > { %v2732_v51 = vadd.f32 %v2731_v41, %v2730_v32 }
 0x30f   : > { %v2734_v33 = vadd.f32 %v2733_v3, %v2732_v51 }
 0x311   : > { %v2736_v2 = vadd.f32 %v2735_v11, %v2734_v33 }
 0x313   : > { %v2738_v55 = vadd.f32 %v2737_v52, %v2736_v2 }
 0x315   : > { %v2740_v10 = vadd.f32 %v2739_v56, %v2738_v55 }
 0x317   : > { %v2742_v7 = vadd.f32 %v2741_v47, %v2740_v10 }
 0x319   : > { %v2744_v14 = vadd.f32 %v2743_v0, %v2742_v7 }
 0x31b   : > { %v2746_v34 = vadd.f32 %v2745_v48, %v2744_v14 }
 0x31d   : > { %v2748_v30 = vadd.f32 %v2747_v23, %v2746_v34 }
 0x31f   : > { %v2750_v44 = vadd.f32 %v2749_v61, %v2748_v30 }
 0x321   : > { %v2752_v63 = vadd.f32 %v2751_v27, %v2750_v44 }
 0x323   : > { %v2754_v4 = vadd.f32 %v2753_v42, %v2752_v63 }
 0x325   : > { %v2756_v45 = vadd.f32 %v2755_v35, %v2754_v4 }
 0x327   : > { %v2758_v40 = vadd.f32 %v2757_v17, %v2756_v45 }
 0x329   : > { %v2759_v46 = vrot.slane %v2758_v40, 4 }
 0x32b   : > { %v2760_v59 = vadd.f32 %v2759_v46, %v2758_v40 }
 0x32d   : > { %v2761_v29 = vrot.slane %v2760_v59, 2 }
 0x32f   : > { %v2762_v6 = vadd.f32 %v2761_v29, %v2760_v59 }
 0x331   : > { %v2763_v20 = vrot.slane %v2762_v6, 1 }
 0x333   : > { %v2764_v22 = vadd.f32 %v2763_v20, %v2762_v6 }
 0x335   : > { %v2766_v57 = vsel %vm2765_vm2, %v4567_v36, %v2764_v22 }
 0x336   : > { %2768 = vst.msk [vmem:[%s141_s8] sm:$0x3] %vm2767_vm3, %v2766_v57 }
 0x337 PF: > { %s12_s9 = sadd.s32 1, %s3340_s9  }
 0x338   : > { %p9_p4 = scmp.ge.s32.totalorder %s12_s9, 4  }
 0x33a   :  { %11 = sbr.rel (!%p9_p4) target bundleno = 1 (0x1), region = 68 }

// kernel: conv_block_forward.4
= control target key start
LH: loop header
LB: loop body
LE: loop exit
PB: predicated region body
PF: predicated region fallthrough
CT: control target
= control target key end

     0   :  { %s3396_s9 = smov 0   ;;  %s4723_s0 = inlined_call_operand.vmem [shape: f32[2,18,18,4], index: 0, kind: input, shape index: {}]   ;;  %s4724_s1 = inlined_call_operand.vmem [shape: f32[9,4,8], index: 1, kind: input, shape index: {}]   ;;  %s4725_s2 = inlined_call_operand.vmem [shape: f32[2,2,8], index: 2, kind: output, shape index: {}]  }
   0x1 LB: > { %s2851_s10 = sadd.s32 4294967295, %s3378_s9   ;;  %p2855_p0 = scmp.ge.s32.totalorder %s3378_s9, 1  ;;  %s3378_s9 = sphi %s3396_s9, %s12_s9  }
   0x2   : > { %p112_p1 = scmp.lt.s32.totalorder %s3378_s9, 3 }
   0x4   : > { %p113_p2 = pnand %p2855_p0, %p112_p1 }
   0x6   : > { %116 = sbr.rel (%p113_p2) target bundleno = 823 (0x337), region = 28 }
   0xb   : > { %v2858_v0 = vld [vmem:[%s4724_s1 + $0x4] sm:$0xf]  ;;  %vm306_vm0 = vcmask 1043456   ;;  %p133_p3 = scmp.lt.s32.totalorder %s2851_s10, 1  ;;  %v2925_v1 = vld [vmem:[%s4724_s1 + $0x8] sm:$0xf] }
   0xc   : > { %3357 = vmatpush.msk.msra.mxu1 %vm306_vm0, %v2858_v0  ;;  %3358 = vmatpush.msk.msra.mxu2 %vm306_vm0, %v2858_v0  ;;  %v2991_v2 = vld [vmem:[%s4724_s1 + $0xc] sm:$0xf]  ;;  %v174_v3 = vld [vmem:[%s4724_s1] sm:$0xf]  ;;  %v3057_v4 = vld [vmem:[%s4724_s1 + $0x10] sm:$0xf] }
   0xd   : > { %s4846_s10 = smov (!%p133_p3, %s2851_s10), 1  ;;  %3359 = vmatpush.msk.msra.mxu3 %vm306_vm0, %v2858_v0  ;;  %2859 = vmatpush.msk.msra.mxu0 %vm306_vm0, %v2858_v0  ;;  %vm209_vm1 = vcmask 31744   ;;  %v3189_v25 = vld [vmem:[%s4724_s1 + $0x18] sm:$0xf]  ;;  %v3255_v26 = vld [vmem:[%s4724_s1 + $0x1c] sm:$0xf] }
   0xe   : > { %2926 = vmatpush.msk.msrb.mxu2 %vm306_vm0, %v2925_v1  ;;  %2892 = vmatpush.msk.msrb.mxu1 %vm306_vm0, %v174_v3  ;;  %s3360_s21 = smul.u32 432, %s4846_s10  ;;  %v3123_v27 = vld [vmem:[%s4724_s1 + $0x14] sm:$0xf]  ;;  %v3321_v32 = vld [vmem:[%s4724_s1 + $0x20] sm:$0xf]  ;;  %vm2583_vm2 = vcmask 64512  }
   0xf   : > { %2992 = vmatpush.msk.msrb.mxu3 %vm306_vm0, %v2991_v2  ;;  %3058 = vmatpush.msk.msrb.mxu0 %vm306_vm0, %v3057_v4  ;;  %s2857_s5 = sshll.u32 %s4846_s10, 1  ;;  %vm2794_vm4 = vcmask 1040384   ;;  %vm2796_vm5 = vcmask 58368  }
  0x10   : > { %s3433_s24 = scalar_lea.vmem %s4723_s0, %s3360_s21  ;;  %s141_s8 = scalar_lea.vmem %s4725_s2, %s2857_s5 }
  0x11   : > { %v3436_v5 = vld [vmem:[%s3433_s24 + $0x61] sm:$0xff]  ;;  %v3453_v9 = vld [vmem:[%s3433_s24 + $0x69] sm:$0xff]  ;;  %v3470_v13 = vld [vmem:[%s3433_s24 + $0x79] sm:$0xff] }
  0x12   : > { %v3439_v6 = vld [vmem:[%s3433_s24 + $0xc1] sm:$0xff]  ;;  %2868 = vmatmul.msk.f32.vlgmr.msra.gmra.mxu1 %vm209_vm1, %v3436_v5  ;;  %v3456_v10 = vld [vmem:[%s3433_s24 + $0xc9] sm:$0xff]  ;;  %v3473_v14 = vld [vmem:[%s3433_s24 + $0xd9] sm:$0xff] }
  0x13   : > { %v3442_v7 = vld [vmem:[%s3433_s24 + $0x121] sm:$0xff]  ;;  %2876 = vmatmul.msk.f32.vlgmr.msra.gmra.mxu2 %vm209_vm1, %v3439_v6  ;;  %v3459_v11 = vld [vmem:[%s3433_s24 + $0x129] sm:$0xff]  ;;  %v3476_v15 = vld [vmem:[%s3433_s24 + $0x139] sm:$0xff]  ;;  %3124 = vmatpush.msk.msra.mxu1 %vm306_vm0, %v3123_v27 }
  0x14   : > { %v175_v8 = vld [vmem:[%s3433_s24 + $0x1] sm:$0xff]  ;;  %2884 = vmatmul.msk.f32.vlgmr.msra.gmra.mxu3 %vm209_vm1, %v3442_v7  ;;  %v176_v12 = vld [vmem:[%s3433_s24 + $0x9] sm:$0xff]  ;;  %v177_v16 = vld [vmem:[%s3433_s24 + $0x19] sm:$0xff]  ;;  %3190 = vmatpush.msk.msra.mxu2 %vm306_vm0, %v3189_v25 }
  0x15   : > { %2860 = vmatmul.msk.f32.vlgmr.msra.gmra.mxu0 %vm209_vm1, %v175_v8  ;;  %v3487_v17 = vld [vmem:[%s3433_s24 + $0x81] sm:$0xff]  ;;  %v3504_v21 = vld [vmem:[%s3433_s24 + $0x91] sm:$0xff]  ;;  %3256 = vmatpush.msk.msra.mxu3 %vm306_vm0, %v3255_v26  ;;  %v3536_v28 = vld [vmem:[%s3433_s24 + $0x99] sm:$0xff] }
  0x16   : > { %v3490_v18 = vld [vmem:[%s3433_s24 + $0xe1] sm:$0xff]  ;;  %v3507_v22 = vld [vmem:[%s3433_s24 + $0xf1] sm:$0xff]  ;;  %v3539_v29 = vld [vmem:[%s3433_s24 + $0xf9] sm:$0xff]  ;;  %3322 = vmatpush.msk.msra.mxu0 %vm306_vm0, %v3321_v32 }
  0x17   : > { %v3493_v19 = vld [vmem:[%s3433_s24 + $0x141] sm:$0xff]  ;;  %v3510_v23 = vld [vmem:[%s3433_s24 + $0x151] sm:$0xff]  ;;  %v3542_v30 = vld [vmem:[%s3433_s24 + $0x159] sm:$0xff] }
  0x18   : > { %v178_v20 = vld [vmem:[%s3433_s24 + $0x21] sm:$0xff]  ;;  %v3513_v24 = vld [vmem:[%s3433_s24 + $0x31] sm:$0xff]  ;;  %v3545_v31 = vld [vmem:[%s3433_s24 + $0x39] sm:$0xff] }
  0x19   : > { %v3560_v33 = vld [vmem:[%s3433_s24 + $0xa9] sm:$0xff]  ;;  %v3580_v37 = vld [vmem:[%s3433_s24 + $0xb1] sm:$0xff]  ;;  %v142_v41 = vld [vmem:[%s3433_s24] sm:$0xff] }
  0x1a   : > { %2869 = vmatmul.msk.f32.gmra.mxu1 %vm209_vm1, %v3453_v9  ;;  %v3563_v34 = vld [vmem:[%s3433_s24 + $0x109] sm:$0xff]  ;;  %v3583_v38 = vld [vmem:[%s3433_s24 + $0x111] sm:$0xff]  ;;  %v2960_v46 = vld [vmem:[%s3433_s24 + $0x20] sm:$0xff] }
  0x1b   : > { %2877 = vmatmul.msk.f32.gmra.mxu2 %vm209_vm1, %v3456_v10  ;;  %v3566_v35 = vld [vmem:[%s3433_s24 + $0x169] sm:$0xff]  ;;  %v3586_v39 = vld [vmem:[%s3433_s24 + $0x171] sm:$0xff]  ;;  %v3614_v47 = vld [vmem:[%s3433_s24 + $0x1a] sm:$0xff] }
  0x1c   : > { %2885 = vmatmul.msk.f32.gmra.mxu3 %vm209_vm1, %v3459_v11  ;;  %v3569_v36 = vld [vmem:[%s3433_s24 + $0x49] sm:$0xff]  ;;  %v3589_v40 = vld [vmem:[%s3433_s24 + $0x51] sm:$0xff]  ;;  %v3654_v53 = vld [vmem:[%s3433_s24 + $0x3a] sm:$0xff] }
  0x1d   : > { %2861 = vmatmul.msk.f32.gmra.mxu0 %vm209_vm1, %v176_v12  ;;  %v635_v42 = vld [vmem:[%s3433_s24 + $0x2] sm:$0xff]  ;;  %v2959_v43 = vld [vmem:[%s3433_s24 + $0x18] sm:$0xff]  ;;  %v636_v45 = vld [vmem:[%s3433_s24 + $0xa] sm:$0xff] }
  0x1e   : > { %v143_v44 = vld [vmem:[%s3433_s24 + $0x8] sm:$0xff]  ;;  %v3617_v48 = vld [vmem:[%s3433_s24 + $0x30] sm:$0xff]  ;;  %v3630_v50 = vld [vmem:[%s3433_s24 + $0x38] sm:$0xff] }
  0x1f   : > { %v3627_v49 = vld [vmem:[%s3433_s24 + $0x22] sm:$0xff]  ;;  %v3640_v51 = vld [vmem:[%s3433_s24 + $0x32] sm:$0xff]  ;;  %v3668_v55 = vld [vmem:[%s3433_s24 + $0x4a] sm:$0xff] }
  0x20   : > { %v3643_v52 = vld [vmem:[%s3433_s24 + $0x48] sm:$0xff]  ;;  %v3657_v54 = vld [vmem:[%s3433_s24 + $0x50] sm:$0xff]  ;;  %v3671_v56 = vld [vmem:[%s3433_s24 + $0x60] sm:$0xff] }
  0x21   : > { %v3682_v57 = vld [vmem:[%s3433_s24 + $0x52] sm:$0xff]  ;;  %v3685_v58 = vld [vmem:[%s3433_s24 + $0x68] sm:$0xff]  ;;  %v3723_v3 = vld [vmem:[%s3433_s24 + $0x80] sm:$0xff] }
  0x22   : > { %2870 = vmatmul.msk.f32.gmra.mxu1 %vm209_vm1, %v3470_v13  ;;  %4755 = vst [vmem:[#allocation2_spill] sm:$0xff] %v3685_v58  ;;  %v3698_v60 = vld [vmem:[%s3433_s24 + $0x62] sm:$0xff]  ;;  %v3701_v61 = vld [vmem:[%s3433_s24 + $0x78] sm:$0xff]  ;;  %v3720_v2 = vld [vmem:[%s3433_s24 + $0x6a] sm:$0xff] }
  0x23   : > { %2878 = vmatmul.msk.f32.gmra.mxu2 %vm209_vm1, %v3473_v14  ;;  %4756 = vst [vmem:[#allocation3_spill] sm:$0xff] %v3701_v61  ;;  %v3742_v12 = vld [vmem:[%s3433_s24 + $0x7a] sm:$0xff]  ;;  %v3764_v26 = vld [vmem:[%s3433_s24 + $0x82] sm:$0xff] }
  0x24   : > { %2886 = vmatmul.msk.f32.gmra.mxu3 %vm209_vm1, %v3476_v15  ;;  %4758 = vst [vmem:[#allocation5_spill] sm:$0xff] %v3720_v2  ;;  %v3767_v27 = vld [vmem:[%s3433_s24 + $0x98] sm:$0xff] }
  0x25   : > { %2862 = vmatmul.msk.f32.gmra.mxu0 %vm209_vm1, %v177_v16  ;;  %4759 = vst [vmem:[#allocation6_spill] sm:$0xff] %v3723_v3 }
  0x26   : > { %4761 = vst [vmem:[#allocation8_spill] sm:$0xff] %v3742_v12 }
  0x27   : > { %4764 = vst [vmem:[#allocation11_spill] sm:$0xff] %v3764_v26 }
  0x28   : > { %4765 = vst [vmem:[#allocation12_spill] sm:$0xff] %v3767_v27 }
  0x2a   : > { %2871 = vmatmul.msk.f32.gmra.mxu1 %vm209_vm1, %v3487_v17 }
  0x2b   : > { %2879 = vmatmul.msk.f32.gmra.mxu2 %vm209_vm1, %v3490_v18 }
  0x2c   : > { %2887 = vmatmul.msk.f32.gmra.mxu3 %vm209_vm1, %v3493_v19 }
  0x2d   : > { %2863 = vmatmul.msk.f32.gmra.mxu0 %vm209_vm1, %v178_v20 }
  0x32   : > { %2872 = vmatmul.msk.f32.gmra.mxu1 %vm209_vm1, %v3504_v21 }
  0x33   : > { %2880 = vmatmul.msk.f32.gmra.mxu2 %vm209_vm1, %v3507_v22 }
  0x34   : > { %2888 = vmatmul.msk.f32.gmra.mxu3 %vm209_vm1, %v3510_v23 }
  0x35   : > { %2864 = vmatmul.msk.f32.gmra.mxu0 %vm209_vm1, %v3513_v24 }
  0x3a   : > { %2873 = vmatmul.msk.f32.gmra.mxu1 %vm209_vm1, %v3536_v28 }
  0x3b   : > { %2881 = vmatmul.msk.f32.gmra.mxu2 %vm209_vm1, %v3539_v29 }
  0x3c   : > { %2889 = vmatmul.msk.f32.gmra.mxu3 %vm209_vm1, %v3542_v30 }
  0x3d   : > { %2865 = vmatmul.msk.f32.gmra.mxu0 %vm209_vm1, %v3545_v31 }
  0x42   : > { %2874 = vmatmul.msk.f32.gmra.mxu1 %vm209_vm1, %v3560_v33 }
  0x43   : > { %2882 = vmatmul.msk.f32.gmra.mxu2 %vm209_vm1, %v3563_v34 }
  0x44   : > { %2890 = vmatmul.msk.f32.gmra.mxu3 %vm209_vm1, %v3566_v35 }
  0x45   : > { %2866 = vmatmul.msk.f32.gmra.mxu0 %vm209_vm1, %v3569_v36 }
  0x4a   : > { %2875 = vmatmul.msk.f32.gmra.mxu1 %vm209_vm1, %v3580_v37 }
  0x4b   : > { %2883 = vmatmul.msk.f32.gmra.mxu2 %vm209_vm1, %v3583_v38 }
  0x4c   : > { %2891 = vmatmul.msk.f32.gmra.mxu3 %vm209_vm1, %v3586_v39 }
  0x4d   : > { %2867 = vmatmul.msk.f32.gmra.mxu0 %vm209_vm1, %v3589_v40 }
  0x52   : > { %2893 = vmatmul.msk.f32.vlgmr.msrb.gmra.mxu1 %vm209_vm1, %v142_v41 }
  0x53   : > { %2927 = vmatmul.msk.f32.vlgmr.msrb.gmra.mxu2 %vm209_vm1, %v635_v42 }
  0x54   : > { %2993 = vmatmul.msk.f32.vlgmr.msrb.gmra.mxu3 %vm209_vm1, %v2959_v43 }
  0x55   : > { %3059 = vmatmul.msk.f32.vlgmr.msrb.gmra.mxu0 %vm209_vm1, %v177_v16 }
  0x5a   : > { %2894 = vmatmul.msk.f32.gmra.mxu1 %vm209_vm1, %v143_v44  ;;  %v3789_v44 = vld [vmem:[%s3433_s24 + $0xa8] sm:$0xff] }
  0x5b   : > { %2928 = vmatmul.msk.f32.gmra.mxu2 %vm209_vm1, %v636_v45  ;;  %4768 = vst [vmem:[#allocation15_spill] sm:$0xff] %v3789_v44 }
  0x5c   : > { %2994 = vmatmul.msk.f32.gmra.mxu3 %vm209_vm1, %v2960_v46 }
  0x5d   : > { %3060 = vmatmul.msk.f32.gmra.mxu0 %vm209_vm1, %v178_v20 }
  0x62   : > { %2895 = vmatmul.msk.f32.gmra.mxu1 %vm209_vm1, %v2959_v43  ;;  %v3786_v43 = vld [vmem:[%s3433_s24 + $0x92] sm:$0xff] }
  0x63   : > { %2929 = vmatmul.msk.f32.gmra.mxu2 %vm209_vm1, %v3614_v47  ;;  %4767 = vst [vmem:[#allocation14_spill] sm:$0xff] %v3786_v43 }
  0x64   : > { %2995 = vmatmul.msk.f32.gmra.mxu3 %vm209_vm1, %v3617_v48 }
  0x65   : > { %3061 = vmatmul.msk.f32.gmra.mxu0 %vm209_vm1, %v3513_v24 }
  0x6a   : > { %2896 = vmatmul.msk.f32.gmra.mxu1 %vm209_vm1, %v2960_v46 }
  0x6b   : > { %2930 = vmatmul.msk.f32.gmra.mxu2 %vm209_vm1, %v3627_v49 }
  0x6c   : > { %2996 = vmatmul.msk.f32.gmra.mxu3 %vm209_vm1, %v3630_v50 }
  0x6d   : > { %3062 = vmatmul.msk.f32.gmra.mxu0 %vm209_vm1, %v3545_v31 }
  0x72   : > { %2897 = vmatmul.msk.f32.gmra.mxu1 %vm209_vm1, %v3617_v48 }
  0x73   : > { %2931 = vmatmul.msk.f32.gmra.mxu2 %vm209_vm1, %v3640_v51 }
  0x74   : > { %2997 = vmatmul.msk.f32.gmra.mxu3 %vm209_vm1, %v3643_v52 }
  0x75   : > { %3063 = vmatmul.msk.f32.gmra.mxu0 %vm209_vm1, %v3569_v36 }
  0x7a   : > { %2898 = vmatmul.msk.f32.gmra.mxu1 %vm209_vm1, %v3630_v50 }
  0x7b   : > { %2932 = vmatmul.msk.f32.gmra.mxu2 %vm209_vm1, %v3654_v53 }
  0x7c   : > { %2998 = vmatmul.msk.f32.gmra.mxu3 %vm209_vm1, %v3657_v54 }
  0x7d   : > { %3064 = vmatmul.msk.f32.gmra.mxu0 %vm209_vm1, %v3589_v40 }
  0x82   : > { %2899 = vmatmul.msk.f32.gmra.mxu1 %vm209_vm1, %v3643_v52 }
  0x83   : > { %2933 = vmatmul.msk.f32.gmra.mxu2 %vm209_vm1, %v3668_v55 }
  0x84   : > { %2999 = vmatmul.msk.f32.gmra.mxu3 %vm209_vm1, %v3671_v56 }
  0x85   : > { %3065 = vmatmul.msk.f32.gmra.mxu0 %vm209_vm1, %v3436_v5 }
  0x8a   : > { %2900 = vmatmul.msk.f32.gmra.mxu1 %vm209_vm1, %v3657_v54 }
  0x8b   : > { %2934 = vmatmul.msk.f32.gmra.mxu2 %vm209_vm1, %v3682_v57 }
  0x8c   : > { %3000 = vmatmul.msk.f32.gmra.mxu3 %vm209_vm1, %v3685_v58 }
  0x8d   : > { %3066 = vmatmul.msk.f32.gmra.mxu0 %vm209_vm1, %v3453_v9 }
  0x8f   : > { %v3695_v59 = vpop.f32.mrf.mxu1 }
  0x92   : > { %v3703_v62 = vpop.f32.mrf.mxu0  ;;  %2901 = vmatmul.msk.f32.gmra.mxu1 %vm209_vm1, %v3671_v56 }
  0x93   : > { %2935 = vmatmul.msk.f32.gmra.mxu2 %vm209_vm1, %v3698_v60 }
  0x94   : > { %3001 = vmatmul.msk.f32.gmra.mxu3 %vm209_vm1, %v3701_v61 }
  0x95   : > { %3067 = vmatmul.msk.f32.gmra.mxu0 %vm209_vm1, %v3470_v13  ;;  %v3745_v13 = vld [vmem:[%s3433_s24 + $0x90] sm:$0xff] }
  0x96   : > { %v3713_v63 = vpop.f32.mrf.mxu2  ;;  %4762 = vst [vmem:[#allocation9_spill] sm:$0xff] %v3745_v13 }
  0x97   : > { %v3715_v0 = vpop.f32.mrf.mxu3  ;;  %v3717_v1 = vpop.f32.mrf.mxu1 }
  0x98   : > { %4757 = vst [vmem:[#allocation4_spill] sm:$0xff] %v3715_v0 }
  0x9a   : > { %v3725_v4 = vpop.f32.mrf.mxu0  ;;  %2902 = vmatmul.msk.f32.gmra.mxu1 %vm209_vm1, %v3685_v58  ;;  %v3890_v58 = vld [vmem:[%s3433_s24 + $0xe0] sm:$0xff] }
  0x9b   : > { %2936 = vmatmul.msk.f32.gmra.mxu2 %vm209_vm1, %v3720_v2  ;;  %v3887_v2 = vld [vmem:[%s3433_s24 + $0xca] sm:$0xff] }
  0x9c   : > { %3002 = vmatmul.msk.f32.gmra.mxu3 %vm209_vm1, %v3723_v3 }
  0x9d   : > { %3068 = vmatmul.msk.f32.gmra.mxu0 %vm209_vm1, %v3487_v17 }
  0x9e   : > { %v3735_v5 = vpop.f32.mrf.mxu2 }
  0x9f   : > { %v3737_v8 = vpop.f32.mrf.mxu3  ;;  %v3739_v9 = vpop.f32.mrf.mxu1 }
  0xa0   : > { %4760 = vst [vmem:[#allocation7_spill] sm:$0xff] %v3737_v8  ;;  %v3811_v8 = vld [vmem:[%s3433_s24 + $0xb0] sm:$0xff] }
  0xa1   : > { %4772 = vst [vmem:[#allocation19_spill] sm:$0xff] %v3811_v8 }
  0xa2   : > { %v3747_v16 = vpop.f32.mrf.mxu0  ;;  %2903 = vmatmul.msk.f32.gmra.mxu1 %vm209_vm1, %v3701_v61  ;;  %v3875_v61 = vld [vmem:[%s3433_s24 + $0xd8] sm:$0xff] }
  0xa3   : > { %2937 = vmatmul.msk.f32.gmra.mxu2 %vm209_vm1, %v3742_v12 }
  0xa4   : > { %3003 = vmatmul.msk.f32.gmra.mxu3 %vm209_vm1, %v3745_v13 }
  0xa5   : > { %3069 = vmatmul.msk.f32.gmra.mxu0 %vm209_vm1, %v3504_v21 }
  0xa6   : > { %v3757_v17 = vpop.f32.mrf.mxu2 }
  0xa7   : > { %v3759_v20 = vpop.f32.mrf.mxu3  ;;  %v3761_v25 = vpop.f32.mrf.mxu1 }
  0xa8   : > { %4763 = vst [vmem:[#allocation10_spill] sm:$0xff] %v3759_v20  ;;  %v3808_v20 = vld [vmem:[%s3433_s24 + $0x9a] sm:$0xff] }
  0xa9   : > { %4771 = vst [vmem:[#allocation18_spill] sm:$0xff] %v3808_v20 }
  0xaa   : > { %v3769_v32 = vpop.f32.mrf.mxu0  ;;  %2904 = vmatmul.msk.f32.gmra.mxu1 %vm209_vm1, %v3723_v3  ;;  %v3852_v3 = vld [vmem:[%s3433_s24 + $0xb2] sm:$0xff] }
  0xab   : > { %2938 = vmatmul.msk.f32.gmra.mxu2 %vm209_vm1, %v3764_v26  ;;  %4779 = vst [vmem:[#allocation26_spill] sm:$0xff] %v3852_v3 }
  0xac   : > { %3004 = vmatmul.msk.f32.gmra.mxu3 %vm209_vm1, %v3767_v27 }
  0xad   : > { %3070 = vmatmul.msk.f32.gmra.mxu0 %vm209_vm1, %v3536_v28 }
  0xae   : > { %v3779_v21 = vpop.f32.mrf.mxu2 }
  0xaf   : > { %v3781_v41 = vpop.f32.mrf.mxu3  ;;  %v3783_v42 = vpop.f32.mrf.mxu1 }
  0xb0   : > { %4766 = vst [vmem:[#allocation13_spill] sm:$0xff] %v3781_v41 }
  0xb2   : > { %v3791_v45 = vpop.f32.mrf.mxu0  ;;  %2905 = vmatmul.msk.f32.gmra.mxu1 %vm209_vm1, %v3745_v13  ;;  %v3830_v13 = vld [vmem:[%s3433_s24 + $0xaa] sm:$0xff] }
  0xb3   : > { %2939 = vmatmul.msk.f32.gmra.mxu2 %vm209_vm1, %v3786_v43  ;;  %4775 = vst [vmem:[#allocation22_spill] sm:$0xff] %v3830_v13 }
  0xb4   : > { %3005 = vmatmul.msk.f32.gmra.mxu3 %vm209_vm1, %v3789_v44 }
  0xb5   : > { %3071 = vmatmul.msk.f32.gmra.mxu0 %vm209_vm1, %v3560_v33 }
  0xb6   : > { %v3801_v28 = vpop.f32.mrf.mxu2 }
  0xb7   : > { %4769 = vst [vmem:[#allocation16_spill] sm:$0xff] %v3801_v28  ;;  %v3803_v46 = vpop.f32.mrf.mxu3  ;;  %v3805_v41 = vpop.f32.mrf.mxu1 }
  0xb8   : > { %4770 = vst [vmem:[#allocation17_spill] sm:$0xff] %v3803_v46 }
  0xba   : > { %v3813_v0 = vpop.f32.mrf.mxu0  ;;  %2906 = vmatmul.msk.f32.gmra.mxu1 %vm209_vm1, %v3767_v27  ;;  %v3833_v27 = vld [vmem:[%s3433_s24 + $0xc0] sm:$0xff] }
  0xbb   : > { %2940 = vmatmul.msk.f32.gmra.mxu2 %vm209_vm1, %v3808_v20  ;;  %4776 = vst [vmem:[#allocation23_spill] sm:$0xff] %v3833_v27 }
  0xbc   : > { %3006 = vmatmul.msk.f32.gmra.mxu3 %vm209_vm1, %v3811_v8 }
  0xbd   : > { %3072 = vmatmul.msk.f32.gmra.mxu0 %vm209_vm1, %v3580_v37 }
  0xbe   : > { %v3823_v33 = vpop.f32.mrf.mxu2 }
  0xbf   : > { %4773 = vst [vmem:[#allocation20_spill] sm:$0xff] %v3823_v33  ;;  %v3825_v46 = vpop.f32.mrf.mxu3  ;;  %v3827_v43 = vpop.f32.mrf.mxu1 }
  0xc0   : > { %4774 = vst [vmem:[#allocation21_spill] sm:$0xff] %v3825_v46 }
  0xc2   : > { %v3835_v26 = vpop.f32.mrf.mxu0  ;;  %2907 = vmatmul.msk.f32.gmra.mxu1 %vm209_vm1, %v3789_v44  ;;  %v3855_v44 = vld [vmem:[%s3433_s24 + $0xc8] sm:$0xff] }
  0xc3   : > { %2941 = vmatmul.msk.f32.gmra.mxu2 %vm209_vm1, %v3830_v13 }
  0xc4   : > { %3007 = vmatmul.msk.f32.gmra.mxu3 %vm209_vm1, %v3833_v27 }
  0xc5   : > { %3073 = vmatmul.msk.f32.gmra.mxu0 %vm209_vm1, %v3439_v6 }
  0xc6   : > { %v3845_v37 = vpop.f32.mrf.mxu2 }
  0xc7   : > { %4777 = vst [vmem:[#allocation24_spill] sm:$0xff] %v3845_v37  ;;  %v3847_v46 = vpop.f32.mrf.mxu3  ;;  %v3849_v20 = vpop.f32.mrf.mxu1  ;;  %v3872_v37 = vld [vmem:[%s3433_s24 + $0xc2] sm:$0xff] }
  0xc8   : > { %4778 = vst [vmem:[#allocation25_spill] sm:$0xff] %v3847_v46 }
  0xc9   : > { %4782 = vst [vmem:[#allocation29_spill] sm:$0xff] %v3872_v37 }
  0xca   : > { %v3857_v12 = vpop.f32.mrf.mxu0  ;;  %2908 = vmatmul.msk.f32.gmra.mxu1 %vm209_vm1, %v3811_v8 }
  0xcb   : > { %2942 = vmatmul.msk.f32.gmra.mxu2 %vm209_vm1, %v3852_v3 }
  0xcc   : > { %3008 = vmatmul.msk.f32.gmra.mxu3 %vm209_vm1, %v3855_v44 }
  0xcd   : > { %3074 = vmatmul.msk.f32.gmra.mxu0 %vm209_vm1, %v3456_v10 }
  0xce   : > { %v3867_v6 = vpop.f32.mrf.mxu2 }
  0xcf   : > { %4780 = vst [vmem:[#allocation27_spill] sm:$0xff] %v3867_v6  ;;  %v3869_v46 = vpop.f32.mrf.mxu3  ;;  %v539_v13 = vpop.f32.mrf.mxu1 }
  0xd0   : > { %4781 = vst [vmem:[#allocation28_spill] sm:$0xff] %v3869_v46  ;;  %v540_v10 = vadd.f32 %v539_v13, %v3703_v62 }
  0xd2   : > { %v1342_v8 = vpop.f32.mrf.mxu0  ;;  %2909 = vmatmul.msk.f32.gmra.mxu1 %vm209_vm1, %v3833_v27 }
  0xd3   : > { %2943 = vmatmul.msk.f32.gmra.mxu2 %vm209_vm1, %v3872_v37 }
  0xd4   : > { %3009 = vmatmul.msk.f32.gmra.mxu3 %vm209_vm1, %v3875_v61 }
  0xd5   : > { %3075 = vmatmul.msk.f32.gmra.mxu0 %vm209_vm1, %v3473_v14 }
  0xd6   : > { %v785_v46 = vpop.f32.mrf.mxu2 }
  0xd7   : > { %v881_v3 = vadd.f32 %v785_v46, %v540_v10  ;;  %v1064_v6 = vpop.f32.mrf.mxu3  ;;  %v542_v33 = vpop.f32.mrf.mxu1 }
  0xd8   : > { %v543_v14 = vadd.f32 %v542_v33, %v3725_v4 }
  0xd9   : > { %v1160_v27 = vadd.f32 %v1064_v6, %v881_v3  ;;  %v3907_v6 = vld [vmem:[%s3433_s24 + $0xf0] sm:$0xff] }
  0xda   : > { %v1345_v37 = vpop.f32.mrf.mxu0  ;;  %2910 = vmatmul.msk.f32.gmra.mxu1 %vm209_vm1, %v3855_v44 }
  0xdb   : > { %v3892_v28 = vadd.f32 %v1342_v8, %v1160_v27  ;;  %2944 = vmatmul.msk.f32.gmra.mxu2 %vm209_vm1, %v3887_v2  ;;  %v3904_v27 = vld [vmem:[%s3433_s24 + $0xda] sm:$0xff] }
  0xdc   : > { %3010 = vmatmul.msk.f32.gmra.mxu3 %vm209_vm1, %v3890_v58 }
  0xdd   : > { %4783 = vst [vmem:[#allocation30_spill] sm:$0xff] %v3892_v28  ;;  %3076 = vmatmul.msk.f32.gmra.mxu0 %vm209_vm1, %v3490_v18 }
  0xde   : > { %v788_v62 = vpop.f32.mrf.mxu2 }
  0xdf   : > { %v882_v3 = vadd.f32 %v788_v62, %v543_v14  ;;  %v1067_v13 = vpop.f32.mrf.mxu3  ;;  %v545_v8 = vpop.f32.mrf.mxu1  ;;  %v3921_v62 = vld [vmem:[%s3433_s24 + $0xe2] sm:$0xff] }
  0xe0   : > { %v546_v18 = vadd.f32 %v545_v8, %v3747_v16 }
  0xe1   : > { %v1161_v46 = vadd.f32 %v1067_v13, %v882_v3  ;;  %v3924_v13 = vld [vmem:[%s3433_s24 + $0xf8] sm:$0xff] }
  0xe2   : > { %v1348_v10 = vpop.f32.mrf.mxu0  ;;  %2911 = vmatmul.msk.f32.gmra.mxu1 %vm209_vm1, %v3875_v61 }
  0xe3   : > { %v3909_v28 = vadd.f32 %v1345_v37, %v1161_v46  ;;  %2945 = vmatmul.msk.f32.gmra.mxu2 %vm209_vm1, %v3904_v27 }
  0xe4   : > { %3011 = vmatmul.msk.f32.gmra.mxu3 %vm209_vm1, %v3907_v6 }
  0xe5   : > { %4784 = vst [vmem:[#allocation31_spill] sm:$0xff] %v3909_v28  ;;  %3077 = vmatmul.msk.f32.gmra.mxu0 %vm209_vm1, %v3507_v22 }
  0xe6   : > { %v791_v4 = vpop.f32.mrf.mxu2 }
  0xe7   : > { %v883_v33 = vadd.f32 %v791_v4, %v546_v18  ;;  %v1070_v14 = vpop.f32.mrf.mxu3  ;;  %v548_v37 = vpop.f32.mrf.mxu1  ;;  %v3938_v4 = vld [vmem:[%s3433_s24 + $0xf2] sm:$0xff] }
  0xe8   : > { %v549_v22 = vadd.f32 %v548_v37, %v3769_v32 }
  0xe9   : > { %v1162_v3 = vadd.f32 %v1070_v14, %v883_v33  ;;  %v3941_v14 = vld [vmem:[%s3433_s24 + $0x108] sm:$0xff] }
  0xea   : > { %v1351_v46 = vpop.f32.mrf.mxu0  ;;  %2912 = vmatmul.msk.f32.gmra.mxu1 %vm209_vm1, %v3890_v58 }
  0xeb   : > { %v3926_v28 = vadd.f32 %v1348_v10, %v1162_v3  ;;  %2946 = vmatmul.msk.f32.gmra.mxu2 %vm209_vm1, %v3921_v62 }
  0xec   : > { %3012 = vmatmul.msk.f32.gmra.mxu3 %vm209_vm1, %v3924_v13 }
  0xed   : > { %4785 = vst [vmem:[#allocation32_spill] sm:$0xff] %v3926_v28  ;;  %3078 = vmatmul.msk.f32.gmra.mxu0 %vm209_vm1, %v3539_v29 }
  0xee   : > { %v794_v16 = vpop.f32.mrf.mxu2 }
  0xef   : > { %v884_v8 = vadd.f32 %v794_v16, %v549_v22  ;;  %v1073_v18 = vpop.f32.mrf.mxu3  ;;  %v551_v10 = vpop.f32.mrf.mxu1  ;;  %v3955_v16 = vld [vmem:[%s3433_s24 + $0xfa] sm:$0xff] }
  0xf0   : > { %v552_v29 = vadd.f32 %v551_v10, %v3791_v45 }
  0xf1   : > { %v1163_v33 = vadd.f32 %v1073_v18, %v884_v8  ;;  %v3958_v18 = vld [vmem:[%s3433_s24 + $0x110] sm:$0xff] }
  0xf2   : > { %v1354_v3 = vpop.f32.mrf.mxu0  ;;  %2913 = vmatmul.msk.f32.gmra.mxu1 %vm209_vm1, %v3907_v6 }
  0xf3   : > { %v3943_v28 = vadd.f32 %v1351_v46, %v1163_v33  ;;  %2947 = vmatmul.msk.f32.gmra.mxu2 %vm209_vm1, %v3938_v4 }
  0xf4   : > { %3013 = vmatmul.msk.f32.gmra.mxu3 %vm209_vm1, %v3941_v14 }
  0xf5   : > { %4786 = vst [vmem:[#allocation33_spill] sm:$0xff] %v3943_v28  ;;  %3079 = vmatmul.msk.f32.gmra.mxu0 %vm209_vm1, %v3563_v34 }
  0xf6   : > { %v797_v32 = vpop.f32.mrf.mxu2 }
  0xf7   : > { %v885_v37 = vadd.f32 %v797_v32, %v552_v29  ;;  %v1076_v22 = vpop.f32.mrf.mxu3  ;;  %v554_v46 = vpop.f32.mrf.mxu1  ;;  %v3972_v32 = vld [vmem:[%s3433_s24 + $0x10a] sm:$0xff] }
  0xf8   : > { %v555_v34 = vadd.f32 %v554_v46, %v3813_v0 }
  0xf9   : > { %v1164_v8 = vadd.f32 %v1076_v22, %v885_v37  ;;  %v3975_v22 = vld [vmem:[%s3433_s24 + $0x120] sm:$0xff] }
  0xfa   : > { %v1357_v33 = vpop.f32.mrf.mxu0  ;;  %2914 = vmatmul.msk.f32.gmra.mxu1 %vm209_vm1, %v3924_v13 }
  0xfb   : > { %v3960_v28 = vadd.f32 %v1354_v3, %v1164_v8  ;;  %2948 = vmatmul.msk.f32.gmra.mxu2 %vm209_vm1, %v3955_v16 }
  0xfc   : > { %3014 = vmatmul.msk.f32.gmra.mxu3 %vm209_vm1, %v3958_v18 }
  0xfd   : > { %4787 = vst [vmem:[#allocation34_spill] sm:$0xff] %v3960_v28  ;;  %3080 = vmatmul.msk.f32.gmra.mxu0 %vm209_vm1, %v3583_v38 }
  0xfe   : > { %v800_v45 = vpop.f32.mrf.mxu2 }
  0xff   : > { %v886_v10 = vadd.f32 %v800_v45, %v555_v34  ;;  %v1079_v29 = vpop.f32.mrf.mxu3  ;;  %v557_v3 = vpop.f32.mrf.mxu1  ;;  %v3989_v45 = vld [vmem:[%s3433_s24 + $0x112] sm:$0xff] }
 0x100   : > { %v558_v38 = vadd.f32 %v557_v3, %v3835_v26 }
 0x101   : > { %v1165_v37 = vadd.f32 %v1079_v29, %v886_v10  ;;  %v3992_v29 = vld [vmem:[%s3433_s24 + $0x128] sm:$0xff] }
 0x102   : > { %v1360_v8 = vpop.f32.mrf.mxu0  ;;  %2915 = vmatmul.msk.f32.gmra.mxu1 %vm209_vm1, %v3941_v14 }
 0x103   : > { %v3977_v28 = vadd.f32 %v1357_v33, %v1165_v37  ;;  %2949 = vmatmul.msk.f32.gmra.mxu2 %vm209_vm1, %v3972_v32 }
 0x104   : > { %3015 = vmatmul.msk.f32.gmra.mxu3 %vm209_vm1, %v3975_v22 }
 0x105   : > { %4788 = vst [vmem:[#allocation35_spill] sm:$0xff] %v3977_v28  ;;  %3081 = vmatmul.msk.f32.gmra.mxu0 %vm209_vm1, %v3442_v7 }
 0x106   : > { %v803_v0 = vpop.f32.mrf.mxu2 }
 0x107   : > { %v887_v46 = vadd.f32 %v803_v0, %v558_v38  ;;  %v1082_v34 = vpop.f32.mrf.mxu3  ;;  %v560_v33 = vpop.f32.mrf.mxu1  ;;  %v4006_v0 = vld [vmem:[%s3433_s24 + $0x122] sm:$0xff] }
 0x108   : > { %v561_v7 = vadd.f32 %v560_v33, %v3857_v12 }
 0x109   : > { %v1166_v10 = vadd.f32 %v1082_v34, %v887_v46  ;;  %v4009_v34 = vld [vmem:[%s3433_s24 + $0x138] sm:$0xff] }
 0x10a   : > { %v1363_v37 = vpop.f32.mrf.mxu0  ;;  %2916 = vmatmul.msk.f32.gmra.mxu1 %vm209_vm1, %v3958_v18 }
 0x10b   : > { %v3994_v28 = vadd.f32 %v1360_v8, %v1166_v10  ;;  %2950 = vmatmul.msk.f32.gmra.mxu2 %vm209_vm1, %v3989_v45 }
 0x10c   : > { %3016 = vmatmul.msk.f32.gmra.mxu3 %vm209_vm1, %v3992_v29 }
 0x10d   : > { %4789 = vst [vmem:[#allocation36_spill] sm:$0xff] %v3994_v28  ;;  %3082 = vmatmul.msk.f32.gmra.mxu0 %vm209_vm1, %v3459_v11 }
 0x10e   : > { %v806_v26 = vpop.f32.mrf.mxu2 }
 0x10f   : > { %v888_v3 = vadd.f32 %v806_v26, %v561_v7  ;;  %v1085_v38 = vpop.f32.mrf.mxu3  ;;  %v563_v8 = vpop.f32.mrf.mxu1  ;;  %v4023_v26 = vld [vmem:[%s3433_s24 + $0x12a] sm:$0xff] }
 0x110   : > { %v564_v11 = vadd.f32 %v563_v8, %v3695_v59 }
 0x111   : > { %v1167_v46 = vadd.f32 %v1085_v38, %v888_v3  ;;  %v4026_v38 = vld [vmem:[%s3433_s24 + $0x140] sm:$0xff] }
 0x112   : > { %v1366_v10 = vpop.f32.mrf.mxu0  ;;  %2917 = vmatmul.msk.f32.gmra.mxu1 %vm209_vm1, %v3975_v22 }
 0x113   : > { %v4011_v28 = vadd.f32 %v1363_v37, %v1167_v46  ;;  %2951 = vmatmul.msk.f32.gmra.mxu2 %vm209_vm1, %v4006_v0 }
 0x114   : > { %3017 = vmatmul.msk.f32.gmra.mxu3 %vm209_vm1, %v4009_v34 }
 0x115   : > { %4790 = vst [vmem:[#allocation37_spill] sm:$0xff] %v4011_v28  ;;  %3083 = vmatmul.msk.f32.gmra.mxu0 %vm209_vm1, %v3476_v15 }
 0x116   : > { %v809_v12 = vpop.f32.mrf.mxu2 }
 0x117   : > { %v889_v33 = vadd.f32 %v809_v12, %v564_v11  ;;  %v1088_v7 = vpop.f32.mrf.mxu3  ;;  %v566_v37 = vpop.f32.mrf.mxu1  ;;  %v4040_v12 = vld [vmem:[%s3433_s24 + $0x13a] sm:$0xff] }
 0x118   : > { %v567_v15 = vadd.f32 %v566_v37, %v3717_v1 }
 0x119   : > { %v1168_v3 = vadd.f32 %v1088_v7, %v889_v33  ;;  %v4043_v7 = vld [vmem:[%s3433_s24 + $0x150] sm:$0xff] }
 0x11a   : > { %v1369_v46 = vpop.f32.mrf.mxu0  ;;  %2918 = vmatmul.msk.f32.gmra.mxu1 %vm209_vm1, %v3992_v29 }
 0x11b   : > { %v4028_v28 = vadd.f32 %v1366_v10, %v1168_v3  ;;  %2952 = vmatmul.msk.f32.gmra.mxu2 %vm209_vm1, %v4023_v26 }
 0x11c   : > { %3018 = vmatmul.msk.f32.gmra.mxu3 %vm209_vm1, %v4026_v38 }
 0x11d   : > { %4791 = vst [vmem:[#allocation38_spill] sm:$0xff] %v4028_v28  ;;  %3084 = vmatmul.msk.f32.gmra.mxu0 %vm209_vm1, %v3493_v19 }
 0x11e   : > { %v812_v59 = vpop.f32.mrf.mxu2 }
 0x11f   : > { %v890_v8 = vadd.f32 %v812_v59, %v567_v15  ;;  %v1091_v11 = vpop.f32.mrf.mxu3  ;;  %v569_v10 = vpop.f32.mrf.mxu1  ;;  %v4057_v59 = vld [vmem:[%s3433_s24 + $0x142] sm:$0xff] }
 0x120   : > { %v570_v19 = vadd.f32 %v569_v10, %v3739_v9 }
 0x121   : > { %v1169_v33 = vadd.f32 %v1091_v11, %v890_v8  ;;  %v4060_v11 = vld [vmem:[%s3433_s24 + $0x158] sm:$0xff] }
 0x122   : > { %v1372_v3 = vpop.f32.mrf.mxu0  ;;  %2919 = vmatmul.msk.f32.gmra.mxu1 %vm209_vm1, %v4009_v34 }
 0x123   : > { %v4045_v28 = vadd.f32 %v1369_v46, %v1169_v33  ;;  %2953 = vmatmul.msk.f32.gmra.mxu2 %vm209_vm1, %v4040_v12 }
 0x124   : > { %3019 = vmatmul.msk.f32.gmra.mxu3 %vm209_vm1, %v4043_v7 }
 0x125   : > { %4792 = vst [vmem:[#allocation39_spill] sm:$0xff] %v4045_v28  ;;  %3085 = vmatmul.msk.f32.gmra.mxu0 %vm209_vm1, %v3510_v23 }
 0x126   : > { %v815_v1 = vpop.f32.mrf.mxu2 }
 0x127   : > { %v891_v37 = vadd.f32 %v815_v1, %v570_v19  ;;  %v1094_v15 = vpop.f32.mrf.mxu3  ;;  %v572_v46 = vpop.f32.mrf.mxu1  ;;  %v4074_v1 = vld [vmem:[%s3433_s24 + $0x152] sm:$0xff] }
 0x128   : > { %v573_v23 = vadd.f32 %v572_v46, %v3761_v25 }
 0x129   : > { %v1170_v8 = vadd.f32 %v1094_v15, %v891_v37  ;;  %v4077_v15 = vld [vmem:[%s3433_s24 + $0x168] sm:$0xff] }
 0x12a   : > { %v1375_v33 = vpop.f32.mrf.mxu0  ;;  %2920 = vmatmul.msk.f32.gmra.mxu1 %vm209_vm1, %v4026_v38 }
 0x12b   : > { %v4062_v28 = vadd.f32 %v1372_v3, %v1170_v8  ;;  %2954 = vmatmul.msk.f32.gmra.mxu2 %vm209_vm1, %v4057_v59 }
 0x12c   : > { %3020 = vmatmul.msk.f32.gmra.mxu3 %vm209_vm1, %v4060_v11 }
 0x12d   : > { %4793 = vst [vmem:[#allocation40_spill] sm:$0xff] %v4062_v28  ;;  %3086 = vmatmul.msk.f32.gmra.mxu0 %vm209_vm1, %v3542_v30 }
 0x12e   : > { %v818_v9 = vpop.f32.mrf.mxu2 }
 0x12f   : > { %v892_v10 = vadd.f32 %v818_v9, %v573_v23  ;;  %v1097_v19 = vpop.f32.mrf.mxu3  ;;  %v575_v3 = vpop.f32.mrf.mxu1  ;;  %v4091_v9 = vld [vmem:[%s3433_s24 + $0x15a] sm:$0xff] }
 0x130   : > { %v576_v30 = vadd.f32 %v575_v3, %v3783_v42  ;;  %4795 = vst [vmem:[#allocation42_spill] sm:$0xff] %v4091_v9 }
 0x131   : > { %v1171_v37 = vadd.f32 %v1097_v19, %v892_v10  ;;  %v4094_v19 = vld [vmem:[%s3433_s24 + $0x170] sm:$0xff] }
 0x132   : > { %v1378_v8 = vpop.f32.mrf.mxu0  ;;  %2921 = vmatmul.msk.f32.gmra.mxu1 %vm209_vm1, %v4043_v7 }
 0x133   : > { %v4079_v28 = vadd.f32 %v1375_v33, %v1171_v37  ;;  %2955 = vmatmul.msk.f32.gmra.mxu2 %vm209_vm1, %v4074_v1 }
 0x134   : > { %3021 = vmatmul.msk.f32.gmra.mxu3 %vm209_vm1, %v4077_v15 }
 0x135   : > { %4794 = vst [vmem:[#allocation41_spill] sm:$0xff] %v4079_v28  ;;  %3087 = vmatmul.msk.f32.gmra.mxu0 %vm209_vm1, %v3566_v35 }
 0x136   : > { %v821_v25 = vpop.f32.mrf.mxu2 }
 0x137   : > { %v893_v46 = vadd.f32 %v821_v25, %v576_v30  ;;  %v1100_v23 = vpop.f32.mrf.mxu3  ;;  %v578_v33 = vpop.f32.mrf.mxu1 }
 0x138   : > { %v579_v35 = vadd.f32 %v578_v33, %v3805_v41 }
 0x139   : > { %v1172_v10 = vadd.f32 %v1100_v23, %v893_v46  ;;  %v4111_v23 = vld [vmem:[%s3433_s24 + $0x180] sm:$0xff] }
 0x13a   : > { %v1381_v37 = vpop.f32.mrf.mxu0  ;;  %2922 = vmatmul.msk.f32.gmra.mxu1 %vm209_vm1, %v4060_v11 }
 0x13b   : > { %v4096_v28 = vadd.f32 %v1378_v8, %v1172_v10  ;;  %2956 = vmatmul.msk.f32.gmra.mxu2 %vm209_vm1, %v4091_v9  ;;  %v4108_v8 = vld [vmem:[%s3433_s24 + $0x16a] sm:$0xff] }
 0x13c   : > { %3022 = vmatmul.msk.f32.gmra.mxu3 %vm209_vm1, %v4094_v19  ;;  %4797 = vst [vmem:[#allocation44_spill] sm:$0xff] %v4108_v8 }
 0x13d   : > { %4796 = vst [vmem:[#allocation43_spill] sm:$0xff] %v4096_v28  ;;  %3088 = vmatmul.msk.f32.gmra.mxu0 %vm209_vm1, %v3586_v39  ;;  %v4114_v28 = vld [vmem:[%s3433_s24 + $0x181] sm:$0xff] }
 0x13e   : > { %v824_v42 = vpop.f32.mrf.mxu2 }
 0x13f   : > { %v894_v3 = vadd.f32 %v824_v42, %v579_v35  ;;  %v1103_v30 = vpop.f32.mrf.mxu3  ;;  %v581_v25 = vpop.f32.mrf.mxu1 }
 0x140   : > { %v582_v39 = vadd.f32 %v581_v25, %v3827_v43 }
 0x141   : > { %v1173_v46 = vadd.f32 %v1103_v30, %v894_v3  ;;  %v4131_v30 = vld [vmem:[%s3433_s24 + $0x188] sm:$0xff] }
 0x142   : > { %v1384_v10 = vpop.f32.mrf.mxu0  ;;  %2923 = vmatmul.msk.f32.gmra.mxu1 %vm209_vm1, %v4077_v15 }
 0x143   : > { %v4116_v9 = vadd.f32 %v1381_v37, %v1173_v46  ;;  %2957 = vmatmul.msk.f32.gmra.mxu2 %vm209_vm1, %v4108_v8  ;;  %v4128_v37 = vld [vmem:[%s3433_s24 + $0x172] sm:$0xff] }
 0x144   : > { %3023 = vmatmul.msk.f32.gmra.mxu3 %vm209_vm1, %v4111_v23 }
 0x145   : > { %4798 = vst [vmem:[#allocation45_spill] sm:$0xff] %v4116_v9  ;;  %3089 = vmatmul.msk.f32.gmra.mxu0 %vm209_vm1, %v4114_v28  ;;  %v4134_v9 = vld [vmem:[%s3433_s24 + $0x189] sm:$0xff] }
 0x146   : > { %v827_v41 = vpop.f32.mrf.mxu2 }
 0x147   : > { %v895_v33 = vadd.f32 %v827_v41, %v582_v39  ;;  %v1106_v35 = vpop.f32.mrf.mxu3  ;;  %v584_v42 = vpop.f32.mrf.mxu1 }
 0x148   : > { %v585_v43 = vadd.f32 %v584_v42, %v3849_v20 }
 0x149   : > { %v1174_v3 = vadd.f32 %v1106_v35, %v895_v33 }
 0x14a   : > { %v1387_v46 = vpop.f32.mrf.mxu0  ;;  %2924 = vmatmul.msk.f32.gmra.mxu1 %vm209_vm1, %v4094_v19 }
 0x14b   : > { %v4136_v8 = vadd.f32 %v1384_v10, %v1174_v3  ;;  %2958 = vmatmul.msk.f32.gmra.mxu2 %vm209_vm1, %v4128_v37 }
 0x14c   : > { %3024 = vmatmul.msk.f32.gmra.mxu3 %vm209_vm1, %v4131_v30 }
 0x14d   : > { %3090 = vmatmul.msk.f32.gmra.mxu0 %vm209_vm1, %v4134_v9 }
 0x14e   : > { %v830_v25 = vpop.f32.mrf.mxu2 }
 0x14f   : > { %v896_v39 = vadd.f32 %v830_v25, %v585_v43  ;;  %v1109_v41 = vpop.f32.mrf.mxu3  ;;  %v587_v33 = vpop.f32.mrf.mxu1 }
 0x150   : > { %v588_v20 = vadd.f32 %v587_v33, %v3713_v63 }
 0x151   : > { %v1175_v10 = vadd.f32 %v1109_v41, %v896_v39 }
 0x152   : > { %v1390_v35 = vpop.f32.mrf.mxu0  ;;  %3125 = vmatmul.msk.f32.vlgmr.msra.gmra.mxu1 %vm209_vm1, %v3614_v47 }
 0x153   : > { %v4147_v3 = vadd.f32 %v1387_v46, %v1175_v10  ;;  %3191 = vmatmul.msk.f32.vlgmr.msra.gmra.mxu2 %vm209_vm1, %v3617_v48 }
 0x154   : > { %3257 = vmatmul.msk.f32.vlgmr.msra.gmra.mxu3 %vm209_vm1, %v3513_v24 }
 0x155   : > { %3323 = vmatmul.msk.f32.vlgmr.msra.gmra.mxu0 %vm209_vm1, %v3640_v51 }
 0x156   : > { %v833_v42 = vpop.f32.mrf.mxu2 }
 0x157   : > { %v897_v43 = vadd.f32 %v833_v42, %v588_v20  ;;  %v1112_v25 = vpop.f32.mrf.mxu3  ;;  %v590_v39 = vpop.f32.mrf.mxu1 }
 0x158   : > { %v591_v24 = vadd.f32 %v590_v39, %v3735_v5 }
 0x159   : > { %v1176_v46 = vadd.f32 %v1112_v25, %v897_v43 }
 0x15a   : > { %v1393_v41 = vpop.f32.mrf.mxu0  ;;  %3126 = vmatmul.msk.f32.gmra.mxu1 %vm209_vm1, %v3627_v49 }
 0x15b   : > { %v4158_v10 = vadd.f32 %v1390_v35, %v1176_v46  ;;  %3192 = vmatmul.msk.f32.gmra.mxu2 %vm209_vm1, %v3630_v50 }
 0x15c   : > { %3258 = vmatmul.msk.f32.gmra.mxu3 %vm209_vm1, %v3545_v31 }
 0x15d   : > { %3324 = vmatmul.msk.f32.gmra.mxu0 %vm209_vm1, %v3654_v53 }
 0x15e   : > { %v836_v47 = vpop.f32.mrf.mxu2 }
 0x15f   : > { %v898_v48 = vadd.f32 %v836_v47, %v591_v24  ;;  %v1115_v63 = vpop.f32.mrf.mxu3  ;;  %v593_v33 = vpop.f32.mrf.mxu1  ;;  %v3227_v47 = vld [vmem:[%s3433_s24 + $0x61] sm:$0xff] }
 0x160   : > { %v594_v31 = vadd.f32 %v593_v33, %v3757_v17 }
 0x161   : > { %v1177_v35 = vadd.f32 %v1115_v63, %v898_v48 }
 0x162   : > { %v1396_v20 = vpop.f32.mrf.mxu0  ;;  %3127 = vmatmul.msk.f32.gmra.mxu1 %vm209_vm1, %v3640_v51 }
 0x163   : > { %v4169_v42 = vadd.f32 %v1393_v41, %v1177_v35  ;;  %3193 = vmatmul.msk.f32.gmra.mxu2 %vm209_vm1, %v3643_v52 }
 0x164   : > { %3259 = vmatmul.msk.f32.gmra.mxu3 %vm209_vm1, %v3569_v36 }
 0x165   : > { %3325 = vmatmul.msk.f32.gmra.mxu0 %vm209_vm1, %v3668_v55 }
 0x166   : > { %v839_v49 = vpop.f32.mrf.mxu2 }
 0x167   : > { %v899_v50 = vadd.f32 %v839_v49, %v594_v31  ;;  %v1118_v5 = vpop.f32.mrf.mxu3  ;;  %v596_v43 = vpop.f32.mrf.mxu1  ;;  %v3228_v31 = vld [vmem:[%s3433_s24 + $0x69] sm:$0xff] }
 0x168   : > { %v597_v36 = vadd.f32 %v596_v43, %v3779_v21 }
 0x169   : > { %v1178_v25 = vadd.f32 %v1118_v5, %v899_v50  ;;  %v4802_v5 = vld [vmem:[#allocation20_spill] sm:$0xff] }
 0x16a   : > { %v1399_v39 = vpop.f32.mrf.mxu0  ;;  %3128 = vmatmul.msk.f32.gmra.mxu1 %vm209_vm1, %v3654_v53 }
 0x16b   : > { %v4180_v46 = vadd.f32 %v1396_v20, %v1178_v25  ;;  %3194 = vmatmul.msk.f32.gmra.mxu2 %vm209_vm1, %v3657_v54 }
 0x16c   : > { %3260 = vmatmul.msk.f32.gmra.mxu3 %vm209_vm1, %v3589_v40  ;;  %v4799_v40 = vld [vmem:[#allocation16_spill] sm:$0xff] }
 0x16d   : > { %3326 = vmatmul.msk.f32.gmra.mxu0 %vm209_vm1, %v3682_v57 }
 0x16e   : > { %v842_v51 = vpop.f32.mrf.mxu2 }
 0x16f   : > { %v900_v52 = vadd.f32 %v842_v51, %v597_v36  ;;  %v1121_v17 = vpop.f32.mrf.mxu3  ;;  %v599_v41 = vpop.f32.mrf.mxu1 }
 0x170   : > { %v600_v54 = vadd.f32 %v599_v41, %v4799_v40 }
 0x171   : > { %v1179_v24 = vadd.f32 %v1121_v17, %v900_v52  ;;  %v3229_v17 = vld [vmem:[%s3433_s24 + $0x79] sm:$0xff] }
 0x172   : > { %v1402_v48 = vpop.f32.mrf.mxu0  ;;  %3129 = vmatmul.msk.f32.gmra.mxu1 %vm209_vm1, %v3668_v55  ;;  %v4800_v55 = vld [vmem:[#allocation2_spill] sm:$0xff] }
 0x173   : > { %v4192_v53 = vadd.f32 %v1399_v39, %v1179_v24  ;;  %3195 = vmatmul.msk.f32.gmra.mxu2 %vm209_vm1, %v3671_v56  ;;  %v4801_v56 = vld [vmem:[#allocation5_spill] sm:$0xff] }
 0x174   : > { %3261 = vmatmul.msk.f32.gmra.mxu3 %vm209_vm1, %v3227_v47  ;;  %v4804_v47 = vld [vmem:[#allocation8_spill] sm:$0xff] }
 0x175   : > { %3327 = vmatmul.msk.f32.gmra.mxu0 %vm209_vm1, %v3698_v60 }
 0x176   : > { %v845_v21 = vpop.f32.mrf.mxu2 }
 0x177   : > { %v901_v63 = vadd.f32 %v845_v21, %v600_v54  ;;  %v1124_v33 = vpop.f32.mrf.mxu3  ;;  %v602_v35 = vpop.f32.mrf.mxu1 }
 0x178   : > { %v603_v43 = vadd.f32 %v602_v35, %v4802_v5  ;;  %v4808_v5 = vld [vmem:[#allocation27_spill] sm:$0xff] }
 0x179   : > { %v1180_v20 = vadd.f32 %v1124_v33, %v901_v63 }
 0x17a   : > { %v1405_v49 = vpop.f32.mrf.mxu0  ;;  %3130 = vmatmul.msk.f32.gmra.mxu1 %vm209_vm1, %v3682_v57  ;;  %v4803_v57 = vld [vmem:[#allocation3_spill] sm:$0xff] }
 0x17b   : > { %v4203_v50 = vadd.f32 %v1402_v48, %v1180_v20  ;;  %3196 = vmatmul.msk.f32.gmra.mxu2 %vm209_vm1, %v4800_v55  ;;  %v4805_v48 = vld [vmem:[#allocation24_spill] sm:$0xff]  ;;  %v3230_v20 = vld [vmem:[%s3433_s24 + $0x81] sm:$0xff] }
 0x17c   : > { %3262 = vmatmul.msk.f32.gmra.mxu3 %vm209_vm1, %v3228_v31  ;;  %v4807_v55 = vld [vmem:[#allocation11_spill] sm:$0xff] }
 0x17d   : > { %3328 = vmatmul.msk.f32.gmra.mxu0 %vm209_vm1, %v4801_v56 }
 0x17e   : > { %v848_v25 = vpop.f32.mrf.mxu2 }
 0x17f   : > { %v902_v39 = vadd.f32 %v848_v25, %v603_v43  ;;  %v1127_v36 = vpop.f32.mrf.mxu3  ;;  %v605_v51 = vpop.f32.mrf.mxu1 }
 0x180   : > { %v606_v40 = vadd.f32 %v605_v51, %v4805_v48  ;;  %v4810_v48 = vld [vmem:[#allocation14_spill] sm:$0xff] }
 0x181   : > { %v1181_v52 = vadd.f32 %v1127_v36, %v902_v39 }
 0x182   : > { %v1408_v41 = vpop.f32.mrf.mxu0  ;;  %3131 = vmatmul.msk.f32.gmra.mxu1 %vm209_vm1, %v3698_v60  ;;  %v4806_v60 = vld [vmem:[#allocation6_spill] sm:$0xff] }
 0x183   : > { %v4214_v24 = vadd.f32 %v1405_v49, %v1181_v52  ;;  %3197 = vmatmul.msk.f32.gmra.mxu2 %vm209_vm1, %v4803_v57 }
 0x184   : > { %3263 = vmatmul.msk.f32.gmra.mxu3 %vm209_vm1, %v3229_v17  ;;  %v3231_v17 = vld [vmem:[%s3433_s24 + $0x91] sm:$0xff] }
 0x185   : > { %3329 = vmatmul.msk.f32.gmra.mxu0 %vm209_vm1, %v4804_v47 }
 0x186   : > { %v851_v54 = vpop.f32.mrf.mxu2 }
 0x187   : > { %v903_v21 = vadd.f32 %v851_v54, %v606_v40  ;;  %v1130_v63 = vpop.f32.mrf.mxu3  ;;  %v608_v33 = vpop.f32.mrf.mxu1  ;;  %v4811_v40 = vld [vmem:[#allocation4_spill] sm:$0xff] }
 0x188   : > { %v609_v43 = vadd.f32 %v608_v33, %v4808_v5 }
 0x189   : > { %v1182_v35 = vadd.f32 %v1130_v63, %v903_v21 }
 0x18a   : > { %v1411_v31 = vpop.f32.mrf.mxu0  ;;  %3132 = vmatmul.msk.f32.gmra.mxu1 %vm209_vm1, %v4801_v56  ;;  %v4809_v56 = vld [vmem:[#allocation9_spill] sm:$0xff] }
 0x18b   : > { %v4225_v49 = vadd.f32 %v1408_v41, %v1182_v35  ;;  %3198 = vmatmul.msk.f32.gmra.mxu2 %vm209_vm1, %v4806_v60 }
 0x18c   : > { %3264 = vmatmul.msk.f32.gmra.mxu3 %vm209_vm1, %v3230_v20 }
 0x18d   : > { %3330 = vmatmul.msk.f32.gmra.mxu0 %vm209_vm1, %v4807_v55 }
 0x18e   : > { %v854_v25 = vpop.f32.mrf.mxu2 }
 0x18f   : > { %v904_v39 = vadd.f32 %v854_v25, %v609_v43  ;;  %v1133_v36 = vpop.f32.mrf.mxu3  ;;  %v611_v51 = vpop.f32.mrf.mxu1  ;;  %v4813_v43 = vld [vmem:[#allocation18_spill] sm:$0xff]  ;;  %v4814_v25 = vld [vmem:[#allocation7_spill] sm:$0xff] }
 0x190   : > { %v612_v54 = vadd.f32 %v611_v51, %v4811_v40 }
 0x191   : > { %v1183_v52 = vadd.f32 %v1133_v36, %v904_v39 }
 0x192   : > { %v1414_v41 = vpop.f32.mrf.mxu0  ;;  %3133 = vmatmul.msk.f32.gmra.mxu1 %vm209_vm1, %v4804_v47  ;;  %v4812_v47 = vld [vmem:[#allocation12_spill] sm:$0xff] }
 0x193   : > { %v4236_v57 = vadd.f32 %v1411_v31, %v1183_v52  ;;  %3199 = vmatmul.msk.f32.gmra.mxu2 %vm209_vm1, %v4809_v56  ;;  %v3232_v31 = vld [vmem:[%s3433_s24 + $0x99] sm:$0xff]  ;;  %v3233_v56 = vld [vmem:[%s3433_s24 + $0xa9] sm:$0xff] }
 0x194   : > { %3265 = vmatmul.msk.f32.gmra.mxu3 %vm209_vm1, %v3231_v17 }
 0x195   : > { %3331 = vmatmul.msk.f32.gmra.mxu0 %vm209_vm1, %v4810_v48 }
 0x196   : > { %v857_v21 = vpop.f32.mrf.mxu2 }
 0x197   : > { %v905_v63 = vadd.f32 %v857_v21, %v612_v54  ;;  %v1136_v33 = vpop.f32.mrf.mxu3  ;;  %v614_v35 = vpop.f32.mrf.mxu1  ;;  %v4816_v21 = vld [vmem:[#allocation22_spill] sm:$0xff] }
 0x198   : > { %v615_v39 = vadd.f32 %v614_v35, %v4814_v25  ;;  %v3234_v25 = vld [vmem:[%s3433_s24 + $0xb1] sm:$0xff] }
 0x199   : > { %v1184_v20 = vadd.f32 %v1136_v33, %v905_v63  ;;  %v4817_v63 = vld [vmem:[#allocation10_spill] sm:$0xff] }
 0x19a   : > { %v1417_v60 = vpop.f32.mrf.mxu0  ;;  %3134 = vmatmul.msk.f32.gmra.mxu1 %vm209_vm1, %v4807_v55  ;;  %v4815_v55 = vld [vmem:[#allocation15_spill] sm:$0xff] }
 0x19b   : > { %v4247_v5 = vadd.f32 %v1414_v41, %v1184_v20  ;;  %3200 = vmatmul.msk.f32.gmra.mxu2 %vm209_vm1, %v4812_v47 }
 0x19c   : > { %3266 = vmatmul.msk.f32.gmra.mxu3 %vm209_vm1, %v3232_v31 }
 0x19d   : > { %3332 = vmatmul.msk.f32.gmra.mxu0 %vm209_vm1, %v4813_v43 }
 0x19e   : > { %v860_v36 = vpop.f32.mrf.mxu2 }
 0x19f   : > { %v906_v51 = vadd.f32 %v860_v36, %v615_v39  ;;  %v1139_v52 = vpop.f32.mrf.mxu3  ;;  %v617_v17 = vpop.f32.mrf.mxu1 }
 0x1a0   : > { %v618_v33 = vadd.f32 %v617_v17, %v4817_v63 }
 0x1a1   : > { %v1185_v41 = vadd.f32 %v1139_v52, %v906_v51  ;;  %v4819_v51 = vld [vmem:[#allocation26_spill] sm:$0xff]  ;;  %v4820_v52 = vld [vmem:[#allocation13_spill] sm:$0xff] }
 0x1a2   : > { %v1420_v40 = vpop.f32.mrf.mxu0  ;;  %3135 = vmatmul.msk.f32.gmra.mxu1 %vm209_vm1, %v4810_v48  ;;  %v4818_v48 = vld [vmem:[#allocation19_spill] sm:$0xff] }
 0x1a3   : > { %v4258_v54 = vadd.f32 %v1417_v60, %v1185_v41  ;;  %3201 = vmatmul.msk.f32.gmra.mxu2 %vm209_vm1, %v4815_v55 }
 0x1a4   : > { %3267 = vmatmul.msk.f32.gmra.mxu3 %vm209_vm1, %v3233_v56 }
 0x1a5   : > { %3333 = vmatmul.msk.f32.gmra.mxu0 %vm209_vm1, %v4816_v21 }
 0x1a6   : > { %v863_v35 = vpop.f32.mrf.mxu2 }
 0x1a7   : > { %v907_v20 = vadd.f32 %v863_v35, %v618_v33  ;;  %v1142_v31 = vpop.f32.mrf.mxu3  ;;  %v620_v47 = vpop.f32.mrf.mxu1  ;;  %v3235_v33 = vld [vmem:[%s3433_s24 + $0xc1] sm:$0xff] }
 0x1a8   : > { %v621_v17 = vadd.f32 %v620_v47, %v4820_v52  ;;  %v4823_v47 = vld [vmem:[#allocation17_spill] sm:$0xff] }
 0x1a9   : > { %v1186_v60 = vadd.f32 %v1142_v31, %v907_v20  ;;  %v4822_v31 = vld [vmem:[#allocation29_spill] sm:$0xff] }
 0x1aa   : > { %v1423_v39 = vpop.f32.mrf.mxu0  ;;  %3136 = vmatmul.msk.f32.gmra.mxu1 %vm209_vm1, %v4813_v43  ;;  %v4821_v43 = vld [vmem:[#allocation23_spill] sm:$0xff] }
 0x1ab   : > { %v4269_v36 = vadd.f32 %v1420_v40, %v1186_v60  ;;  %3202 = vmatmul.msk.f32.gmra.mxu2 %vm209_vm1, %v4818_v48 }
 0x1ac   : > { %3268 = vmatmul.msk.f32.gmra.mxu3 %vm209_vm1, %v3234_v25 }
 0x1ad   : > { %3334 = vmatmul.msk.f32.gmra.mxu0 %vm209_vm1, %v4819_v51 }
 0x1ae   : > { %v866_v41 = vpop.f32.mrf.mxu2 }
 0x1af   : > { %v908_v56 = vadd.f32 %v866_v41, %v621_v17  ;;  %v1145_v55 = vpop.f32.mrf.mxu3  ;;  %v623_v63 = vpop.f32.mrf.mxu1  ;;  %v3236_v41 = vld [vmem:[%s3433_s24 + $0xc9] sm:$0xff] }
 0x1b0   : > { %v624_v60 = vadd.f32 %v623_v63, %v4823_v47 }
 0x1b1   : > { %v1187_v40 = vadd.f32 %v1145_v55, %v908_v56 }
 0x1b2   : > { %v1426_v35 = vpop.f32.mrf.mxu0  ;;  %3137 = vmatmul.msk.f32.gmra.mxu1 %vm209_vm1, %v4816_v21  ;;  %v4824_v21 = vld [vmem:[#allocation21_spill] sm:$0xff] }
 0x1b3   : > { %v4280_v20 = vadd.f32 %v1423_v39, %v1187_v40  ;;  %3203 = vmatmul.msk.f32.gmra.mxu2 %vm209_vm1, %v4821_v43 }
 0x1b4   : > { %3269 = vmatmul.msk.f32.gmra.mxu3 %vm209_vm1, %v3235_v33 }
 0x1b5   : > { %3335 = vmatmul.msk.f32.gmra.mxu0 %vm209_vm1, %v4822_v31 }
 0x1b6   : > { %v869_v25 = vpop.f32.mrf.mxu2 }
 0x1b7   : > { %v909_v48 = vadd.f32 %v869_v25, %v624_v60  ;;  %v1148_v52 = vpop.f32.mrf.mxu3  ;;  %v626_v17 = vpop.f32.mrf.mxu1  ;;  %v3237_v60 = vld [vmem:[%s3433_s24 + $0xd9] sm:$0xff] }
 0x1b8   : > { %v627_v63 = vadd.f32 %v626_v17, %v4824_v21  ;;  %v3238_v21 = vld [vmem:[%s3433_s24 + $0xe1] sm:$0xff] }
 0x1b9   : > { %v1188_v39 = vadd.f32 %v1148_v52, %v909_v48 }
 0x1ba   : > { %v1429_v56 = vpop.f32.mrf.mxu0  ;;  %3138 = vmatmul.msk.f32.gmra.mxu1 %vm209_vm1, %v4819_v51 }
 0x1bb   : > { %v4291_v55 = vadd.f32 %v1426_v35, %v1188_v39  ;;  %3204 = vmatmul.msk.f32.gmra.mxu2 %vm209_vm1, %v3855_v44  ;;  %v4825_v44 = vld [vmem:[#allocation25_spill] sm:$0xff] }
 0x1bc   : > { %3270 = vmatmul.msk.f32.gmra.mxu3 %vm209_vm1, %v3236_v41 }
 0x1bd   : > { %3336 = vmatmul.msk.f32.gmra.mxu0 %vm209_vm1, %v3887_v2 }
 0x1be   : > { %v872_v40 = vpop.f32.mrf.mxu2 }
 0x1bf   : > { %v910_v33 = vadd.f32 %v872_v40, %v627_v63  ;;  %v1151_v43 = vpop.f32.mrf.mxu3  ;;  %v629_v47 = vpop.f32.mrf.mxu1 }
 0x1c0   : > { %v630_v51 = vadd.f32 %v629_v47, %v4825_v44 }
 0x1c1   : > { %v1189_v35 = vadd.f32 %v1151_v43, %v910_v33 }
 0x1c2   : > { %v1432_v25 = vpop.f32.mrf.mxu0  ;;  %3139 = vmatmul.msk.f32.gmra.mxu1 %vm209_vm1, %v4822_v31 }
 0x1c3   : > { %v4302_v48 = vadd.f32 %v1429_v56, %v1189_v35  ;;  %3205 = vmatmul.msk.f32.gmra.mxu2 %vm209_vm1, %v3875_v61  ;;  %v4826_v61 = vld [vmem:[#allocation28_spill] sm:$0xff] }
 0x1c4   : > { %3271 = vmatmul.msk.f32.gmra.mxu3 %vm209_vm1, %v3237_v60 }
 0x1c5   : > { %3337 = vmatmul.msk.f32.gmra.mxu0 %vm209_vm1, %v3904_v27 }
 0x1c6   : > { %v875_v52 = vpop.f32.mrf.mxu2 }
 0x1c7   : > { %v911_v17 = vadd.f32 %v875_v52, %v630_v51  ;;  %v1154_v39 = vpop.f32.mrf.mxu3  ;;  %v632_v41 = vpop.f32.mrf.mxu1 }
 0x1c8   : > { %v633_v31 = vadd.f32 %v632_v41, %v4826_v61 }
 0x1c9   : > { %v1190_v56 = vadd.f32 %v1154_v39, %v911_v17 }
 0x1ca   : > { %v1435_v63 = vpop.f32.mrf.mxu0  ;;  %3140 = vmatmul.msk.f32.gmra.mxu1 %vm209_vm1, %v3887_v2 }
 0x1cb   : > { %v4313_v40 = vadd.f32 %v1432_v25, %v1190_v56  ;;  %3206 = vmatmul.msk.f32.gmra.mxu2 %vm209_vm1, %v3890_v58  ;;  %v3239_v25 = vld [vmem:[%s3433_s24 + $0xf1] sm:$0xff]  ;;  %v4827_v58 = vld [vmem:[#allocation30_spill] sm:$0xff] }
 0x1cc   : > { %3272 = vmatmul.msk.f32.gmra.mxu3 %vm209_vm1, %v3238_v21  ;;  %v3240_v21 = vld [vmem:[%s3433_s24 + $0xf9] sm:$0xff] }
 0x1cd   : > { %3338 = vmatmul.msk.f32.gmra.mxu0 %vm209_vm1, %v3921_v62 }
 0x1ce   : > { %v878_v33 = vpop.f32.mrf.mxu2 }
 0x1cf   : > { %v912_v43 = vadd.f32 %v878_v33, %v633_v31  ;;  %v1157_v47 = vpop.f32.mrf.mxu3  ;;  %v1620_v35 = vpop.f32.mrf.mxu1 }
 0x1d0   : > { %v1716_v2 = vadd.f32 %v1620_v35, %v4827_v58 }
 0x1d1   : > { %v1191_v60 = vadd.f32 %v1157_v47, %v912_v43 }
 0x1d2   : > { %v2455_v44 = vpop.f32.mrf.mxu0  ;;  %3141 = vmatmul.msk.f32.gmra.mxu1 %vm209_vm1, %v3904_v27  ;;  %v4828_v27 = vld [vmem:[#allocation31_spill] sm:$0xff] }
 0x1d3   : > { %v4324_v51 = vadd.f32 %v1435_v63, %v1191_v60  ;;  %3207 = vmatmul.msk.f32.gmra.mxu2 %vm209_vm1, %v3907_v6  ;;  %v3241_v60 = vld [vmem:[%s3433_s24 + $0x109] sm:$0xff] }
 0x1d4   : > { %3273 = vmatmul.msk.f32.gmra.mxu3 %vm209_vm1, %v3239_v25 }
 0x1d5   : > { %3339 = vmatmul.msk.f32.gmra.mxu0 %vm209_vm1, %v3938_v4 }
 0x1d6   : > { %v1899_v52 = vpop.f32.mrf.mxu2 }
 0x1d7   : > { %v1995_v17 = vadd.f32 %v1899_v52, %v1716_v2  ;;  %v2177_v39 = vpop.f32.mrf.mxu3  ;;  %v1623_v41 = vpop.f32.mrf.mxu1 }
 0x1d8   : > { %v1717_v6 = vadd.f32 %v1623_v41, %v4828_v27  ;;  %v3242_v41 = vld [vmem:[%s3433_s24 + $0x111] sm:$0xff] }
 0x1d9   : > { %v2273_v56 = vadd.f32 %v2177_v39, %v1995_v17 }
 0x1da   : > { %v2458_v63 = vpop.f32.mrf.mxu0  ;;  %3142 = vmatmul.msk.f32.gmra.mxu1 %vm209_vm1, %v3921_v62  ;;  %v4829_v62 = vld [vmem:[#allocation32_spill] sm:$0xff] }
 0x1db   : > { %v4335_v61 = vadd.f32 %v2455_v44, %v2273_v56  ;;  %3208 = vmatmul.msk.f32.gmra.mxu2 %vm209_vm1, %v3924_v13 }
 0x1dc   : > { %3274 = vmatmul.msk.f32.gmra.mxu3 %vm209_vm1, %v3240_v21 }
 0x1dd   : > { %3340 = vmatmul.msk.f32.gmra.mxu0 %vm209_vm1, %v3955_v16 }
 0x1de   : > { %v1902_v31 = vpop.f32.mrf.mxu2 }
 0x1df   : > { %v1996_v33 = vadd.f32 %v1902_v31, %v1717_v6  ;;  %v2180_v43 = vpop.f32.mrf.mxu3  ;;  %v1626_v47 = vpop.f32.mrf.mxu1 }
 0x1e0   : > { %v1718_v13 = vadd.f32 %v1626_v47, %v4829_v62 }
 0x1e1   : > { %v2274_v35 = vadd.f32 %v2180_v43, %v1996_v33  ;;  %v3243_v43 = vld [vmem:[%s3433_s24 + $0x121] sm:$0xff] }
 0x1e2   : > { %v2461_v25 = vpop.f32.mrf.mxu0  ;;  %3143 = vmatmul.msk.f32.gmra.mxu1 %vm209_vm1, %v3938_v4  ;;  %v4830_v4 = vld [vmem:[#allocation33_spill] sm:$0xff] }
 0x1e3   : > { %v4346_v44 = vadd.f32 %v2458_v63, %v2274_v35  ;;  %3209 = vmatmul.msk.f32.gmra.mxu2 %vm209_vm1, %v3941_v14 }
 0x1e4   : > { %3275 = vmatmul.msk.f32.gmra.mxu3 %vm209_vm1, %v3241_v60 }
 0x1e5   : > { %3341 = vmatmul.msk.f32.gmra.mxu0 %vm209_vm1, %v3972_v32 }
 0x1e6   : > { %v1905_v58 = vpop.f32.mrf.mxu2 }
 0x1e7   : > { %v1997_v2 = vadd.f32 %v1905_v58, %v1718_v13  ;;  %v2183_v52 = vpop.f32.mrf.mxu3  ;;  %v1629_v17 = vpop.f32.mrf.mxu1 }
 0x1e8   : > { %v1719_v14 = vadd.f32 %v1629_v17, %v4830_v4 }
 0x1e9   : > { %v2275_v39 = vadd.f32 %v2183_v52, %v1997_v2  ;;  %v3244_v2 = vld [vmem:[%s3433_s24 + $0x129] sm:$0xff] }
 0x1ea   : > { %v2464_v56 = vpop.f32.mrf.mxu0  ;;  %3144 = vmatmul.msk.f32.gmra.mxu1 %vm209_vm1, %v3955_v16  ;;  %v4831_v16 = vld [vmem:[#allocation34_spill] sm:$0xff] }
 0x1eb   : > { %v4357_v21 = vadd.f32 %v2461_v25, %v2275_v39  ;;  %3210 = vmatmul.msk.f32.gmra.mxu2 %vm209_vm1, %v3958_v18 }
 0x1ec   : > { %3276 = vmatmul.msk.f32.gmra.mxu3 %vm209_vm1, %v3242_v41 }
 0x1ed   : > { %3342 = vmatmul.msk.f32.gmra.mxu0 %vm209_vm1, %v3989_v45 }
 0x1ee   : > { %v1908_v63 = vpop.f32.mrf.mxu2 }
 0x1ef   : > { %v1998_v27 = vadd.f32 %v1908_v63, %v1719_v14  ;;  %v2186_v6 = vpop.f32.mrf.mxu3  ;;  %v1632_v31 = vpop.f32.mrf.mxu1  ;;  %v3245_v63 = vld [vmem:[%s3433_s24 + $0x139] sm:$0xff] }
 0x1f0   : > { %v1720_v18 = vadd.f32 %v1632_v31, %v4831_v16 }
 0x1f1   : > { %v2276_v33 = vadd.f32 %v2186_v6, %v1998_v27 }
 0x1f2   : > { %v2467_v47 = vpop.f32.mrf.mxu0  ;;  %3145 = vmatmul.msk.f32.gmra.mxu1 %vm209_vm1, %v3972_v32  ;;  %v4832_v32 = vld [vmem:[#allocation35_spill] sm:$0xff] }
 0x1f3   : > { %v4368_v35 = vadd.f32 %v2464_v56, %v2276_v33  ;;  %3211 = vmatmul.msk.f32.gmra.mxu2 %vm209_vm1, %v3975_v22 }
 0x1f4   : > { %3277 = vmatmul.msk.f32.gmra.mxu3 %vm209_vm1, %v3243_v43 }
 0x1f5   : > { %3343 = vmatmul.msk.f32.gmra.mxu0 %vm209_vm1, %v4006_v0 }
 0x1f6   : > { %v1911_v60 = vpop.f32.mrf.mxu2 }
 0x1f7   : > { %v1999_v25 = vadd.f32 %v1911_v60, %v1720_v18  ;;  %v2189_v62 = vpop.f32.mrf.mxu3  ;;  %v1635_v13 = vpop.f32.mrf.mxu1  ;;  %v3246_v18 = vld [vmem:[%s3433_s24 + $0x141] sm:$0xff] }
 0x1f8   : > { %v1721_v22 = vadd.f32 %v1635_v13, %v4832_v32 }
 0x1f9   : > { %v2277_v58 = vadd.f32 %v2189_v62, %v1999_v25 }
 0x1fa   : > { %v2470_v52 = vpop.f32.mrf.mxu0  ;;  %3146 = vmatmul.msk.f32.gmra.mxu1 %vm209_vm1, %v3989_v45  ;;  %v4833_v45 = vld [vmem:[#allocation36_spill] sm:$0xff] }
 0x1fb   : > { %v4379_v17 = vadd.f32 %v2467_v47, %v2277_v58  ;;  %3212 = vmatmul.msk.f32.gmra.mxu2 %vm209_vm1, %v3992_v29 }
 0x1fc   : > { %3278 = vmatmul.msk.f32.gmra.mxu3 %vm209_vm1, %v3244_v2 }
 0x1fd   : > { %3344 = vmatmul.msk.f32.gmra.mxu0 %vm209_vm1, %v4023_v26 }
 0x1fe   : > { %v1914_v39 = vpop.f32.mrf.mxu2 }
 0x1ff   : > { %v2000_v41 = vadd.f32 %v1914_v39, %v1721_v22  ;;  %v2192_v56 = vpop.f32.mrf.mxu3  ;;  %v1638_v4 = vpop.f32.mrf.mxu1  ;;  %v3247_v39 = vld [vmem:[%s3433_s24 + $0x151] sm:$0xff] }
 0x200   : > { %v1722_v29 = vadd.f32 %v1638_v4, %v4833_v45 }
 0x201   : > { %v2278_v14 = vadd.f32 %v2192_v56, %v2000_v41 }
 0x202   : > { %v2473_v27 = vpop.f32.mrf.mxu0  ;;  %3147 = vmatmul.msk.f32.gmra.mxu1 %vm209_vm1, %v4006_v0  ;;  %v4834_v0 = vld [vmem:[#allocation37_spill] sm:$0xff] }
 0x203   : > { %v4390_v6 = vadd.f32 %v2470_v52, %v2278_v14  ;;  %3213 = vmatmul.msk.f32.gmra.mxu2 %vm209_vm1, %v4009_v34  ;;  %v4835_v52 = vld [vmem:[#allocation38_spill] sm:$0xff] }
 0x204   : > { %3279 = vmatmul.msk.f32.gmra.mxu3 %vm209_vm1, %v3245_v63  ;;  %v4836_v63 = vld [vmem:[#allocation39_spill] sm:$0xff] }
 0x205   : > { %3345 = vmatmul.msk.f32.gmra.mxu0 %vm209_vm1, %v4040_v12 }
 0x206   : > { %v1917_v31 = vpop.f32.mrf.mxu2 }
 0x207   : > { %v2001_v33 = vadd.f32 %v1917_v31, %v1722_v29  ;;  %v2195_v43 = vpop.f32.mrf.mxu3  ;;  %v1641_v47 = vpop.f32.mrf.mxu1  ;;  %v3248_v29 = vld [vmem:[%s3433_s24 + $0x159] sm:$0xff] }
 0x208   : > { %v1723_v34 = vadd.f32 %v1641_v47, %v4834_v0 }
 0x209   : > { %v2279_v16 = vadd.f32 %v2195_v43, %v2001_v33 }
 0x20a   : > { %v2476_v60 = vpop.f32.mrf.mxu0  ;;  %3148 = vmatmul.msk.f32.gmra.mxu1 %vm209_vm1, %v4023_v26 }
 0x20b   : > { %v4401_v25 = vadd.f32 %v2473_v27, %v2279_v16  ;;  %3214 = vmatmul.msk.f32.gmra.mxu2 %vm209_vm1, %v4026_v38 }
 0x20c   : > { %3280 = vmatmul.msk.f32.gmra.mxu3 %vm209_vm1, %v3246_v18  ;;  %v4838_v18 = vld [vmem:[#allocation40_spill] sm:$0xff] }
 0x20d   : > { %3346 = vmatmul.msk.f32.gmra.mxu0 %vm209_vm1, %v4057_v59 }
 0x20e   : > { %v1920_v62 = vpop.f32.mrf.mxu2 }
 0x20f   : > { %v2002_v13 = vadd.f32 %v1920_v62, %v1723_v34  ;;  %v2198_v58 = vpop.f32.mrf.mxu3  ;;  %v1644_v2 = vpop.f32.mrf.mxu1  ;;  %v3249_v34 = vld [vmem:[%s3433_s24 + $0x169] sm:$0xff] }
 0x210   : > { %v1724_v32 = vadd.f32 %v1644_v2, %v4835_v52 }
 0x211   : > { %v2280_v22 = vadd.f32 %v2198_v58, %v2002_v13 }
 0x212   : > { %v2479_v26 = vpop.f32.mrf.mxu0  ;;  %3149 = vmatmul.msk.f32.gmra.mxu1 %vm209_vm1, %v4040_v12  ;;  %v4837_v12 = vld [vmem:[#allocation42_spill] sm:$0xff] }
 0x213   : > { %v4413_v41 = vadd.f32 %v2476_v60, %v2280_v22  ;;  %3215 = vmatmul.msk.f32.gmra.mxu2 %vm209_vm1, %v4043_v7 }
 0x214   : > { %3281 = vmatmul.msk.f32.gmra.mxu3 %vm209_vm1, %v3247_v39 }
 0x215   : > { %3347 = vmatmul.msk.f32.gmra.mxu0 %vm209_vm1, %v4074_v1 }
 0x216   : > { %v1923_v38 = vpop.f32.mrf.mxu2 }
 0x217   : > { %v2003_v56 = vadd.f32 %v1923_v38, %v1724_v32  ;;  %v2201_v4 = vpop.f32.mrf.mxu3  ;;  %v1647_v14 = vpop.f32.mrf.mxu1  ;;  %v4840_v32 = vld [vmem:[#allocation41_spill] sm:$0xff] }
 0x218   : > { %v1725_v27 = vadd.f32 %v1647_v14, %v4836_v63  ;;  %v4841_v63 = vld [vmem:[#allocation43_spill] sm:$0xff] }
 0x219   : > { %v2281_v45 = vadd.f32 %v2201_v4, %v2003_v56 }
 0x21a   : > { %v2482_v31 = vpop.f32.mrf.mxu0  ;;  %3150 = vmatmul.msk.f32.gmra.mxu1 %vm209_vm1, %v4057_v59  ;;  %v4839_v59 = vld [vmem:[#allocation44_spill] sm:$0xff] }
 0x21b   : > { %v4424_v33 = vadd.f32 %v2479_v26, %v2281_v45  ;;  %3216 = vmatmul.msk.f32.gmra.mxu2 %vm209_vm1, %v4060_v11  ;;  %v3250_v26 = vld [vmem:[%s3433_s24 + $0x171] sm:$0xff] }
 0x21c   : > { %3282 = vmatmul.msk.f32.gmra.mxu3 %vm209_vm1, %v3248_v29 }
 0x21d   : > { %3348 = vmatmul.msk.f32.gmra.mxu0 %vm209_vm1, %v4837_v12 }
 0x21e   : > { %v1926_v7 = vpop.f32.mrf.mxu2 }
 0x21f   : > { %v2004_v43 = vadd.f32 %v1926_v7, %v1725_v27  ;;  %v2204_v47 = vpop.f32.mrf.mxu3  ;;  %v1650_v16 = vpop.f32.mrf.mxu1 }
 0x220   : > { %v1726_v60 = vadd.f32 %v1650_v16, %v4838_v18  ;;  %v4842_v16 = vld [vmem:[#allocation45_spill] sm:$0xff] }
 0x221   : > { %v2282_v0 = vadd.f32 %v2204_v47, %v2004_v43 }
 0x222   : > { %v2485_v62 = vpop.f32.mrf.mxu0  ;;  %3151 = vmatmul.msk.f32.gmra.mxu1 %vm209_vm1, %v4074_v1 }
 0x223   : > { %v4435_v13 = vadd.f32 %v2482_v31, %v2282_v0  ;;  %3217 = vmatmul.msk.f32.gmra.mxu2 %vm209_vm1, %v4077_v15  ;;  %v3317_v31 = vld [vmem:[%s3433_s24 + $0x182] sm:$0xff] }
 0x224   : > { %3283 = vmatmul.msk.f32.gmra.mxu3 %vm209_vm1, %v3249_v34  ;;  %v3318_v34 = vld [vmem:[%s3433_s24 + $0x18a] sm:$0xff] }
 0x225   : > { %3349 = vmatmul.msk.f32.gmra.mxu0 %vm209_vm1, %v4839_v59 }
 0x226   : > { %v1929_v11 = vpop.f32.mrf.mxu2 }
 0x227   : > { %v2005_v58 = vadd.f32 %v1929_v11, %v1726_v60  ;;  %v2207_v2 = vpop.f32.mrf.mxu3  ;;  %v1653_v52 = vpop.f32.mrf.mxu1 }
 0x228   : > { %v1727_v22 = vadd.f32 %v1653_v52, %v4840_v32  ;;  %v3253_v32 = vld [vmem:[%s3433_s24 + $0x199] sm:$0xff] }
 0x229   : > { %v2283_v39 = vadd.f32 %v2207_v2, %v2005_v58  ;;  %v3187_v58 = vld [vmem:[%s3433_s24 + $0x198] sm:$0xff] }
 0x22a   : > { %v2488_v38 = vpop.f32.mrf.mxu0  ;;  %3152 = vmatmul.msk.f32.gmra.mxu1 %vm209_vm1, %v4837_v12 }
 0x22b   : > { %v4446_v56 = vadd.f32 %v2485_v62, %v2283_v39  ;;  %3218 = vmatmul.msk.f32.gmra.mxu2 %vm209_vm1, %v4094_v19 }
 0x22c   : > { %3284 = vmatmul.msk.f32.gmra.mxu3 %vm209_vm1, %v3250_v26 }
 0x22d   : > { %3350 = vmatmul.msk.f32.gmra.mxu0 %vm209_vm1, %v4128_v37 }
 0x22e   : > { %v1932_v1 = vpop.f32.mrf.mxu2 }
 0x22f   : > { %v2006_v15 = vadd.f32 %v1932_v1, %v1727_v22  ;;  %v2210_v4 = vpop.f32.mrf.mxu3  ;;  %v1656_v14 = vpop.f32.mrf.mxu1  ;;  %v3319_v22 = vld [vmem:[%s3433_s24 + $0x19a] sm:$0xff] }
 0x230   : > { %v1728_v27 = vadd.f32 %v1656_v14, %v4841_v63  ;;  %v3320_v63 = vld [vmem:[%s3433_s24 + $0x1a2] sm:$0xff] }
 0x231   : > { %v2284_v45 = vadd.f32 %v2210_v4, %v2006_v15  ;;  %v3254_v4 = vld [vmem:[%s3433_s24 + $0x1a1] sm:$0xff] }
 0x232   : > { %v2491_v29 = vpop.f32.mrf.mxu0  ;;  %3153 = vmatmul.msk.f32.gmra.mxu1 %vm209_vm1, %v4839_v59 }
 0x233   : > { %v4457_v7 = vadd.f32 %v2488_v38, %v2284_v45  ;;  %3219 = vmatmul.msk.f32.gmra.mxu2 %vm209_vm1, %v4111_v23  ;;  %v3188_v38 = vld [vmem:[%s3433_s24 + $0x1a0] sm:$0xff] }
 0x234   : > { %3285 = vmatmul.msk.f32.gmra.mxu3 %vm209_vm1, %v4114_v28 }
 0x235   : > { %3351 = vmatmul.msk.f32.gmra.mxu0 %vm209_vm1, %v3317_v31 }
 0x236   : > { %v1935_v19 = vpop.f32.mrf.mxu2 }
 0x237   : > { %v2007_v12 = vadd.f32 %v1935_v19, %v1728_v27  ;;  %v2213_v43 = vpop.f32.mrf.mxu3  ;;  %v1659_v47 = vpop.f32.mrf.mxu1 }
 0x238   : > { %v1729_v18 = vadd.f32 %v1659_v47, %v4842_v16 }
 0x239   : > { %v2285_v60 = vadd.f32 %v2213_v43, %v2007_v12 }
 0x23a   : > { %v2494_v0 = vpop.f32.mrf.mxu0  ;;  %3154 = vmatmul.msk.f32.gmra.mxu1 %vm209_vm1, %v4128_v37 }
 0x23b   : > { %v4468_v62 = vadd.f32 %v2491_v29, %v2285_v60  ;;  %3220 = vmatmul.msk.f32.gmra.mxu2 %vm209_vm1, %v4131_v30 }
 0x23c   : > { %3286 = vmatmul.msk.f32.gmra.mxu3 %vm209_vm1, %v4134_v9 }
 0x23d   : > { %3352 = vmatmul.msk.f32.gmra.mxu0 %vm209_vm1, %v3318_v34 }
 0x23e   : > { %v1938_v28 = vpop.f32.mrf.mxu2 }
 0x23f   : > { %v2008_v23 = vadd.f32 %v1938_v28, %v1729_v18  ;;  %v2216_v59 = vpop.f32.mrf.mxu3  ;;  %v1662_v11 = vpop.f32.mrf.mxu1 }
 0x240   : > { %v1730_v2 = vadd.f32 %v1662_v11, %v4136_v8 }
 0x241   : > { %v2286_v52 = vadd.f32 %v2216_v59, %v2008_v23 }
 0x242   : > { %v2497_v37 = vpop.f32.mrf.mxu0  ;;  %3155 = vmatmul.msk.f32.gmra.mxu1 %vm209_vm1, %v3317_v31 }
 0x243   : > { %v4481_v30 = vadd.f32 %v2494_v0, %v2286_v52  ;;  %3221 = vmatmul.msk.f32.gmra.mxu2 %vm209_vm1, %v3187_v58 }
 0x244   : > { %3287 = vmatmul.msk.f32.gmra.mxu3 %vm209_vm1, %v3253_v32 }
 0x245   : > { %3353 = vmatmul.msk.f32.gmra.mxu0 %vm209_vm1, %v3319_v22 }
 0x246   : > { %v1941_v9 = vpop.f32.mrf.mxu2 }
 0x247   : > { %v2009_v39 = vadd.f32 %v1941_v9, %v1730_v2  ;;  %v2219_v26 = vpop.f32.mrf.mxu3  ;;  %v1665_v8 = vpop.f32.mrf.mxu1 }
 0x248   : > { %v1731_v1 = vadd.f32 %v1665_v8, %v4147_v3 }
 0x249   : > { %v2287_v15 = vadd.f32 %v2219_v26, %v2009_v39 }
 0x24a   : > { %v2500_v14 = vpop.f32.mrf.mxu0  ;;  %3156 = vmatmul.msk.f32.gmra.mxu1 %vm209_vm1, %v3318_v34 }
 0x24b   : > { %v4491_v27 = vadd.f32 %v2497_v37, %v2287_v15  ;;  %3222 = vmatmul.msk.f32.gmra.mxu2 %vm209_vm1, %v3188_v38 }
 0x24c   : > { %3288 = vmatmul.msk.f32.gmra.mxu3 %vm209_vm1, %v3254_v4 }
 0x24d   : > { %3354 = vmatmul.msk.f32.gmra.mxu0 %vm209_vm1, %v3320_v63 }
 0x24e   : > { %v1944_v45 = vpop.f32.mrf.mxu2 }
 0x24f   : > { %v2010_v29 = vadd.f32 %v1944_v45, %v1731_v1  ;;  %v2222_v31 = vpop.f32.mrf.mxu3  ;;  %v1668_v19 = vpop.f32.mrf.mxu1 }
 0x250   : > { %v1732_v3 = vadd.f32 %v1668_v19, %v4158_v10 }
 0x251   : > { %v2288_v12 = vadd.f32 %v2222_v31, %v2010_v29 }
 0x252   : > { %v2503_v43 = vpop.f32.mrf.mxu0 }
 0x253   : > { %v4498_v47 = vadd.f32 %v2500_v14, %v2288_v12 }
 0x255   : > { %4843 = vst [vmem:[#allocation16_spill] sm:$0xff] %v4498_v47 }
 0x256   : > { %v1947_v16 = vpop.f32.mrf.mxu2 }
 0x257   : > { %v2011_v18 = vadd.f32 %v1947_v16, %v1732_v3  ;;  %v2225_v60 = vpop.f32.mrf.mxu3  ;;  %v1671_v0 = vpop.f32.mrf.mxu1 }
 0x258   : > { %v1733_v34 = vadd.f32 %v1671_v0, %v4169_v42 }
 0x259   : > { %v2289_v28 = vadd.f32 %v2225_v60, %v2011_v18 }
 0x25a   : > { %v2506_v23 = vpop.f32.mrf.mxu0 }
 0x25b   : > { %v4501_v59 = vadd.f32 %v2503_v43, %v2289_v28 }
 0x25e   : > { %v1950_v11 = vpop.f32.mrf.mxu2 }
 0x25f   : > { %v2012_v58 = vadd.f32 %v1950_v11, %v1733_v34  ;;  %v2228_v2 = vpop.f32.mrf.mxu3  ;;  %v1674_v52 = vpop.f32.mrf.mxu1  ;;  %v2585_v34 = vsel %vm2583_vm2, %v4346_v44, 0.0  ;;  %v2587_v11 = vsel %vm2583_vm2, %v4357_v21, 0.0 }
 0x260   : > { %v1734_v10 = vadd.f32 %v1674_v52, %v4180_v46  ;;  %v2589_v52 = vsel %vm2583_vm2, %v4368_v35, 0.0 }
 0x261   : > { %v2290_v32 = vadd.f32 %v2228_v2, %v2012_v58 }
 0x262   : > { %v2509_v37 = vpop.f32.mrf.mxu0 }
 0x263   : > { %v4504_v22 = vadd.f32 %v2506_v23, %v2290_v32  ;;  %v2584_v23 = vsel %vm2583_vm2, %v4335_v61, 0.0  ;;  %v2591_v32 = vsel %vm2583_vm2, %v4379_v17, 0.0 }
 0x264   : > { %v2586_v2 = vadd.f32 %v2585_v34, %v2584_v23 }
 0x266   : > { %v1953_v9 = vpop.f32.mrf.mxu2 }
 0x267   : > { %v2013_v39 = vadd.f32 %v1953_v9, %v1734_v10  ;;  %v2231_v26 = vpop.f32.mrf.mxu3  ;;  %v1677_v8 = vpop.f32.mrf.mxu1  ;;  %v2588_v10 = vadd.f32 %v2587_v11, %v2586_v2  ;;  %v2605_v11 = vsel %vm2583_vm2, %v4457_v7, 0.0 }
 0x268   : > { %v1735_v42 = vadd.f32 %v1677_v8, %v4192_v53 }
 0x269   : > { %v2291_v38 = vadd.f32 %v2231_v26, %v2013_v39  ;;  %v2593_v39 = vsel %vm2583_vm2, %v4390_v6, 0.0 }
 0x26a   : > { %v2512_v1 = vpop.f32.mrf.mxu0 }
 0x26b   : > { %v4507_v15 = vadd.f32 %v2509_v37, %v2291_v38  ;;  %v2590_v37 = vadd.f32 %v2589_v52, %v2588_v10  ;;  %v2595_v38 = vsel %vm2583_vm2, %v4401_v25, 0.0  ;;  %v2607_v52 = vsel %vm2583_vm2, %v4468_v62, 0.0 }
 0x26d   : > { %v2592_v8 = vadd.f32 %v2591_v32, %v2590_v37  ;;  %v2609_v37 = vsel %vm2583_vm2, %v4481_v30, 0.0 }
 0x26e   : > { %v1956_v4 = vpop.f32.mrf.mxu2 }
 0x26f   : > { %v2014_v14 = vadd.f32 %v1956_v4, %v1735_v42  ;;  %v2234_v63 = vpop.f32.mrf.mxu3  ;;  %v1680_v45 = vpop.f32.mrf.mxu1  ;;  %v2594_v4 = vadd.f32 %v2593_v39, %v2592_v8 }
 0x270   : > { %v1736_v46 = vadd.f32 %v1680_v45, %v4203_v50  ;;  %v2599_v45 = vsel %vm2583_vm2, %v4424_v33, 0.0 }
 0x271   : > { %v2292_v29 = vadd.f32 %v2234_v63, %v2014_v14  ;;  %v2597_v14 = vsel %vm2583_vm2, %v4413_v41, 0.0  ;;  %v2596_v63 = vadd.f32 %v2595_v38, %v2594_v4  ;;  %v2611_v4 = vsel %vm2583_vm2, %v4491_v27, 0.0 }
 0x272   : > { %v2515_v31 = vpop.f32.mrf.mxu0 }
 0x273   : > { %v4510_v19 = vadd.f32 %v2512_v1, %v2292_v29 }
 0x276   : > { %v1959_v3 = vpop.f32.mrf.mxu2 }
 0x277   : > { %v2015_v12 = vadd.f32 %v1959_v3, %v1736_v46  ;;  %v2237_v43 = vpop.f32.mrf.mxu3  ;;  %v1683_v16 = vpop.f32.mrf.mxu1  ;;  %v2598_v46 = vadd.f32 %v2597_v14, %v2596_v63 }
 0x278   : > { %v1737_v14 = vadd.f32 %v1683_v16, %v4214_v24  ;;  %v2617_v24 = vsel %vm2583_vm2, %v4504_v22, 0.0 }
 0x279   : > { %v2293_v18 = vadd.f32 %v2237_v43, %v2015_v12  ;;  %v2600_v12 = vadd.f32 %v2599_v45, %v2598_v46  ;;  %v2613_v46 = vsel %vm2583_vm2, %v4498_v47, 0.0 }
 0x27a   : > { %v4512_v53 = vpop.f32.mrf.mxu0 }
 0x27b   : > { %v4514_v60 = vadd.f32 %v2515_v31, %v2293_v18  ;;  %v2601_v31 = vsel %vm2583_vm2, %v4435_v13, 0.0  ;;  %v2603_v18 = vsel %vm2583_vm2, %v4446_v56, 0.0 }
 0x27c   : > { %v2602_v23 = vadd.f32 %v2601_v31, %v2600_v12 }
 0x27e   : > { %v1962_v0 = vpop.f32.mrf.mxu2  ;;  %v2604_v2 = vadd.f32 %v2603_v18, %v2602_v23  ;;  %v2615_v23 = vsel %vm2583_vm2, %v4501_v59, 0.0 }
 0x27f   : > { %v2240_v28 = vpop.f32.mrf.mxu3  ;;  %v1686_v50 = vpop.f32.mrf.mxu1  ;;  %v2016_v31 = vadd.f32 %v1962_v0, %v1737_v14 }
 0x280   : > { %v2606_v10 = vadd.f32 %v2605_v11, %v2604_v2  ;;  %v1738_v12 = vadd.f32 %v1686_v50, %v4225_v49  ;;  %v2619_v49 = vsel %vm2583_vm2, %v4507_v15, 0.0 }
 0x281   : > { %v2294_v16 = vadd.f32 %v2240_v28, %v2016_v31 }
 0x282   : > { %v4522_v58 = vpop.f32.mrf.mxu0  ;;  %v2608_v8 = vadd.f32 %v2607_v52, %v2606_v10 }
 0x283   : > { %v4564_v28 = vadd.f32 %v4512_v53, %v2294_v16 }
 0x284   : > { %v2610_v45 = vadd.f32 %v2609_v37, %v2608_v8 }
 0x286   : > { %v1965_v9 = vpop.f32.mrf.mxu2  ;;  %v2612_v18 = vadd.f32 %v2611_v4, %v2610_v45  ;;  %v2621_v45 = vsel %vm2583_vm2, %v4510_v19, 0.0 }
 0x287   : > { %v2243_v26 = vpop.f32.mrf.mxu3  ;;  %v1689_v42 = vpop.f32.mrf.mxu1  ;;  %v2017_v11 = vadd.f32 %v1965_v9, %v1738_v12  ;;  %v2625_v12 = vsel %vm2583_vm2, %v4564_v28, 0.0 }
 0x288   : > { %v1739_v2 = vadd.f32 %v1689_v42, %v4236_v57  ;;  %v2614_v52 = vadd.f32 %v2613_v46, %v2612_v18  ;;  %v2623_v46 = vsel %vm2583_vm2, %v4514_v60, 0.0 }
 0x289   : > { %v2295_v50 = vadd.f32 %v2243_v26, %v2017_v11 }
 0x28a   : > { %v2524_v1 = vpop.f32.mrf.mxu0  ;;  %v2616_v0 = vadd.f32 %v2615_v23, %v2614_v52 }
 0x28b   : > { %v4569_v31 = vadd.f32 %v4522_v58, %v2295_v50 }
 0x28c   : > { %v2618_v42 = vadd.f32 %v2617_v24, %v2616_v0 }
 0x28d   : > { %v2627_v52 = vsel %vm2583_vm2, %v4569_v31, 0.0 }
 0x28e   : > { %v1968_v29 = vpop.f32.mrf.mxu2 }
 0x28f   : > { %v2246_v3 = vpop.f32.mrf.mxu3  ;;  %v1692_v43 = vpop.f32.mrf.mxu1  ;;  %v2018_v37 = vadd.f32 %v1968_v29, %v1739_v2 }
 0x290   : > { %v1740_v8 = vadd.f32 %v1692_v43, %v4247_v5  ;;  %v2620_v43 = vadd.f32 %v2619_v49, %v2618_v42 }
 0x291   : > { %v2296_v29 = vadd.f32 %v2246_v3, %v2018_v37 }
 0x292   : > { %v2527_v34 = vpop.f32.mrf.mxu0 }
 0x293   : > { %v4574_v18 = vadd.f32 %v2524_v1, %v2296_v29 }
 0x295   : > { %v2629_v24 = vsel %vm2583_vm2, %v4574_v18, 0.0 }
 0x296   : > { %v1971_v32 = vpop.f32.mrf.mxu2 }
 0x297   : > { %v2249_v39 = vpop.f32.mrf.mxu3  ;;  %v1695_v38 = vpop.f32.mrf.mxu1  ;;  %v2019_v4 = vadd.f32 %v1971_v32, %v1740_v8  ;;  %v2622_v32 = vadd.f32 %v2621_v45, %v2620_v43 }
 0x298   : > { %v1741_v9 = vadd.f32 %v1695_v38, %v4258_v54 }
 0x299   : > { %v2297_v26 = vadd.f32 %v2249_v39, %v2019_v4  ;;  %v2624_v11 = vadd.f32 %v2623_v46, %v2622_v32 }
 0x29a   : > { %v2530_v63 = vpop.f32.mrf.mxu0 }
 0x29b   : > { %v4578_v58 = vadd.f32 %v2527_v34, %v2297_v26 }
 0x29e   : > { %v1974_v10 = vpop.f32.mrf.mxu2 }
 0x29f   : > { %v2252_v47 = vpop.f32.mrf.mxu3  ;;  %v1698_v14 = vpop.f32.mrf.mxu1  ;;  %v2020_v5 = vadd.f32 %v1974_v10, %v1741_v9 }
 0x2a0   : > { %v1742_v54 = vadd.f32 %v1698_v14, %v4269_v36  ;;  %v2626_v36 = vadd.f32 %v2625_v12, %v2624_v11 }
 0x2a1   : > { %v2298_v53 = vadd.f32 %v2252_v47, %v2020_v5  ;;  %v2631_v47 = vsel %vm2583_vm2, %v4578_v58, 0.0 }
 0x2a2   : > { %v2533_v57 = vpop.f32.mrf.mxu0  ;;  %v2628_v1 = vadd.f32 %v2627_v52, %v2626_v36 }
 0x2a3   : > { %v4582_v16 = vadd.f32 %v2530_v63, %v2298_v53 }
 0x2a4   : > { %v2630_v0 = vadd.f32 %v2629_v24, %v2628_v1 }
 0x2a5   : > { %v2633_v34 = vsel %vm2583_vm2, %v4582_v16, 0.0 }
 0x2a6   : > { %v1977_v38 = vpop.f32.mrf.mxu2  ;;  %v2632_v4 = vadd.f32 %v2631_v47, %v2630_v0 }
 0x2a7   : > { %v2021_v3 = vadd.f32 %v1977_v38, %v1742_v54  ;;  %v2255_v23 = vpop.f32.mrf.mxu3  ;;  %v1701_v2 = vpop.f32.mrf.mxu1 }
 0x2a8   : > { %v1743_v37 = vadd.f32 %v1701_v2, %v4280_v20  ;;  %v2634_v45 = vadd.f32 %v2633_v34, %v2632_v4 }
 0x2a9   : > { %v2299_v39 = vadd.f32 %v2255_v23, %v2021_v3 }
 0x2aa   : > { %v2536_v10 = vpop.f32.mrf.mxu0 }
 0x2ab   : > { %v4587_v8 = vadd.f32 %v2533_v57, %v2299_v39 }
 0x2ad   : > { %v2635_v63 = vsel %vm2583_vm2, %v4587_v8, 0.0 }
 0x2ae   : > { %v1980_v14 = vpop.f32.mrf.mxu2  ;;  %v2636_v20 = vadd.f32 %v2635_v63, %v2634_v45 }
 0x2af   : > { %v2022_v49 = vadd.f32 %v1980_v14, %v1743_v37  ;;  %v2258_v50 = vpop.f32.mrf.mxu3  ;;  %v1704_v9 = vpop.f32.mrf.mxu1 }
 0x2b0   : > { %v1744_v57 = vadd.f32 %v1704_v9, %v4291_v55 }
 0x2b1   : > { %v2300_v42 = vadd.f32 %v2258_v50, %v2022_v49 }
 0x2b2   : > { %v2539_v29 = vpop.f32.mrf.mxu0 }
 0x2b3   : > { %v4593_v5 = vadd.f32 %v2536_v10, %v2300_v42 }
 0x2b5   : > { %v2637_v43 = vsel %vm2583_vm2, %v4593_v5, 0.0 }
 0x2b6   : > { %v2638_v46 = vadd.f32 %v2637_v43, %v2636_v20  ;;  %v1983_v26 = vpop.f32.mrf.mxu2 }
 0x2b7   : > { %v2023_v54 = vadd.f32 %v1983_v26, %v1744_v57  ;;  %v2261_v32 = vpop.f32.mrf.mxu3  ;;  %v1707_v38 = vpop.f32.mrf.mxu1 }
 0x2b8   : > { %v1745_v23 = vadd.f32 %v1707_v38, %v4302_v48 }
 0x2b9   : > { %v2301_v12 = vadd.f32 %v2261_v32, %v2023_v54 }
 0x2ba   : > { %v2542_v3 = vpop.f32.mrf.mxu0 }
 0x2bb   : > { %v4598_v53 = vadd.f32 %v2539_v29, %v2301_v12 }
 0x2bd   : > { %v2639_v11 = vsel %vm2583_vm2, %v4598_v53, 0.0 }
 0x2be   : > { %v2640_v2 = vadd.f32 %v2639_v11, %v2638_v46  ;;  %v1986_v52 = vpop.f32.mrf.mxu2 }
 0x2bf   : > { %v2024_v55 = vadd.f32 %v1986_v52, %v1745_v23  ;;  %v2264_v39 = vpop.f32.mrf.mxu3  ;;  %v1710_v10 = vpop.f32.mrf.mxu1 }
 0x2c0   : > { %v1746_v1 = vadd.f32 %v1710_v10, %v4313_v40  ;;  %v3380_v40 = vmov 256.0  }
 0x2c1   : > { %v2302_v36 = vadd.f32 %v2264_v39, %v2024_v55  ;;  %3370 = vrcp.f32 %v3380_v40 }
 0x2c2   : > { %v2545_v14 = vpop.f32.mrf.mxu0 }
 0x2c3   : > { %v4603_v24 = vadd.f32 %v2542_v3, %v2302_v36 }
 0x2c5   : > { %v2641_v47 = vsel %vm2583_vm2, %v4603_v24, 0.0 }
 0x2c6   : > { %v2642_v37 = vadd.f32 %v2641_v47, %v2640_v2  ;;  %v1989_v0 = vpop.f32.mrf.mxu2 }
 0x2c7   : > { %v2025_v48 = vadd.f32 %v1989_v0, %v1746_v1  ;;  %v2267_v34 = vpop.f32.mrf.mxu3  ;;  %v1713_v50 = vpop.f32.mrf.mxu1 }
 0x2c8   : > { %v1747_v9 = vadd.f32 %v1713_v50, %v4324_v51  ;;  %v3371_v26 = vpop.eup %3370 }
 0x2c9   : > { %v2303_v49 = vadd.f32 %v2267_v34, %v2025_v48  ;;  %v2654_v38 = vmul.f32 256.0, %v3371_v26  ;;  %vm2658_vm3 = vweird.f32 %v3371_v26 }
 0x2ca   : > { %v2548_v57 = vpop.f32.mrf.mxu0 }
 0x2cb   : > { %v4608_v4 = vadd.f32 %v2545_v14, %v2303_v49  ;;  %v2655_v3 = vsub.f32 1.0, %v2654_v38 }
 0x2cd   : > { %v2643_v63 = vsel %vm2583_vm2, %v4608_v4, 0.0  ;;  %v2656_v2 = vmul.f32 %v3371_v26, %v2655_v3 }
 0x2ce   : > { %v2644_v42 = vadd.f32 %v2643_v63, %v2642_v37  ;;  %v1992_v45 = vpop.f32.mrf.mxu2 }
 0x2cf   : > { %v2026_v29 = vadd.f32 %v1992_v45, %v1747_v9  ;;  %v2270_v20 = vpop.f32.mrf.mxu3  ;;  %v2657_v55 = vadd.f32 %v3371_v26, %v2656_v2 }
 0x2d1   : > { %v2304_v43 = vadd.f32 %v2270_v20, %v2026_v29  ;;  %v2659_v10 = vsel %vm2658_vm3, %v3371_v26, %v2657_v55 }
 0x2d3   : > { %v4613_v46 = vadd.f32 %v2548_v57, %v2304_v43 }
 0x2d5   : > { %v2645_v54 = vsel %vm2583_vm2, %v4613_v46, 0.0 }
 0x2d6   : > { %v2646_v32 = vadd.f32 %v2645_v54, %v2644_v42 }
 0x2d8   : > { %v2647_v51 = vrot.slane %v2646_v32, 4 }
 0x2da   : > { %v2648_v12 = vadd.f32 %v2647_v51, %v2646_v32 }
 0x2dc   : > { %v2649_v23 = vrot.slane %v2648_v12, 2 }
 0x2de   : > { %v2650_v11 = vadd.f32 %v2649_v23, %v2648_v12 }
 0x2e0   : > { %v2651_v52 = vrot.slane %v2650_v11, 1 }
 0x2e2   : > { %v2652_v39 = vadd.f32 %v2651_v52, %v2650_v11 }
 0x2e4   : > { %v4617_v36 = vmul.f32 %v2659_v10, %v2652_v39 }
 0x2e6   : > { %v2661_v1 = vsub.f32 %v4335_v61, %v4617_v36  ;;  %v2662_v47 = vsub.f32 %v4346_v44, %v4617_v36  ;;  %v2663_v37 = vsub.f32 %v4357_v21, %v4617_v36  ;;  %v2664_v0 = vsub.f32 %v4368_v35, %v4617_v36 }
 0x2e7   : > { %v2665_v34 = vsub.f32 %v4379_v17, %v4617_v36  ;;  %v2666_v50 = vsub.f32 %v4390_v6, %v4617_v36  ;;  %v2667_v21 = vsub.f32 %v4401_v25, %v4617_v36  ;;  %v2668_v17 = vsub.f32 %v4413_v41, %v4617_v36 }
 0x2e8   : > { %v2693_v14 = vmul.f32 %v2661_v1, %v2661_v1  ;;  %v2694_v48 = vmul.f32 %v2662_v47, %v2662_v47  ;;  %v2695_v49 = vmul.f32 %v2663_v37, %v2663_v37  ;;  %v2696_v9 = vmul.f32 %v2664_v0, %v2664_v0 }
 0x2e9   : > { %v2697_v42 = vmul.f32 %v2665_v34, %v2665_v34  ;;  %v2698_v40 = vmul.f32 %v2666_v50, %v2666_v50  ;;  %v2669_v20 = vsub.f32 %v4424_v33, %v4617_v36  ;;  %v2699_v57 = vmul.f32 %v2667_v21, %v2667_v21 }
 0x2ea   : > { %v2725_v61 = vsel %vm2583_vm2, %v2693_v14, 0.0  ;;  %v2726_v44 = vsel %vm2583_vm2, %v2694_v48, 0.0  ;;  %v2728_v35 = vsel %vm2583_vm2, %v2695_v49, 0.0  ;;  %v2730_v29 = vsel %vm2583_vm2, %v2696_v9, 0.0 }
 0x2eb   : > { %v2727_v63 = vadd.f32 %v2726_v44, %v2725_v61  ;;  %v2732_v43 = vsel %vm2583_vm2, %v2697_v42, 0.0  ;;  %v2670_v25 = vsub.f32 %v4435_v13, %v4617_v36  ;;  %v2700_v54 = vmul.f32 %v2668_v17, %v2668_v17 }
 0x2ec   : > { %v2734_v32 = vsel %vm2583_vm2, %v2698_v40, 0.0  ;;  %v2671_v41 = vsub.f32 %v4446_v56, %v4617_v36  ;;  %v2701_v51 = vmul.f32 %v2669_v20, %v2669_v20  ;;  %v2736_v12 = vsel %vm2583_vm2, %v2699_v57, 0.0 }
 0x2ed   : > { %v2729_v45 = vadd.f32 %v2728_v35, %v2727_v63  ;;  %v2672_v33 = vsub.f32 %v4457_v7, %v4617_v36  ;;  %v2702_v23 = vmul.f32 %v2670_v25, %v2670_v25  ;;  %v2738_v11 = vsel %vm2583_vm2, %v2700_v54, 0.0 }
 0x2ee   : > { %v2673_v13 = vsub.f32 %v4468_v62, %v4617_v36  ;;  %v2703_v52 = vmul.f32 %v2671_v41, %v2671_v41  ;;  %v2740_v55 = vsel %vm2583_vm2, %v2701_v51, 0.0  ;;  %v2674_v56 = vsub.f32 %v4481_v30, %v4617_v36  ;;  %v4844_v62 = vld [vmem:[#allocation16_spill] sm:$0xff] }
 0x2ef   : > { %v2731_v6 = vadd.f32 %v2730_v29, %v2729_v45  ;;  %v2704_v10 = vmul.f32 %v2672_v33, %v2672_v33  ;;  %v2742_v1 = vsel %vm2583_vm2, %v2702_v23, 0.0  ;;  %v2675_v7 = vsub.f32 %v4491_v27, %v4617_v36 }
 0x2f0   : > { %v2705_v37 = vmul.f32 %v2673_v13, %v2673_v13  ;;  %v2744_v0 = vsel %vm2583_vm2, %v2703_v52, 0.0  ;;  %v2676_v48 = vsub.f32 %v4844_v62, %v4617_v36  ;;  %v2706_v34 = vmul.f32 %v2674_v56, %v2674_v56 }
 0x2f1   : > { %v2733_v26 = vadd.f32 %v2732_v43, %v2731_v6  ;;  %v2746_v49 = vsel %vm2583_vm2, %v2704_v10, 0.0  ;;  %v2677_v30 = vsub.f32 %v4501_v59, %v4617_v36  ;;  %v2707_v9 = vmul.f32 %v2675_v7, %v2675_v7 }
 0x2f2   : > { %v2748_v61 = vsel %vm2583_vm2, %v2705_v37, 0.0  ;;  %v2678_v27 = vsub.f32 %v4504_v22, %v4617_v36  ;;  %v2708_v63 = vmul.f32 %v2676_v48, %v2676_v48  ;;  %v2750_v21 = vsel %vm2583_vm2, %v2706_v34, 0.0 }
 0x2f3   : > { %v2735_v38 = vadd.f32 %v2734_v32, %v2733_v26  ;;  %v2679_v35 = vsub.f32 %v4507_v15, %v4617_v36  ;;  %v2709_v45 = vmul.f32 %v2677_v30, %v2677_v30  ;;  %v2752_v17 = vsel %vm2583_vm2, %v2707_v9, 0.0 }
 0x2f4   : > { %v2680_v59 = vsub.f32 %v4510_v19, %v4617_v36  ;;  %v2710_v29 = vmul.f32 %v2678_v27, %v2678_v27  ;;  %v2754_v6 = vsel %vm2583_vm2, %v2708_v63, 0.0  ;;  %v2681_v22 = vsub.f32 %v4514_v60, %v4617_v36 }
 0x2f5   : > { %v2737_v3 = vadd.f32 %v2736_v12, %v2735_v38  ;;  %v2711_v57 = vmul.f32 %v2679_v35, %v2679_v35  ;;  %v2756_v43 = vsel %vm2583_vm2, %v2709_v45, 0.0  ;;  %v2682_v15 = vsub.f32 %v4564_v28, %v4617_v36 }
 0x2f6   : > { %v2712_v25 = vmul.f32 %v2680_v59, %v2680_v59  ;;  %v2758_v54 = vsel %vm2583_vm2, %v2710_v29, 0.0  ;;  %v2683_v19 = vsub.f32 %v4569_v31, %v4617_v36  ;;  %v2713_v38 = vmul.f32 %v2681_v22, %v2681_v22 }
 0x2f7   : > { %v2739_v2 = vadd.f32 %v2738_v11, %v2737_v3  ;;  %v2760_v41 = vsel %vm2583_vm2, %v2711_v57, 0.0  ;;  %v2684_v60 = vsub.f32 %v4574_v18, %v4617_v36  ;;  %v2714_v12 = vmul.f32 %v2682_v15, %v2682_v15 }
 0x2f8   : > { %v2762_v3 = vsel %vm2583_vm2, %v2712_v25, 0.0  ;;  %v2685_v28 = vsub.f32 %v4578_v58, %v4617_v36  ;;  %v2715_v23 = vmul.f32 %v2683_v19, %v2683_v19  ;;  %v2764_v11 = vsel %vm2583_vm2, %v2713_v38, 0.0 }
 0x2f9   : > { %v2741_v39 = vadd.f32 %v2740_v55, %v2739_v2  ;;  %v2686_v31 = vsub.f32 %v4582_v16, %v4617_v36  ;;  %v2716_v13 = vmul.f32 %v2684_v60, %v2684_v60  ;;  %v2766_v52 = vsel %vm2583_vm2, %v2714_v12, 0.0 }
 0x2fa   : > { %v2687_v18 = vsub.f32 %v4587_v8, %v4617_v36  ;;  %v2768_v56 = vsel %vm2583_vm2, %v2715_v23, 0.0  ;;  %v2688_v58 = vsub.f32 %v4593_v5, %v4617_v36  ;;  %v2689_v16 = vsub.f32 %v4598_v53, %v4617_v36 }
 0x2fb   : > { %v2743_v47 = vadd.f32 %v2742_v1, %v2741_v39  ;;  %v2717_v39 = vmul.f32 %v2685_v28, %v2685_v28  ;;  %v2718_v1 = vmul.f32 %v2686_v31, %v2686_v31  ;;  %v2690_v8 = vsub.f32 %v4603_v24, %v4617_v36 }
 0x2fc   : > { %v2719_v37 = vmul.f32 %v2687_v18, %v2687_v18  ;;  %v2720_v62 = vmul.f32 %v2688_v58, %v2688_v58  ;;  %v2691_v5 = vsub.f32 %v4608_v4, %v4617_v36  ;;  %v2692_v53 = vsub.f32 %v4613_v46, %v4617_v36 }
 0x2fd   : > { %v2745_v14 = vadd.f32 %v2744_v0, %v2743_v47  ;;  %v2770_v47 = vsel %vm2583_vm2, %v2716_v13, 0.0  ;;  %v2772_v0 = vsel %vm2583_vm2, %v2717_v39, 0.0  ;;  %v2774_v48 = vsel %vm2583_vm2, %v2718_v1, 0.0 }
 0x2fe   : > { %v2722_v9 = vmul.f32 %v2690_v8, %v2690_v8  ;;  %v2723_v24 = vmul.f32 %v2691_v5, %v2691_v5 }
 0x2ff   : > { %v2747_v50 = vadd.f32 %v2746_v49, %v2745_v14  ;;  %v2721_v49 = vmul.f32 %v2689_v16, %v2689_v16 }
 0x300   : > { %v2784_v35 = vsel %vm2583_vm2, %v2723_v24, 0.0 }
 0x301   : > { %v2749_v44 = vadd.f32 %v2748_v61, %v2747_v50  ;;  %v2776_v50 = vsel %vm2583_vm2, %v2719_v37, 0.0  ;;  %v2778_v61 = vsel %vm2583_vm2, %v2720_v62, 0.0  ;;  %v2780_v27 = vsel %vm2583_vm2, %v2721_v49, 0.0 }
 0x303   : > { %v2751_v42 = vadd.f32 %v2750_v21, %v2749_v44  ;;  %v2724_v21 = vmul.f32 %v2692_v53, %v2692_v53 }
 0x305   : > { %v2753_v40 = vadd.f32 %v2752_v17, %v2751_v42  ;;  %v2782_v42 = vsel %vm2583_vm2, %v2722_v9, 0.0  ;;  %v2786_v17 = vsel %vm2583_vm2, %v2724_v21, 0.0 }
 0x307   : > { %v2755_v20 = vadd.f32 %v2754_v6, %v2753_v40 }
 0x309   : > { %v2757_v26 = vadd.f32 %v2756_v43, %v2755_v20 }
 0x30b   : > { %v2759_v32 = vadd.f32 %v2758_v54, %v2757_v26 }
 0x30d   : > { %v2761_v51 = vadd.f32 %v2760_v41, %v2759_v32 }
 0x30f   : > { %v2763_v33 = vadd.f32 %v2762_v3, %v2761_v51 }
 0x311   : > { %v2765_v2 = vadd.f32 %v2764_v11, %v2763_v33 }
 0x313   : > { %v2767_v55 = vadd.f32 %v2766_v52, %v2765_v2 }
 0x315   : > { %v2769_v10 = vadd.f32 %v2768_v56, %v2767_v55 }
 0x317   : > { %v2771_v7 = vadd.f32 %v2770_v47, %v2769_v10 }
 0x319   : > { %v2773_v14 = vadd.f32 %v2772_v0, %v2771_v7 }
 0x31b   : > { %v2775_v34 = vadd.f32 %v2774_v48, %v2773_v14 }
 0x31d   : > { %v2777_v30 = vadd.f32 %v2776_v50, %v2775_v34 }
 0x31f   : > { %v2779_v44 = vadd.f32 %v2778_v61, %v2777_v30 }
 0x321   : > { %v2781_v63 = vadd.f32 %v2780_v27, %v2779_v44 }
 0x323   : > { %v2783_v4 = vadd.f32 %v2782_v42, %v2781_v63 }
 0x325   : > { %v2785_v45 = vadd.f32 %v2784_v35, %v2783_v4 }
 0x327   : > { %v2787_v40 = vadd.f32 %v2786_v17, %v2785_v45 }
 0x329   : > { %v2788_v46 = vrot.slane %v2787_v40, 4 }
 0x32b   : > { %v2789_v59 = vadd.f32 %v2788_v46, %v2787_v40 }
 0x32d   : > { %v2790_v29 = vrot.slane %v2789_v59, 2 }
 0x32f   : > { %v2791_v6 = vadd.f32 %v2790_v29, %v2789_v59 }
 0x331   : > { %v2792_v20 = vrot.slane %v2791_v6, 1 }
 0x333   : > { %v2793_v22 = vadd.f32 %v2792_v20, %v2791_v6 }
 0x335   : > { %v2795_v57 = vsel %vm2794_vm4, %v4617_v36, %v2793_v22 }
 0x336   : > { %2797 = vst.msk [vmem:[%s141_s8] sm:$0x3] %vm2796_vm5, %v2795_v57 }
 0x337 PF: > { %s12_s9 = sadd.s32 1, %s3378_s9  }
 0x338   : > { %p9_p4 = scmp.ge.s32.totalorder %s12_s9, 4  }
 0x33a   :  { %11 = sbr.rel (!%p9_p4) target bundleno = 1 (0x1), region = 68 }

// kernel: conv_block_forward.7
= control target key start
LH: loop header
LB: loop body
LE: loop exit
PB: predicated region body
PF: predicated region fallthrough
CT: control target
= control target key end

     0   :  { %s3349_s15 = smov 0   ;;  %s4524_s0 = inlined_call_operand.vmem [shape: f32[2,18,18,8], index: 0, kind: input, shape index: {}]   ;;  %s4525_s1 = inlined_call_operand.vmem [shape: f32[9,8,8], index: 1, kind: input, shape index: {}]   ;;  %s4526_s2 = inlined_call_operand.vmem [shape: f32[1,8], index: 2, kind: input, shape index: {}]   ;;  %s4527_s3 = inlined_call_operand.vmem [shape: f32[1,8], index: 3, kind: input, shape index: {}]   ;;  %s4528_s4 = inlined_call_operand.vmem [shape: f32[512,8], index: 4, kind: output, shape index: {}]  }
   0x1 LB: > { %s3355_s16 = sadd.s32 4294967295, %s3322_s15   ;;  %p2808_p0 = scmp.ge.s32.totalorder %s3322_s15, 1  ;;  %s3322_s15 = sphi %s3349_s15, %s14_s15  }
   0x2   : > { %p162_p1 = scmp.lt.s32.totalorder %s3322_s15, 3 }
   0x4   : > { %p163_p2 = pnand %p2808_p0, %p162_p1 }
   0x6   : > { %166 = sbr.rel (%p163_p2) target bundleno = 733 (0x2dd), region = 36 }
   0xb   : > { %v2812_v0 = vld [vmem:[%s4525_s1 + $0x8] sm:$0xff]  ;;  %p188_p3 = scmp.lt.s32.totalorder %s3355_s16, 1  ;;  %v2877_v1 = vld [vmem:[%s4525_s1 + $0x10] sm:$0xff]  ;;  %v2942_v2 = vld [vmem:[%s4525_s1 + $0x18] sm:$0xff]  ;;  %vm266_vm0 = vcmask 64512   ;;  %s2810_s14 = sshll.u32 %s3355_s16, 5 }
   0xc   : > { %3302 = vmatpush.msra.mxu1 %v2812_v0  ;;  %3303 = vmatpush.msra.mxu2 %v2812_v0  ;;  %v231_v3 = vld [vmem:[%s4525_s1] sm:$0xff]  ;;  %v3137_v25 = vld [vmem:[%s4525_s1 + $0x30] sm:$0xff]  ;;  %v3202_v26 = vld [vmem:[%s4525_s1 + $0x38] sm:$0xff]  ;;  %p194_p4 = scmp.lt.s32.totalorder %s2810_s14, 63 }
   0xd   : > { %s189_s25 = scalar_select %p188_p3, %s3355_s16, 1  ;;  %3304 = vmatpush.msra.mxu3 %v2812_v0  ;;  %v3007_v4 = vld [vmem:[%s4525_s1 + $0x20] sm:$0xff]  ;;  %378 = vmatpush.msra.mxu0 %v2812_v0  ;;  %v3072_v27 = vld [vmem:[%s4525_s1 + $0x28] sm:$0xff] }
   0xe   : > { %830 = vmatpush.msrb.mxu2 %v2877_v1  ;;  %587 = vmatpush.msrb.mxu1 %v231_v3  ;;  %v3267_v32 = vld [vmem:[%s4525_s1 + $0x40] sm:$0xff]  ;;  %s4632_s14 = smov (!%p194_p4, %s2810_s14), 63 }
   0xf   : > { %1106 = vmatpush.msrb.mxu3 %v2942_v2  ;;  %s3305_s28 = smul.u32 432, %s189_s25  ;;  %1381 = vmatpush.msrb.mxu0 %v3007_v4  ;;  %s2811_s20 = sshll.u32 %s4632_s14, 3 }
  0x10   : > { %s4257_s23 = scalar_lea.vmem %s4528_s4, %s2811_s20 }
  0x11   : > { %s3379_s5 = scalar_lea.vmem %s4524_s0, %s3305_s28 }
  0x12   : > { %v3382_v5 = vld [vmem:[%s3379_s5 + $0x61] sm:$0xff]  ;;  %v3399_v9 = vld [vmem:[%s3379_s5 + $0x69] sm:$0xff]  ;;  %v3416_v13 = vld [vmem:[%s3379_s5 + $0x79] sm:$0xff] }
  0x13   : > { %v3385_v6 = vld [vmem:[%s3379_s5 + $0xc1] sm:$0xff]  ;;  %2821 = vmatmul.msk.f32.vlgmr.msra.gmra.mxu1 %vm266_vm0, %v3382_v5  ;;  %v3402_v10 = vld [vmem:[%s3379_s5 + $0xc9] sm:$0xff]  ;;  %v3419_v14 = vld [vmem:[%s3379_s5 + $0xd9] sm:$0xff] }
  0x14   : > { %v3388_v7 = vld [vmem:[%s3379_s5 + $0x121] sm:$0xff]  ;;  %2829 = vmatmul.msk.f32.vlgmr.msra.gmra.mxu2 %vm266_vm0, %v3385_v6  ;;  %v3405_v11 = vld [vmem:[%s3379_s5 + $0x129] sm:$0xff]  ;;  %v3422_v15 = vld [vmem:[%s3379_s5 + $0x139] sm:$0xff]  ;;  %1656 = vmatpush.msra.mxu1 %v3072_v27 }
  0x15   : > { %v232_v8 = vld [vmem:[%s3379_s5 + $0x1] sm:$0xff]  ;;  %2837 = vmatmul.msk.f32.vlgmr.msra.gmra.mxu3 %vm266_vm0, %v3388_v7  ;;  %v233_v12 = vld [vmem:[%s3379_s5 + $0x9] sm:$0xff]  ;;  %v234_v16 = vld [vmem:[%s3379_s5 + $0x19] sm:$0xff]  ;;  %1932 = vmatpush.msra.mxu2 %v3137_v25 }
  0x16   : > { %2813 = vmatmul.msk.f32.vlgmr.msra.gmra.mxu0 %vm266_vm0, %v232_v8  ;;  %v3433_v17 = vld [vmem:[%s3379_s5 + $0x81] sm:$0xff]  ;;  %v3450_v21 = vld [vmem:[%s3379_s5 + $0x91] sm:$0xff]  ;;  %2207 = vmatpush.msra.mxu3 %v3202_v26  ;;  %v3479_v28 = vld [vmem:[%s3379_s5 + $0x99] sm:$0xff] }
  0x17   : > { %v3436_v18 = vld [vmem:[%s3379_s5 + $0xe1] sm:$0xff]  ;;  %v3453_v22 = vld [vmem:[%s3379_s5 + $0xf1] sm:$0xff]  ;;  %v3482_v29 = vld [vmem:[%s3379_s5 + $0xf9] sm:$0xff]  ;;  %2482 = vmatpush.msra.mxu0 %v3267_v32 }
  0x18   : > { %v3439_v19 = vld [vmem:[%s3379_s5 + $0x141] sm:$0xff]  ;;  %v3456_v23 = vld [vmem:[%s3379_s5 + $0x151] sm:$0xff]  ;;  %v3485_v30 = vld [vmem:[%s3379_s5 + $0x159] sm:$0xff] }
  0x19   : > { %v235_v20 = vld [vmem:[%s3379_s5 + $0x21] sm:$0xff]  ;;  %v3459_v24 = vld [vmem:[%s3379_s5 + $0x31] sm:$0xff]  ;;  %v3488_v31 = vld [vmem:[%s3379_s5 + $0x39] sm:$0xff] }
  0x1a   : > { %v3502_v33 = vld [vmem:[%s3379_s5 + $0xa9] sm:$0xff]  ;;  %v3522_v37 = vld [vmem:[%s3379_s5 + $0xb1] sm:$0xff]  ;;  %v199_v41 = vld [vmem:[%s3379_s5] sm:$0xff] }
  0x1b   : > { %2822 = vmatmul.msk.f32.gmra.mxu1 %vm266_vm0, %v3399_v9  ;;  %v3505_v34 = vld [vmem:[%s3379_s5 + $0x109] sm:$0xff]  ;;  %v3525_v38 = vld [vmem:[%s3379_s5 + $0x111] sm:$0xff]  ;;  %v2911_v46 = vld [vmem:[%s3379_s5 + $0x20] sm:$0xff] }
  0x1c   : > { %2830 = vmatmul.msk.f32.gmra.mxu2 %vm266_vm0, %v3402_v10  ;;  %v3508_v35 = vld [vmem:[%s3379_s5 + $0x169] sm:$0xff]  ;;  %v3528_v39 = vld [vmem:[%s3379_s5 + $0x171] sm:$0xff]  ;;  %v3556_v47 = vld [vmem:[%s3379_s5 + $0x1a] sm:$0xff] }
  0x1d   : > { %2838 = vmatmul.msk.f32.gmra.mxu3 %vm266_vm0, %v3405_v11  ;;  %v3511_v36 = vld [vmem:[%s3379_s5 + $0x49] sm:$0xff]  ;;  %v3531_v40 = vld [vmem:[%s3379_s5 + $0x51] sm:$0xff]  ;;  %v3596_v53 = vld [vmem:[%s3379_s5 + $0x3a] sm:$0xff] }
  0x1e   : > { %2814 = vmatmul.msk.f32.gmra.mxu0 %vm266_vm0, %v233_v12  ;;  %v685_v42 = vld [vmem:[%s3379_s5 + $0x2] sm:$0xff]  ;;  %v2910_v43 = vld [vmem:[%s3379_s5 + $0x18] sm:$0xff]  ;;  %v686_v45 = vld [vmem:[%s3379_s5 + $0xa] sm:$0xff] }
  0x1f   : > { %v200_v44 = vld [vmem:[%s3379_s5 + $0x8] sm:$0xff]  ;;  %v3559_v48 = vld [vmem:[%s3379_s5 + $0x30] sm:$0xff]  ;;  %v3572_v50 = vld [vmem:[%s3379_s5 + $0x38] sm:$0xff] }
  0x20   : > { %v3569_v49 = vld [vmem:[%s3379_s5 + $0x22] sm:$0xff]  ;;  %v3582_v51 = vld [vmem:[%s3379_s5 + $0x32] sm:$0xff]  ;;  %v3610_v55 = vld [vmem:[%s3379_s5 + $0x4a] sm:$0xff] }
  0x21   : > { %v3585_v52 = vld [vmem:[%s3379_s5 + $0x48] sm:$0xff]  ;;  %v3599_v54 = vld [vmem:[%s3379_s5 + $0x50] sm:$0xff]  ;;  %v3613_v56 = vld [vmem:[%s3379_s5 + $0x60] sm:$0xff] }
  0x22   : > { %v3624_v57 = vld [vmem:[%s3379_s5 + $0x52] sm:$0xff]  ;;  %v3627_v58 = vld [vmem:[%s3379_s5 + $0x68] sm:$0xff]  ;;  %v3665_v3 = vld [vmem:[%s3379_s5 + $0x80] sm:$0xff] }
  0x23   : > { %2823 = vmatmul.msk.f32.gmra.mxu1 %vm266_vm0, %v3416_v13  ;;  %4553 = vst [vmem:[#allocation2_spill] sm:$0xff] %v3627_v58  ;;  %v3640_v60 = vld [vmem:[%s3379_s5 + $0x62] sm:$0xff]  ;;  %v3643_v61 = vld [vmem:[%s3379_s5 + $0x78] sm:$0xff]  ;;  %v3662_v2 = vld [vmem:[%s3379_s5 + $0x6a] sm:$0xff] }
  0x24   : > { %2831 = vmatmul.msk.f32.gmra.mxu2 %vm266_vm0, %v3419_v14  ;;  %4554 = vst [vmem:[#allocation3_spill] sm:$0xff] %v3643_v61  ;;  %v3684_v12 = vld [vmem:[%s3379_s5 + $0x7a] sm:$0xff]  ;;  %v3706_v26 = vld [vmem:[%s3379_s5 + $0x82] sm:$0xff] }
  0x25   : > { %2839 = vmatmul.msk.f32.gmra.mxu3 %vm266_vm0, %v3422_v15  ;;  %4556 = vst [vmem:[#allocation5_spill] sm:$0xff] %v3662_v2  ;;  %v3709_v27 = vld [vmem:[%s3379_s5 + $0x98] sm:$0xff] }
  0x26   : > { %2815 = vmatmul.msk.f32.gmra.mxu0 %vm266_vm0, %v234_v16  ;;  %4557 = vst [vmem:[#allocation6_spill] sm:$0xff] %v3665_v3 }
  0x27   : > { %4559 = vst [vmem:[#allocation8_spill] sm:$0xff] %v3684_v12 }
  0x28   : > { %4562 = vst [vmem:[#allocation11_spill] sm:$0xff] %v3706_v26 }
  0x29   : > { %4563 = vst [vmem:[#allocation12_spill] sm:$0xff] %v3709_v27 }
  0x2b   : > { %2824 = vmatmul.msk.f32.gmra.mxu1 %vm266_vm0, %v3433_v17 }
  0x2c   : > { %2832 = vmatmul.msk.f32.gmra.mxu2 %vm266_vm0, %v3436_v18 }
  0x2d   : > { %2840 = vmatmul.msk.f32.gmra.mxu3 %vm266_vm0, %v3439_v19 }
  0x2e   : > { %2816 = vmatmul.msk.f32.gmra.mxu0 %vm266_vm0, %v235_v20 }
  0x33   : > { %2825 = vmatmul.msk.f32.gmra.mxu1 %vm266_vm0, %v3450_v21 }
  0x34   : > { %2833 = vmatmul.msk.f32.gmra.mxu2 %vm266_vm0, %v3453_v22 }
  0x35   : > { %2841 = vmatmul.msk.f32.gmra.mxu3 %vm266_vm0, %v3456_v23 }
  0x36   : > { %2817 = vmatmul.msk.f32.gmra.mxu0 %vm266_vm0, %v3459_v24 }
  0x3b   : > { %2826 = vmatmul.msk.f32.gmra.mxu1 %vm266_vm0, %v3479_v28 }
  0x3c   : > { %2834 = vmatmul.msk.f32.gmra.mxu2 %vm266_vm0, %v3482_v29 }
  0x3d   : > { %2842 = vmatmul.msk.f32.gmra.mxu3 %vm266_vm0, %v3485_v30 }
  0x3e   : > { %2818 = vmatmul.msk.f32.gmra.mxu0 %vm266_vm0, %v3488_v31 }
  0x43   : > { %2827 = vmatmul.msk.f32.gmra.mxu1 %vm266_vm0, %v3502_v33 }
  0x44   : > { %2835 = vmatmul.msk.f32.gmra.mxu2 %vm266_vm0, %v3505_v34 }
  0x45   : > { %2843 = vmatmul.msk.f32.gmra.mxu3 %vm266_vm0, %v3508_v35 }
  0x46   : > { %2819 = vmatmul.msk.f32.gmra.mxu0 %vm266_vm0, %v3511_v36 }
  0x4b   : > { %2828 = vmatmul.msk.f32.gmra.mxu1 %vm266_vm0, %v3522_v37 }
  0x4c   : > { %2836 = vmatmul.msk.f32.gmra.mxu2 %vm266_vm0, %v3525_v38 }
  0x4d   : > { %2844 = vmatmul.msk.f32.gmra.mxu3 %vm266_vm0, %v3528_v39 }
  0x4e   : > { %2820 = vmatmul.msk.f32.gmra.mxu0 %vm266_vm0, %v3531_v40 }
  0x53   : > { %2845 = vmatmul.msk.f32.vlgmr.msrb.gmra.mxu1 %vm266_vm0, %v199_v41 }
  0x54   : > { %2878 = vmatmul.msk.f32.vlgmr.msrb.gmra.mxu2 %vm266_vm0, %v685_v42 }
  0x55   : > { %2943 = vmatmul.msk.f32.vlgmr.msrb.gmra.mxu3 %vm266_vm0, %v2910_v43 }
  0x56   : > { %3008 = vmatmul.msk.f32.vlgmr.msrb.gmra.mxu0 %vm266_vm0, %v234_v16 }
  0x5b   : > { %2846 = vmatmul.msk.f32.gmra.mxu1 %vm266_vm0, %v200_v44  ;;  %v3731_v44 = vld [vmem:[%s3379_s5 + $0xa8] sm:$0xff] }
  0x5c   : > { %2879 = vmatmul.msk.f32.gmra.mxu2 %vm266_vm0, %v686_v45  ;;  %4566 = vst [vmem:[#allocation15_spill] sm:$0xff] %v3731_v44 }
  0x5d   : > { %2944 = vmatmul.msk.f32.gmra.mxu3 %vm266_vm0, %v2911_v46 }
  0x5e   : > { %3009 = vmatmul.msk.f32.gmra.mxu0 %vm266_vm0, %v235_v20 }
  0x63   : > { %2847 = vmatmul.msk.f32.gmra.mxu1 %vm266_vm0, %v2910_v43  ;;  %v3728_v43 = vld [vmem:[%s3379_s5 + $0x92] sm:$0xff] }
  0x64   : > { %2880 = vmatmul.msk.f32.gmra.mxu2 %vm266_vm0, %v3556_v47  ;;  %4565 = vst [vmem:[#allocation14_spill] sm:$0xff] %v3728_v43 }
  0x65   : > { %2945 = vmatmul.msk.f32.gmra.mxu3 %vm266_vm0, %v3559_v48 }
  0x66   : > { %3010 = vmatmul.msk.f32.gmra.mxu0 %vm266_vm0, %v3459_v24 }
  0x6b   : > { %2848 = vmatmul.msk.f32.gmra.mxu1 %vm266_vm0, %v2911_v46 }
  0x6c   : > { %2881 = vmatmul.msk.f32.gmra.mxu2 %vm266_vm0, %v3569_v49 }
  0x6d   : > { %2946 = vmatmul.msk.f32.gmra.mxu3 %vm266_vm0, %v3572_v50 }
  0x6e   : > { %3011 = vmatmul.msk.f32.gmra.mxu0 %vm266_vm0, %v3488_v31 }
  0x73   : > { %2849 = vmatmul.msk.f32.gmra.mxu1 %vm266_vm0, %v3559_v48 }
  0x74   : > { %2882 = vmatmul.msk.f32.gmra.mxu2 %vm266_vm0, %v3582_v51 }
  0x75   : > { %2947 = vmatmul.msk.f32.gmra.mxu3 %vm266_vm0, %v3585_v52 }
  0x76   : > { %3012 = vmatmul.msk.f32.gmra.mxu0 %vm266_vm0, %v3511_v36 }
  0x7b   : > { %2850 = vmatmul.msk.f32.gmra.mxu1 %vm266_vm0, %v3572_v50 }
  0x7c   : > { %2883 = vmatmul.msk.f32.gmra.mxu2 %vm266_vm0, %v3596_v53 }
  0x7d   : > { %2948 = vmatmul.msk.f32.gmra.mxu3 %vm266_vm0, %v3599_v54 }
  0x7e   : > { %3013 = vmatmul.msk.f32.gmra.mxu0 %vm266_vm0, %v3531_v40 }
  0x83   : > { %2851 = vmatmul.msk.f32.gmra.mxu1 %vm266_vm0, %v3585_v52 }
  0x84   : > { %2884 = vmatmul.msk.f32.gmra.mxu2 %vm266_vm0, %v3610_v55 }
  0x85   : > { %2949 = vmatmul.msk.f32.gmra.mxu3 %vm266_vm0, %v3613_v56 }
  0x86   : > { %3014 = vmatmul.msk.f32.gmra.mxu0 %vm266_vm0, %v3382_v5 }
  0x8b   : > { %2852 = vmatmul.msk.f32.gmra.mxu1 %vm266_vm0, %v3599_v54 }
  0x8c   : > { %2885 = vmatmul.msk.f32.gmra.mxu2 %vm266_vm0, %v3624_v57 }
  0x8d   : > { %2950 = vmatmul.msk.f32.gmra.mxu3 %vm266_vm0, %v3627_v58 }
  0x8e   : > { %3015 = vmatmul.msk.f32.gmra.mxu0 %vm266_vm0, %v3399_v9 }
  0x90   : > { %v3637_v59 = vpop.f32.mrf.mxu1 }
  0x93   : > { %v3645_v62 = vpop.f32.mrf.mxu0  ;;  %2853 = vmatmul.msk.f32.gmra.mxu1 %vm266_vm0, %v3613_v56 }
  0x94   : > { %2886 = vmatmul.msk.f32.gmra.mxu2 %vm266_vm0, %v3640_v60 }
  0x95   : > { %2951 = vmatmul.msk.f32.gmra.mxu3 %vm266_vm0, %v3643_v61 }
  0x96   : > { %3016 = vmatmul.msk.f32.gmra.mxu0 %vm266_vm0, %v3416_v13  ;;  %v3687_v13 = vld [vmem:[%s3379_s5 + $0x90] sm:$0xff] }
  0x97   : > { %v3655_v63 = vpop.f32.mrf.mxu2  ;;  %4560 = vst [vmem:[#allocation9_spill] sm:$0xff] %v3687_v13 }
  0x98   : > { %v3657_v0 = vpop.f32.mrf.mxu3  ;;  %v3659_v1 = vpop.f32.mrf.mxu1 }
  0x99   : > { %4555 = vst [vmem:[#allocation4_spill] sm:$0xff] %v3657_v0 }
  0x9b   : > { %v3667_v4 = vpop.f32.mrf.mxu0  ;;  %2854 = vmatmul.msk.f32.gmra.mxu1 %vm266_vm0, %v3627_v58  ;;  %v3832_v58 = vld [vmem:[%s3379_s5 + $0xe0] sm:$0xff] }
  0x9c   : > { %2887 = vmatmul.msk.f32.gmra.mxu2 %vm266_vm0, %v3662_v2  ;;  %v3829_v2 = vld [vmem:[%s3379_s5 + $0xca] sm:$0xff] }
  0x9d   : > { %2952 = vmatmul.msk.f32.gmra.mxu3 %vm266_vm0, %v3665_v3 }
  0x9e   : > { %3017 = vmatmul.msk.f32.gmra.mxu0 %vm266_vm0, %v3433_v17 }
  0x9f   : > { %v3677_v5 = vpop.f32.mrf.mxu2 }
  0xa0   : > { %v3679_v8 = vpop.f32.mrf.mxu3  ;;  %v3681_v9 = vpop.f32.mrf.mxu1 }
  0xa1   : > { %4558 = vst [vmem:[#allocation7_spill] sm:$0xff] %v3679_v8  ;;  %v3753_v8 = vld [vmem:[%s3379_s5 + $0xb0] sm:$0xff] }
  0xa2   : > { %4570 = vst [vmem:[#allocation19_spill] sm:$0xff] %v3753_v8 }
  0xa3   : > { %v3689_v16 = vpop.f32.mrf.mxu0  ;;  %2855 = vmatmul.msk.f32.gmra.mxu1 %vm266_vm0, %v3643_v61  ;;  %v3817_v61 = vld [vmem:[%s3379_s5 + $0xd8] sm:$0xff] }
  0xa4   : > { %2888 = vmatmul.msk.f32.gmra.mxu2 %vm266_vm0, %v3684_v12 }
  0xa5   : > { %2953 = vmatmul.msk.f32.gmra.mxu3 %vm266_vm0, %v3687_v13 }
  0xa6   : > { %3018 = vmatmul.msk.f32.gmra.mxu0 %vm266_vm0, %v3450_v21 }
  0xa7   : > { %v3699_v17 = vpop.f32.mrf.mxu2 }
  0xa8   : > { %v3701_v20 = vpop.f32.mrf.mxu3  ;;  %v3703_v25 = vpop.f32.mrf.mxu1 }
  0xa9   : > { %4561 = vst [vmem:[#allocation10_spill] sm:$0xff] %v3701_v20  ;;  %v3750_v20 = vld [vmem:[%s3379_s5 + $0x9a] sm:$0xff] }
  0xaa   : > { %4569 = vst [vmem:[#allocation18_spill] sm:$0xff] %v3750_v20 }
  0xab   : > { %v3711_v32 = vpop.f32.mrf.mxu0  ;;  %2856 = vmatmul.msk.f32.gmra.mxu1 %vm266_vm0, %v3665_v3  ;;  %v3794_v3 = vld [vmem:[%s3379_s5 + $0xb2] sm:$0xff] }
  0xac   : > { %2889 = vmatmul.msk.f32.gmra.mxu2 %vm266_vm0, %v3706_v26  ;;  %4577 = vst [vmem:[#allocation26_spill] sm:$0xff] %v3794_v3 }
  0xad   : > { %2954 = vmatmul.msk.f32.gmra.mxu3 %vm266_vm0, %v3709_v27 }
  0xae   : > { %3019 = vmatmul.msk.f32.gmra.mxu0 %vm266_vm0, %v3479_v28 }
  0xaf   : > { %v3721_v21 = vpop.f32.mrf.mxu2 }
  0xb0   : > { %v3723_v41 = vpop.f32.mrf.mxu3  ;;  %v3725_v42 = vpop.f32.mrf.mxu1 }
  0xb1   : > { %4564 = vst [vmem:[#allocation13_spill] sm:$0xff] %v3723_v41 }
  0xb3   : > { %v3733_v45 = vpop.f32.mrf.mxu0  ;;  %2857 = vmatmul.msk.f32.gmra.mxu1 %vm266_vm0, %v3687_v13  ;;  %v3772_v13 = vld [vmem:[%s3379_s5 + $0xaa] sm:$0xff] }
  0xb4   : > { %2890 = vmatmul.msk.f32.gmra.mxu2 %vm266_vm0, %v3728_v43  ;;  %4573 = vst [vmem:[#allocation22_spill] sm:$0xff] %v3772_v13 }
  0xb5   : > { %2955 = vmatmul.msk.f32.gmra.mxu3 %vm266_vm0, %v3731_v44 }
  0xb6   : > { %3020 = vmatmul.msk.f32.gmra.mxu0 %vm266_vm0, %v3502_v33 }
  0xb7   : > { %v3743_v28 = vpop.f32.mrf.mxu2 }
  0xb8   : > { %4567 = vst [vmem:[#allocation16_spill] sm:$0xff] %v3743_v28  ;;  %v3745_v46 = vpop.f32.mrf.mxu3  ;;  %v3747_v41 = vpop.f32.mrf.mxu1 }
  0xb9   : > { %4568 = vst [vmem:[#allocation17_spill] sm:$0xff] %v3745_v46 }
  0xbb   : > { %v3755_v0 = vpop.f32.mrf.mxu0  ;;  %2858 = vmatmul.msk.f32.gmra.mxu1 %vm266_vm0, %v3709_v27  ;;  %v3775_v27 = vld [vmem:[%s3379_s5 + $0xc0] sm:$0xff] }
  0xbc   : > { %2891 = vmatmul.msk.f32.gmra.mxu2 %vm266_vm0, %v3750_v20  ;;  %4574 = vst [vmem:[#allocation23_spill] sm:$0xff] %v3775_v27 }
  0xbd   : > { %2956 = vmatmul.msk.f32.gmra.mxu3 %vm266_vm0, %v3753_v8 }
  0xbe   : > { %3021 = vmatmul.msk.f32.gmra.mxu0 %vm266_vm0, %v3522_v37 }
  0xbf   : > { %v3765_v33 = vpop.f32.mrf.mxu2 }
  0xc0   : > { %4571 = vst [vmem:[#allocation20_spill] sm:$0xff] %v3765_v33  ;;  %v3767_v46 = vpop.f32.mrf.mxu3  ;;  %v3769_v43 = vpop.f32.mrf.mxu1 }
  0xc1   : > { %4572 = vst [vmem:[#allocation21_spill] sm:$0xff] %v3767_v46 }
  0xc3   : > { %v3777_v26 = vpop.f32.mrf.mxu0  ;;  %2859 = vmatmul.msk.f32.gmra.mxu1 %vm266_vm0, %v3731_v44  ;;  %v3797_v44 = vld [vmem:[%s3379_s5 + $0xc8] sm:$0xff] }
  0xc4   : > { %2892 = vmatmul.msk.f32.gmra.mxu2 %vm266_vm0, %v3772_v13 }
  0xc5   : > { %2957 = vmatmul.msk.f32.gmra.mxu3 %vm266_vm0, %v3775_v27 }
  0xc6   : > { %3022 = vmatmul.msk.f32.gmra.mxu0 %vm266_vm0, %v3385_v6 }
  0xc7   : > { %v3787_v37 = vpop.f32.mrf.mxu2 }
  0xc8   : > { %4575 = vst [vmem:[#allocation24_spill] sm:$0xff] %v3787_v37  ;;  %v3789_v46 = vpop.f32.mrf.mxu3  ;;  %v3791_v20 = vpop.f32.mrf.mxu1  ;;  %v3814_v37 = vld [vmem:[%s3379_s5 + $0xc2] sm:$0xff] }
  0xc9   : > { %4576 = vst [vmem:[#allocation25_spill] sm:$0xff] %v3789_v46 }
  0xca   : > { %4580 = vst [vmem:[#allocation29_spill] sm:$0xff] %v3814_v37 }
  0xcb   : > { %v3799_v12 = vpop.f32.mrf.mxu0  ;;  %2860 = vmatmul.msk.f32.gmra.mxu1 %vm266_vm0, %v3753_v8 }
  0xcc   : > { %2893 = vmatmul.msk.f32.gmra.mxu2 %vm266_vm0, %v3794_v3 }
  0xcd   : > { %2958 = vmatmul.msk.f32.gmra.mxu3 %vm266_vm0, %v3797_v44 }
  0xce   : > { %3023 = vmatmul.msk.f32.gmra.mxu0 %vm266_vm0, %v3402_v10 }
  0xcf   : > { %v3809_v6 = vpop.f32.mrf.mxu2 }
  0xd0   : > { %4578 = vst [vmem:[#allocation27_spill] sm:$0xff] %v3809_v6  ;;  %v3811_v46 = vpop.f32.mrf.mxu3  ;;  %v589_v13 = vpop.f32.mrf.mxu1 }
  0xd1   : > { %4579 = vst [vmem:[#allocation28_spill] sm:$0xff] %v3811_v46  ;;  %v590_v10 = vadd.f32 %v589_v13, %v3645_v62 }
  0xd3   : > { %v1383_v8 = vpop.f32.mrf.mxu0  ;;  %2861 = vmatmul.msk.f32.gmra.mxu1 %vm266_vm0, %v3775_v27 }
  0xd4   : > { %2894 = vmatmul.msk.f32.gmra.mxu2 %vm266_vm0, %v3814_v37 }
  0xd5   : > { %2959 = vmatmul.msk.f32.gmra.mxu3 %vm266_vm0, %v3817_v61 }
  0xd6   : > { %3024 = vmatmul.msk.f32.gmra.mxu0 %vm266_vm0, %v3419_v14 }
  0xd7   : > { %v832_v46 = vpop.f32.mrf.mxu2 }
  0xd8   : > { %v928_v3 = vadd.f32 %v832_v46, %v590_v10  ;;  %v1108_v6 = vpop.f32.mrf.mxu3  ;;  %v592_v33 = vpop.f32.mrf.mxu1 }
  0xd9   : > { %v593_v14 = vadd.f32 %v592_v33, %v3667_v4 }
  0xda   : > { %v1204_v27 = vadd.f32 %v1108_v6, %v928_v3  ;;  %v3849_v6 = vld [vmem:[%s3379_s5 + $0xf0] sm:$0xff] }
  0xdb   : > { %v1386_v37 = vpop.f32.mrf.mxu0  ;;  %2862 = vmatmul.msk.f32.gmra.mxu1 %vm266_vm0, %v3797_v44 }
  0xdc   : > { %v3834_v28 = vadd.f32 %v1383_v8, %v1204_v27  ;;  %2895 = vmatmul.msk.f32.gmra.mxu2 %vm266_vm0, %v3829_v2  ;;  %v3846_v27 = vld [vmem:[%s3379_s5 + $0xda] sm:$0xff] }
  0xdd   : > { %2960 = vmatmul.msk.f32.gmra.mxu3 %vm266_vm0, %v3832_v58 }
  0xde   : > { %4581 = vst [vmem:[#allocation30_spill] sm:$0xff] %v3834_v28  ;;  %3025 = vmatmul.msk.f32.gmra.mxu0 %vm266_vm0, %v3436_v18 }
  0xdf   : > { %v835_v62 = vpop.f32.mrf.mxu2 }
  0xe0   : > { %v929_v3 = vadd.f32 %v835_v62, %v593_v14  ;;  %v1111_v13 = vpop.f32.mrf.mxu3  ;;  %v595_v8 = vpop.f32.mrf.mxu1  ;;  %v3863_v62 = vld [vmem:[%s3379_s5 + $0xe2] sm:$0xff] }
  0xe1   : > { %v596_v18 = vadd.f32 %v595_v8, %v3689_v16 }
  0xe2   : > { %v1205_v46 = vadd.f32 %v1111_v13, %v929_v3  ;;  %v3866_v13 = vld [vmem:[%s3379_s5 + $0xf8] sm:$0xff] }
  0xe3   : > { %v1389_v10 = vpop.f32.mrf.mxu0  ;;  %2863 = vmatmul.msk.f32.gmra.mxu1 %vm266_vm0, %v3817_v61 }
  0xe4   : > { %v3851_v28 = vadd.f32 %v1386_v37, %v1205_v46  ;;  %2896 = vmatmul.msk.f32.gmra.mxu2 %vm266_vm0, %v3846_v27 }
  0xe5   : > { %2961 = vmatmul.msk.f32.gmra.mxu3 %vm266_vm0, %v3849_v6 }
  0xe6   : > { %4582 = vst [vmem:[#allocation31_spill] sm:$0xff] %v3851_v28  ;;  %3026 = vmatmul.msk.f32.gmra.mxu0 %vm266_vm0, %v3453_v22 }
  0xe7   : > { %v838_v4 = vpop.f32.mrf.mxu2 }
  0xe8   : > { %v930_v33 = vadd.f32 %v838_v4, %v596_v18  ;;  %v1114_v14 = vpop.f32.mrf.mxu3  ;;  %v598_v37 = vpop.f32.mrf.mxu1  ;;  %v3880_v4 = vld [vmem:[%s3379_s5 + $0xf2] sm:$0xff] }
  0xe9   : > { %v599_v22 = vadd.f32 %v598_v37, %v3711_v32 }
  0xea   : > { %v1206_v3 = vadd.f32 %v1114_v14, %v930_v33  ;;  %v3883_v14 = vld [vmem:[%s3379_s5 + $0x108] sm:$0xff] }
  0xeb   : > { %v1392_v46 = vpop.f32.mrf.mxu0  ;;  %2864 = vmatmul.msk.f32.gmra.mxu1 %vm266_vm0, %v3832_v58 }
  0xec   : > { %v3868_v28 = vadd.f32 %v1389_v10, %v1206_v3  ;;  %2897 = vmatmul.msk.f32.gmra.mxu2 %vm266_vm0, %v3863_v62 }
  0xed   : > { %2962 = vmatmul.msk.f32.gmra.mxu3 %vm266_vm0, %v3866_v13 }
  0xee   : > { %4583 = vst [vmem:[#allocation32_spill] sm:$0xff] %v3868_v28  ;;  %3027 = vmatmul.msk.f32.gmra.mxu0 %vm266_vm0, %v3482_v29 }
  0xef   : > { %v841_v16 = vpop.f32.mrf.mxu2 }
  0xf0   : > { %v931_v8 = vadd.f32 %v841_v16, %v599_v22  ;;  %v1117_v18 = vpop.f32.mrf.mxu3  ;;  %v601_v10 = vpop.f32.mrf.mxu1  ;;  %v3897_v16 = vld [vmem:[%s3379_s5 + $0xfa] sm:$0xff] }
  0xf1   : > { %v602_v29 = vadd.f32 %v601_v10, %v3733_v45 }
  0xf2   : > { %v1207_v33 = vadd.f32 %v1117_v18, %v931_v8  ;;  %v3900_v18 = vld [vmem:[%s3379_s5 + $0x110] sm:$0xff] }
  0xf3   : > { %v1395_v3 = vpop.f32.mrf.mxu0  ;;  %2865 = vmatmul.msk.f32.gmra.mxu1 %vm266_vm0, %v3849_v6 }
  0xf4   : > { %v3885_v28 = vadd.f32 %v1392_v46, %v1207_v33  ;;  %2898 = vmatmul.msk.f32.gmra.mxu2 %vm266_vm0, %v3880_v4 }
  0xf5   : > { %2963 = vmatmul.msk.f32.gmra.mxu3 %vm266_vm0, %v3883_v14 }
  0xf6   : > { %4584 = vst [vmem:[#allocation33_spill] sm:$0xff] %v3885_v28  ;;  %3028 = vmatmul.msk.f32.gmra.mxu0 %vm266_vm0, %v3505_v34 }
  0xf7   : > { %v844_v32 = vpop.f32.mrf.mxu2 }
  0xf8   : > { %v932_v37 = vadd.f32 %v844_v32, %v602_v29  ;;  %v1120_v22 = vpop.f32.mrf.mxu3  ;;  %v604_v46 = vpop.f32.mrf.mxu1  ;;  %v3914_v32 = vld [vmem:[%s3379_s5 + $0x10a] sm:$0xff] }
  0xf9   : > { %v605_v34 = vadd.f32 %v604_v46, %v3755_v0 }
  0xfa   : > { %v1208_v8 = vadd.f32 %v1120_v22, %v932_v37  ;;  %v3917_v22 = vld [vmem:[%s3379_s5 + $0x120] sm:$0xff] }
  0xfb   : > { %v1398_v33 = vpop.f32.mrf.mxu0  ;;  %2866 = vmatmul.msk.f32.gmra.mxu1 %vm266_vm0, %v3866_v13 }
  0xfc   : > { %v3902_v28 = vadd.f32 %v1395_v3, %v1208_v8  ;;  %2899 = vmatmul.msk.f32.gmra.mxu2 %vm266_vm0, %v3897_v16 }
  0xfd   : > { %2964 = vmatmul.msk.f32.gmra.mxu3 %vm266_vm0, %v3900_v18 }
  0xfe   : > { %4585 = vst [vmem:[#allocation34_spill] sm:$0xff] %v3902_v28  ;;  %3029 = vmatmul.msk.f32.gmra.mxu0 %vm266_vm0, %v3525_v38 }
  0xff   : > { %v847_v45 = vpop.f32.mrf.mxu2 }
 0x100   : > { %v933_v10 = vadd.f32 %v847_v45, %v605_v34  ;;  %v1123_v29 = vpop.f32.mrf.mxu3  ;;  %v607_v3 = vpop.f32.mrf.mxu1  ;;  %v3931_v45 = vld [vmem:[%s3379_s5 + $0x112] sm:$0xff] }
 0x101   : > { %v608_v38 = vadd.f32 %v607_v3, %v3777_v26 }
 0x102   : > { %v1209_v37 = vadd.f32 %v1123_v29, %v933_v10  ;;  %v3934_v29 = vld [vmem:[%s3379_s5 + $0x128] sm:$0xff] }
 0x103   : > { %v1401_v8 = vpop.f32.mrf.mxu0  ;;  %2867 = vmatmul.msk.f32.gmra.mxu1 %vm266_vm0, %v3883_v14 }
 0x104   : > { %v3919_v28 = vadd.f32 %v1398_v33, %v1209_v37  ;;  %2900 = vmatmul.msk.f32.gmra.mxu2 %vm266_vm0, %v3914_v32 }
 0x105   : > { %2965 = vmatmul.msk.f32.gmra.mxu3 %vm266_vm0, %v3917_v22 }
 0x106   : > { %4586 = vst [vmem:[#allocation35_spill] sm:$0xff] %v3919_v28  ;;  %3030 = vmatmul.msk.f32.gmra.mxu0 %vm266_vm0, %v3388_v7 }
 0x107   : > { %v850_v0 = vpop.f32.mrf.mxu2 }
 0x108   : > { %v934_v46 = vadd.f32 %v850_v0, %v608_v38  ;;  %v1126_v34 = vpop.f32.mrf.mxu3  ;;  %v610_v33 = vpop.f32.mrf.mxu1  ;;  %v3948_v0 = vld [vmem:[%s3379_s5 + $0x122] sm:$0xff] }
 0x109   : > { %v611_v7 = vadd.f32 %v610_v33, %v3799_v12 }
 0x10a   : > { %v1210_v10 = vadd.f32 %v1126_v34, %v934_v46  ;;  %v3951_v34 = vld [vmem:[%s3379_s5 + $0x138] sm:$0xff] }
 0x10b   : > { %v1404_v37 = vpop.f32.mrf.mxu0  ;;  %2868 = vmatmul.msk.f32.gmra.mxu1 %vm266_vm0, %v3900_v18 }
 0x10c   : > { %v3936_v28 = vadd.f32 %v1401_v8, %v1210_v10  ;;  %2901 = vmatmul.msk.f32.gmra.mxu2 %vm266_vm0, %v3931_v45 }
 0x10d   : > { %2966 = vmatmul.msk.f32.gmra.mxu3 %vm266_vm0, %v3934_v29 }
 0x10e   : > { %4587 = vst [vmem:[#allocation36_spill] sm:$0xff] %v3936_v28  ;;  %3031 = vmatmul.msk.f32.gmra.mxu0 %vm266_vm0, %v3405_v11 }
 0x10f   : > { %v853_v26 = vpop.f32.mrf.mxu2 }
 0x110   : > { %v935_v3 = vadd.f32 %v853_v26, %v611_v7  ;;  %v1129_v38 = vpop.f32.mrf.mxu3  ;;  %v613_v8 = vpop.f32.mrf.mxu1  ;;  %v3965_v26 = vld [vmem:[%s3379_s5 + $0x12a] sm:$0xff] }
 0x111   : > { %v614_v11 = vadd.f32 %v613_v8, %v3637_v59 }
 0x112   : > { %v1211_v46 = vadd.f32 %v1129_v38, %v935_v3  ;;  %v2935_v38 = vld [vmem:[%s3379_s5 + $0x140] sm:$0xff] }
 0x113   : > { %v1407_v10 = vpop.f32.mrf.mxu0  ;;  %2869 = vmatmul.msk.f32.gmra.mxu1 %vm266_vm0, %v3917_v22 }
 0x114   : > { %v3953_v28 = vadd.f32 %v1404_v37, %v1211_v46  ;;  %2902 = vmatmul.msk.f32.gmra.mxu2 %vm266_vm0, %v3948_v0 }
 0x115   : > { %2967 = vmatmul.msk.f32.gmra.mxu3 %vm266_vm0, %v3951_v34 }
 0x116   : > { %4588 = vst [vmem:[#allocation37_spill] sm:$0xff] %v3953_v28  ;;  %3032 = vmatmul.msk.f32.gmra.mxu0 %vm266_vm0, %v3422_v15 }
 0x117   : > { %v856_v12 = vpop.f32.mrf.mxu2 }
 0x118   : > { %v936_v33 = vadd.f32 %v856_v12, %v614_v11  ;;  %v1132_v7 = vpop.f32.mrf.mxu3  ;;  %v616_v37 = vpop.f32.mrf.mxu1 }
 0x119   : > { %v617_v15 = vadd.f32 %v616_v37, %v3659_v1 }
 0x11a   : > { %v1212_v3 = vadd.f32 %v1132_v7, %v936_v33  ;;  %v2936_v7 = vld [vmem:[%s3379_s5 + $0x150] sm:$0xff] }
 0x11b   : > { %v1410_v46 = vpop.f32.mrf.mxu0  ;;  %2870 = vmatmul.msk.f32.gmra.mxu1 %vm266_vm0, %v3934_v29 }
 0x11c   : > { %v3968_v28 = vadd.f32 %v1407_v10, %v1212_v3  ;;  %2903 = vmatmul.msk.f32.gmra.mxu2 %vm266_vm0, %v3965_v26  ;;  %v3979_v10 = vld [vmem:[%s3379_s5 + $0x13a] sm:$0xff] }
 0x11d   : > { %2968 = vmatmul.msk.f32.gmra.mxu3 %vm266_vm0, %v2935_v38 }
 0x11e   : > { %4589 = vst [vmem:[#allocation38_spill] sm:$0xff] %v3968_v28  ;;  %3033 = vmatmul.msk.f32.gmra.mxu0 %vm266_vm0, %v3439_v19 }
 0x11f   : > { %v859_v59 = vpop.f32.mrf.mxu2 }
 0x120   : > { %v937_v8 = vadd.f32 %v859_v59, %v617_v15  ;;  %v1135_v11 = vpop.f32.mrf.mxu3  ;;  %v619_v12 = vpop.f32.mrf.mxu1 }
 0x121   : > { %v620_v19 = vadd.f32 %v619_v12, %v3681_v9 }
 0x122   : > { %v1213_v33 = vadd.f32 %v1135_v11, %v937_v8  ;;  %v2937_v11 = vld [vmem:[%s3379_s5 + $0x158] sm:$0xff] }
 0x123   : > { %v1413_v3 = vpop.f32.mrf.mxu0  ;;  %2871 = vmatmul.msk.f32.gmra.mxu1 %vm266_vm0, %v3951_v34 }
 0x124   : > { %v3982_v28 = vadd.f32 %v1410_v46, %v1213_v33  ;;  %2904 = vmatmul.msk.f32.gmra.mxu2 %vm266_vm0, %v3979_v10  ;;  %v3993_v46 = vld [vmem:[%s3379_s5 + $0x142] sm:$0xff] }
 0x125   : > { %2969 = vmatmul.msk.f32.gmra.mxu3 %vm266_vm0, %v2936_v7 }
 0x126   : > { %4590 = vst [vmem:[#allocation39_spill] sm:$0xff] %v3982_v28  ;;  %3034 = vmatmul.msk.f32.gmra.mxu0 %vm266_vm0, %v3456_v23 }
 0x127   : > { %v862_v1 = vpop.f32.mrf.mxu2 }
 0x128   : > { %v938_v37 = vadd.f32 %v862_v1, %v620_v19  ;;  %v1138_v15 = vpop.f32.mrf.mxu3  ;;  %v622_v59 = vpop.f32.mrf.mxu1 }
 0x129   : > { %v623_v23 = vadd.f32 %v622_v59, %v3703_v25 }
 0x12a   : > { %v1214_v8 = vadd.f32 %v1138_v15, %v938_v37  ;;  %v713_v37 = vld [vmem:[%s3379_s5 + $0x152] sm:$0xff]  ;;  %v2938_v15 = vld [vmem:[%s3379_s5 + $0x168] sm:$0xff] }
 0x12b   : > { %v1416_v33 = vpop.f32.mrf.mxu0  ;;  %2872 = vmatmul.msk.f32.gmra.mxu1 %vm266_vm0, %v2935_v38 }
 0x12c   : > { %v3996_v28 = vadd.f32 %v1413_v3, %v1214_v8  ;;  %2905 = vmatmul.msk.f32.gmra.mxu2 %vm266_vm0, %v3993_v46 }
 0x12d   : > { %2970 = vmatmul.msk.f32.gmra.mxu3 %vm266_vm0, %v2937_v11 }
 0x12e   : > { %3035 = vmatmul.msk.f32.gmra.mxu0 %vm266_vm0, %v3485_v30 }
 0x12f   : > { %v865_v9 = vpop.f32.mrf.mxu2 }
 0x130   : > { %v939_v12 = vadd.f32 %v865_v9, %v623_v23  ;;  %v1141_v19 = vpop.f32.mrf.mxu3  ;;  %v625_v1 = vpop.f32.mrf.mxu1 }
 0x131   : > { %v626_v30 = vadd.f32 %v625_v1, %v3725_v42 }
 0x132   : > { %v1215_v3 = vadd.f32 %v1141_v19, %v939_v12  ;;  %v714_v12 = vld [vmem:[%s3379_s5 + $0x15a] sm:$0xff]  ;;  %v2939_v19 = vld [vmem:[%s3379_s5 + $0x170] sm:$0xff] }
 0x133   : > { %v1419_v38 = vpop.f32.mrf.mxu0  ;;  %2873 = vmatmul.msk.f32.gmra.mxu1 %vm266_vm0, %v2936_v7 }
 0x134   : > { %v4007_v8 = vadd.f32 %v1416_v33, %v1215_v3  ;;  %2906 = vmatmul.msk.f32.gmra.mxu2 %vm266_vm0, %v713_v37 }
 0x135   : > { %2971 = vmatmul.msk.f32.gmra.mxu3 %vm266_vm0, %v2938_v15 }
 0x136   : > { %3036 = vmatmul.msk.f32.gmra.mxu0 %vm266_vm0, %v3508_v35 }
 0x137   : > { %v868_v25 = vpop.f32.mrf.mxu2 }
 0x138   : > { %v940_v59 = vadd.f32 %v868_v25, %v626_v30  ;;  %v1144_v23 = vpop.f32.mrf.mxu3  ;;  %v628_v9 = vpop.f32.mrf.mxu1  ;;  %v715_v25 = vld [vmem:[%s3379_s5 + $0x16a] sm:$0xff] }
 0x139   : > { %v629_v35 = vadd.f32 %v628_v9, %v3747_v41 }
 0x13a   : > { %v1216_v33 = vadd.f32 %v1144_v23, %v940_v59 }
 0x13b   : > { %v1422_v7 = vpop.f32.mrf.mxu0  ;;  %2874 = vmatmul.msk.f32.gmra.mxu1 %vm266_vm0, %v2937_v11  ;;  %v3005_v11 = vld [vmem:[%s3379_s5 + $0x181] sm:$0xff] }
 0x13c   : > { %v4017_v3 = vadd.f32 %v1419_v38, %v1216_v33  ;;  %2907 = vmatmul.msk.f32.gmra.mxu2 %vm266_vm0, %v714_v12  ;;  %v2940_v38 = vld [vmem:[%s3379_s5 + $0x180] sm:$0xff] }
 0x13d   : > { %2972 = vmatmul.msk.f32.gmra.mxu3 %vm266_vm0, %v2939_v19 }
 0x13e   : > { %4591 = vst [vmem:[#allocation40_spill] sm:$0xff] %v4017_v3  ;;  %3037 = vmatmul.msk.f32.gmra.mxu0 %vm266_vm0, %v3528_v39 }
 0x13f   : > { %v871_v42 = vpop.f32.mrf.mxu2 }
 0x140   : > { %v941_v1 = vadd.f32 %v871_v42, %v629_v35  ;;  %v1147_v37 = vpop.f32.mrf.mxu3  ;;  %v631_v30 = vpop.f32.mrf.mxu1  ;;  %v716_v42 = vld [vmem:[%s3379_s5 + $0x172] sm:$0xff] }
 0x141   : > { %v632_v39 = vadd.f32 %v631_v30, %v3769_v43 }
 0x142   : > { %v1217_v59 = vadd.f32 %v1147_v37, %v941_v1  ;;  %v2941_v37 = vld [vmem:[%s3379_s5 + $0x188] sm:$0xff] }
 0x143   : > { %v1425_v23 = vpop.f32.mrf.mxu0  ;;  %2875 = vmatmul.msk.f32.gmra.mxu1 %vm266_vm0, %v2938_v15 }
 0x144   : > { %v4028_v12 = vadd.f32 %v1422_v7, %v1217_v59  ;;  %2908 = vmatmul.msk.f32.gmra.mxu2 %vm266_vm0, %v715_v25  ;;  %v3006_v7 = vld [vmem:[%s3379_s5 + $0x189] sm:$0xff] }
 0x145   : > { %2973 = vmatmul.msk.f32.gmra.mxu3 %vm266_vm0, %v2940_v38 }
 0x146   : > { %3038 = vmatmul.msk.f32.gmra.mxu0 %vm266_vm0, %v3005_v11 }
 0x147   : > { %v874_v41 = vpop.f32.mrf.mxu2 }
 0x148   : > { %v942_v9 = vadd.f32 %v874_v41, %v632_v39  ;;  %v1150_v33 = vpop.f32.mrf.mxu3  ;;  %v634_v35 = vpop.f32.mrf.mxu1 }
 0x149   : > { %v635_v43 = vadd.f32 %v634_v35, %v3791_v20 }
 0x14a   : > { %v1218_v1 = vadd.f32 %v1150_v33, %v942_v9 }
 0x14b   : > { %v1428_v3 = vpop.f32.mrf.mxu0  ;;  %2876 = vmatmul.msk.f32.gmra.mxu1 %vm266_vm0, %v2939_v19 }
 0x14c   : > { %v4038_v59 = vadd.f32 %v1425_v23, %v1218_v1  ;;  %2909 = vmatmul.msk.f32.gmra.mxu2 %vm266_vm0, %v716_v42 }
 0x14d   : > { %2974 = vmatmul.msk.f32.gmra.mxu3 %vm266_vm0, %v2941_v37 }
 0x14e   : > { %3039 = vmatmul.msk.f32.gmra.mxu0 %vm266_vm0, %v3006_v7 }
 0x14f   : > { %v877_v15 = vpop.f32.mrf.mxu2 }
 0x150   : > { %v943_v30 = vadd.f32 %v877_v15, %v635_v43  ;;  %v1153_v25 = vpop.f32.mrf.mxu3  ;;  %v637_v38 = vpop.f32.mrf.mxu1 }
 0x151   : > { %v638_v20 = vadd.f32 %v637_v38, %v3655_v63 }
 0x152   : > { %v1219_v11 = vadd.f32 %v1153_v25, %v943_v30 }
 0x153   : > { %v1431_v39 = vpop.f32.mrf.mxu0  ;;  %3073 = vmatmul.msk.f32.vlgmr.msra.gmra.mxu1 %vm266_vm0, %v3556_v47 }
 0x154   : > { %v4045_v41 = vadd.f32 %v1428_v3, %v1219_v11  ;;  %3138 = vmatmul.msk.f32.vlgmr.msra.gmra.mxu2 %vm266_vm0, %v3559_v48 }
 0x155   : > { %3203 = vmatmul.msk.f32.vlgmr.msra.gmra.mxu3 %vm266_vm0, %v3459_v24 }
 0x156   : > { %3268 = vmatmul.msk.f32.vlgmr.msra.gmra.mxu0 %vm266_vm0, %v3582_v51 }
 0x157   : > { %v880_v19 = vpop.f32.mrf.mxu2 }
 0x158   : > { %v944_v23 = vadd.f32 %v880_v19, %v638_v20  ;;  %v1156_v9 = vpop.f32.mrf.mxu3  ;;  %v640_v33 = vpop.f32.mrf.mxu1  ;;  %v3174_v20 = vld [vmem:[%s3379_s5 + $0x61] sm:$0xff] }
 0x159   : > { %v641_v24 = vadd.f32 %v640_v33, %v3677_v5 }
 0x15a   : > { %v1220_v3 = vadd.f32 %v1156_v9, %v944_v23 }
 0x15b   : > { %v1434_v35 = vpop.f32.mrf.mxu0  ;;  %3074 = vmatmul.msk.f32.gmra.mxu1 %vm266_vm0, %v3569_v49 }
 0x15c   : > { %v4056_v42 = vadd.f32 %v1431_v39, %v1220_v3  ;;  %3139 = vmatmul.msk.f32.gmra.mxu2 %vm266_vm0, %v3572_v50 }
 0x15d   : > { %3204 = vmatmul.msk.f32.gmra.mxu3 %vm266_vm0, %v3488_v31 }
 0x15e   : > { %3269 = vmatmul.msk.f32.gmra.mxu0 %vm266_vm0, %v3596_v53 }
 0x15f   : > { %v883_v47 = vpop.f32.mrf.mxu2 }
 0x160   : > { %v945_v48 = vadd.f32 %v883_v47, %v641_v24  ;;  %v1159_v63 = vpop.f32.mrf.mxu3  ;;  %v643_v1 = vpop.f32.mrf.mxu1 }
 0x161   : > { %v644_v31 = vadd.f32 %v643_v1, %v3699_v17 }
 0x162   : > { %v1221_v37 = vadd.f32 %v1159_v63, %v945_v48  ;;  %v4595_v48 = vld [vmem:[#allocation20_spill] sm:$0xff] }
 0x163   : > { %v1437_v7 = vpop.f32.mrf.mxu0  ;;  %3075 = vmatmul.msk.f32.gmra.mxu1 %vm266_vm0, %v3582_v51 }
 0x164   : > { %v4067_v43 = vadd.f32 %v1434_v35, %v1221_v37  ;;  %3140 = vmatmul.msk.f32.gmra.mxu2 %vm266_vm0, %v3585_v52  ;;  %v3175_v35 = vld [vmem:[%s3379_s5 + $0x69] sm:$0xff] }
 0x165   : > { %3205 = vmatmul.msk.f32.gmra.mxu3 %vm266_vm0, %v3511_v36 }
 0x166   : > { %3270 = vmatmul.msk.f32.gmra.mxu0 %vm266_vm0, %v3610_v55 }
 0x167   : > { %v886_v49 = vpop.f32.mrf.mxu2 }
 0x168   : > { %v946_v50 = vadd.f32 %v886_v49, %v644_v31  ;;  %v1162_v5 = vpop.f32.mrf.mxu3  ;;  %v646_v15 = vpop.f32.mrf.mxu1 }
 0x169   : > { %v647_v36 = vadd.f32 %v646_v15, %v3721_v21 }
 0x16a   : > { %v1222_v30 = vadd.f32 %v1162_v5, %v946_v50  ;;  %v3176_v50 = vld [vmem:[%s3379_s5 + $0x79] sm:$0xff] }
 0x16b   : > { %v1440_v25 = vpop.f32.mrf.mxu0  ;;  %3076 = vmatmul.msk.f32.gmra.mxu1 %vm266_vm0, %v3596_v53 }
 0x16c   : > { %v4078_v38 = vadd.f32 %v1437_v7, %v1222_v30  ;;  %3141 = vmatmul.msk.f32.gmra.mxu2 %vm266_vm0, %v3599_v54  ;;  %v4597_v30 = vld [vmem:[#allocation8_spill] sm:$0xff] }
 0x16d   : > { %3206 = vmatmul.msk.f32.gmra.mxu3 %vm266_vm0, %v3531_v40  ;;  %v4592_v40 = vld [vmem:[#allocation16_spill] sm:$0xff] }
 0x16e   : > { %3271 = vmatmul.msk.f32.gmra.mxu0 %vm266_vm0, %v3624_v57 }
 0x16f   : > { %v889_v51 = vpop.f32.mrf.mxu2 }
 0x170   : > { %v947_v52 = vadd.f32 %v889_v51, %v647_v36  ;;  %v1165_v17 = vpop.f32.mrf.mxu3  ;;  %v649_v11 = vpop.f32.mrf.mxu1 }
 0x171   : > { %v650_v54 = vadd.f32 %v649_v11, %v4592_v40 }
 0x172   : > { %v1223_v39 = vadd.f32 %v1165_v17, %v947_v52 }
 0x173   : > { %v1443_v19 = vpop.f32.mrf.mxu0  ;;  %3077 = vmatmul.msk.f32.gmra.mxu1 %vm266_vm0, %v3610_v55  ;;  %v4593_v55 = vld [vmem:[#allocation2_spill] sm:$0xff] }
 0x174   : > { %v4090_v53 = vadd.f32 %v1440_v25, %v1223_v39  ;;  %3142 = vmatmul.msk.f32.gmra.mxu2 %vm266_vm0, %v3613_v56  ;;  %v4594_v56 = vld [vmem:[#allocation5_spill] sm:$0xff]  ;;  %v4598_v25 = vld [vmem:[#allocation24_spill] sm:$0xff] }
 0x175   : > { %3207 = vmatmul.msk.f32.gmra.mxu3 %vm266_vm0, %v3174_v20  ;;  %v3177_v20 = vld [vmem:[%s3379_s5 + $0x81] sm:$0xff] }
 0x176   : > { %3272 = vmatmul.msk.f32.gmra.mxu0 %vm266_vm0, %v3640_v60 }
 0x177   : > { %v892_v21 = vpop.f32.mrf.mxu2 }
 0x178   : > { %v948_v23 = vadd.f32 %v892_v21, %v650_v54  ;;  %v1168_v9 = vpop.f32.mrf.mxu3  ;;  %v652_v33 = vpop.f32.mrf.mxu1  ;;  %v4600_v54 = vld [vmem:[#allocation11_spill] sm:$0xff] }
 0x179   : > { %v653_v63 = vadd.f32 %v652_v33, %v4595_v48  ;;  %v4601_v21 = vld [vmem:[#allocation27_spill] sm:$0xff] }
 0x17a   : > { %v1224_v3 = vadd.f32 %v1168_v9, %v948_v23 }
 0x17b   : > { %v1446_v24 = vpop.f32.mrf.mxu0  ;;  %3078 = vmatmul.msk.f32.gmra.mxu1 %vm266_vm0, %v3624_v57  ;;  %v4596_v57 = vld [vmem:[#allocation3_spill] sm:$0xff] }
 0x17c   : > { %v4101_v47 = vadd.f32 %v1443_v19, %v1224_v3  ;;  %3143 = vmatmul.msk.f32.gmra.mxu2 %vm266_vm0, %v4593_v55  ;;  %v3178_v55 = vld [vmem:[%s3379_s5 + $0x91] sm:$0xff] }
 0x17d   : > { %3208 = vmatmul.msk.f32.gmra.mxu3 %vm266_vm0, %v3175_v35 }
 0x17e   : > { %3273 = vmatmul.msk.f32.gmra.mxu0 %vm266_vm0, %v4594_v56 }
 0x17f   : > { %v895_v1 = vpop.f32.mrf.mxu2 }
 0x180   : > { %v949_v37 = vadd.f32 %v895_v1, %v653_v63  ;;  %v1171_v7 = vpop.f32.mrf.mxu3  ;;  %v655_v31 = vpop.f32.mrf.mxu1  ;;  %v4603_v1 = vld [vmem:[#allocation14_spill] sm:$0xff] }
 0x181   : > { %v656_v36 = vadd.f32 %v655_v31, %v4598_v25  ;;  %v3179_v25 = vld [vmem:[%s3379_s5 + $0x99] sm:$0xff] }
 0x182   : > { %v1225_v49 = vadd.f32 %v1171_v7, %v949_v37  ;;  %v4604_v37 = vld [vmem:[#allocation4_spill] sm:$0xff] }
 0x183   : > { %v1449_v5 = vpop.f32.mrf.mxu0  ;;  %3079 = vmatmul.msk.f32.gmra.mxu1 %vm266_vm0, %v3640_v60  ;;  %v4599_v60 = vld [vmem:[#allocation6_spill] sm:$0xff] }
 0x184   : > { %v4112_v15 = vadd.f32 %v1446_v24, %v1225_v49  ;;  %3144 = vmatmul.msk.f32.gmra.mxu2 %vm266_vm0, %v4596_v57 }
 0x185   : > { %3209 = vmatmul.msk.f32.gmra.mxu3 %vm266_vm0, %v3176_v50 }
 0x186   : > { %3274 = vmatmul.msk.f32.gmra.mxu0 %vm266_vm0, %v4597_v30 }
 0x187   : > { %v898_v51 = vpop.f32.mrf.mxu2 }
 0x188   : > { %v950_v52 = vadd.f32 %v898_v51, %v656_v36  ;;  %v1174_v17 = vpop.f32.mrf.mxu3  ;;  %v658_v11 = vpop.f32.mrf.mxu1 }
 0x189   : > { %v659_v23 = vadd.f32 %v658_v11, %v4601_v21 }
 0x18a   : > { %v1226_v39 = vadd.f32 %v1174_v17, %v950_v52  ;;  %v4606_v52 = vld [vmem:[#allocation18_spill] sm:$0xff]  ;;  %v4607_v17 = vld [vmem:[#allocation7_spill] sm:$0xff] }
 0x18b   : > { %v1452_v19 = vpop.f32.mrf.mxu0  ;;  %3080 = vmatmul.msk.f32.gmra.mxu1 %vm266_vm0, %v4594_v56  ;;  %v4602_v56 = vld [vmem:[#allocation9_spill] sm:$0xff] }
 0x18c   : > { %v4123_v40 = vadd.f32 %v1449_v5, %v1226_v39  ;;  %3145 = vmatmul.msk.f32.gmra.mxu2 %vm266_vm0, %v4599_v60 }
 0x18d   : > { %3210 = vmatmul.msk.f32.gmra.mxu3 %vm266_vm0, %v3177_v20 }
 0x18e   : > { %3275 = vmatmul.msk.f32.gmra.mxu0 %vm266_vm0, %v4600_v54 }
 0x18f   : > { %v901_v9 = vpop.f32.mrf.mxu2 }
 0x190   : > { %v951_v33 = vadd.f32 %v901_v9, %v659_v23  ;;  %v1177_v3 = vpop.f32.mrf.mxu3  ;;  %v661_v35 = vpop.f32.mrf.mxu1  ;;  %v3180_v23 = vld [vmem:[%s3379_s5 + $0xa9] sm:$0xff] }
 0x191   : > { %v662_v7 = vadd.f32 %v661_v35, %v4604_v37  ;;  %v4610_v35 = vld [vmem:[#allocation10_spill] sm:$0xff] }
 0x192   : > { %v1227_v24 = vadd.f32 %v1177_v3, %v951_v33  ;;  %v4609_v3 = vld [vmem:[#allocation22_spill] sm:$0xff] }
 0x193   : > { %v1455_v48 = vpop.f32.mrf.mxu0  ;;  %3081 = vmatmul.msk.f32.gmra.mxu1 %vm266_vm0, %v4597_v30  ;;  %v4605_v30 = vld [vmem:[#allocation12_spill] sm:$0xff] }
 0x194   : > { %v4134_v63 = vadd.f32 %v1452_v19, %v1227_v24  ;;  %3146 = vmatmul.msk.f32.gmra.mxu2 %vm266_vm0, %v4602_v56 }
 0x195   : > { %3211 = vmatmul.msk.f32.gmra.mxu3 %vm266_vm0, %v3178_v55 }
 0x196   : > { %3276 = vmatmul.msk.f32.gmra.mxu0 %vm266_vm0, %v4603_v1 }
 0x197   : > { %v904_v31 = vpop.f32.mrf.mxu2 }
 0x198   : > { %v952_v49 = vadd.f32 %v904_v31, %v662_v7  ;;  %v1180_v50 = vpop.f32.mrf.mxu3  ;;  %v664_v5 = vpop.f32.mrf.mxu1  ;;  %v3181_v31 = vld [vmem:[%s3379_s5 + $0xb1] sm:$0xff] }
 0x199   : > { %v665_v11 = vadd.f32 %v664_v5, %v4607_v17  ;;  %v4612_v5 = vld [vmem:[#allocation26_spill] sm:$0xff] }
 0x19a   : > { %v1228_v57 = vadd.f32 %v1180_v50, %v952_v49 }
 0x19b   : > { %v1458_v36 = vpop.f32.mrf.mxu0  ;;  %3082 = vmatmul.msk.f32.gmra.mxu1 %vm266_vm0, %v4600_v54  ;;  %v4608_v54 = vld [vmem:[#allocation15_spill] sm:$0xff] }
 0x19c   : > { %v4145_v51 = vadd.f32 %v1455_v48, %v1228_v57  ;;  %3147 = vmatmul.msk.f32.gmra.mxu2 %vm266_vm0, %v4605_v30  ;;  %v4613_v57 = vld [vmem:[#allocation13_spill] sm:$0xff] }
 0x19d   : > { %3212 = vmatmul.msk.f32.gmra.mxu3 %vm266_vm0, %v3179_v25 }
 0x19e   : > { %3277 = vmatmul.msk.f32.gmra.mxu0 %vm266_vm0, %v4606_v52 }
 0x19f   : > { %v907_v39 = vpop.f32.mrf.mxu2 }
 0x1a0   : > { %v953_v20 = vadd.f32 %v907_v39, %v665_v11  ;;  %v1183_v19 = vpop.f32.mrf.mxu3  ;;  %v667_v60 = vpop.f32.mrf.mxu1 }
 0x1a1   : > { %v668_v24 = vadd.f32 %v667_v60, %v4610_v35 }
 0x1a2   : > { %v1229_v21 = vadd.f32 %v1183_v19, %v953_v20  ;;  %v3182_v20 = vld [vmem:[%s3379_s5 + $0xc1] sm:$0xff] }
 0x1a3   : > { %v1461_v9 = vpop.f32.mrf.mxu0  ;;  %3083 = vmatmul.msk.f32.gmra.mxu1 %vm266_vm0, %v4603_v1  ;;  %v4611_v1 = vld [vmem:[#allocation19_spill] sm:$0xff] }
 0x1a4   : > { %v4156_v33 = vadd.f32 %v1458_v36, %v1229_v21  ;;  %3148 = vmatmul.msk.f32.gmra.mxu2 %vm266_vm0, %v4608_v54  ;;  %v4615_v21 = vld [vmem:[#allocation29_spill] sm:$0xff] }
 0x1a5   : > { %3213 = vmatmul.msk.f32.gmra.mxu3 %vm266_vm0, %v3180_v23  ;;  %v4616_v23 = vld [vmem:[#allocation17_spill] sm:$0xff] }
 0x1a6   : > { %3278 = vmatmul.msk.f32.gmra.mxu0 %vm266_vm0, %v4609_v3 }
 0x1a7   : > { %v910_v55 = vpop.f32.mrf.mxu2 }
 0x1a8   : > { %v954_v48 = vadd.f32 %v910_v55, %v668_v24  ;;  %v1186_v56 = vpop.f32.mrf.mxu3  ;;  %v670_v37 = vpop.f32.mrf.mxu1 }
 0x1a9   : > { %v671_v25 = vadd.f32 %v670_v37, %v4613_v57 }
 0x1aa   : > { %v1230_v7 = vadd.f32 %v1186_v56, %v954_v48  ;;  %v3183_v56 = vld [vmem:[%s3379_s5 + $0xc9] sm:$0xff] }
 0x1ab   : > { %v1464_v49 = vpop.f32.mrf.mxu0  ;;  %3084 = vmatmul.msk.f32.gmra.mxu1 %vm266_vm0, %v4606_v52  ;;  %v4614_v52 = vld [vmem:[#allocation23_spill] sm:$0xff] }
 0x1ac   : > { %v4167_v50 = vadd.f32 %v1461_v9, %v1230_v7  ;;  %3149 = vmatmul.msk.f32.gmra.mxu2 %vm266_vm0, %v4611_v1 }
 0x1ad   : > { %3214 = vmatmul.msk.f32.gmra.mxu3 %vm266_vm0, %v3181_v31 }
 0x1ae   : > { %3279 = vmatmul.msk.f32.gmra.mxu0 %vm266_vm0, %v4612_v5 }
 0x1af   : > { %v913_v36 = vpop.f32.mrf.mxu2 }
 0x1b0   : > { %v955_v30 = vadd.f32 %v913_v36, %v671_v25  ;;  %v1189_v17 = vpop.f32.mrf.mxu3  ;;  %v673_v11 = vpop.f32.mrf.mxu1 }
 0x1b1   : > { %v674_v9 = vadd.f32 %v673_v11, %v4616_v23 }
 0x1b2   : > { %v1231_v39 = vadd.f32 %v1189_v17, %v955_v30  ;;  %v3184_v30 = vld [vmem:[%s3379_s5 + $0xd9] sm:$0xff] }
 0x1b3   : > { %v1467_v19 = vpop.f32.mrf.mxu0  ;;  %3085 = vmatmul.msk.f32.gmra.mxu1 %vm266_vm0, %v4609_v3  ;;  %v4617_v3 = vld [vmem:[#allocation21_spill] sm:$0xff] }
 0x1b4   : > { %v4178_v60 = vadd.f32 %v1464_v49, %v1231_v39  ;;  %3150 = vmatmul.msk.f32.gmra.mxu2 %vm266_vm0, %v4614_v52 }
 0x1b5   : > { %3215 = vmatmul.msk.f32.gmra.mxu3 %vm266_vm0, %v3182_v20 }
 0x1b6   : > { %3280 = vmatmul.msk.f32.gmra.mxu0 %vm266_vm0, %v4615_v21 }
 0x1b7   : > { %v916_v54 = vpop.f32.mrf.mxu2 }
 0x1b8   : > { %v956_v35 = vadd.f32 %v916_v54, %v674_v9  ;;  %v1192_v24 = vpop.f32.mrf.mxu3  ;;  %v676_v55 = vpop.f32.mrf.mxu1  ;;  %v3185_v9 = vld [vmem:[%s3379_s5 + $0xe1] sm:$0xff] }
 0x1b9   : > { %v677_v31 = vadd.f32 %v676_v55, %v4617_v3  ;;  %v3186_v3 = vld [vmem:[%s3379_s5 + $0xf1] sm:$0xff] }
 0x1ba   : > { %v1232_v48 = vadd.f32 %v1192_v24, %v956_v35 }
 0x1bb   : > { %v1470_v37 = vpop.f32.mrf.mxu0  ;;  %3086 = vmatmul.msk.f32.gmra.mxu1 %vm266_vm0, %v4612_v5 }
 0x1bc   : > { %v4189_v7 = vadd.f32 %v1467_v19, %v1232_v48  ;;  %3151 = vmatmul.msk.f32.gmra.mxu2 %vm266_vm0, %v3797_v44  ;;  %v4618_v44 = vld [vmem:[#allocation25_spill] sm:$0xff] }
 0x1bd   : > { %3216 = vmatmul.msk.f32.gmra.mxu3 %vm266_vm0, %v3183_v56 }
 0x1be   : > { %3281 = vmatmul.msk.f32.gmra.mxu0 %vm266_vm0, %v3829_v2 }
 0x1bf   : > { %v919_v49 = vpop.f32.mrf.mxu2 }
 0x1c0   : > { %v957_v1 = vadd.f32 %v919_v49, %v677_v31  ;;  %v1195_v57 = vpop.f32.mrf.mxu3  ;;  %v679_v25 = vpop.f32.mrf.mxu1 }
 0x1c1   : > { %v680_v5 = vadd.f32 %v679_v25, %v4618_v44 }
 0x1c2   : > { %v1233_v36 = vadd.f32 %v1195_v57, %v957_v1 }
 0x1c3   : > { %v1473_v17 = vpop.f32.mrf.mxu0  ;;  %3087 = vmatmul.msk.f32.gmra.mxu1 %vm266_vm0, %v4615_v21 }
 0x1c4   : > { %v4200_v11 = vadd.f32 %v1470_v37, %v1233_v36  ;;  %3152 = vmatmul.msk.f32.gmra.mxu2 %vm266_vm0, %v3817_v61  ;;  %v4619_v61 = vld [vmem:[#allocation28_spill] sm:$0xff] }
 0x1c5   : > { %3217 = vmatmul.msk.f32.gmra.mxu3 %vm266_vm0, %v3184_v30 }
 0x1c6   : > { %3282 = vmatmul.msk.f32.gmra.mxu0 %vm266_vm0, %v3846_v27 }
 0x1c7   : > { %v922_v39 = vpop.f32.mrf.mxu2 }
 0x1c8   : > { %v958_v20 = vadd.f32 %v922_v39, %v680_v5  ;;  %v1198_v19 = vpop.f32.mrf.mxu3  ;;  %v682_v52 = vpop.f32.mrf.mxu1  ;;  %v4242_v5 = vld [vmem:[%s4527_s3] ss:$0 sm:$0xff]  ;;  %v4621_v39 = vld [vmem:[#allocation31_spill] sm:$0xff] }
 0x1c9   : > { %v683_v35 = vadd.f32 %v682_v52, %v4619_v61 }
 0x1ca   : > { %v1234_v23 = vadd.f32 %v1198_v19, %v958_v20 }
 0x1cb   : > { %v1476_v54 = vpop.f32.mrf.mxu0  ;;  %3088 = vmatmul.msk.f32.gmra.mxu1 %vm266_vm0, %v3829_v2 }
 0x1cc   : > { %v4211_v21 = vadd.f32 %v1473_v17, %v1234_v23  ;;  %3153 = vmatmul.msk.f32.gmra.mxu2 %vm266_vm0, %v3832_v58  ;;  %v4620_v58 = vld [vmem:[#allocation30_spill] sm:$0xff] }
 0x1cd   : > { %3218 = vmatmul.msk.f32.gmra.mxu3 %vm266_vm0, %v3185_v9 }
 0x1ce   : > { %3283 = vmatmul.msk.f32.gmra.mxu0 %vm266_vm0, %v3863_v62 }
 0x1cf   : > { %v925_v24 = vpop.f32.mrf.mxu2 }
 0x1d0   : > { %v959_v55 = vadd.f32 %v925_v24, %v683_v35  ;;  %v1201_v48 = vpop.f32.mrf.mxu3  ;;  %v1658_v56 = vpop.f32.mrf.mxu1  ;;  %v3188_v35 = vld [vmem:[%s3379_s5 + $0x109] sm:$0xff] }
 0x1d1   : > { %v1754_v49 = vadd.f32 %v1658_v56, %v4620_v58 }
 0x1d2   : > { %v1235_v37 = vadd.f32 %v1201_v48, %v959_v55  ;;  %v4622_v48 = vld [vmem:[#allocation32_spill] sm:$0xff] }
 0x1d3   : > { %v2484_v31 = vpop.f32.mrf.mxu0  ;;  %3089 = vmatmul.msk.f32.gmra.mxu1 %vm266_vm0, %v3846_v27  ;;  %v4236_v27 = vld [vmem:[%s4526_s2] ss:$0 sm:$0xff] }
 0x1d4   : > { %v4223_v2 = vadd.f32 %v1476_v54, %v1235_v37  ;;  %3154 = vmatmul.msk.f32.gmra.mxu2 %vm266_vm0, %v3849_v6  ;;  %v3187_v6 = vld [vmem:[%s3379_s5 + $0xf9] sm:$0xff] }
 0x1d5   : > { %3219 = vmatmul.msk.f32.gmra.mxu3 %vm266_vm0, %v3186_v3 }
 0x1d6   : > { %3284 = vmatmul.msk.f32.gmra.mxu0 %vm266_vm0, %v3880_v4 }
 0x1d7   : > { %v1934_v1 = vpop.f32.mrf.mxu2 }
 0x1d8   : > { %v2030_v57 = vadd.f32 %v1934_v1, %v1754_v49  ;;  %v2209_v25 = vpop.f32.mrf.mxu3  ;;  %v1661_v36 = vpop.f32.mrf.mxu1 }
 0x1d9   : > { %v1755_v20 = vadd.f32 %v1661_v36, %v4621_v39 }
 0x1da   : > { %v2305_v30 = vadd.f32 %v2209_v25, %v2030_v57  ;;  %v3189_v25 = vld [vmem:[%s3379_s5 + $0x111] sm:$0xff] }
 0x1db   : > { %v2487_v17 = vpop.f32.mrf.mxu0  ;;  %3090 = vmatmul.msk.f32.gmra.mxu1 %vm266_vm0, %v3863_v62 }
 0x1dc   : > { %v2580_v44 = vadd.f32 %v2484_v31, %v2305_v30  ;;  %3155 = vmatmul.msk.f32.gmra.mxu2 %vm266_vm0, %v3866_v13  ;;  %v4623_v30 = vld [vmem:[#allocation33_spill] sm:$0xff] }
 0x1dd   : > { %3220 = vmatmul.msk.f32.gmra.mxu3 %vm266_vm0, %v3187_v6 }
 0x1de   : > { %3285 = vmatmul.msk.f32.gmra.mxu0 %vm266_vm0, %v3897_v16  ;;  %v2616_v19 = vmul.f32 %v4236_v27, %v2580_v44 }
 0x1df   : > { %v1937_v52 = vpop.f32.mrf.mxu2 }
 0x1e0   : > { %v2652_v23 = vadd.f32 %v4242_v5, %v2616_v19  ;;  %v2031_v9 = vadd.f32 %v1937_v52, %v1755_v20  ;;  %v2212_v54 = vpop.f32.mrf.mxu3  ;;  %v1664_v62 = vpop.f32.mrf.mxu1 }
 0x1e1   : > { %v1756_v56 = vadd.f32 %v1664_v62, %v4622_v48  ;;  %v4624_v62 = vld [vmem:[#allocation34_spill] sm:$0xff] }
 0x1e2   : > { %v2684_v13 = vmax.f32 %v2652_v23, 0.0  ;;  %v2306_v61 = vadd.f32 %v2212_v54, %v2031_v9  ;;  %v3190_v9 = vld [vmem:[%s3379_s5 + $0x121] sm:$0xff] }
 0x1e3   : > { %v2490_v24 = vpop.f32.mrf.mxu0  ;;  %3091 = vmatmul.msk.f32.gmra.mxu1 %vm266_vm0, %v3880_v4 }
 0x1e4   : > { %2716 = vst.msk [vmem:[%s4257_s23] sm:$0xff] %vm266_vm0, %v2684_v13  ;;  %v2581_v55 = vadd.f32 %v2487_v17, %v2306_v61  ;;  %3156 = vmatmul.msk.f32.gmra.mxu2 %vm266_vm0, %v3883_v14 }
 0x1e5   : > { %3221 = vmatmul.msk.f32.gmra.mxu3 %vm266_vm0, %v3188_v35 }
 0x1e6   : > { %3286 = vmatmul.msk.f32.gmra.mxu0 %vm266_vm0, %v3914_v32  ;;  %v2617_v37 = vmul.f32 %v4236_v27, %v2581_v55 }
 0x1e7   : > { %v1940_v3 = vpop.f32.mrf.mxu2 }
 0x1e8   : > { %v2653_v31 = vadd.f32 %v4242_v5, %v2617_v37  ;;  %v2032_v58 = vadd.f32 %v1940_v3, %v1756_v56  ;;  %v2215_v49 = vpop.f32.mrf.mxu3  ;;  %v1667_v1 = vpop.f32.mrf.mxu1  ;;  %v3191_v3 = vld [vmem:[%s3379_s5 + $0x129] sm:$0xff] }
 0x1e9   : > { %v1757_v6 = vadd.f32 %v1667_v1, %v4623_v30 }
 0x1ea   : > { %v2685_v57 = vmax.f32 %v2653_v31, 0.0  ;;  %v2307_v4 = vadd.f32 %v2215_v49, %v2032_v58  ;;  %v4625_v58 = vld [vmem:[#allocation35_spill] sm:$0xff] }
 0x1eb   : > { %v2493_v36 = vpop.f32.mrf.mxu0  ;;  %3092 = vmatmul.msk.f32.gmra.mxu1 %vm266_vm0, %v3897_v16 }
 0x1ec   : > { %2717 = vst.msk [vmem:[%s4257_s23 + $0x8] sm:$0xff] %vm266_vm0, %v2685_v57  ;;  %v2582_v14 = vadd.f32 %v2490_v24, %v2307_v4  ;;  %3157 = vmatmul.msk.f32.gmra.mxu2 %vm266_vm0, %v3900_v18 }
 0x1ed   : > { %3222 = vmatmul.msk.f32.gmra.mxu3 %vm266_vm0, %v3189_v25 }
 0x1ee   : > { %3287 = vmatmul.msk.f32.gmra.mxu0 %vm266_vm0, %v3931_v45  ;;  %v2618_v17 = vmul.f32 %v4236_v27, %v2582_v14 }
 0x1ef   : > { %v1943_v44 = vpop.f32.mrf.mxu2 }
 0x1f0   : > { %v2654_v39 = vadd.f32 %v4242_v5, %v2618_v17  ;;  %v2033_v20 = vadd.f32 %v1943_v44, %v1757_v6  ;;  %v2218_v19 = vpop.f32.mrf.mxu3  ;;  %v1670_v52 = vpop.f32.mrf.mxu1  ;;  %v3192_v6 = vld [vmem:[%s3379_s5 + $0x139] sm:$0xff] }
 0x1f1   : > { %v1758_v13 = vadd.f32 %v1670_v52, %v4624_v62 }
 0x1f2   : > { %v2686_v23 = vmax.f32 %v2654_v39, 0.0  ;;  %v2308_v16 = vadd.f32 %v2218_v19, %v2033_v20 }
 0x1f3   : > { %v2496_v54 = vpop.f32.mrf.mxu0  ;;  %3093 = vmatmul.msk.f32.gmra.mxu1 %vm266_vm0, %v3914_v32 }
 0x1f4   : > { %2718 = vst.msk [vmem:[%s4257_s23 + $0x10] sm:$0xff] %vm266_vm0, %v2686_v23  ;;  %v2583_v18 = vadd.f32 %v2493_v36, %v2308_v16  ;;  %3158 = vmatmul.msk.f32.gmra.mxu2 %vm266_vm0, %v3917_v22 }
 0x1f5   : > { %3223 = vmatmul.msk.f32.gmra.mxu3 %vm266_vm0, %v3190_v9  ;;  %v3128_v9 = vld [vmem:[%s3379_s5 + $0x140] sm:$0xff] }
 0x1f6   : > { %3288 = vmatmul.msk.f32.gmra.mxu0 %vm266_vm0, %v3948_v0  ;;  %v2619_v61 = vmul.f32 %v4236_v27, %v2583_v18  ;;  %v3193_v18 = vld [vmem:[%s3379_s5 + $0x141] sm:$0xff] }
 0x1f7   : > { %v1946_v35 = vpop.f32.mrf.mxu2 }
 0x1f8   : > { %v2655_v24 = vadd.f32 %v4242_v5, %v2619_v61  ;;  %v2034_v55 = vadd.f32 %v1946_v35, %v1758_v13  ;;  %v2221_v48 = vpop.f32.mrf.mxu3  ;;  %v1673_v56 = vpop.f32.mrf.mxu1  ;;  %v4627_v13 = vld [vmem:[#allocation37_spill] sm:$0xff] }
 0x1f9   : > { %v1759_v49 = vadd.f32 %v1673_v56, %v4625_v58  ;;  %v3194_v58 = vld [vmem:[%s3379_s5 + $0x151] sm:$0xff] }
 0x1fa   : > { %v2687_v37 = vmax.f32 %v2655_v24, 0.0  ;;  %v2309_v32 = vadd.f32 %v2221_v48, %v2034_v55 }
 0x1fb   : > { %v2499_v31 = vpop.f32.mrf.mxu0  ;;  %3094 = vmatmul.msk.f32.gmra.mxu1 %vm266_vm0, %v3931_v45 }
 0x1fc   : > { %2719 = vst.msk [vmem:[%s4257_s23 + $0x18] sm:$0xff] %vm266_vm0, %v2687_v37  ;;  %v2584_v22 = vadd.f32 %v2496_v54, %v2309_v32  ;;  %3159 = vmatmul.msk.f32.gmra.mxu2 %vm266_vm0, %v3934_v29  ;;  %v3064_v32 = vld [vmem:[%s3379_s5 + $0x13a] sm:$0xff] }
 0x1fd   : > { %3224 = vmatmul.msk.f32.gmra.mxu3 %vm266_vm0, %v3191_v3  ;;  %v3129_v3 = vld [vmem:[%s3379_s5 + $0x150] sm:$0xff] }
 0x1fe   : > { %3289 = vmatmul.msk.f32.gmra.mxu0 %vm266_vm0, %v3965_v26  ;;  %v2620_v1 = vmul.f32 %v4236_v27, %v2584_v22  ;;  %v4626_v26 = vld [vmem:[#allocation36_spill] sm:$0xff] }
 0x1ff   : > { %v1949_v57 = vpop.f32.mrf.mxu2 }
 0x200   : > { %v2656_v4 = vadd.f32 %v4242_v5, %v2620_v1  ;;  %v2035_v25 = vadd.f32 %v1949_v57, %v1759_v49  ;;  %v2224_v36 = vpop.f32.mrf.mxu3  ;;  %v1676_v14 = vpop.f32.mrf.mxu1  ;;  %v3259_v1 = vld [vmem:[%s3379_s5 + $0x152] sm:$0xff]  ;;  %v4628_v57 = vld [vmem:[#allocation38_spill] sm:$0xff] }
 0x201   : > { %v1760_v44 = vadd.f32 %v1676_v14, %v4626_v26 }
 0x202   : > { %v2688_v30 = vmax.f32 %v2656_v4, 0.0  ;;  %v2310_v45 = vadd.f32 %v2224_v36, %v2035_v25 }
 0x203   : > { %v2502_v29 = vpop.f32.mrf.mxu0  ;;  %3095 = vmatmul.msk.f32.gmra.mxu1 %vm266_vm0, %v3948_v0  ;;  %v3063_v0 = vld [vmem:[%s3379_s5 + $0x12a] sm:$0xff] }
 0x204   : > { %2720 = vst.msk [vmem:[%s4257_s23 + $0x20] sm:$0xff] %vm266_vm0, %v2688_v30  ;;  %v2585_v17 = vadd.f32 %v2499_v31, %v2310_v45  ;;  %3160 = vmatmul.msk.f32.gmra.mxu2 %vm266_vm0, %v3951_v34 }
 0x205   : > { %3225 = vmatmul.msk.f32.gmra.mxu3 %vm266_vm0, %v3192_v6 }
 0x206   : > { %3290 = vmatmul.msk.f32.gmra.mxu0 %vm266_vm0, %v3979_v10  ;;  %v2621_v39 = vmul.f32 %v4236_v27, %v2585_v17  ;;  %v3130_v17 = vld [vmem:[%s3379_s5 + $0x158] sm:$0xff] }
 0x207   : > { %v1952_v20 = vpop.f32.mrf.mxu2 }
 0x208   : > { %v2657_v19 = vadd.f32 %v4242_v5, %v2621_v39  ;;  %v2036_v52 = vadd.f32 %v1952_v20, %v1760_v44  ;;  %v2227_v23 = vpop.f32.mrf.mxu3  ;;  %v1679_v16 = vpop.f32.mrf.mxu1  ;;  %v3195_v39 = vld [vmem:[%s3379_s5 + $0x159] sm:$0xff] }
 0x209   : > { %v1761_v61 = vadd.f32 %v1679_v16, %v4627_v13 }
 0x20a   : > { %v2689_v54 = vmax.f32 %v2657_v19, 0.0  ;;  %v2311_v34 = vadd.f32 %v2227_v23, %v2036_v52  ;;  %v3260_v19 = vld [vmem:[%s3379_s5 + $0x15a] sm:$0xff]  ;;  %v4629_v23 = vld [vmem:[#allocation39_spill] sm:$0xff] }
 0x20b   : > { %v2505_v62 = vpop.f32.mrf.mxu0  ;;  %3096 = vmatmul.msk.f32.gmra.mxu1 %vm266_vm0, %v3063_v0 }
 0x20c   : > { %2721 = vst.msk [vmem:[%s4257_s23 + $0x28] sm:$0xff] %vm266_vm0, %v2689_v54  ;;  %v2586_v10 = vadd.f32 %v2502_v29, %v2311_v34  ;;  %3161 = vmatmul.msk.f32.gmra.mxu2 %vm266_vm0, %v3128_v9  ;;  %v3065_v29 = vld [vmem:[%s3379_s5 + $0x142] sm:$0xff] }
 0x20d   : > { %3226 = vmatmul.msk.f32.gmra.mxu3 %vm266_vm0, %v3193_v18 }
 0x20e   : > { %3291 = vmatmul.msk.f32.gmra.mxu0 %vm266_vm0, %v3993_v46  ;;  %v2622_v35 = vmul.f32 %v4236_v27, %v2586_v10  ;;  %v3131_v10 = vld [vmem:[%s3379_s5 + $0x168] sm:$0xff] }
 0x20f   : > { %v1955_v24 = vpop.f32.mrf.mxu2 }
 0x210   : > { %v2658_v55 = vadd.f32 %v4242_v5, %v2622_v35  ;;  %v2037_v48 = vadd.f32 %v1955_v24, %v1761_v61  ;;  %v2230_v56 = vpop.f32.mrf.mxu3  ;;  %v1682_v37 = vpop.f32.mrf.mxu1  ;;  %v3196_v35 = vld [vmem:[%s3379_s5 + $0x169] sm:$0xff] }
 0x211   : > { %v1762_v4 = vadd.f32 %v1682_v37, %v4628_v57  ;;  %v3197_v57 = vld [vmem:[%s3379_s5 + $0x171] sm:$0xff] }
 0x212   : > { %v2690_v31 = vmax.f32 %v2658_v55, 0.0  ;;  %v2312_v22 = vadd.f32 %v2230_v56, %v2037_v48  ;;  %v3261_v55 = vld [vmem:[%s3379_s5 + $0x16a] sm:$0xff] }
 0x213   : > { %v2508_v49 = vpop.f32.mrf.mxu0  ;;  %3097 = vmatmul.msk.f32.gmra.mxu1 %vm266_vm0, %v3064_v32 }
 0x214   : > { %2722 = vst.msk [vmem:[%s4257_s23 + $0x30] sm:$0xff] %vm266_vm0, %v2690_v31  ;;  %v2587_v46 = vadd.f32 %v2505_v62, %v2312_v22  ;;  %3162 = vmatmul.msk.f32.gmra.mxu2 %vm266_vm0, %v3129_v3 }
 0x215   : > { %3227 = vmatmul.msk.f32.gmra.mxu3 %vm266_vm0, %v3194_v58 }
 0x216   : > { %3292 = vmatmul.msk.f32.gmra.mxu0 %vm266_vm0, %v3259_v1  ;;  %v2623_v25 = vmul.f32 %v4236_v27, %v2587_v46 }
 0x217   : > { %v1958_v36 = vpop.f32.mrf.mxu2 }
 0x218   : > { %v2659_v14 = vadd.f32 %v4242_v5, %v2623_v25  ;;  %v2038_v30 = vadd.f32 %v1958_v36, %v1762_v4  ;;  %v2233_v45 = vpop.f32.mrf.mxu3  ;;  %v1685_v6 = vpop.f32.mrf.mxu1  ;;  %v3262_v25 = vld [vmem:[%s3379_s5 + $0x172] sm:$0xff] }
 0x219   : > { %v1763_v16 = vadd.f32 %v1685_v6, %v4629_v23 }
 0x21a   : > { %v2691_v26 = vmax.f32 %v2659_v14, 0.0  ;;  %v2313_v44 = vadd.f32 %v2233_v45, %v2038_v30 }
 0x21b   : > { %v2511_v20 = vpop.f32.mrf.mxu0  ;;  %3098 = vmatmul.msk.f32.gmra.mxu1 %vm266_vm0, %v3065_v29 }
 0x21c   : > { %2723 = vst.msk [vmem:[%s4257_s23 + $0x38] sm:$0xff] %vm266_vm0, %v2691_v26  ;;  %v2588_v52 = vadd.f32 %v2508_v49, %v2313_v44  ;;  %3163 = vmatmul.msk.f32.gmra.mxu2 %vm266_vm0, %v3130_v17  ;;  %v3132_v49 = vld [vmem:[%s3379_s5 + $0x170] sm:$0xff]  ;;  %v3133_v26 = vld [vmem:[%s3379_s5 + $0x180] sm:$0xff] }
 0x21d   : > { %3228 = vmatmul.msk.f32.gmra.mxu3 %vm266_vm0, %v3195_v39 }
 0x21e   : > { %3293 = vmatmul.msk.f32.gmra.mxu0 %vm266_vm0, %v3260_v19  ;;  %v2624_v0 = vmul.f32 %v4236_v27, %v2588_v52  ;;  %v3263_v52 = vld [vmem:[%s3379_s5 + $0x182] sm:$0xff] }
 0x21f   : > { %v1961_v9 = vpop.f32.mrf.mxu2 }
 0x220   : > { %v2660_v54 = vadd.f32 %v4242_v5, %v2624_v0  ;;  %v2039_v34 = vadd.f32 %v1961_v9, %v1763_v16  ;;  %v2236_v18 = vpop.f32.mrf.mxu3  ;;  %v1688_v62 = vpop.f32.mrf.mxu1 }
 0x221   : > { %v1764_v56 = vadd.f32 %v1688_v62, %v3996_v28 }
 0x222   : > { %v2692_v13 = vmax.f32 %v2660_v54, 0.0  ;;  %v2314_v61 = vadd.f32 %v2236_v18, %v2039_v34 }
 0x223   : > { %v2514_v24 = vpop.f32.mrf.mxu0  ;;  %3099 = vmatmul.msk.f32.gmra.mxu1 %vm266_vm0, %v3259_v1 }
 0x224   : > { %2724 = vst.msk [vmem:[%s4257_s23 + $0x40] sm:$0xff] %vm266_vm0, %v2692_v13  ;;  %v2589_v48 = vadd.f32 %v2511_v20, %v2314_v61  ;;  %3164 = vmatmul.msk.f32.gmra.mxu2 %vm266_vm0, %v3131_v10  ;;  %v3198_v20 = vld [vmem:[%s3379_s5 + $0x181] sm:$0xff] }
 0x225   : > { %3229 = vmatmul.msk.f32.gmra.mxu3 %vm266_vm0, %v3196_v35  ;;  %v3134_v10 = vld [vmem:[%s3379_s5 + $0x188] sm:$0xff] }
 0x226   : > { %3294 = vmatmul.msk.f32.gmra.mxu0 %vm266_vm0, %v3261_v55  ;;  %v2625_v37 = vmul.f32 %v4236_v27, %v2589_v48  ;;  %v3199_v35 = vld [vmem:[%s3379_s5 + $0x189] sm:$0xff] }
 0x227   : > { %v1964_v32 = vpop.f32.mrf.mxu2 }
 0x228   : > { %v2661_v3 = vadd.f32 %v4242_v5, %v2625_v37  ;;  %v2040_v31 = vadd.f32 %v1964_v32, %v1764_v56  ;;  %v2239_v22 = vpop.f32.mrf.mxu3  ;;  %v1691_v58 = vpop.f32.mrf.mxu1 }
 0x229   : > { %v1765_v28 = vadd.f32 %v1691_v58, %v4007_v8  ;;  %v4630_v8 = vld [vmem:[#allocation40_spill] sm:$0xff] }
 0x22a   : > { %v2693_v1 = vmax.f32 %v2661_v3, 0.0  ;;  %v2315_v46 = vadd.f32 %v2239_v22, %v2040_v31 }
 0x22b   : > { %v2517_v4 = vpop.f32.mrf.mxu0  ;;  %3100 = vmatmul.msk.f32.gmra.mxu1 %vm266_vm0, %v3260_v19 }
 0x22c   : > { %2725 = vst.msk [vmem:[%s4257_s23 + $0x48] sm:$0xff] %vm266_vm0, %v2693_v1  ;;  %v2590_v36 = vadd.f32 %v2514_v24, %v2315_v46  ;;  %3165 = vmatmul.msk.f32.gmra.mxu2 %vm266_vm0, %v3132_v49  ;;  %v3135_v49 = vld [vmem:[%s3379_s5 + $0x198] sm:$0xff] }
 0x22d   : > { %3230 = vmatmul.msk.f32.gmra.mxu3 %vm266_vm0, %v3197_v57  ;;  %v3200_v57 = vld [vmem:[%s3379_s5 + $0x199] sm:$0xff] }
 0x22e   : > { %3295 = vmatmul.msk.f32.gmra.mxu0 %vm266_vm0, %v3262_v25  ;;  %v2626_v14 = vmul.f32 %v4236_v27, %v2590_v36 }
 0x22f   : > { %v1967_v30 = vpop.f32.mrf.mxu2 }
 0x230   : > { %v2662_v45 = vadd.f32 %v4242_v5, %v2626_v14  ;;  %v2041_v6 = vadd.f32 %v1967_v30, %v1765_v28  ;;  %v2242_v29 = vpop.f32.mrf.mxu3  ;;  %v1694_v17 = vpop.f32.mrf.mxu1 }
 0x231   : > { %v1766_v16 = vadd.f32 %v1694_v17, %v4630_v8  ;;  %v3136_v17 = vld [vmem:[%s3379_s5 + $0x1a0] sm:$0xff] }
 0x232   : > { %v2694_v44 = vmax.f32 %v2662_v45, 0.0  ;;  %v2316_v39 = vadd.f32 %v2242_v29, %v2041_v6 }
 0x233   : > { %v2520_v19 = vpop.f32.mrf.mxu0  ;;  %3101 = vmatmul.msk.f32.gmra.mxu1 %vm266_vm0, %v3261_v55  ;;  %v3264_v55 = vld [vmem:[%s3379_s5 + $0x18a] sm:$0xff] }
 0x234   : > { %2726 = vst.msk [vmem:[%s4257_s23 + $0x50] sm:$0xff] %vm266_vm0, %v2694_v44  ;;  %v2591_v23 = vadd.f32 %v2517_v4, %v2316_v39  ;;  %3166 = vmatmul.msk.f32.gmra.mxu2 %vm266_vm0, %v3133_v26  ;;  %v3201_v39 = vld [vmem:[%s3379_s5 + $0x1a1] sm:$0xff] }
 0x235   : > { %3231 = vmatmul.msk.f32.gmra.mxu3 %vm266_vm0, %v3198_v20 }
 0x236   : > { %3296 = vmatmul.msk.f32.gmra.mxu0 %vm266_vm0, %v3263_v52  ;;  %v2627_v0 = vmul.f32 %v4236_v27, %v2591_v23 }
 0x237   : > { %v1970_v9 = vpop.f32.mrf.mxu2 }
 0x238   : > { %v2663_v54 = vadd.f32 %v4242_v5, %v2627_v0  ;;  %v2042_v34 = vadd.f32 %v1970_v9, %v1766_v16  ;;  %v2245_v18 = vpop.f32.mrf.mxu3  ;;  %v1697_v62 = vpop.f32.mrf.mxu1 }
 0x239   : > { %v1767_v56 = vadd.f32 %v1697_v62, %v4028_v12 }
 0x23a   : > { %v2695_v13 = vmax.f32 %v2663_v54, 0.0  ;;  %v2317_v61 = vadd.f32 %v2245_v18, %v2042_v34 }
 0x23b   : > { %v2523_v24 = vpop.f32.mrf.mxu0  ;;  %3102 = vmatmul.msk.f32.gmra.mxu1 %vm266_vm0, %v3262_v25  ;;  %v3265_v25 = vld [vmem:[%s3379_s5 + $0x19a] sm:$0xff] }
 0x23c   : > { %2727 = vst.msk [vmem:[%s4257_s23 + $0x58] sm:$0xff] %vm266_vm0, %v2695_v13  ;;  %v2592_v48 = vadd.f32 %v2520_v19, %v2317_v61  ;;  %3167 = vmatmul.msk.f32.gmra.mxu2 %vm266_vm0, %v3134_v10  ;;  %v3266_v19 = vld [vmem:[%s3379_s5 + $0x1a2] sm:$0xff] }
 0x23d   : > { %3232 = vmatmul.msk.f32.gmra.mxu3 %vm266_vm0, %v3199_v35 }
 0x23e   : > { %3297 = vmatmul.msk.f32.gmra.mxu0 %vm266_vm0, %v3264_v55  ;;  %v2628_v37 = vmul.f32 %v4236_v27, %v2592_v48 }
 0x23f   : > { %v1973_v32 = vpop.f32.mrf.mxu2 }
 0x240   : > { %v2664_v3 = vadd.f32 %v4242_v5, %v2628_v37  ;;  %v2043_v31 = vadd.f32 %v1973_v32, %v1767_v56  ;;  %v2248_v22 = vpop.f32.mrf.mxu3  ;;  %v1700_v58 = vpop.f32.mrf.mxu1 }
 0x241   : > { %v1768_v12 = vadd.f32 %v1700_v58, %v4038_v59 }
 0x242   : > { %v2696_v1 = vmax.f32 %v2664_v3, 0.0  ;;  %v2318_v46 = vadd.f32 %v2248_v22, %v2043_v31 }
 0x243   : > { %v2526_v4 = vpop.f32.mrf.mxu0  ;;  %3103 = vmatmul.msk.f32.gmra.mxu1 %vm266_vm0, %v3263_v52 }
 0x244   : > { %2728 = vst.msk [vmem:[%s4257_s23 + $0x60] sm:$0xff] %vm266_vm0, %v2696_v1  ;;  %v2593_v36 = vadd.f32 %v2523_v24, %v2318_v46  ;;  %3168 = vmatmul.msk.f32.gmra.mxu2 %vm266_vm0, %v3135_v49 }
 0x245   : > { %3233 = vmatmul.msk.f32.gmra.mxu3 %vm266_vm0, %v3200_v57 }
 0x246   : > { %3298 = vmatmul.msk.f32.gmra.mxu0 %vm266_vm0, %v3265_v25  ;;  %v2629_v28 = vmul.f32 %v4236_v27, %v2593_v36 }
 0x247   : > { %v1976_v14 = vpop.f32.mrf.mxu2 }
 0x248   : > { %v2665_v30 = vadd.f32 %v4242_v5, %v2629_v28  ;;  %v2044_v45 = vadd.f32 %v1976_v14, %v1768_v12  ;;  %v2251_v6 = vpop.f32.mrf.mxu3  ;;  %v1703_v29 = vpop.f32.mrf.mxu1 }
 0x249   : > { %v1769_v59 = vadd.f32 %v1703_v29, %v4045_v41 }
 0x24a   : > { %v2697_v26 = vmax.f32 %v2665_v30, 0.0  ;;  %v2319_v44 = vadd.f32 %v2251_v6, %v2044_v45 }
 0x24b   : > { %v2529_v20 = vpop.f32.mrf.mxu0  ;;  %3104 = vmatmul.msk.f32.gmra.mxu1 %vm266_vm0, %v3264_v55 }
 0x24c   : > { %2729 = vst.msk [vmem:[%s4257_s23 + $0x68] sm:$0xff] %vm266_vm0, %v2697_v26  ;;  %v2594_v52 = vadd.f32 %v2526_v4, %v2319_v44  ;;  %3169 = vmatmul.msk.f32.gmra.mxu2 %vm266_vm0, %v3136_v17 }
 0x24d   : > { %3234 = vmatmul.msk.f32.gmra.mxu3 %vm266_vm0, %v3201_v39 }
 0x24e   : > { %3299 = vmatmul.msk.f32.gmra.mxu0 %vm266_vm0, %v3266_v19  ;;  %v2630_v23 = vmul.f32 %v4236_v27, %v2594_v52 }
 0x24f   : > { %v1979_v8 = vpop.f32.mrf.mxu2 }
 0x250   : > { %v2666_v16 = vadd.f32 %v4242_v5, %v2630_v23  ;;  %v2045_v0 = vadd.f32 %v1979_v8, %v1769_v59  ;;  %v2254_v9 = vpop.f32.mrf.mxu3  ;;  %v1706_v54 = vpop.f32.mrf.mxu1 }
 0x251   : > { %v1770_v13 = vadd.f32 %v1706_v54, %v4056_v42 }
 0x252   : > { %v2698_v34 = vmax.f32 %v2666_v16, 0.0  ;;  %v2320_v18 = vadd.f32 %v2254_v9, %v2045_v0 }
 0x253   : > { %v2532_v62 = vpop.f32.mrf.mxu0 }
 0x254   : > { %2730 = vst.msk [vmem:[%s4257_s23 + $0x70] sm:$0xff] %vm266_vm0, %v2698_v34  ;;  %v2595_v10 = vadd.f32 %v2529_v20, %v2320_v18 }
 0x256   : > { %v2631_v61 = vmul.f32 %v4236_v27, %v2595_v10 }
 0x257   : > { %v1982_v41 = vpop.f32.mrf.mxu2 }
 0x258   : > { %v2667_v35 = vadd.f32 %v4242_v5, %v2631_v61  ;;  %v2046_v24 = vadd.f32 %v1982_v41, %v1770_v13  ;;  %v2257_v55 = vpop.f32.mrf.mxu3  ;;  %v1709_v48 = vpop.f32.mrf.mxu1 }
 0x259   : > { %v1771_v31 = vadd.f32 %v1709_v48, %v4067_v43 }
 0x25a   : > { %v2699_v56 = vmax.f32 %v2667_v35, 0.0  ;;  %v2321_v37 = vadd.f32 %v2257_v55, %v2046_v24 }
 0x25b   : > { %v2535_v32 = vpop.f32.mrf.mxu0 }
 0x25c   : > { %2731 = vst.msk [vmem:[%s4257_s23 + $0x78] sm:$0xff] %vm266_vm0, %v2699_v56  ;;  %v2596_v3 = vadd.f32 %v2532_v62, %v2321_v37 }
 0x25e   : > { %v2632_v22 = vmul.f32 %v4236_v27, %v2596_v3 }
 0x25f   : > { %v1985_v42 = vpop.f32.mrf.mxu2 }
 0x260   : > { %v2668_v58 = vadd.f32 %v4242_v5, %v2632_v22  ;;  %v2047_v49 = vadd.f32 %v1985_v42, %v1771_v31  ;;  %v2260_v1 = vpop.f32.mrf.mxu3  ;;  %v1712_v46 = vpop.f32.mrf.mxu1 }
 0x261   : > { %v1772_v12 = vadd.f32 %v1712_v46, %v4078_v38 }
 0x262   : > { %v2700_v57 = vmax.f32 %v2668_v58, 0.0  ;;  %v2322_v4 = vadd.f32 %v2260_v1, %v2047_v49 }
 0x263   : > { %v2538_v25 = vpop.f32.mrf.mxu0 }
 0x264   : > { %2732 = vst.msk [vmem:[%s4257_s23 + $0x80] sm:$0xff] %vm266_vm0, %v2700_v57  ;;  %v2597_v36 = vadd.f32 %v2535_v32, %v2322_v4 }
 0x266   : > { %v2633_v28 = vmul.f32 %v4236_v27, %v2597_v36 }
 0x267   : > { %v1988_v43 = vpop.f32.mrf.mxu2 }
 0x268   : > { %v2669_v14 = vadd.f32 %v4242_v5, %v2633_v28  ;;  %v2048_v30 = vadd.f32 %v1988_v43, %v1772_v12  ;;  %v2263_v45 = vpop.f32.mrf.mxu3  ;;  %v1715_v6 = vpop.f32.mrf.mxu1 }
 0x269   : > { %v1773_v39 = vadd.f32 %v1715_v6, %v4090_v53 }
 0x26a   : > { %v2701_v29 = vmax.f32 %v2669_v14, 0.0  ;;  %v2323_v17 = vadd.f32 %v2263_v45, %v2048_v30 }
 0x26b   : > { %v2541_v26 = vpop.f32.mrf.mxu0 }
 0x26c   : > { %2733 = vst.msk [vmem:[%s4257_s23 + $0x88] sm:$0xff] %vm266_vm0, %v2701_v29  ;;  %v2598_v44 = vadd.f32 %v2538_v25, %v2323_v17 }
 0x26e   : > { %v2634_v20 = vmul.f32 %v4236_v27, %v2598_v44 }
 0x26f   : > { %v1991_v38 = vpop.f32.mrf.mxu2 }
 0x270   : > { %v2670_v19 = vadd.f32 %v4242_v5, %v2634_v20  ;;  %v2049_v52 = vadd.f32 %v1991_v38, %v1773_v39  ;;  %v2266_v59 = vpop.f32.mrf.mxu3  ;;  %v1718_v23 = vpop.f32.mrf.mxu1 }
 0x271   : > { %v1774_v54 = vadd.f32 %v1718_v23, %v4101_v47 }
 0x272   : > { %v2702_v8 = vmax.f32 %v2670_v19, 0.0  ;;  %v2324_v16 = vadd.f32 %v2266_v59, %v2049_v52 }
 0x273   : > { %v2544_v0 = vpop.f32.mrf.mxu0 }
 0x274   : > { %2734 = vst.msk [vmem:[%s4257_s23 + $0x90] sm:$0xff] %vm266_vm0, %v2702_v8  ;;  %v2599_v9 = vadd.f32 %v2541_v26, %v2324_v16 }
 0x276   : > { %v2635_v34 = vmul.f32 %v4236_v27, %v2599_v9 }
 0x277   : > { %v1994_v53 = vpop.f32.mrf.mxu2 }
 0x278   : > { %v2671_v18 = vadd.f32 %v4242_v5, %v2635_v34  ;;  %v2050_v62 = vadd.f32 %v1994_v53, %v1774_v54  ;;  %v2269_v10 = vpop.f32.mrf.mxu3  ;;  %v1721_v13 = vpop.f32.mrf.mxu1 }
 0x279   : > { %v1775_v55 = vadd.f32 %v1721_v13, %v4112_v15 }
 0x27a   : > { %v2703_v61 = vmax.f32 %v2671_v18, 0.0  ;;  %v2325_v41 = vadd.f32 %v2269_v10, %v2050_v62 }
 0x27b   : > { %v2547_v35 = vpop.f32.mrf.mxu0 }
 0x27c   : > { %2735 = vst.msk [vmem:[%s4257_s23 + $0x98] sm:$0xff] %vm266_vm0, %v2703_v61  ;;  %v2600_v24 = vadd.f32 %v2544_v0, %v2325_v41 }
 0x27e   : > { %v2636_v48 = vmul.f32 %v4236_v27, %v2600_v24 }
 0x27f   : > { %v1997_v47 = vpop.f32.mrf.mxu2 }
 0x280   : > { %v2672_v56 = vadd.f32 %v4242_v5, %v2636_v48  ;;  %v2051_v37 = vadd.f32 %v1997_v47, %v1775_v55  ;;  %v2272_v32 = vpop.f32.mrf.mxu3  ;;  %v1724_v3 = vpop.f32.mrf.mxu1 }
 0x281   : > { %v1776_v49 = vadd.f32 %v1724_v3, %v4123_v40 }
 0x282   : > { %v2704_v31 = vmax.f32 %v2672_v56, 0.0  ;;  %v2326_v22 = vadd.f32 %v2272_v32, %v2051_v37 }
 0x283   : > { %v2550_v42 = vpop.f32.mrf.mxu0 }
 0x284   : > { %2736 = vst.msk [vmem:[%s4257_s23 + $0xa0] sm:$0xff] %vm266_vm0, %v2704_v31  ;;  %v2601_v58 = vadd.f32 %v2547_v35, %v2326_v22 }
 0x286   : > { %v2637_v1 = vmul.f32 %v4236_v27, %v2601_v58 }
 0x287   : > { %v2000_v15 = vpop.f32.mrf.mxu2 }
 0x288   : > { %v2673_v46 = vadd.f32 %v4242_v5, %v2637_v1  ;;  %v2052_v57 = vadd.f32 %v2000_v15, %v1776_v49  ;;  %v2275_v4 = vpop.f32.mrf.mxu3  ;;  %v1727_v25 = vpop.f32.mrf.mxu1 }
 0x289   : > { %v1777_v14 = vadd.f32 %v1727_v25, %v4134_v63 }
 0x28a   : > { %v2705_v36 = vmax.f32 %v2673_v46, 0.0  ;;  %v2327_v12 = vadd.f32 %v2275_v4, %v2052_v57 }
 0x28b   : > { %v2553_v28 = vpop.f32.mrf.mxu0 }
 0x28c   : > { %2737 = vst.msk [vmem:[%s4257_s23 + $0xa8] sm:$0xff] %vm266_vm0, %v2705_v36  ;;  %v2602_v43 = vadd.f32 %v2550_v42, %v2327_v12 }
 0x28e   : > { %v2638_v30 = vmul.f32 %v4236_v27, %v2602_v43 }
 0x28f   : > { %v2003_v40 = vpop.f32.mrf.mxu2 }
 0x290   : > { %v2674_v45 = vadd.f32 %v4242_v5, %v2638_v30  ;;  %v2053_v6 = vadd.f32 %v2003_v40, %v1777_v14  ;;  %v2278_v29 = vpop.f32.mrf.mxu3  ;;  %v1730_v17 = vpop.f32.mrf.mxu1 }
 0x291   : > { %v1778_v38 = vadd.f32 %v1730_v17, %v4145_v51 }
 0x292   : > { %v2706_v26 = vmax.f32 %v2674_v45, 0.0  ;;  %v2328_v44 = vadd.f32 %v2278_v29, %v2053_v6 }
 0x293   : > { %v2556_v39 = vpop.f32.mrf.mxu0 }
 0x294   : > { %2738 = vst.msk [vmem:[%s4257_s23 + $0xb0] sm:$0xff] %vm266_vm0, %v2706_v26  ;;  %v2603_v20 = vadd.f32 %v2553_v28, %v2328_v44 }
 0x296   : > { %v2639_v19 = vmul.f32 %v4236_v27, %v2603_v20 }
 0x297   : > { %v2006_v63 = vpop.f32.mrf.mxu2 }
 0x298   : > { %v2675_v52 = vadd.f32 %v4242_v5, %v2639_v19  ;;  %v2054_v59 = vadd.f32 %v2006_v63, %v1778_v38  ;;  %v2281_v23 = vpop.f32.mrf.mxu3  ;;  %v1733_v8 = vpop.f32.mrf.mxu1 }
 0x299   : > { %v1779_v34 = vadd.f32 %v1733_v8, %v4156_v33 }
 0x29a   : > { %v2707_v16 = vmax.f32 %v2675_v52, 0.0  ;;  %v2329_v0 = vadd.f32 %v2281_v23, %v2054_v59 }
 0x29b   : > { %v2559_v9 = vpop.f32.mrf.mxu0 }
 0x29c   : > { %2739 = vst.msk [vmem:[%s4257_s23 + $0xb8] sm:$0xff] %vm266_vm0, %v2707_v16  ;;  %v2604_v54 = vadd.f32 %v2556_v39, %v2329_v0 }
 0x29e   : > { %v2640_v53 = vmul.f32 %v4236_v27, %v2604_v54 }
 0x29f   : > { %v2009_v51 = vpop.f32.mrf.mxu2 }
 0x2a0   : > { %v2676_v18 = vadd.f32 %v4242_v5, %v2640_v53  ;;  %v2055_v62 = vadd.f32 %v2009_v51, %v1779_v34  ;;  %v2284_v10 = vpop.f32.mrf.mxu3  ;;  %v1736_v13 = vpop.f32.mrf.mxu1 }
 0x2a1   : > { %v1780_v55 = vadd.f32 %v1736_v13, %v4167_v50 }
 0x2a2   : > { %v2708_v61 = vmax.f32 %v2676_v18, 0.0  ;;  %v2330_v41 = vadd.f32 %v2284_v10, %v2055_v62 }
 0x2a3   : > { %v2562_v35 = vpop.f32.mrf.mxu0 }
 0x2a4   : > { %2740 = vst.msk [vmem:[%s4257_s23 + $0xc0] sm:$0xff] %vm266_vm0, %v2708_v61  ;;  %v2605_v24 = vadd.f32 %v2559_v9, %v2330_v41 }
 0x2a6   : > { %v2641_v48 = vmul.f32 %v4236_v27, %v2605_v24 }
 0x2a7   : > { %v2012_v33 = vpop.f32.mrf.mxu2 }
 0x2a8   : > { %v2677_v47 = vadd.f32 %v4242_v5, %v2641_v48  ;;  %v2056_v56 = vadd.f32 %v2012_v33, %v1780_v55  ;;  %v2287_v37 = vpop.f32.mrf.mxu3  ;;  %v1739_v32 = vpop.f32.mrf.mxu1 }
 0x2a9   : > { %v1781_v58 = vadd.f32 %v1739_v32, %v4178_v60 }
 0x2aa   : > { %v2709_v3 = vmax.f32 %v2677_v47, 0.0  ;;  %v2331_v31 = vadd.f32 %v2287_v37, %v2056_v56 }
 0x2ab   : > { %v2565_v22 = vpop.f32.mrf.mxu0 }
 0x2ac   : > { %2741 = vst.msk [vmem:[%s4257_s23 + $0xc8] sm:$0xff] %vm266_vm0, %v2709_v3  ;;  %v2606_v42 = vadd.f32 %v2562_v35, %v2331_v31 }
 0x2ae   : > { %v2642_v49 = vmul.f32 %v4236_v27, %v2606_v42 }
 0x2af   : > { %v2015_v50 = vpop.f32.mrf.mxu2 }
 0x2b0   : > { %v2678_v1 = vadd.f32 %v4242_v5, %v2642_v49  ;;  %v2057_v15 = vadd.f32 %v2015_v50, %v1781_v58  ;;  %v2290_v46 = vpop.f32.mrf.mxu3  ;;  %v1742_v57 = vpop.f32.mrf.mxu1 }
 0x2b1   : > { %v1782_v28 = vadd.f32 %v1742_v57, %v4189_v7 }
 0x2b2   : > { %v2710_v4 = vmax.f32 %v2678_v1, 0.0  ;;  %v2332_v25 = vadd.f32 %v2290_v46, %v2057_v15 }
 0x2b3   : > { %v2568_v36 = vpop.f32.mrf.mxu0 }
 0x2b4   : > { %2742 = vst.msk [vmem:[%s4257_s23 + $0xd0] sm:$0xff] %vm266_vm0, %v2710_v4  ;;  %v2607_v12 = vadd.f32 %v2565_v22, %v2332_v25 }
 0x2b6   : > { %v2643_v43 = vmul.f32 %v4236_v27, %v2607_v12 }
 0x2b7   : > { %v2018_v60 = vpop.f32.mrf.mxu2 }
 0x2b8   : > { %v2679_v14 = vadd.f32 %v4242_v5, %v2643_v43  ;;  %v2058_v30 = vadd.f32 %v2018_v60, %v1782_v28  ;;  %v2293_v40 = vpop.f32.mrf.mxu3  ;;  %v1745_v45 = vpop.f32.mrf.mxu1 }
 0x2b9   : > { %v1783_v44 = vadd.f32 %v1745_v45, %v4200_v11 }
 0x2ba   : > { %v2711_v6 = vmax.f32 %v2679_v14, 0.0  ;;  %v2333_v29 = vadd.f32 %v2293_v40, %v2058_v30 }
 0x2bb   : > { %v2571_v26 = vpop.f32.mrf.mxu0 }
 0x2bc   : > { %2743 = vst.msk [vmem:[%s4257_s23 + $0xd8] sm:$0xff] %vm266_vm0, %v2711_v6  ;;  %v2608_v17 = vadd.f32 %v2568_v36, %v2333_v29 }
 0x2be   : > { %v2644_v39 = vmul.f32 %v4236_v27, %v2608_v17 }
 0x2bf   : > { %v2021_v7 = vpop.f32.mrf.mxu2 }
 0x2c0   : > { %v2680_v20 = vadd.f32 %v4242_v5, %v2644_v39  ;;  %v2059_v38 = vadd.f32 %v2021_v7, %v1783_v44  ;;  %v2296_v19 = vpop.f32.mrf.mxu3  ;;  %v1748_v63 = vpop.f32.mrf.mxu1 }
 0x2c1   : > { %v1784_v8 = vadd.f32 %v1748_v63, %v4211_v21 }
 0x2c2   : > { %v2712_v52 = vmax.f32 %v2680_v20, 0.0  ;;  %v2334_v59 = vadd.f32 %v2296_v19, %v2059_v38 }
 0x2c3   : > { %v2574_v11 = vpop.f32.mrf.mxu0 }
 0x2c4   : > { %2744 = vst.msk [vmem:[%s4257_s23 + $0xe0] sm:$0xff] %vm266_vm0, %v2712_v52  ;;  %v2609_v23 = vadd.f32 %v2571_v26, %v2334_v59 }
 0x2c6   : > { %v2645_v16 = vmul.f32 %v4236_v27, %v2609_v23 }
 0x2c7   : > { %v2024_v0 = vpop.f32.mrf.mxu2 }
 0x2c8   : > { %v2681_v9 = vadd.f32 %v4242_v5, %v2645_v16  ;;  %v2060_v54 = vadd.f32 %v2024_v0, %v1784_v8  ;;  %v2299_v34 = vpop.f32.mrf.mxu3  ;;  %v1751_v18 = vpop.f32.mrf.mxu1 }
 0x2c9   : > { %v1785_v10 = vadd.f32 %v1751_v18, %v4223_v2 }
 0x2ca   : > { %v2713_v53 = vmax.f32 %v2681_v9, 0.0  ;;  %v2335_v51 = vadd.f32 %v2299_v34, %v2060_v54 }
 0x2cb   : > { %v2577_v24 = vpop.f32.mrf.mxu0 }
 0x2cc   : > { %2745 = vst.msk [vmem:[%s4257_s23 + $0xe8] sm:$0xff] %vm266_vm0, %v2713_v53  ;;  %v2610_v62 = vadd.f32 %v2574_v11, %v2335_v51 }
 0x2ce   : > { %v2646_v21 = vmul.f32 %v4236_v27, %v2610_v62 }
 0x2cf   : > { %v2027_v13 = vpop.f32.mrf.mxu2 }
 0x2d0   : > { %v2682_v61 = vadd.f32 %v4242_v5, %v2646_v21  ;;  %v2061_v41 = vadd.f32 %v2027_v13, %v1785_v10  ;;  %v2302_v35 = vpop.f32.mrf.mxu3 }
 0x2d2   : > { %v2714_v55 = vmax.f32 %v2682_v61, 0.0  ;;  %v2336_v48 = vadd.f32 %v2302_v35, %v2061_v41 }
 0x2d4   : > { %2746 = vst.msk [vmem:[%s4257_s23 + $0xf0] sm:$0xff] %vm266_vm0, %v2714_v55  ;;  %v2611_v33 = vadd.f32 %v2577_v24, %v2336_v48 }
 0x2d6   : > { %v2647_v47 = vmul.f32 %v4236_v27, %v2611_v33 }
 0x2d8   : > { %v2683_v56 = vadd.f32 %v4242_v5, %v2647_v47 }
 0x2da   : > { %v2715_v37 = vmax.f32 %v2683_v56, 0.0 }
 0x2dc   : > { %2747 = vst.msk [vmem:[%s4257_s23 + $0xf8] sm:$0xff] %vm266_vm0, %v2715_v37 }
 0x2dd PF: > { %s14_s15 = sadd.s32 1, %s3322_s15  }
 0x2de   : > { %p11_p5 = scmp.ge.s32.totalorder %s14_s15, 4  }
 0x2e0   :  { %13 = sbr.rel (!%p11_p5) target bundleno = 1 (0x1), region = 76 }

</bundles_post_ra>
